<compile_context>
chip_gen: v7x
topology: tpu7x:2x2x1
jax: 0.10.0
libtpu: 0.0.40
codegen_flags: <defaults>
</compile_context>

<pallas_src>
import functools
import numpy as np
import jax
import jax.numpy as jnp
from jax import lax
from jax.experimental import pallas as pl
from jax.experimental.pallas import tpu as pltpu


def _round_up(x, m):
    return (x + m - 1) // m * m


def _pick_tile(s, pref=128):
    for t in (pref, pref // 2, 64, 32, 16, 8):
        if t <= s and s % t == 0:
            return t
    return s  # block == full dim is always legal


# ----------------------------------------------------------------------------
# Tiled linear:  y = x @ W + b   (bf16 operands, f32 accumulation)
# ----------------------------------------------------------------------------
def _linear_kernel(x_ref, w_ref, b_ref, o_ref, acc_ref):
    @pl.when(pl.program_id(2) == 0)
    def _():
        acc_ref[...] = jnp.zeros_like(acc_ref)

    acc_ref[...] += jnp.dot(
        x_ref[...], w_ref[...], preferred_element_type=jnp.float32
    )

    @pl.when(pl.program_id(2) == pl.num_programs(2) - 1)
    def _():
        o_ref[...] = acc_ref[...] + b_ref[...]


def pallas_linear(x2d, w, b):
    M, K = x2d.shape
    K2, N = w.shape
    assert K == K2
    tm = min(256, _round_up(M, 8))
    tn = min(256, _round_up(N, 128))
    tk = min(512, _round_up(K, 128))
    Mp, Np, Kp = _round_up(M, tm), _round_up(N, tn), _round_up(K, tk)

    x_p = jnp.zeros((Mp, Kp), jnp.bfloat16).at[:M, :K].set(x2d.astype(jnp.bfloat16))
    w_p = jnp.zeros((Kp, Np), jnp.bfloat16).at[:K, :N].set(w.astype(jnp.bfloat16))
    b_p = jnp.zeros((1, Np), jnp.float32).at[:, :N].set(
        b.astype(jnp.float32)[None, :]
    )

    out = pl.pallas_call(
        _linear_kernel,
        out_shape=jax.ShapeDtypeStruct((Mp, Np), jnp.float32),
        grid=(Mp // tm, Np // tn, Kp // tk),
        in_specs=[
            pl.BlockSpec((tm, tk), lambda i, j, k: (i, k)),
            pl.BlockSpec((tk, tn), lambda i, j, k: (k, j)),
            pl.BlockSpec((1, tn), lambda i, j, k: (0, j)),
        ],
        out_specs=pl.BlockSpec((tm, tn), lambda i, j, k: (i, j)),
        scratch_shapes=[pltpu.VMEM((tm, tn), jnp.float32)],
        compiler_params=pltpu.CompilerParams(
            dimension_semantics=("parallel", "parallel", "arbitrary"),
            vmem_limit_bytes=48 * 1024 * 1024,
        ),
    )(x_p, w_p, b_p)
    return out[:M, :N]


# ----------------------------------------------------------------------------
# RoPE helpers (interleaved pairs): out = x*cos + rotate_half(x)*sin
# rotate_half(x)[..., 2i] = -x[..., 2i+1], rotate_half(x)[..., 2i+1] = x[..., 2i]
# implemented with XLU lane rolls + an even/odd select (no MXU matmul).
# ----------------------------------------------------------------------------
def _rotate_pairs(x):
    n = x.shape[1]
    left = pltpu.roll(x, n - 1, axis=1)   # left[:, j]  = x[:, j+1]
    right = pltpu.roll(x, 1, axis=1)      # right[:, j] = x[:, j-1]
    lane = lax.broadcasted_iota(jnp.int32, x.shape, 1)
    return jnp.where(lane % 2 == 0, -left, right)


def _rope(x, cos, sin):
    return x * cos + _rotate_pairs(x) * sin


# ----------------------------------------------------------------------------
# Flash-style fused-KV attention kernel.
#   grid = (batch, q_block, kv_block); kv axis is the reduction ("arbitrary").
#   At kv==0 the (tiny) cam keys/values are attended as the first fused-KV block
#   and the running (m, l, acc) statistics are initialised from it; every step
#   then folds in one img KV block with the online-softmax merge.
#   Heads are packed along the last dim (C = H*hd) -> lane-dense I/O.
# ----------------------------------------------------------------------------
def _flash_attn_kernel(*refs, num_heads, head_dim, masked):
    if masked:
        (q_ref, ki_ref, vi_ref, kc_ref, vc_ref,
         cos_q_ref, sin_q_ref, cos_k_ref, sin_k_ref, cos_c_ref, sin_c_ref,
         mask_c_ref, mask_i_ref,
         o_ref, q_scr, m_scr, l_scr, acc_scr) = refs
    else:
        (q_ref, ki_ref, vi_ref, kc_ref, vc_ref,
         cos_q_ref, sin_q_ref, cos_k_ref, sin_k_ref, cos_c_ref, sin_c_ref,
         o_ref, q_scr, m_scr, l_scr, acc_scr) = refs
        mask_c_ref = mask_i_ref = None

    kv = pl.program_id(2)
    H, hd = num_heads, head_dim
    scale = 1.0 / (hd ** 0.5)
    dn = (((1,), (1,)), ((), ()))  # contract last dims (q @ k^T without transpose)

    @pl.when(kv == 0)
    def _init():
        # RoPE + scale on the query block, once per (b, q_block); keep bf16 copy.
        q_rot = (
            _rope(q_ref[0, :, :], cos_q_ref[...], sin_q_ref[...]) * scale
        ).astype(jnp.bfloat16)
        q_scr[...] = q_rot
        # camera keys/values = first block of the fused KV sequence.
        kc = _rope(kc_ref[0, :, :], cos_c_ref[...], sin_c_ref[...]).astype(
            jnp.bfloat16
        )
        vc = vc_ref[0, :, :].astype(jnp.bfloat16)
        for h in range(H):
            sl = slice(h * hd, (h + 1) * hd)
            s = lax.dot_general(
                q_rot[:, sl], kc[:, sl], dimension_numbers=dn,
                preferred_element_type=jnp.float32,
            )
            if masked:
                s = s + mask_c_ref[...]
            m0 = jnp.max(s, axis=-1, keepdims=True)
            p = jnp.exp(s - m0)
            m_scr[h] = m0
            l_scr[h] = jnp.sum(p, axis=-1, keepdims=True)
            acc_scr[:, sl] = jnp.dot(
                p.astype(jnp.bfloat16), vc[:, sl],
                preferred_element_type=jnp.float32,
            )

    # current img KV block
    ki = _rope(ki_ref[0, :, :], cos_k_ref[...], sin_k_ref[...]).astype(jnp.bfloat16)
    vi = vi_ref[0, :, :].astype(jnp.bfloat16)
    q_all = q_scr[...]
    for h in range(H):
        sl = slice(h * hd, (h + 1) * hd)
        s = lax.dot_general(
            q_all[:, sl], ki[:, sl], dimension_numbers=dn,
            preferred_element_type=jnp.float32,
        )
        if masked:
            s = s + mask_i_ref[...]
        m_prev = m_scr[h]
        m_new = jnp.maximum(m_prev, jnp.max(s, axis=-1, keepdims=True))
        alpha = jnp.exp(m_prev - m_new)
        p = jnp.exp(s - m_new)
        l_scr[h] = alpha * l_scr[h] + jnp.sum(p, axis=-1, keepdims=True)
        acc_scr[:, sl] = alpha * acc_scr[:, sl] + jnp.dot(
            p.astype(jnp.bfloat16), vi[:, sl], preferred_element_type=jnp.float32
        )
        m_scr[h] = m_new

    @pl.when(kv == pl.num_programs(2) - 1)
    def _finalize():
        for h in range(H):
            sl = slice(h * hd, (h + 1) * hd)
            acc_scr[:, sl] = acc_scr[:, sl] * pl.reciprocal(
                l_scr[h], approx=True
            )
        o_ref[0, :, :] = acc_scr[...].astype(o_ref.dtype)


def pallas_dual_attention(qkv_img, qkv_cam, cos_img_t, sin_img_t,
                          cos_cam_t, sin_cam_t, mask_cc, mask_ci, num_heads):
    B, TN, C3 = qkv_img.shape
    C = C3 // 3
    hd = C // num_heads
    T = qkv_cam.shape[1]
    assert C % 128 == 0, "packed head dim (C = H*hd) must be a multiple of 128"

    tq = _pick_tile(TN, 128)
    tk = _pick_tile(TN, 128)
    nQ, nKV = TN // tq, TN // tk
    vmem_limit = 48 * 1024 * 1024  # explicit, fits v7x's 64 MiB VMEM

    # ---------------- img queries (no mask) ----------------
    img_in_specs = [
        pl.BlockSpec((1, tq, C), lambda b, qi, kv: (b, qi, 0)),   # q (slot 0)
        pl.BlockSpec((1, tk, C), lambda b, qi, kv: (b, kv, 1)),   # k img (slot 1)
        pl.BlockSpec((1, tk, C), lambda b, qi, kv: (b, kv, 2)),   # v img (slot 2)
        pl.BlockSpec((1, T, C), lambda b, qi, kv: (b, 0, 1)),     # k cam
        pl.BlockSpec((1, T, C), lambda b, qi, kv: (b, 0, 2)),     # v cam
        pl.BlockSpec((tq, C), lambda b, qi, kv: (qi, 0)),         # cos q
        pl.BlockSpec((tq, C), lambda b, qi, kv: (qi, 0)),         # sin q
        pl.BlockSpec((tk, C), lambda b, qi, kv: (kv, 0)),         # cos k
        pl.BlockSpec((tk, C), lambda b, qi, kv: (kv, 0)),         # sin k
        pl.BlockSpec((T, C), lambda b, qi, kv: (0, 0)),           # cos cam
        pl.BlockSpec((T, C), lambda b, qi, kv: (0, 0)),           # sin cam
    ]
    x_img = pl.pallas_call(
        functools.partial(_flash_attn_kernel, num_heads=num_heads,
                          head_dim=hd, masked=False),
        out_shape=jax.ShapeDtypeStruct((B, TN, C), jnp.float32),
        grid=(B, nQ, nKV),
        in_specs=img_in_specs,
        out_specs=pl.BlockSpec((1, tq, C), lambda b, qi, kv: (b, qi, 0)),
        scratch_shapes=[
            pltpu.VMEM((tq, C), jnp.bfloat16),               # rotated+scaled q
            pltpu.VMEM((num_heads, tq, 1), jnp.float32),     # running max
            pltpu.VMEM((num_heads, tq, 1), jnp.float32),     # running sum
            pltpu.VMEM((tq, C), jnp.float32),                # output accumulator
        ],
        compiler_params=pltpu.CompilerParams(
            dimension_semantics=("parallel", "parallel", "arbitrary"),
            vmem_limit_bytes=vmem_limit,
        ),
    )(qkv_img, qkv_img, qkv_img, qkv_cam, qkv_cam,
      cos_img_t, sin_img_t, cos_img_t, sin_img_t, cos_cam_t, sin_cam_t)

    # ---------------- cam queries (camera-causal additive mask) ----------------
    cam_in_specs = [
        pl.BlockSpec((1, T, C), lambda b, qi, kv: (b, 0, 0)),     # q cam
        pl.BlockSpec((1, tk, C), lambda b, qi, kv: (b, kv, 1)),   # k img
        pl.BlockSpec((1, tk, C), lambda b, qi, kv: (b, kv, 2)),   # v img
        pl.BlockSpec((1, T, C), lambda b, qi, kv: (b, 0, 1)),     # k cam
        pl.BlockSpec((1, T, C), lambda b, qi, kv: (b, 0, 2)),     # v cam
        pl.BlockSpec((T, C), lambda b, qi, kv: (0, 0)),           # cos q (cam)
        pl.BlockSpec((T, C), lambda b, qi, kv: (0, 0)),           # sin q (cam)
        pl.BlockSpec((tk, C), lambda b, qi, kv: (kv, 0)),         # cos k (img)
        pl.BlockSpec((tk, C), lambda b, qi, kv: (kv, 0)),         # sin k (img)
        pl.BlockSpec((T, C), lambda b, qi, kv: (0, 0)),           # cos cam
        pl.BlockSpec((T, C), lambda b, qi, kv: (0, 0)),           # sin cam
        pl.BlockSpec((T, T), lambda b, qi, kv: (0, 0)),           # mask cam->cam
        pl.BlockSpec((T, tk), lambda b, qi, kv: (0, kv)),         # mask cam->img
    ]
    x_cam = pl.pallas_call(
        functools.partial(_flash_attn_kernel, num_heads=num_heads,
                          head_dim=hd, masked=True),
        out_shape=jax.ShapeDtypeStruct((B, T, C), jnp.float32),
        grid=(B, 1, nKV),
        in_specs=cam_in_specs,
        out_specs=pl.BlockSpec((1, T, C), lambda b, qi, kv: (b, 0, 0)),
        scratch_shapes=[
            pltpu.VMEM((T, C), jnp.bfloat16),
            pltpu.VMEM((num_heads, T, 1), jnp.float32),
            pltpu.VMEM((num_heads, T, 1), jnp.float32),
            pltpu.VMEM((T, C), jnp.float32),
        ],
        compiler_params=pltpu.CompilerParams(
            dimension_semantics=("parallel", "arbitrary", "arbitrary"),
            vmem_limit_bytes=vmem_limit,
        ),
    )(qkv_cam, qkv_img, qkv_img, qkv_cam, qkv_cam,
      cos_cam_t, sin_cam_t, cos_img_t, sin_img_t, cos_cam_t, sin_cam_t,
      mask_cc, mask_ci)

    return x_img, x_cam


# ----------------------------------------------------------------------------
# Full forward
# ----------------------------------------------------------------------------
def video_camera_attention_forward(img, cam, params, num_heads, mask_fused,
                                   freqs_cis_img, freqs_cis_cam):
    B, T, N, C = img.shape
    hd = C // num_heads
    TN = T * N

    w_qkv, b_qkv = params["w_qkv"], params["b_qkv"]
    w_proj, b_proj = params["w_proj"], params["b_proj"]

    # fused qkv linear over img + cam tokens (one weight read, one kernel)
    tokens = jnp.concatenate(
        [img.reshape(B * TN, C), cam.reshape(B * T, C)], axis=0
    )
    qkv_all = pallas_linear(tokens, w_qkv, b_qkv)
    qkv_img = qkv_all[: B * TN].reshape(B, TN, 3 * C)   # [q | k | v] per token
    qkv_cam = qkv_all[B * TN:].reshape(B, T, 3 * C)

    # tile RoPE tables across heads so they match the packed (.., C) layout
    cos_img, sin_img = freqs_cis_img   # (TN, hd)
    cos_cam, sin_cam = freqs_cis_cam   # (T, hd)
    cos_img_t = jnp.tile(cos_img, (1, num_heads))
    sin_img_t = jnp.tile(sin_img, (1, num_heads))
    cos_cam_t = jnp.tile(cos_cam, (1, num_heads))
    sin_cam_t = jnp.tile(sin_cam, (1, num_heads))

    # split the fused-key additive mask into (cam-key, img-key) parts
    mask_r = mask_fused.reshape(T, T, N + 1)
    mask_cc = mask_r[:, :, 0]                      # cam query -> cam keys (T, T)
    mask_ci = mask_r[:, :, 1:].reshape(T, TN)      # cam query -> img keys (T, TN)

    x_img, x_cam = pallas_dual_attention(
        qkv_img, qkv_cam, cos_img_t, sin_img_t, cos_cam_t, sin_cam_t,
        mask_cc, mask_ci, num_heads,
    )

    # TODO(synk): fuse the output projection into the attention finalize step to
    # avoid the x_img HBM round-trip when C is small enough to keep W_proj in VMEM.
    xcat = jnp.concatenate(
        [x_img.reshape(B * TN, C), x_cam.reshape(B * T, C)], axis=0
    )
    out = pallas_linear(xcat, w_proj, b_proj)
    img_out = out[: B * TN].reshape(B, T, N, C)
    cam_out = out[B * TN:].reshape(B, T, C)
    return img_out, cam_out


# ----------------------------------------------------------------------------
# Pure-JAX reference (mirrors the PyTorch forward) for validation
# ----------------------------------------------------------------------------
def _apply_rope_ref(x, cos, sin):
    x2 = x.reshape(*x.shape[:-1], -1, 2)
    xr, xi = x2[..., 0], x2[..., 1]
    rot = jnp.stack([-xi, xr], axis=-1).reshape(x.shape)
    return x * cos + rot * sin


def reference_forward(img, cam, params, num_heads, mask_fused, fci, fcc):
    B, T, N, C = img.shape
    hd = C // num_heads
    TN = T * N
    w_qkv, b_qkv = params["w_qkv"], params["b_qkv"]
    w_proj, b_proj = params["w_proj"], params["b_proj"]

    qkv_i = (img.reshape(B, TN, C) @ w_qkv + b_qkv).reshape(
        B, TN, 3, num_heads, hd
    ).transpose(0, 3, 2, 1, 4)
    q_i, k_i, v_i = qkv_i[:, :, 0], qkv_i[:, :, 1], qkv_i[:, :, 2]
    q_i = _apply_rope_ref(q_i, *fci)
    k_i = _apply_rope_ref(k_i, *fci)

    qkv_c = (cam @ w_qkv + b_qkv).reshape(B, T, 3, num_heads, hd).transpose(
        0, 3, 2, 1, 4
    )
    q_c, k_c, v_c = qkv_c[:, :, 0], qkv_c[:, :, 1], qkv_c[:, :, 2]
    q_c = _apply_rope_ref(q_c, *fcc)
    k_c = _apply_rope_ref(k_c, *fcc)

    k_i5 = k_i.reshape(B, num_heads, T, N, hd)
    v_i5 = v_i.reshape(B, num_heads, T, N, hd)
    k_f = jnp.concatenate([k_c[:, :, :, None, :], k_i5], axis=3).reshape(
        B, num_heads, T * (N + 1), hd
    )
    v_f = jnp.concatenate([v_c[:, :, :, None, :], v_i5], axis=3).reshape(
        B, num_heads, T * (N + 1), hd
    )

    scale = hd ** -0.5

    def sdpa(q, k, v, mask=None):
        s = jnp.einsum("bhqd,bhkd->bhqk", q, k) * scale
        if mask is not None:
            s = s + mask
        return jnp.einsum("bhqk,bhkd->bhqd", jax.nn.softmax(s, axis=-1), v)

    x_i = sdpa(q_i, k_f, v_f).transpose(0, 2, 1, 3).reshape(B, T, N, C)
    x_c = sdpa(q_c, k_f, v_f, mask_fused).transpose(0, 2, 1, 3).reshape(B, T, C)
    return x_i @ w_proj + b_proj, x_c @ w_proj + b_proj


def build_freqs(S, hd):
    pos = jnp.arange(S, dtype=jnp.float32)
    inv_freq = 1.0 / (10000.0 ** (jnp.arange(0, hd, 2, dtype=jnp.float32) / hd))
    ang = pos[:, None] * inv_freq[None, :]          # (S, hd//2)
    cos = jnp.repeat(jnp.cos(ang), 2, axis=-1)      # interleaved pairs
    sin = jnp.repeat(jnp.sin(ang), 2, axis=-1)
    return cos, sin


if __name__ == "__main__":
    # small but TPU-friendly shapes: hd = 128 keeps every store lane-dense,
    # TN = 256 exercises >1 query block and >1 KV block of the flash loop.
    B, T, N, C, num_heads = 2, 4, 64, 256, 2
    hd = C // num_heads
    TN = T * N

    key = jax.random.PRNGKey(0)
    k1, k2, k3, k4, k5 = jax.random.split(key, 5)

    img = jax.random.normal(k1, (B, T, N, C), dtype=jnp.float32)
    cam = jax.random.normal(k2, (B, T, C), dtype=jnp.float32)

    params = {
        "w_qkv": jax.random.normal(k3, (C, 3 * C), dtype=jnp.float32) * 0.05,
        "b_qkv": jnp.zeros((3 * C,), dtype=jnp.float32),  # qkv_bias=False
        "w_proj": jax.random.normal(k4, (C, C), dtype=jnp.float32) * 0.05,
        "b_proj": jax.random.normal(k5, (C,), dtype=jnp.float32) * 0.02,
    }

    freqs_cis_img = build_freqs(TN, hd)
    freqs_cis_cam = build_freqs(T, hd)

    # camera-causal additive mask over the fused key sequence:
    # cam query at time t may attend to cam/img keys of time <= t.
    t_q = np.arange(T)
    t_k = np.repeat(np.arange(T), N + 1)
    mask_fused = jnp.asarray(
        np.where(t_k[None, :] <= t_q[:, None], 0.0, -1e9).astype(np.float32)
    )  # (T, T*(N+1)), broadcasts over (B, H)

    fwd = jax.jit(
        functools.partial(video_camera_attention_forward, num_heads=num_heads)
    )
    img_out, cam_out = fwd(
        img, cam, params, mask_fused=mask_fused,
        freqs_cis_img=freqs_cis_img, freqs_cis_cam=freqs_cis_cam,
    )
    jax.block_until_ready((img_out, cam_out))

    ref_img, ref_cam = reference_forward(
        img, cam, params, num_heads, mask_fused, freqs_cis_img, freqs_cis_cam
    )
    assert img_out.shape == (B, T, N, C) and cam_out.shape == (B, T, C)
    # bf16 MXU operands + approx reciprocal -> compare against the f32 reference
    # with a tolerance covering bf16 rounding.
    np.testing.assert_allclose(np.asarray(img_out), np.asarray(ref_img),
                               rtol=5e-2, atol=5e-2)
    np.testing.assert_allclose(np.asarray(cam_out), np.asarray(ref_cam),
                               rtol=5e-2, atol=5e-2)
    print("KERNEL_OK")
</pallas_src>

<mosaic_0001>
module attributes {stable_mosaic.version = 11 : i64} {
  func.func @_linear_kernel(%arg0: i32, %arg1: i32, %arg2: i32, %arg3: memref<256x256xbf16, #tpu.memory_space<vmem>>, %arg4: memref<256x256xbf16, #tpu.memory_space<vmem>>, %arg5: memref<1x256xf32, #tpu.memory_space<vmem>>, %arg6: memref<256x256xf32, #tpu.memory_space<vmem>>, %arg7: memref<256x256xf32, #tpu.memory_space<vmem>>) attributes {dimension_semantics = [#tpu.dimension_semantics<parallel>, #tpu.dimension_semantics<parallel>, #tpu.dimension_semantics<arbitrary>], iteration_bounds = array<i64: 3, 3, 1>, scalar_prefetch = 0 : i64, scratch_operands = 1 : i64, tpu.core_type = #tpu.core_type<tc>, window_params = [{transform_indices = @transform_0, window_bounds = array<i64: 256, 256>}, {transform_indices = @transform_1, window_bounds = array<i64: 256, 256>}, {transform_indices = @transform_2, window_bounds = array<i64: 1, 256>}, {transform_indices = @transform_3, window_bounds = array<i64: 256, 256>}]} {
    %c0_i32 = arith.constant 0 : i32
    %0 = arith.cmpi eq, %arg2, %c0_i32 : i32
    %1 = arith.extui %0 : i1 to i32
    %c0_i32_0 = arith.constant 0 : i32
    %2 = arith.cmpi ne, %1, %c0_i32_0 : i32
    scf.if %2 {
      %cst_10 = arith.constant 0.000000e+00 : f32
      %12 = vector.broadcast %cst_10 : f32 to vector<256x256xf32>
      %c0_11 = arith.constant 0 : index
      %c0_12 = arith.constant 0 : index
      %13 = vector.load %arg7[%c0_11, %c0_12] : memref<256x256xf32, #tpu.memory_space<vmem>>, vector<256x256xf32>
      tpu.vector_store %arg7[%c0_11, %c0_12], %12 {strides = array<i32>} : memref<256x256xf32, #tpu.memory_space<vmem>>, vector<256x256xf32>,
    } else {
    }
    %c0 = arith.constant 0 : index
    %c0_1 = arith.constant 0 : index
    %3 = vector.load %arg7[%c0, %c0_1] : memref<256x256xf32, #tpu.memory_space<vmem>>, vector<256x256xf32>
    %c0_2 = arith.constant 0 : index
    %c0_3 = arith.constant 0 : index
    %4 = vector.load %arg3[%c0_2, %c0_3] : memref<256x256xbf16, #tpu.memory_space<vmem>>, vector<256x256xbf16>
    %c0_4 = arith.constant 0 : index
    %c0_5 = arith.constant 0 : index
    %5 = vector.load %arg4[%c0_4, %c0_5] : memref<256x256xbf16, #tpu.memory_space<vmem>>, vector<256x256xbf16>
    %cst = arith.constant dense<0.000000e+00> : vector<256x256xf32>
    %6 = tpu.matmul %4, %5, %cst {dimension_numbers = #tpu.dot_dimension_numbers<[1], [0], [0], [1], [0, 0, 1, 1], [], []>} : vector<256x256xbf16>, vector<256x256xbf16>, vector<256x256xf32> -> vector<256x256xf32>
    %7 = arith.addf %3, %6 : vector<256x256xf32>
    %c0_6 = arith.constant 0 : index
    %c0_7 = arith.constant 0 : index
    %8 = vector.load %arg7[%c0_6, %c0_7] : memref<256x256xf32, #tpu.memory_space<vmem>>, vector<256x256xf32>
    tpu.vector_store %arg7[%c0_6, %c0_7], %7 {strides = array<i32>} : memref<256x256xf32, #tpu.memory_space<vmem>>, vector<256x256xf32>,
    %c0_i32_8 = arith.constant 0 : i32
    %9 = arith.cmpi eq, %arg2, %c0_i32_8 : i32
    %10 = arith.extui %9 : i1 to i32
    %c0_i32_9 = arith.constant 0 : i32
    %11 = arith.cmpi ne, %10, %c0_i32_9 : i32
    scf.if %11 {
      %c0_10 = arith.constant 0 : index
      %c0_11 = arith.constant 0 : index
      %12 = vector.load %arg7[%c0_10, %c0_11] : memref<256x256xf32, #tpu.memory_space<vmem>>, vector<256x256xf32>
      %c0_12 = arith.constant 0 : index
      %c0_13 = arith.constant 0 : index
      %13 = vector.load %arg5[%c0_12, %c0_13] : memref<1x256xf32, #tpu.memory_space<vmem>>, vector<1x256xf32>
      %14 = vector.broadcast %13 : vector<1x256xf32> to vector<256x256xf32>
      %15 = arith.addf %12, %14 : vector<256x256xf32>
      %c0_14 = arith.constant 0 : index
      %c0_15 = arith.constant 0 : index
      %16 = vector.load %arg6[%c0_14, %c0_15] : memref<256x256xf32, #tpu.memory_space<vmem>>, vector<256x256xf32>
      tpu.vector_store %arg6[%c0_14, %c0_15], %15 {strides = array<i32>} : memref<256x256xf32, #tpu.memory_space<vmem>>, vector<256x256xf32>,
    } else {
    }
    return
  }
  func.func @transform_0(%arg0: i32, %arg1: i32, %arg2: i32) -> (i32, i32) {
    %c0_i32 = arith.constant 0 : i32
    return %arg0, %arg2 : i32, i32
  }
  func.func @transform_1(%arg0: i32, %arg1: i32, %arg2: i32) -> (i32, i32) {
    %c0_i32 = arith.constant 0 : i32
    return %arg2, %arg1 : i32, i32
  }
  func.func @transform_2(%arg0: i32, %arg1: i32, %arg2: i32) -> (i32, i32) {
    %c0_i32 = arith.constant 0 : i32
    %c0_i32_0 = arith.constant 0 : i32
    return %c0_i32, %arg1 : i32, i32
  }
  func.func @transform_3(%arg0: i32, %arg1: i32, %arg2: i32) -> (i32, i32) {
    %c0_i32 = arith.constant 0 : i32
    return %arg0, %arg1 : i32, i32
  }
}

module attributes {stable_mosaic.version = 11 : i64} {
  func.func @_flash_attn_kernel(%arg0: i32, %arg1: i32, %arg2: i32, %arg3: memref<1x4x256xf32, #tpu.memory_space<vmem>>, %arg4: memref<1x128x256xf32, #tpu.memory_space<vmem>>, %arg5: memref<1x128x256xf32, #tpu.memory_space<vmem>>, %arg6: memref<1x4x256xf32, #tpu.memory_space<vmem>>, %arg7: memref<1x4x256xf32, #tpu.memory_space<vmem>>, %arg8: memref<4x256xf32, #tpu.memory_space<vmem>>, %arg9: memref<4x256xf32, #tpu.memory_space<vmem>>, %arg10: memref<128x256xf32, #tpu.memory_space<vmem>>, %arg11: memref<128x256xf32, #tpu.memory_space<vmem>>, %arg12: memref<4x256xf32, #tpu.memory_space<vmem>>, %arg13: memref<4x256xf32, #tpu.memory_space<vmem>>, %arg14: memref<4x4xf32, #tpu.memory_space<vmem>>, %arg15: memref<4x128xf32, #tpu.memory_space<vmem>>, %arg16: memref<1x4x256xf32, #tpu.memory_space<vmem>>, %arg17: memref<4x256xbf16, #tpu.memory_space<vmem>>, %arg18: memref<2x4x1xf32, #tpu.memory_space<vmem>>, %arg19: memref<2x4x1xf32, #tpu.memory_space<vmem>>, %arg20: memref<4x256xf32, #tpu.memory_space<vmem>>) attributes {dimension_semantics = [#tpu.dimension_semantics<parallel>, #tpu.dimension_semantics<arbitrary>, #tpu.dimension_semantics<arbitrary>], iteration_bounds = array<i64: 2, 1, 2>, scalar_prefetch = 0 : i64, scratch_operands = 4 : i64, tpu.core_type = #tpu.core_type<tc>, window_params = [{transform_indices = @transform_0, window_bounds = array<i64: 1, 4, 256>}, {transform_indices = @transform_1, window_bounds = array<i64: 1, 128, 256>}, {transform_indices = @transform_2, window_bounds = array<i64: 1, 128, 256>}, {transform_indices = @transform_3, window_bounds = array<i64: 1, 4, 256>}, {transform_indices = @transform_4, window_bounds = array<i64: 1, 4, 256>}, {pipeline_mode = #tpu.pipeline_mode<synchronous>, transform_indices = @transform_5, window_bounds = array<i64: 4, 256>}, {pipeline_mode = #tpu.pipeline_mode<synchronous>, transform_indices = @transform_6, window_bounds = array<i64: 4, 256>}, {transform_indices = @transform_7, window_bounds = array<i64: 128, 256>}, {transform_indices = @transform_8, window_bounds = array<i64: 128, 256>}, {pipeline_mode = #tpu.pipeline_mode<synchronous>, transform_indices = @transform_9, window_bounds = array<i64: 4, 256>}, {pipeline_mode = #tpu.pipeline_mode<synchronous>, transform_indices = @transform_10, window_bounds = array<i64: 4, 256>}, {pipeline_mode = #tpu.pipeline_mode<synchronous>, transform_indices = @transform_11, window_bounds = array<i64: 4, 4>}, {transform_indices = @transform_12, window_bounds = array<i64: 4, 128>}, {transform_indices = @transform_13, window_bounds = array<i64: 1, 4, 256>}]} {
    %c0_i32 = arith.constant 0 : i32
    %0 = arith.cmpi eq, %arg2, %c0_i32 : i32
    %1 = arith.extui %0 : i1 to i32
    %c0_i32_0 = arith.constant 0 : i32
    %2 = arith.cmpi ne, %1, %c0_i32_0 : i32
    scf.if %2 {
      %c0_62 = arith.constant 0 : index
      %c0_63 = arith.constant 0 : index
      %c0_64 = arith.constant 0 : index
      %112 = vector.load %arg3[%c0_62, %c0_63, %c0_64] : memref<1x4x256xf32, #tpu.memory_space<vmem>>, vector<1x4x256xf32>
      %113 = vector.shape_cast %112 : vector<1x4x256xf32> to vector<4x256xf32>
      %c0_65 = arith.constant 0 : index
      %c0_66 = arith.constant 0 : index
      %114 = vector.load %arg8[%c0_65, %c0_66] : memref<4x256xf32, #tpu.memory_space<vmem>>, vector<4x256xf32>
      %c0_67 = arith.constant 0 : index
      %c0_68 = arith.constant 0 : index
      %115 = vector.load %arg9[%c0_67, %c0_68] : memref<4x256xf32, #tpu.memory_space<vmem>>, vector<4x256xf32>
      %116 = arith.mulf %113, %114 : vector<4x256xf32>
      %c255_i32_69 = arith.constant 255 : i32
      %117 = tpu.dynamic_rotate %113 by %c255_i32_69 dim 1 : vector<4x256xf32>, i32 -> vector<4x256xf32>
      %c1_i32_70 = arith.constant 1 : i32
      %118 = tpu.dynamic_rotate %113 by %c1_i32_70 dim 1 : vector<4x256xf32>, i32 -> vector<4x256xf32>
      %119 = tpu.iota {dimensions = array<i32: 1>} : vector<4x256xi32>
      %c2_i32_71 = arith.constant 2 : i32
      %c0_i32_72 = arith.constant 0 : i32
      %120 = arith.cmpi eq, %c2_i32_71, %c0_i32_72 : i32
      %c1_i32_73 = arith.constant 1 : i32
      %121 = arith.select %120, %c1_i32_73, %c2_i32_71 : i32
      %122 = vector.broadcast %121 : i32 to vector<4x256xi32>
      %123 = arith.remsi %119, %122 : vector<4x256xi32>
      %c0_i32_74 = arith.constant 0 : i32
      %124 = vector.broadcast %c0_i32_74 : i32 to vector<4x256xi32>
      %125 = arith.cmpi ne, %123, %124 : vector<4x256xi32>
      %c0_i32_75 = arith.constant 0 : i32
      %126 = vector.broadcast %c0_i32_75 : i32 to vector<4x256xi32>
      %127 = arith.cmpi slt, %123, %126 : vector<4x256xi32>
      %c0_i32_76 = arith.constant 0 : i32
      %128 = arith.cmpi slt, %121, %c0_i32_76 : i32
      %129 = vector.broadcast %128 : i1 to vector<4x256xi1>
      %130 = vector.broadcast %129 : vector<4x256xi1> to vector<4x256xi1>
      %131 = arith.xori %127, %130 : vector<4x256xi1>
      %132 = arith.andi %131, %125 : vector<4x256xi1>
      %133 = vector.broadcast %121 : i32 to vector<4x256xi32>
      %134 = arith.addi %123, %133 : vector<4x256xi32>
      %135 = arith.select %132, %134, %123 : vector<4x256xi1>, vector<4x256xi32>
      %c0_i32_77 = arith.constant 0 : i32
      %136 = vector.broadcast %c0_i32_77 : i32 to vector<4x256xi32>
      %137 = arith.cmpi eq, %135, %136 : vector<4x256xi32>
      %cst_78 = arith.constant 0.000000e+00 : f32
      %138 = vector.broadcast %cst_78 : f32 to vector<4x256xf32>
      %139 = arith.subf %138, %117 : vector<4x256xf32>
      %140 = arith.select %137, %139, %118 : vector<4x256xi1>, vector<4x256xf32>
      %141 = arith.mulf %140, %115 : vector<4x256xf32>
      %142 = arith.addf %116, %141 : vector<4x256xf32>
      %cst_79 = arith.constant 0.0883883461 : f32
      %143 = vector.broadcast %cst_79 : f32 to vector<4x256xf32>
      %144 = arith.mulf %142, %143 : vector<4x256xf32>
      %145 = arith.truncf %144 : vector<4x256xf32> to vector<4x256xbf16>
      %c0_80 = arith.constant 0 : index
      %c0_81 = arith.constant 0 : index
      %146 = vector.load %arg17[%c0_80, %c0_81] : memref<4x256xbf16, #tpu.memory_space<vmem>>, vector<4x256xbf16>
      tpu.vector_store %arg17[%c0_80, %c0_81], %145 {strides = array<i32>} : memref<4x256xbf16, #tpu.memory_space<vmem>>, vector<4x256xbf16>,
      %c0_82 = arith.constant 0 : index
      %c0_83 = arith.constant 0 : index
      %c0_84 = arith.constant 0 : index
      %147 = vector.load %arg6[%c0_82, %c0_83, %c0_84] : memref<1x4x256xf32, #tpu.memory_space<vmem>>, vector<1x4x256xf32>
      %148 = vector.shape_cast %147 : vector<1x4x256xf32> to vector<4x256xf32>
      %c0_85 = arith.constant 0 : index
      %c0_86 = arith.constant 0 : index
      %149 = vector.load %arg12[%c0_85, %c0_86] : memref<4x256xf32, #tpu.memory_space<vmem>>, vector<4x256xf32>
      %c0_87 = arith.constant 0 : index
      %c0_88 = arith.constant 0 : index
      %150 = vector.load %arg13[%c0_87, %c0_88] : memref<4x256xf32, #tpu.memory_space<vmem>>, vector<4x256xf32>
      %151 = arith.mulf %148, %149 : vector<4x256xf32>
      %c255_i32_89 = arith.constant 255 : i32
      %152 = tpu.dynamic_rotate %148 by %c255_i32_89 dim 1 : vector<4x256xf32>, i32 -> vector<4x256xf32>
      %c1_i32_90 = arith.constant 1 : i32
      %153 = tpu.dynamic_rotate %148 by %c1_i32_90 dim 1 : vector<4x256xf32>, i32 -> vector<4x256xf32>
      %154 = tpu.iota {dimensions = array<i32: 1>} : vector<4x256xi32>
      %c2_i32_91 = arith.constant 2 : i32
      %c0_i32_92 = arith.constant 0 : i32
      %155 = arith.cmpi eq, %c2_i32_91, %c0_i32_92 : i32
      %c1_i32_93 = arith.constant 1 : i32
      %156 = arith.select %155, %c1_i32_93, %c2_i32_91 : i32
      %157 = vector.broadcast %156 : i32 to vector<4x256xi32>
      %158 = arith.remsi %154, %157 : vector<4x256xi32>
      %c0_i32_94 = arith.constant 0 : i32
      %159 = vector.broadcast %c0_i32_94 : i32 to vector<4x256xi32>
      %160 = arith.cmpi ne, %158, %159 : vector<4x256xi32>
      %c0_i32_95 = arith.constant 0 : i32
      %161 = vector.broadcast %c0_i32_95 : i32 to vector<4x256xi32>
      %162 = arith.cmpi slt, %158, %161 : vector<4x256xi32>
      %c0_i32_96 = arith.constant 0 : i32
      %163 = arith.cmpi slt, %156, %c0_i32_96 : i32
      %164 = vector.broadcast %163 : i1 to vector<4x256xi1>
      %165 = vector.broadcast %164 : vector<4x256xi1> to vector<4x256xi1>
      %166 = arith.xori %162, %165 : vector<4x256xi1>
      %167 = arith.andi %166, %160 : vector<4x256xi1>
      %168 = vector.broadcast %156 : i32 to vector<4x256xi32>
      %169 = arith.addi %158, %168 : vector<4x256xi32>
      %170 = arith.select %167, %169, %158 : vector<4x256xi1>, vector<4x256xi32>
      %c0_i32_97 = arith.constant 0 : i32
      %171 = vector.broadcast %c0_i32_97 : i32 to vector<4x256xi32>
      %172 = arith.cmpi eq, %170, %171 : vector<4x256xi32>
      %cst_98 = arith.constant 0.000000e+00 : f32
      %173 = vector.broadcast %cst_98 : f32 to vector<4x256xf32>
      %174 = arith.subf %173, %152 : vector<4x256xf32>
      %175 = arith.select %172, %174, %153 : vector<4x256xi1>, vector<4x256xf32>
      %176 = arith.mulf %175, %150 : vector<4x256xf32>
      %177 = arith.addf %151, %176 : vector<4x256xf32>
      %178 = arith.truncf %177 : vector<4x256xf32> to vector<4x256xbf16>
      %c0_99 = arith.constant 0 : index
      %c0_100 = arith.constant 0 : index
      %c0_101 = arith.constant 0 : index
      %179 = vector.load %arg7[%c0_99, %c0_100, %c0_101] : memref<1x4x256xf32, #tpu.memory_space<vmem>>, vector<1x4x256xf32>
      %180 = vector.shape_cast %179 : vector<1x4x256xf32> to vector<4x256xf32>
      %181 = arith.truncf %180 : vector<4x256xf32> to vector<4x256xbf16>
      %182 = vector.extract_strided_slice %145 {offsets = [0, 0], sizes = [4, 128], strides = [1, 1]} : vector<4x256xbf16> to vector<4x128xbf16>
      %183 = vector.extract_strided_slice %178 {offsets = [0, 0], sizes = [4, 128], strides = [1, 1]} : vector<4x256xbf16> to vector<4x128xbf16>
      %cst_102 = arith.constant dense<0.000000e+00> : vector<4x4xf32>
      %184 = tpu.matmul %182, %183, %cst_102 {dimension_numbers = #tpu.dot_dimension_numbers<[1], [1], [0], [0], [0, 0, 1, 0], [], []>} : vector<4x128xbf16>, vector<4x128xbf16>, vector<4x4xf32> -> vector<4x4xf32>
      %c0_103 = arith.constant 0 : index
      %c0_104 = arith.constant 0 : index
      %185 = vector.load %arg14[%c0_103, %c0_104] : memref<4x4xf32, #tpu.memory_space<vmem>>, vector<4x4xf32>
      %186 = arith.addf %184, %185 : vector<4x4xf32>
      %cst_105 = arith.constant dense<0xFF800000> : vector<4xf32>
      %187 = vector.multi_reduction <maximumf>, %186, %cst_105 [1] : vector<4x4xf32> to vector<4xf32>
      %188 = vector.shape_cast %187 : vector<4xf32> to vector<4x1xf32>
      %189 = vector.broadcast %188 : vector<4x1xf32> to vector<4x4xf32>
      %190 = arith.subf %186, %189 : vector<4x4xf32>
      %191 = math.exp %190 : vector<4x4xf32>
      %c0_106 = arith.constant 0 : index
      %c0_107 = arith.constant 0 : index
      %c0_108 = arith.constant 0 : index
      %192 = vector.load %arg18[%c0_106, %c0_107, %c0_108] : memref<2x4x1xf32, #tpu.memory_space<vmem>>, vector<1x4x1xf32>
      %193 = vector.shape_cast %192 : vector<1x4x1xf32> to vector<4x1xf32>
      %194 = vector.shape_cast %188 : vector<4x1xf32> to vector<1x4x1xf32>
      tpu.vector_store %arg18[%c0_106, %c0_107, %c0_108], %194 {strides = array<i32>} : memref<2x4x1xf32, #tpu.memory_space<vmem>>, vector<1x4x1xf32>,
      %cst_109 = arith.constant dense<0.000000e+00> : vector<4xf32>
      %195 = vector.multi_reduction <add>, %191, %cst_109 [1] : vector<4x4xf32> to vector<4xf32>
      %196 = vector.shape_cast %195 : vector<4xf32> to vector<4x1xf32>
      %c0_110 = arith.constant 0 : index
      %c0_111 = arith.constant 0 : index
      %c0_112 = arith.constant 0 : index
      %197 = vector.load %arg19[%c0_110, %c0_111, %c0_112] : memref<2x4x1xf32, #tpu.memory_space<vmem>>, vector<1x4x1xf32>
      %198 = vector.shape_cast %197 : vector<1x4x1xf32> to vector<4x1xf32>
      %199 = vector.shape_cast %196 : vector<4x1xf32> to vector<1x4x1xf32>
      tpu.vector_store %arg19[%c0_110, %c0_111, %c0_112], %199 {strides = array<i32>} : memref<2x4x1xf32, #tpu.memory_space<vmem>>, vector<1x4x1xf32>,
      %200 = arith.truncf %191 : vector<4x4xf32> to vector<4x4xbf16>
      %201 = vector.extract_strided_slice %181 {offsets = [0, 0], sizes = [4, 128], strides = [1, 1]} : vector<4x256xbf16> to vector<4x128xbf16>
      %cst_113 = arith.constant dense<0.000000e+00> : vector<4x128xf32>
      %202 = tpu.matmul %200, %201, %cst_113 {dimension_numbers = #tpu.dot_dimension_numbers<[1], [0], [0], [1], [0, 0, 1, 1], [], []>} : vector<4x4xbf16>, vector<4x128xbf16>, vector<4x128xf32> -> vector<4x128xf32>
      %c0_114 = arith.constant 0 : index
      %c0_115 = arith.constant 0 : index
      %203 = vector.load %arg20[%c0_114, %c0_115] : memref<4x256xf32, #tpu.memory_space<vmem>>, vector<4x128xf32>
      tpu.vector_store %arg20[%c0_114, %c0_115], %202 {strides = array<i32>} : memref<4x256xf32, #tpu.memory_space<vmem>>, vector<4x128xf32>,
      %204 = vector.extract_strided_slice %145 {offsets = [0, 128], sizes = [4, 128], strides = [1, 1]} : vector<4x256xbf16> to vector<4x128xbf16>
      %205 = vector.extract_strided_slice %178 {offsets = [0, 128], sizes = [4, 128], strides = [1, 1]} : vector<4x256xbf16> to vector<4x128xbf16>
      %cst_116 = arith.constant dense<0.000000e+00> : vector<4x4xf32>
      %206 = tpu.matmul %204, %205, %cst_116 {dimension_numbers = #tpu.dot_dimension_numbers<[1], [1], [0], [0], [0, 0, 1, 0], [], []>} : vector<4x128xbf16>, vector<4x128xbf16>, vector<4x4xf32> -> vector<4x4xf32>
      %c0_117 = arith.constant 0 : index
      %c0_118 = arith.constant 0 : index
      %207 = vector.load %arg14[%c0_117, %c0_118] : memref<4x4xf32, #tpu.memory_space<vmem>>, vector<4x4xf32>
      %208 = arith.addf %206, %207 : vector<4x4xf32>
      %cst_119 = arith.constant dense<0xFF800000> : vector<4xf32>
      %209 = vector.multi_reduction <maximumf>, %208, %cst_119 [1] : vector<4x4xf32> to vector<4xf32>
      %210 = vector.shape_cast %209 : vector<4xf32> to vector<4x1xf32>
      %211 = vector.broadcast %210 : vector<4x1xf32> to vector<4x4xf32>
      %212 = arith.subf %208, %211 : vector<4x4xf32>
      %213 = math.exp %212 : vector<4x4xf32>
      %c1_120 = arith.constant 1 : index
      %c0_121 = arith.constant 0 : index
      %c0_122 = arith.constant 0 : index
      %214 = vector.load %arg18[%c1_120, %c0_121, %c0_122] : memref<2x4x1xf32, #tpu.memory_space<vmem>>, vector<1x4x1xf32>
      %215 = vector.shape_cast %214 : vector<1x4x1xf32> to vector<4x1xf32>
      %216 = vector.shape_cast %210 : vector<4x1xf32> to vector<1x4x1xf32>
      tpu.vector_store %arg18[%c1_120, %c0_121, %c0_122], %216 {strides = array<i32>} : memref<2x4x1xf32, #tpu.memory_space<vmem>>, vector<1x4x1xf32>,
      %cst_123 = arith.constant dense<0.000000e+00> : vector<4xf32>
      %217 = vector.multi_reduction <add>, %213, %cst_123 [1] : vector<4x4xf32> to vector<4xf32>
      %218 = vector.shape_cast %217 : vector<4xf32> to vector<4x1xf32>
      %c1_124 = arith.constant 1 : index
      %c0_125 = arith.constant 0 : index
      %c0_126 = arith.constant 0 : index
      %219 = vector.load %arg19[%c1_124, %c0_125, %c0_126] : memref<2x4x1xf32, #tpu.memory_space<vmem>>, vector<1x4x1xf32>
      %220 = vector.shape_cast %219 : vector<1x4x1xf32> to vector<4x1xf32>
      %221 = vector.shape_cast %218 : vector<4x1xf32> to vector<1x4x1xf32>
      tpu.vector_store %arg19[%c1_124, %c0_125, %c0_126], %221 {strides = array<i32>} : memref<2x4x1xf32, #tpu.memory_space<vmem>>, vector<1x4x1xf32>,
      %222 = arith.truncf %213 : vector<4x4xf32> to vector<4x4xbf16>
      %223 = vector.extract_strided_slice %181 {offsets = [0, 128], sizes = [4, 128], strides = [1, 1]} : vector<4x256xbf16> to vector<4x128xbf16>
      %cst_127 = arith.constant dense<0.000000e+00> : vector<4x128xf32>
      %224 = tpu.matmul %222, %223, %cst_127 {dimension_numbers = #tpu.dot_dimension_numbers<[1], [0], [0], [1], [0, 0, 1, 1], [], []>} : vector<4x4xbf16>, vector<4x128xbf16>, vector<4x128xf32> -> vector<4x128xf32>
      %c0_128 = arith.constant 0 : index
      %c128_129 = arith.constant 128 : index
      %225 = vector.load %arg20[%c0_128, %c128_129] : memref<4x256xf32, #tpu.memory_space<vmem>>, vector<4x128xf32>
      tpu.vector_store %arg20[%c0_128, %c128_129], %224 {strides = array<i32>} : memref<4x256xf32, #tpu.memory_space<vmem>>, vector<4x128xf32>,
    } else {
    }
    %c0 = arith.constant 0 : index
    %c0_1 = arith.constant 0 : index
    %c0_2 = arith.constant 0 : index
    %3 = vector.load %arg4[%c0, %c0_1, %c0_2] : memref<1x128x256xf32, #tpu.memory_space<vmem>>, vector<1x128x256xf32>
    %4 = vector.shape_cast %3 : vector<1x128x256xf32> to vector<128x256xf32>
    %c0_3 = arith.constant 0 : index
    %c0_4 = arith.constant 0 : index
    %5 = vector.load %arg10[%c0_3, %c0_4] : memref<128x256xf32, #tpu.memory_space<vmem>>, vector<128x256xf32>
    %c0_5 = arith.constant 0 : index
    %c0_6 = arith.constant 0 : index
    %6 = vector.load %arg11[%c0_5, %c0_6] : memref<128x256xf32, #tpu.memory_space<vmem>>, vector<128x256xf32>
    %7 = arith.mulf %4, %5 : vector<128x256xf32>
    %c255_i32 = arith.constant 255 : i32
    %8 = tpu.dynamic_rotate %4 by %c255_i32 dim 1 : vector<128x256xf32>, i32 -> vector<128x256xf32>
    %c1_i32 = arith.constant 1 : i32
    %9 = tpu.dynamic_rotate %4 by %c1_i32 dim 1 : vector<128x256xf32>, i32 -> vector<128x256xf32>
    %10 = tpu.iota {dimensions = array<i32: 1>} : vector<128x256xi32>
    %c2_i32 = arith.constant 2 : i32
    %c0_i32_7 = arith.constant 0 : i32
    %11 = arith.cmpi eq, %c2_i32, %c0_i32_7 : i32
    %c1_i32_8 = arith.constant 1 : i32
    %12 = arith.select %11, %c1_i32_8, %c2_i32 : i32
    %13 = vector.broadcast %12 : i32 to vector<128x256xi32>
    %14 = arith.remsi %10, %13 : vector<128x256xi32>
    %c0_i32_9 = arith.constant 0 : i32
    %15 = vector.broadcast %c0_i32_9 : i32 to vector<128x256xi32>
    %16 = arith.cmpi ne, %14, %15 : vector<128x256xi32>
    %c0_i32_10 = arith.constant 0 : i32
    %17 = vector.broadcast %c0_i32_10 : i32 to vector<128x256xi32>
    %18 = arith.cmpi slt, %14, %17 : vector<128x256xi32>
    %c0_i32_11 = arith.constant 0 : i32
    %19 = arith.cmpi slt, %12, %c0_i32_11 : i32
    %20 = vector.broadcast %19 : i1 to vector<128x256xi1>
    %21 = vector.broadcast %20 : vector<128x256xi1> to vector<128x256xi1>
    %22 = arith.xori %18, %21 : vector<128x256xi1>
    %23 = arith.andi %22, %16 : vector<128x256xi1>
    %24 = vector.broadcast %12 : i32 to vector<128x256xi32>
    %25 = arith.addi %14, %24 : vector<128x256xi32>
    %26 = arith.select %23, %25, %14 : vector<128x256xi1>, vector<128x256xi32>
    %c0_i32_12 = arith.constant 0 : i32
    %27 = vector.broadcast %c0_i32_12 : i32 to vector<128x256xi32>
    %28 = arith.cmpi eq, %26, %27 : vector<128x256xi32>
    %cst = arith.constant 0.000000e+00 : f32
    %29 = vector.broadcast %cst : f32 to vector<128x256xf32>
    %30 = arith.subf %29, %8 : vector<128x256xf32>
    %31 = arith.select %28, %30, %9 : vector<128x256xi1>, vector<128x256xf32>
    %32 = arith.mulf %31, %6 : vector<128x256xf32>
    %33 = arith.addf %7, %32 : vector<128x256xf32>
    %34 = arith.truncf %33 : vector<128x256xf32> to vector<128x256xbf16>
    %c0_13 = arith.constant 0 : index
    %c0_14 = arith.constant 0 : index
    %c0_15 = arith.constant 0 : index
    %35 = vector.load %arg5[%c0_13, %c0_14, %c0_15] : memref<1x128x256xf32, #tpu.memory_space<vmem>>, vector<1x128x256xf32>
    %36 = vector.shape_cast %35 : vector<1x128x256xf32> to vector<128x256xf32>
    %37 = arith.truncf %36 : vector<128x256xf32> to vector<128x256xbf16>
    %c0_16 = arith.constant 0 : index
    %c0_17 = arith.constant 0 : index
    %38 = vector.load %arg17[%c0_16, %c0_17] : memref<4x256xbf16, #tpu.memory_space<vmem>>, vector<4x256xbf16>
    %39 = vector.extract_strided_slice %38 {offsets = [0, 0], sizes = [4, 128], strides = [1, 1]} : vector<4x256xbf16> to vector<4x128xbf16>
    %40 = vector.extract_strided_slice %34 {offsets = [0, 0], sizes = [128, 128], strides = [1, 1]} : vector<128x256xbf16> to vector<128x128xbf16>
    %cst_18 = arith.constant dense<0.000000e+00> : vector<4x128xf32>
    %41 = tpu.matmul %39, %40, %cst_18 {dimension_numbers = #tpu.dot_dimension_numbers<[1], [1], [0], [0], [0, 0, 1, 0], [], []>} : vector<4x128xbf16>, vector<128x128xbf16>, vector<4x128xf32> -> vector<4x128xf32>
    %c0_19 = arith.constant 0 : index
    %c0_20 = arith.constant 0 : index
    %42 = vector.load %arg15[%c0_19, %c0_20] : memref<4x128xf32, #tpu.memory_space<vmem>>, vector<4x128xf32>
    %43 = arith.addf %41, %42 : vector<4x128xf32>
    %c0_21 = arith.constant 0 : index
    %c0_22 = arith.constant 0 : index
    %c0_23 = arith.constant 0 : index
    %44 = vector.load %arg18[%c0_21, %c0_22, %c0_23] : memref<2x4x1xf32, #tpu.memory_space<vmem>>, vector<1x4x1xf32>
    %45 = vector.shape_cast %44 : vector<1x4x1xf32> to vector<4x1xf32>
    %cst_24 = arith.constant dense<0xFF800000> : vector<4xf32>
    %46 = vector.multi_reduction <maximumf>, %43, %cst_24 [1] : vector<4x128xf32> to vector<4xf32>
    %47 = vector.shape_cast %46 : vector<4xf32> to vector<4x1xf32>
    %48 = arith.maximumf %45, %47 : vector<4x1xf32>
    %49 = arith.subf %45, %48 : vector<4x1xf32>
    %50 = math.exp %49 : vector<4x1xf32>
    %51 = vector.broadcast %48 : vector<4x1xf32> to vector<4x128xf32>
    %52 = arith.subf %43, %51 : vector<4x128xf32>
    %53 = math.exp %52 : vector<4x128xf32>
    %c0_25 = arith.constant 0 : index
    %c0_26 = arith.constant 0 : index
    %c0_27 = arith.constant 0 : index
    %54 = vector.load %arg19[%c0_25, %c0_26, %c0_27] : memref<2x4x1xf32, #tpu.memory_space<vmem>>, vector<1x4x1xf32>
    %55 = vector.shape_cast %54 : vector<1x4x1xf32> to vector<4x1xf32>
    %56 = arith.mulf %50, %55 : vector<4x1xf32>
    %cst_28 = arith.constant dense<0.000000e+00> : vector<4xf32>
    %57 = vector.multi_reduction <add>, %53, %cst_28 [1] : vector<4x128xf32> to vector<4xf32>
    %58 = vector.shape_cast %57 : vector<4xf32> to vector<4x1xf32>
    %59 = arith.addf %56, %58 : vector<4x1xf32>
    %c0_29 = arith.constant 0 : index
    %c0_30 = arith.constant 0 : index
    %c0_31 = arith.constant 0 : index
    %60 = vector.load %arg19[%c0_29, %c0_30, %c0_31] : memref<2x4x1xf32, #tpu.memory_space<vmem>>, vector<1x4x1xf32>
    %61 = vector.shape_cast %60 : vector<1x4x1xf32> to vector<4x1xf32>
    %62 = vector.shape_cast %59 : vector<4x1xf32> to vector<1x4x1xf32>
    tpu.vector_store %arg19[%c0_29, %c0_30, %c0_31], %62 {strides = array<i32>} : memref<2x4x1xf32, #tpu.memory_space<vmem>>, vector<1x4x1xf32>,
    %c0_32 = arith.constant 0 : index
    %c0_33 = arith.constant 0 : index
    %63 = vector.load %arg20[%c0_32, %c0_33] : memref<4x256xf32, #tpu.memory_space<vmem>>, vector<4x128xf32>
    %64 = vector.broadcast %50 : vector<4x1xf32> to vector<4x128xf32>
    %65 = arith.mulf %64, %63 : vector<4x128xf32>
    %66 = arith.truncf %53 : vector<4x128xf32> to vector<4x128xbf16>
    %67 = vector.extract_strided_slice %37 {offsets = [0, 0], sizes = [128, 128], strides = [1, 1]} : vector<128x256xbf16> to vector<128x128xbf16>
    %cst_34 = arith.constant dense<0.000000e+00> : vector<4x128xf32>
    %68 = tpu.matmul %66, %67, %cst_34 {dimension_numbers = #tpu.dot_dimension_numbers<[1], [0], [0], [1], [0, 0, 1, 1], [], []>} : vector<4x128xbf16>, vector<128x128xbf16>, vector<4x128xf32> -> vector<4x128xf32>
    %69 = arith.addf %65, %68 : vector<4x128xf32>
    %c0_35 = arith.constant 0 : index
    %c0_36 = arith.constant 0 : index
    %70 = vector.load %arg20[%c0_35, %c0_36] : memref<4x256xf32, #tpu.memory_space<vmem>>, vector<4x128xf32>
    tpu.vector_store %arg20[%c0_35, %c0_36], %69 {strides = array<i32>} : memref<4x256xf32, #tpu.memory_space<vmem>>, vector<4x128xf32>,
    %c0_37 = arith.constant 0 : index
    %c0_38 = arith.constant 0 : index
    %c0_39 = arith.constant 0 : index
    %71 = vector.load %arg18[%c0_37, %c0_38, %c0_39] : memref<2x4x1xf32, #tpu.memory_space<vmem>>, vector<1x4x1xf32>
    %72 = vector.shape_cast %71 : vector<1x4x1xf32> to vector<4x1xf32>
    %73 = vector.shape_cast %48 : vector<4x1xf32> to vector<1x4x1xf32>
    tpu.vector_store %arg18[%c0_37, %c0_38, %c0_39], %73 {strides = array<i32>} : memref<2x4x1xf32, #tpu.memory_space<vmem>>, vector<1x4x1xf32>,
    %74 = vector.extract_strided_slice %38 {offsets = [0, 128], sizes = [4, 128], strides = [1, 1]} : vector<4x256xbf16> to vector<4x128xbf16>
    %75 = vector.extract_strided_slice %34 {offsets = [0, 128], sizes = [128, 128], strides = [1, 1]} : vector<128x256xbf16> to vector<128x128xbf16>
    %cst_40 = arith.constant dense<0.000000e+00> : vector<4x128xf32>
    %76 = tpu.matmul %74, %75, %cst_40 {dimension_numbers = #tpu.dot_dimension_numbers<[1], [1], [0], [0], [0, 0, 1, 0], [], []>} : vector<4x128xbf16>, vector<128x128xbf16>, vector<4x128xf32> -> vector<4x128xf32>
    %c0_41 = arith.constant 0 : index
    %c0_42 = arith.constant 0 : index
    %77 = vector.load %arg15[%c0_41, %c0_42] : memref<4x128xf32, #tpu.memory_space<vmem>>, vector<4x128xf32>
    %78 = arith.addf %76, %77 : vector<4x128xf32>
    %c1 = arith.constant 1 : index
    %c0_43 = arith.constant 0 : index
    %c0_44 = arith.constant 0 : index
    %79 = vector.load %arg18[%c1, %c0_43, %c0_44] : memref<2x4x1xf32, #tpu.memory_space<vmem>>, vector<1x4x1xf32>
    %80 = vector.shape_cast %79 : vector<1x4x1xf32> to vector<4x1xf32>
    %cst_45 = arith.constant dense<0xFF800000> : vector<4xf32>
    %81 = vector.multi_reduction <maximumf>, %78, %cst_45 [1] : vector<4x128xf32> to vector<4xf32>
    %82 = vector.shape_cast %81 : vector<4xf32> to vector<4x1xf32>
    %83 = arith.maximumf %80, %82 : vector<4x1xf32>
    %84 = arith.subf %80, %83 : vector<4x1xf32>
    %85 = math.exp %84 : vector<4x1xf32>
    %86 = vector.broadcast %83 : vector<4x1xf32> to vector<4x128xf32>
    %87 = arith.subf %78, %86 : vector<4x128xf32>
    %88 = math.exp %87 : vector<4x128xf32>
    %c1_46 = arith.constant 1 : index
    %c0_47 = arith.constant 0 : index
    %c0_48 = arith.constant 0 : index
    %89 = vector.load %arg19[%c1_46, %c0_47, %c0_48] : memref<2x4x1xf32, #tpu.memory_space<vmem>>, vector<1x4x1xf32>
    %90 = vector.shape_cast %89 : vector<1x4x1xf32> to vector<4x1xf32>
    %91 = arith.mulf %85, %90 : vector<4x1xf32>
    %cst_49 = arith.constant dense<0.000000e+00> : vector<4xf32>
    %92 = vector.multi_reduction <add>, %88, %cst_49 [1] : vector<4x128xf32> to vector<4xf32>
    %93 = vector.shape_cast %92 : vector<4xf32> to vector<4x1xf32>
    %94 = arith.addf %91, %93 : vector<4x1xf32>
    %c1_50 = arith.constant 1 : index
    %c0_51 = arith.constant 0 : index
    %c0_52 = arith.constant 0 : index
    %95 = vector.load %arg19[%c1_50, %c0_51, %c0_52] : memref<2x4x1xf32, #tpu.memory_space<vmem>>, vector<1x4x1xf32>
    %96 = vector.shape_cast %95 : vector<1x4x1xf32> to vector<4x1xf32>
    %97 = vector.shape_cast %94 : vector<4x1xf32> to vector<1x4x1xf32>
    tpu.vector_store %arg19[%c1_50, %c0_51, %c0_52], %97 {strides = array<i32>} : memref<2x4x1xf32, #tpu.memory_space<vmem>>, vector<1x4x1xf32>,
    %c0_53 = arith.constant 0 : index
    %c128 = arith.constant 128 : index
    %98 = vector.load %arg20[%c0_53, %c128] : memref<4x256xf32, #tpu.memory_space<vmem>>, vector<4x128xf32>
    %99 = vector.broadcast %85 : vector<4x1xf32> to vector<4x128xf32>
    %100 = arith.mulf %99, %98 : vector<4x128xf32>
    %101 = arith.truncf %88 : vector<4x128xf32> to vector<4x128xbf16>
    %102 = vector.extract_strided_slice %37 {offsets = [0, 128], sizes = [128, 128], strides = [1, 1]} : vector<128x256xbf16> to vector<128x128xbf16>
    %cst_54 = arith.constant dense<0.000000e+00> : vector<4x128xf32>
    %103 = tpu.matmul %101, %102, %cst_54 {dimension_numbers = #tpu.dot_dimension_numbers<[1], [0], [0], [1], [0, 0, 1, 1], [], []>} : vector<4x128xbf16>, vector<128x128xbf16>, vector<4x128xf32> -> vector<4x128xf32>
    %104 = arith.addf %100, %103 : vector<4x128xf32>
    %c0_55 = arith.constant 0 : index
    %c128_56 = arith.constant 128 : index
    %105 = vector.load %arg20[%c0_55, %c128_56] : memref<4x256xf32, #tpu.memory_space<vmem>>, vector<4x128xf32>
    tpu.vector_store %arg20[%c0_55, %c128_56], %104 {strides = array<i32>} : memref<4x256xf32, #tpu.memory_space<vmem>>, vector<4x128xf32>,
    %c1_57 = arith.constant 1 : index
    %c0_58 = arith.constant 0 : index
    %c0_59 = arith.constant 0 : index
    %106 = vector.load %arg18[%c1_57, %c0_58, %c0_59] : memref<2x4x1xf32, #tpu.memory_space<vmem>>, vector<1x4x1xf32>
    %107 = vector.shape_cast %106 : vector<1x4x1xf32> to vector<4x1xf32>
    %108 = vector.shape_cast %83 : vector<4x1xf32> to vector<1x4x1xf32>
    tpu.vector_store %arg18[%c1_57, %c0_58, %c0_59], %108 {strides = array<i32>} : memref<2x4x1xf32, #tpu.memory_space<vmem>>, vector<1x4x1xf32>,
    %c1_i32_60 = arith.constant 1 : i32
    %109 = arith.cmpi eq, %arg2, %c1_i32_60 : i32
    %110 = arith.extui %109 : i1 to i32
    %c0_i32_61 = arith.constant 0 : i32
    %111 = arith.cmpi ne, %110, %c0_i32_61 : i32
    scf.if %111 {
      %c0_62 = arith.constant 0 : index
      %c0_63 = arith.constant 0 : index
      %112 = vector.load %arg20[%c0_62, %c0_63] : memref<4x256xf32, #tpu.memory_space<vmem>>, vector<4x128xf32>
      %c0_64 = arith.constant 0 : index
      %c0_65 = arith.constant 0 : index
      %c0_66 = arith.constant 0 : index
      %113 = vector.load %arg19[%c0_64, %c0_65, %c0_66] : memref<2x4x1xf32, #tpu.memory_space<vmem>>, vector<1x4x1xf32>
      %114 = vector.shape_cast %113 : vector<1x4x1xf32> to vector<4x1xf32>
      %115 = tpu.reciprocal %114 {approx = true} : vector<4x1xf32> -> vector<4x1xf32>
      %116 = vector.broadcast %115 : vector<4x1xf32> to vector<4x128xf32>
      %117 = arith.mulf %112, %116 : vector<4x128xf32>
      %c0_67 = arith.constant 0 : index
      %c0_68 = arith.constant 0 : index
      %118 = vector.load %arg20[%c0_67, %c0_68] : memref<4x256xf32, #tpu.memory_space<vmem>>, vector<4x128xf32>
      tpu.vector_store %arg20[%c0_67, %c0_68], %117 {strides = array<i32>} : memref<4x256xf32, #tpu.memory_space<vmem>>, vector<4x128xf32>,
      %c0_69 = arith.constant 0 : index
      %c128_70 = arith.constant 128 : index
      %119 = vector.load %arg20[%c0_69, %c128_70] : memref<4x256xf32, #tpu.memory_space<vmem>>, vector<4x128xf32>
      %c1_71 = arith.constant 1 : index
      %c0_72 = arith.constant 0 : index
      %c0_73 = arith.constant 0 : index
      %120 = vector.load %arg19[%c1_71, %c0_72, %c0_73] : memref<2x4x1xf32, #tpu.memory_space<vmem>>, vector<1x4x1xf32>
      %121 = vector.shape_cast %120 : vector<1x4x1xf32> to vector<4x1xf32>
      %122 = tpu.reciprocal %121 {approx = true} : vector<4x1xf32> -> vector<4x1xf32>
      %123 = vector.broadcast %122 : vector<4x1xf32> to vector<4x128xf32>
      %124 = arith.mulf %119, %123 : vector<4x128xf32>
      %c0_74 = arith.constant 0 : index
      %c128_75 = arith.constant 128 : index
      %125 = vector.load %arg20[%c0_74, %c128_75] : memref<4x256xf32, #tpu.memory_space<vmem>>, vector<4x128xf32>
      tpu.vector_store %arg20[%c0_74, %c128_75], %124 {strides = array<i32>} : memref<4x256xf32, #tpu.memory_space<vmem>>, vector<4x128xf32>,
      %c0_76 = arith.constant 0 : index
      %c0_77 = arith.constant 0 : index
      %126 = vector.load %arg20[%c0_76, %c0_77] : memref<4x256xf32, #tpu.memory_space<vmem>>, vector<4x256xf32>
      %c0_78 = arith.constant 0 : index
      %c0_79 = arith.constant 0 : index
      %c0_80 = arith.constant 0 : index
      %127 = vector.load %arg16[%c0_78, %c0_79, %c0_80] : memref<1x4x256xf32, #tpu.memory_space<vmem>>, vector<1x4x256xf32>
      %128 = vector.shape_cast %127 : vector<1x4x256xf32> to vector<4x256xf32>
      %129 = vector.shape_cast %126 : vector<4x256xf32> to vector<1x4x256xf32>
      tpu.vector_store %arg16[%c0_78, %c0_79, %c0_80], %129 {strides = array<i32>} : memref<1x4x256xf32, #tpu.memory_space<vmem>>, vector<1x4x256xf32>,
    } else {
    }
    return
  }
  func.func @transform_0(%arg0: i32, %arg1: i32, %arg2: i32) -> (i32, i32, i32) {
    %c0_i32 = arith.constant 0 : i32
    %c0_i32_0 = arith.constant 0 : i32
    %c0_i32_1 = arith.constant 0 : i32
    return %arg0, %c0_i32, %c0_i32_0 : i32, i32, i32
  }
  func.func @transform_1(%arg0: i32, %arg1: i32, %arg2: i32) -> (i32, i32, i32) {
    %c1_i32 = arith.constant 1 : i32
    %c0_i32 = arith.constant 0 : i32
    return %arg0, %arg2, %c1_i32 : i32, i32, i32
  }
  func.func @transform_2(%arg0: i32, %arg1: i32, %arg2: i32) -> (i32, i32, i32) {
    %c2_i32 = arith.constant 2 : i32
    %c0_i32 = arith.constant 0 : i32
    return %arg0, %arg2, %c2_i32 : i32, i32, i32
  }
  func.func @transform_3(%arg0: i32, %arg1: i32, %arg2: i32) -> (i32, i32, i32) {
    %c0_i32 = arith.constant 0 : i32
    %c1_i32 = arith.constant 1 : i32
    %c0_i32_0 = arith.constant 0 : i32
    return %arg0, %c0_i32, %c1_i32 : i32, i32, i32
  }
  func.func @transform_4(%arg0: i32, %arg1: i32, %arg2: i32) -> (i32, i32, i32) {
    %c0_i32 = arith.constant 0 : i32
    %c2_i32 = arith.constant 2 : i32
    %c0_i32_0 = arith.constant 0 : i32
    return %arg0, %c0_i32, %c2_i32 : i32, i32, i32
  }
  func.func @transform_5(%arg0: i32, %arg1: i32, %arg2: i32) -> (i32, i32) {
    %c0_i32 = arith.constant 0 : i32
    %c0_i32_0 = arith.constant 0 : i32
    %c0_i32_1 = arith.constant 0 : i32
    return %c0_i32, %c0_i32_0 : i32, i32
  }
  func.func @transform_6(%arg0: i32, %arg1: i32, %arg2: i32) -> (i32, i32) {
    %c0_i32 = arith.constant 0 : i32
    %c0_i32_0 = arith.constant 0 : i32
    %c0_i32_1 = arith.constant 0 : i32
    return %c0_i32, %c0_i32_0 : i32, i32
  }
  func.func @transform_7(%arg0: i32, %arg1: i32, %arg2: i32) -> (i32, i32) {
    %c0_i32 = arith.constant 0 : i32
    %c0_i32_0 = arith.constant 0 : i32
    return %arg2, %c0_i32 : i32, i32
  }
  func.func @transform_8(%arg0: i32, %arg1: i32, %arg2: i32) -> (i32, i32) {
    %c0_i32 = arith.constant 0 : i32
    %c0_i32_0 = arith.constant 0 : i32
    return %arg2, %c0_i32 : i32, i32
  }
  func.func @transform_9(%arg0: i32, %arg1: i32, %arg2: i32) -> (i32, i32) {
    %c0_i32 = arith.constant 0 : i32
    %c0_i32_0 = arith.constant 0 : i32
    %c0_i32_1 = arith.constant 0 : i32
    return %c0_i32, %c0_i32_0 : i32, i32
  }
  func.func @transform_10(%arg0: i32, %arg1: i32, %arg2: i32) -> (i32, i32) {
    %c0_i32 = arith.constant 0 : i32
    %c0_i32_0 = arith.constant 0 : i32
    %c0_i32_1 = arith.constant 0 : i32
    return %c0_i32, %c0_i32_0 : i32, i32
  }
  func.func @transform_11(%arg0: i32, %arg1: i32, %arg2: i32) -> (i32, i32) {
    %c0_i32 = arith.constant 0 : i32
    %c0_i32_0 = arith.constant 0 : i32
    %c0_i32_1 = arith.constant 0 : i32
    return %c0_i32, %c0_i32_0 : i32, i32
  }
  func.func @transform_12(%arg0: i32, %arg1: i32, %arg2: i32) -> (i32, i32) {
    %c0_i32 = arith.constant 0 : i32
    %c0_i32_0 = arith.constant 0 : i32
    return %c0_i32, %arg2 : i32, i32
  }
  func.func @transform_13(%arg0: i32, %arg1: i32, %arg2: i32) -> (i32, i32, i32) {
    %c0_i32 = arith.constant 0 : i32
    %c0_i32_0 = arith.constant 0 : i32
    %c0_i32_1 = arith.constant 0 : i32
    return %arg0, %c0_i32, %c0_i32_0 : i32, i32, i32
  }
}

module attributes {stable_mosaic.version = 11 : i64} {
  func.func @_flash_attn_kernel(%arg0: i32, %arg1: i32, %arg2: i32, %arg3: memref<1x128x256xf32, #tpu.memory_space<vmem>>, %arg4: memref<1x128x256xf32, #tpu.memory_space<vmem>>, %arg5: memref<1x128x256xf32, #tpu.memory_space<vmem>>, %arg6: memref<1x4x256xf32, #tpu.memory_space<vmem>>, %arg7: memref<1x4x256xf32, #tpu.memory_space<vmem>>, %arg8: memref<128x256xf32, #tpu.memory_space<vmem>>, %arg9: memref<128x256xf32, #tpu.memory_space<vmem>>, %arg10: memref<128x256xf32, #tpu.memory_space<vmem>>, %arg11: memref<128x256xf32, #tpu.memory_space<vmem>>, %arg12: memref<4x256xf32, #tpu.memory_space<vmem>>, %arg13: memref<4x256xf32, #tpu.memory_space<vmem>>, %arg14: memref<1x128x256xf32, #tpu.memory_space<vmem>>, %arg15: memref<128x256xbf16, #tpu.memory_space<vmem>>, %arg16: memref<2x128x1xf32, #tpu.memory_space<vmem>>, %arg17: memref<2x128x1xf32, #tpu.memory_space<vmem>>, %arg18: memref<128x256xf32, #tpu.memory_space<vmem>>) attributes {dimension_semantics = [#tpu.dimension_semantics<parallel>, #tpu.dimension_semantics<parallel>, #tpu.dimension_semantics<arbitrary>], iteration_bounds = array<i64: 2, 2, 2>, scalar_prefetch = 0 : i64, scratch_operands = 4 : i64, tpu.core_type = #tpu.core_type<tc>, window_params = [{transform_indices = @transform_0, window_bounds = array<i64: 1, 128, 256>}, {transform_indices = @transform_1, window_bounds = array<i64: 1, 128, 256>}, {transform_indices = @transform_2, window_bounds = array<i64: 1, 128, 256>}, {transform_indices = @transform_3, window_bounds = array<i64: 1, 4, 256>}, {transform_indices = @transform_4, window_bounds = array<i64: 1, 4, 256>}, {transform_indices = @transform_5, window_bounds = array<i64: 128, 256>}, {transform_indices = @transform_6, window_bounds = array<i64: 128, 256>}, {transform_indices = @transform_7, window_bounds = array<i64: 128, 256>}, {transform_indices = @transform_8, window_bounds = array<i64: 128, 256>}, {pipeline_mode = #tpu.pipeline_mode<synchronous>, transform_indices = @transform_9, window_bounds = array<i64: 4, 256>}, {pipeline_mode = #tpu.pipeline_mode<synchronous>, transform_indices = @transform_10, window_bounds = array<i64: 4, 256>}, {transform_indices = @transform_11, window_bounds = array<i64: 1, 128, 256>}]} {
    %c0_i32 = arith.constant 0 : i32
    %0 = arith.cmpi eq, %arg2, %c0_i32 : i32
    %1 = arith.extui %0 : i1 to i32
    %c0_i32_0 = arith.constant 0 : i32
    %2 = arith.cmpi ne, %1, %c0_i32_0 : i32
    scf.if %2 {
      %c0_58 = arith.constant 0 : index
      %c0_59 = arith.constant 0 : index
      %c0_60 = arith.constant 0 : index
      %108 = vector.load %arg3[%c0_58, %c0_59, %c0_60] : memref<1x128x256xf32, #tpu.memory_space<vmem>>, vector<1x128x256xf32>
      %109 = vector.shape_cast %108 : vector<1x128x256xf32> to vector<128x256xf32>
      %c0_61 = arith.constant 0 : index
      %c0_62 = arith.constant 0 : index
      %110 = vector.load %arg8[%c0_61, %c0_62] : memref<128x256xf32, #tpu.memory_space<vmem>>, vector<128x256xf32>
      %c0_63 = arith.constant 0 : index
      %c0_64 = arith.constant 0 : index
      %111 = vector.load %arg9[%c0_63, %c0_64] : memref<128x256xf32, #tpu.memory_space<vmem>>, vector<128x256xf32>
      %112 = arith.mulf %109, %110 : vector<128x256xf32>
      %c255_i32_65 = arith.constant 255 : i32
      %113 = tpu.dynamic_rotate %109 by %c255_i32_65 dim 1 : vector<128x256xf32>, i32 -> vector<128x256xf32>
      %c1_i32_66 = arith.constant 1 : i32
      %114 = tpu.dynamic_rotate %109 by %c1_i32_66 dim 1 : vector<128x256xf32>, i32 -> vector<128x256xf32>
      %115 = tpu.iota {dimensions = array<i32: 1>} : vector<128x256xi32>
      %c2_i32_67 = arith.constant 2 : i32
      %c0_i32_68 = arith.constant 0 : i32
      %116 = arith.cmpi eq, %c2_i32_67, %c0_i32_68 : i32
      %c1_i32_69 = arith.constant 1 : i32
      %117 = arith.select %116, %c1_i32_69, %c2_i32_67 : i32
      %118 = vector.broadcast %117 : i32 to vector<128x256xi32>
      %119 = arith.remsi %115, %118 : vector<128x256xi32>
      %c0_i32_70 = arith.constant 0 : i32
      %120 = vector.broadcast %c0_i32_70 : i32 to vector<128x256xi32>
      %121 = arith.cmpi ne, %119, %120 : vector<128x256xi32>
      %c0_i32_71 = arith.constant 0 : i32
      %122 = vector.broadcast %c0_i32_71 : i32 to vector<128x256xi32>
      %123 = arith.cmpi slt, %119, %122 : vector<128x256xi32>
      %c0_i32_72 = arith.constant 0 : i32
      %124 = arith.cmpi slt, %117, %c0_i32_72 : i32
      %125 = vector.broadcast %124 : i1 to vector<128x256xi1>
      %126 = vector.broadcast %125 : vector<128x256xi1> to vector<128x256xi1>
      %127 = arith.xori %123, %126 : vector<128x256xi1>
      %128 = arith.andi %127, %121 : vector<128x256xi1>
      %129 = vector.broadcast %117 : i32 to vector<128x256xi32>
      %130 = arith.addi %119, %129 : vector<128x256xi32>
      %131 = arith.select %128, %130, %119 : vector<128x256xi1>, vector<128x256xi32>
      %c0_i32_73 = arith.constant 0 : i32
      %132 = vector.broadcast %c0_i32_73 : i32 to vector<128x256xi32>
      %133 = arith.cmpi eq, %131, %132 : vector<128x256xi32>
      %cst_74 = arith.constant 0.000000e+00 : f32
      %134 = vector.broadcast %cst_74 : f32 to vector<128x256xf32>
      %135 = arith.subf %134, %113 : vector<128x256xf32>
      %136 = arith.select %133, %135, %114 : vector<128x256xi1>, vector<128x256xf32>
      %137 = arith.mulf %136, %111 : vector<128x256xf32>
      %138 = arith.addf %112, %137 : vector<128x256xf32>
      %cst_75 = arith.constant 0.0883883461 : f32
      %139 = vector.broadcast %cst_75 : f32 to vector<128x256xf32>
      %140 = arith.mulf %138, %139 : vector<128x256xf32>
      %141 = arith.truncf %140 : vector<128x256xf32> to vector<128x256xbf16>
      %c0_76 = arith.constant 0 : index
      %c0_77 = arith.constant 0 : index
      %142 = vector.load %arg15[%c0_76, %c0_77] : memref<128x256xbf16, #tpu.memory_space<vmem>>, vector<128x256xbf16>
      tpu.vector_store %arg15[%c0_76, %c0_77], %141 {strides = array<i32>} : memref<128x256xbf16, #tpu.memory_space<vmem>>, vector<128x256xbf16>,
      %c0_78 = arith.constant 0 : index
      %c0_79 = arith.constant 0 : index
      %c0_80 = arith.constant 0 : index
      %143 = vector.load %arg6[%c0_78, %c0_79, %c0_80] : memref<1x4x256xf32, #tpu.memory_space<vmem>>, vector<1x4x256xf32>
      %144 = vector.shape_cast %143 : vector<1x4x256xf32> to vector<4x256xf32>
      %c0_81 = arith.constant 0 : index
      %c0_82 = arith.constant 0 : index
      %145 = vector.load %arg12[%c0_81, %c0_82] : memref<4x256xf32, #tpu.memory_space<vmem>>, vector<4x256xf32>
      %c0_83 = arith.constant 0 : index
      %c0_84 = arith.constant 0 : index
      %146 = vector.load %arg13[%c0_83, %c0_84] : memref<4x256xf32, #tpu.memory_space<vmem>>, vector<4x256xf32>
      %147 = arith.mulf %144, %145 : vector<4x256xf32>
      %c255_i32_85 = arith.constant 255 : i32
      %148 = tpu.dynamic_rotate %144 by %c255_i32_85 dim 1 : vector<4x256xf32>, i32 -> vector<4x256xf32>
      %c1_i32_86 = arith.constant 1 : i32
      %149 = tpu.dynamic_rotate %144 by %c1_i32_86 dim 1 : vector<4x256xf32>, i32 -> vector<4x256xf32>
      %150 = tpu.iota {dimensions = array<i32: 1>} : vector<4x256xi32>
      %c2_i32_87 = arith.constant 2 : i32
      %c0_i32_88 = arith.constant 0 : i32
      %151 = arith.cmpi eq, %c2_i32_87, %c0_i32_88 : i32
      %c1_i32_89 = arith.constant 1 : i32
      %152 = arith.select %151, %c1_i32_89, %c2_i32_87 : i32
      %153 = vector.broadcast %152 : i32 to vector<4x256xi32>
      %154 = arith.remsi %150, %153 : vector<4x256xi32>
      %c0_i32_90 = arith.constant 0 : i32
      %155 = vector.broadcast %c0_i32_90 : i32 to vector<4x256xi32>
      %156 = arith.cmpi ne, %154, %155 : vector<4x256xi32>
      %c0_i32_91 = arith.constant 0 : i32
      %157 = vector.broadcast %c0_i32_91 : i32 to vector<4x256xi32>
      %158 = arith.cmpi slt, %154, %157 : vector<4x256xi32>
      %c0_i32_92 = arith.constant 0 : i32
      %159 = arith.cmpi slt, %152, %c0_i32_92 : i32
      %160 = vector.broadcast %159 : i1 to vector<4x256xi1>
      %161 = vector.broadcast %160 : vector<4x256xi1> to vector<4x256xi1>
      %162 = arith.xori %158, %161 : vector<4x256xi1>
      %163 = arith.andi %162, %156 : vector<4x256xi1>
      %164 = vector.broadcast %152 : i32 to vector<4x256xi32>
      %165 = arith.addi %154, %164 : vector<4x256xi32>
      %166 = arith.select %163, %165, %154 : vector<4x256xi1>, vector<4x256xi32>
      %c0_i32_93 = arith.constant 0 : i32
      %167 = vector.broadcast %c0_i32_93 : i32 to vector<4x256xi32>
      %168 = arith.cmpi eq, %166, %167 : vector<4x256xi32>
      %cst_94 = arith.constant 0.000000e+00 : f32
      %169 = vector.broadcast %cst_94 : f32 to vector<4x256xf32>
      %170 = arith.subf %169, %148 : vector<4x256xf32>
      %171 = arith.select %168, %170, %149 : vector<4x256xi1>, vector<4x256xf32>
      %172 = arith.mulf %171, %146 : vector<4x256xf32>
      %173 = arith.addf %147, %172 : vector<4x256xf32>
      %174 = arith.truncf %173 : vector<4x256xf32> to vector<4x256xbf16>
      %c0_95 = arith.constant 0 : index
      %c0_96 = arith.constant 0 : index
      %c0_97 = arith.constant 0 : index
      %175 = vector.load %arg7[%c0_95, %c0_96, %c0_97] : memref<1x4x256xf32, #tpu.memory_space<vmem>>, vector<1x4x256xf32>
      %176 = vector.shape_cast %175 : vector<1x4x256xf32> to vector<4x256xf32>
      %177 = arith.truncf %176 : vector<4x256xf32> to vector<4x256xbf16>
      %178 = vector.extract_strided_slice %141 {offsets = [0, 0], sizes = [128, 128], strides = [1, 1]} : vector<128x256xbf16> to vector<128x128xbf16>
      %179 = vector.extract_strided_slice %174 {offsets = [0, 0], sizes = [4, 128], strides = [1, 1]} : vector<4x256xbf16> to vector<4x128xbf16>
      %cst_98 = arith.constant dense<0.000000e+00> : vector<128x4xf32>
      %180 = tpu.matmul %178, %179, %cst_98 {dimension_numbers = #tpu.dot_dimension_numbers<[1], [1], [0], [0], [0, 0, 1, 0], [], []>} : vector<128x128xbf16>, vector<4x128xbf16>, vector<128x4xf32> -> vector<128x4xf32>
      %cst_99 = arith.constant dense<0xFF800000> : vector<128xf32>
      %181 = vector.multi_reduction <maximumf>, %180, %cst_99 [1] : vector<128x4xf32> to vector<128xf32>
      %182 = vector.shape_cast %181 : vector<128xf32> to vector<128x1xf32>
      %183 = vector.broadcast %182 : vector<128x1xf32> to vector<128x4xf32>
      %184 = arith.subf %180, %183 : vector<128x4xf32>
      %185 = math.exp %184 : vector<128x4xf32>
      %c0_100 = arith.constant 0 : index
      %c0_101 = arith.constant 0 : index
      %c0_102 = arith.constant 0 : index
      %186 = vector.load %arg16[%c0_100, %c0_101, %c0_102] : memref<2x128x1xf32, #tpu.memory_space<vmem>>, vector<1x128x1xf32>
      %187 = vector.shape_cast %186 : vector<1x128x1xf32> to vector<128x1xf32>
      %188 = vector.shape_cast %182 : vector<128x1xf32> to vector<1x128x1xf32>
      tpu.vector_store %arg16[%c0_100, %c0_101, %c0_102], %188 {strides = array<i32>} : memref<2x128x1xf32, #tpu.memory_space<vmem>>, vector<1x128x1xf32>,
      %cst_103 = arith.constant dense<0.000000e+00> : vector<128xf32>
      %189 = vector.multi_reduction <add>, %185, %cst_103 [1] : vector<128x4xf32> to vector<128xf32>
      %190 = vector.shape_cast %189 : vector<128xf32> to vector<128x1xf32>
      %c0_104 = arith.constant 0 : index
      %c0_105 = arith.constant 0 : index
      %c0_106 = arith.constant 0 : index
      %191 = vector.load %arg17[%c0_104, %c0_105, %c0_106] : memref<2x128x1xf32, #tpu.memory_space<vmem>>, vector<1x128x1xf32>
      %192 = vector.shape_cast %191 : vector<1x128x1xf32> to vector<128x1xf32>
      %193 = vector.shape_cast %190 : vector<128x1xf32> to vector<1x128x1xf32>
      tpu.vector_store %arg17[%c0_104, %c0_105, %c0_106], %193 {strides = array<i32>} : memref<2x128x1xf32, #tpu.memory_space<vmem>>, vector<1x128x1xf32>,
      %194 = arith.truncf %185 : vector<128x4xf32> to vector<128x4xbf16>
      %195 = vector.extract_strided_slice %177 {offsets = [0, 0], sizes = [4, 128], strides = [1, 1]} : vector<4x256xbf16> to vector<4x128xbf16>
      %cst_107 = arith.constant dense<0.000000e+00> : vector<128x128xf32>
      %196 = tpu.matmul %194, %195, %cst_107 {dimension_numbers = #tpu.dot_dimension_numbers<[1], [0], [0], [1], [0, 0, 1, 1], [], []>} : vector<128x4xbf16>, vector<4x128xbf16>, vector<128x128xf32> -> vector<128x128xf32>
      %c0_108 = arith.constant 0 : index
      %c0_109 = arith.constant 0 : index
      %197 = vector.load %arg18[%c0_108, %c0_109] : memref<128x256xf32, #tpu.memory_space<vmem>>, vector<128x128xf32>
      tpu.vector_store %arg18[%c0_108, %c0_109], %196 {strides = array<i32>} : memref<128x256xf32, #tpu.memory_space<vmem>>, vector<128x128xf32>,
      %198 = vector.extract_strided_slice %141 {offsets = [0, 128], sizes = [128, 128], strides = [1, 1]} : vector<128x256xbf16> to vector<128x128xbf16>
      %199 = vector.extract_strided_slice %174 {offsets = [0, 128], sizes = [4, 128], strides = [1, 1]} : vector<4x256xbf16> to vector<4x128xbf16>
      %cst_110 = arith.constant dense<0.000000e+00> : vector<128x4xf32>
      %200 = tpu.matmul %198, %199, %cst_110 {dimension_numbers = #tpu.dot_dimension_numbers<[1], [1], [0], [0], [0, 0, 1, 0], [], []>} : vector<128x128xbf16>, vector<4x128xbf16>, vector<128x4xf32> -> vector<128x4xf32>
      %cst_111 = arith.constant dense<0xFF800000> : vector<128xf32>
      %201 = vector.multi_reduction <maximumf>, %200, %cst_111 [1] : vector<128x4xf32> to vector<128xf32>
      %202 = vector.shape_cast %201 : vector<128xf32> to vector<128x1xf32>
      %203 = vector.broadcast %202 : vector<128x1xf32> to vector<128x4xf32>
      %204 = arith.subf %200, %203 : vector<128x4xf32>
      %205 = math.exp %204 : vector<128x4xf32>
      %c1_112 = arith.constant 1 : index
      %c0_113 = arith.constant 0 : index
      %c0_114 = arith.constant 0 : index
      %206 = vector.load %arg16[%c1_112, %c0_113, %c0_114] : memref<2x128x1xf32, #tpu.memory_space<vmem>>, vector<1x128x1xf32>
      %207 = vector.shape_cast %206 : vector<1x128x1xf32> to vector<128x1xf32>
      %208 = vector.shape_cast %202 : vector<128x1xf32> to vector<1x128x1xf32>
      tpu.vector_store %arg16[%c1_112, %c0_113, %c0_114], %208 {strides = array<i32>} : memref<2x128x1xf32, #tpu.memory_space<vmem>>, vector<1x128x1xf32>,
      %cst_115 = arith.constant dense<0.000000e+00> : vector<128xf32>
      %209 = vector.multi_reduction <add>, %205, %cst_115 [1] : vector<128x4xf32> to vector<128xf32>
      %210 = vector.shape_cast %209 : vector<128xf32> to vector<128x1xf32>
      %c1_116 = arith.constant 1 : index
      %c0_117 = arith.constant 0 : index
      %c0_118 = arith.constant 0 : index
      %211 = vector.load %arg17[%c1_116, %c0_117, %c0_118] : memref<2x128x1xf32, #tpu.memory_space<vmem>>, vector<1x128x1xf32>
      %212 = vector.shape_cast %211 : vector<1x128x1xf32> to vector<128x1xf32>
      %213 = vector.shape_cast %210 : vector<128x1xf32> to vector<1x128x1xf32>
      tpu.vector_store %arg17[%c1_116, %c0_117, %c0_118], %213 {strides = array<i32>} : memref<2x128x1xf32, #tpu.memory_space<vmem>>, vector<1x128x1xf32>,
      %214 = arith.truncf %205 : vector<128x4xf32> to vector<128x4xbf16>
      %215 = vector.extract_strided_slice %177 {offsets = [0, 128], sizes = [4, 128], strides = [1, 1]} : vector<4x256xbf16> to vector<4x128xbf16>
      %cst_119 = arith.constant dense<0.000000e+00> : vector<128x128xf32>
      %216 = tpu.matmul %214, %215, %cst_119 {dimension_numbers = #tpu.dot_dimension_numbers<[1], [0], [0], [1], [0, 0, 1, 1], [], []>} : vector<128x4xbf16>, vector<4x128xbf16>, vector<128x128xf32> -> vector<128x128xf32>
      %c0_120 = arith.constant 0 : index
      %c128_121 = arith.constant 128 : index
      %217 = vector.load %arg18[%c0_120, %c128_121] : memref<128x256xf32, #tpu.memory_space<vmem>>, vector<128x128xf32>
      tpu.vector_store %arg18[%c0_120, %c128_121], %216 {strides = array<i32>} : memref<128x256xf32, #tpu.memory_space<vmem>>, vector<128x128xf32>,
    } else {
    }
    %c0 = arith.constant 0 : index
    %c0_1 = arith.constant 0 : index
    %c0_2 = arith.constant 0 : index
    %3 = vector.load %arg4[%c0, %c0_1, %c0_2] : memref<1x128x256xf32, #tpu.memory_space<vmem>>, vector<1x128x256xf32>
    %4 = vector.shape_cast %3 : vector<1x128x256xf32> to vector<128x256xf32>
    %c0_3 = arith.constant 0 : index
    %c0_4 = arith.constant 0 : index
    %5 = vector.load %arg10[%c0_3, %c0_4] : memref<128x256xf32, #tpu.memory_space<vmem>>, vector<128x256xf32>
    %c0_5 = arith.constant 0 : index
    %c0_6 = arith.constant 0 : index
    %6 = vector.load %arg11[%c0_5, %c0_6] : memref<128x256xf32, #tpu.memory_space<vmem>>, vector<128x256xf32>
    %7 = arith.mulf %4, %5 : vector<128x256xf32>
    %c255_i32 = arith.constant 255 : i32
    %8 = tpu.dynamic_rotate %4 by %c255_i32 dim 1 : vector<128x256xf32>, i32 -> vector<128x256xf32>
    %c1_i32 = arith.constant 1 : i32
    %9 = tpu.dynamic_rotate %4 by %c1_i32 dim 1 : vector<128x256xf32>, i32 -> vector<128x256xf32>
    %10 = tpu.iota {dimensions = array<i32: 1>} : vector<128x256xi32>
    %c2_i32 = arith.constant 2 : i32
    %c0_i32_7 = arith.constant 0 : i32
    %11 = arith.cmpi eq, %c2_i32, %c0_i32_7 : i32
    %c1_i32_8 = arith.constant 1 : i32
    %12 = arith.select %11, %c1_i32_8, %c2_i32 : i32
    %13 = vector.broadcast %12 : i32 to vector<128x256xi32>
    %14 = arith.remsi %10, %13 : vector<128x256xi32>
    %c0_i32_9 = arith.constant 0 : i32
    %15 = vector.broadcast %c0_i32_9 : i32 to vector<128x256xi32>
    %16 = arith.cmpi ne, %14, %15 : vector<128x256xi32>
    %c0_i32_10 = arith.constant 0 : i32
    %17 = vector.broadcast %c0_i32_10 : i32 to vector<128x256xi32>
    %18 = arith.cmpi slt, %14, %17 : vector<128x256xi32>
    %c0_i32_11 = arith.constant 0 : i32
    %19 = arith.cmpi slt, %12, %c0_i32_11 : i32
    %20 = vector.broadcast %19 : i1 to vector<128x256xi1>
    %21 = vector.broadcast %20 : vector<128x256xi1> to vector<128x256xi1>
    %22 = arith.xori %18, %21 : vector<128x256xi1>
    %23 = arith.andi %22, %16 : vector<128x256xi1>
    %24 = vector.broadcast %12 : i32 to vector<128x256xi32>
    %25 = arith.addi %14, %24 : vector<128x256xi32>
    %26 = arith.select %23, %25, %14 : vector<128x256xi1>, vector<128x256xi32>
    %c0_i32_12 = arith.constant 0 : i32
    %27 = vector.broadcast %c0_i32_12 : i32 to vector<128x256xi32>
    %28 = arith.cmpi eq, %26, %27 : vector<128x256xi32>
    %cst = arith.constant 0.000000e+00 : f32
    %29 = vector.broadcast %cst : f32 to vector<128x256xf32>
    %30 = arith.subf %29, %8 : vector<128x256xf32>
    %31 = arith.select %28, %30, %9 : vector<128x256xi1>, vector<128x256xf32>
    %32 = arith.mulf %31, %6 : vector<128x256xf32>
    %33 = arith.addf %7, %32 : vector<128x256xf32>
    %34 = arith.truncf %33 : vector<128x256xf32> to vector<128x256xbf16>
    %c0_13 = arith.constant 0 : index
    %c0_14 = arith.constant 0 : index
    %c0_15 = arith.constant 0 : index
    %35 = vector.load %arg5[%c0_13, %c0_14, %c0_15] : memref<1x128x256xf32, #tpu.memory_space<vmem>>, vector<1x128x256xf32>
    %36 = vector.shape_cast %35 : vector<1x128x256xf32> to vector<128x256xf32>
    %37 = arith.truncf %36 : vector<128x256xf32> to vector<128x256xbf16>
    %c0_16 = arith.constant 0 : index
    %c0_17 = arith.constant 0 : index
    %38 = vector.load %arg15[%c0_16, %c0_17] : memref<128x256xbf16, #tpu.memory_space<vmem>>, vector<128x256xbf16>
    %39 = vector.extract_strided_slice %38 {offsets = [0, 0], sizes = [128, 128], strides = [1, 1]} : vector<128x256xbf16> to vector<128x128xbf16>
    %40 = vector.extract_strided_slice %34 {offsets = [0, 0], sizes = [128, 128], strides = [1, 1]} : vector<128x256xbf16> to vector<128x128xbf16>
    %cst_18 = arith.constant dense<0.000000e+00> : vector<128x128xf32>
    %41 = tpu.matmul %39, %40, %cst_18 {dimension_numbers = #tpu.dot_dimension_numbers<[1], [1], [0], [0], [0, 0, 1, 0], [], []>} : vector<128x128xbf16>, vector<128x128xbf16>, vector<128x128xf32> -> vector<128x128xf32>
    %c0_19 = arith.constant 0 : index
    %c0_20 = arith.constant 0 : index
    %c0_21 = arith.constant 0 : index
    %42 = vector.load %arg16[%c0_19, %c0_20, %c0_21] : memref<2x128x1xf32, #tpu.memory_space<vmem>>, vector<1x128x1xf32>
    %43 = vector.shape_cast %42 : vector<1x128x1xf32> to vector<128x1xf32>
    %cst_22 = arith.constant dense<0xFF800000> : vector<128xf32>
    %44 = vector.multi_reduction <maximumf>, %41, %cst_22 [1] : vector<128x128xf32> to vector<128xf32>
    %45 = vector.shape_cast %44 : vector<128xf32> to vector<128x1xf32>
    %46 = arith.maximumf %43, %45 : vector<128x1xf32>
    %47 = arith.subf %43, %46 : vector<128x1xf32>
    %48 = math.exp %47 : vector<128x1xf32>
    %49 = vector.broadcast %46 : vector<128x1xf32> to vector<128x128xf32>
    %50 = arith.subf %41, %49 : vector<128x128xf32>
    %51 = math.exp %50 : vector<128x128xf32>
    %c0_23 = arith.constant 0 : index
    %c0_24 = arith.constant 0 : index
    %c0_25 = arith.constant 0 : index
    %52 = vector.load %arg17[%c0_23, %c0_24, %c0_25] : memref<2x128x1xf32, #tpu.memory_space<vmem>>, vector<1x128x1xf32>
    %53 = vector.shape_cast %52 : vector<1x128x1xf32> to vector<128x1xf32>
    %54 = arith.mulf %48, %53 : vector<128x1xf32>
    %cst_26 = arith.constant dense<0.000000e+00> : vector<128xf32>
    %55 = vector.multi_reduction <add>, %51, %cst_26 [1] : vector<128x128xf32> to vector<128xf32>
    %56 = vector.shape_cast %55 : vector<128xf32> to vector<128x1xf32>
    %57 = arith.addf %54, %56 : vector<128x1xf32>
    %c0_27 = arith.constant 0 : index
    %c0_28 = arith.constant 0 : index
    %c0_29 = arith.constant 0 : index
    %58 = vector.load %arg17[%c0_27, %c0_28, %c0_29] : memref<2x128x1xf32, #tpu.memory_space<vmem>>, vector<1x128x1xf32>
    %59 = vector.shape_cast %58 : vector<1x128x1xf32> to vector<128x1xf32>
    %60 = vector.shape_cast %57 : vector<128x1xf32> to vector<1x128x1xf32>
    tpu.vector_store %arg17[%c0_27, %c0_28, %c0_29], %60 {strides = array<i32>} : memref<2x128x1xf32, #tpu.memory_space<vmem>>, vector<1x128x1xf32>,
    %c0_30 = arith.constant 0 : index
    %c0_31 = arith.constant 0 : index
    %61 = vector.load %arg18[%c0_30, %c0_31] : memref<128x256xf32, #tpu.memory_space<vmem>>, vector<128x128xf32>
    %62 = vector.broadcast %48 : vector<128x1xf32> to vector<128x128xf32>
    %63 = arith.mulf %62, %61 : vector<128x128xf32>
    %64 = arith.truncf %51 : vector<128x128xf32> to vector<128x128xbf16>
    %65 = vector.extract_strided_slice %37 {offsets = [0, 0], sizes = [128, 128], strides = [1, 1]} : vector<128x256xbf16> to vector<128x128xbf16>
    %cst_32 = arith.constant dense<0.000000e+00> : vector<128x128xf32>
    %66 = tpu.matmul %64, %65, %cst_32 {dimension_numbers = #tpu.dot_dimension_numbers<[1], [0], [0], [1], [0, 0, 1, 1], [], []>} : vector<128x128xbf16>, vector<128x128xbf16>, vector<128x128xf32> -> vector<128x128xf32>
    %67 = arith.addf %63, %66 : vector<128x128xf32>
    %c0_33 = arith.constant 0 : index
    %c0_34 = arith.constant 0 : index
    %68 = vector.load %arg18[%c0_33, %c0_34] : memref<128x256xf32, #tpu.memory_space<vmem>>, vector<128x128xf32>
    tpu.vector_store %arg18[%c0_33, %c0_34], %67 {strides = array<i32>} : memref<128x256xf32, #tpu.memory_space<vmem>>, vector<128x128xf32>,
    %c0_35 = arith.constant 0 : index
    %c0_36 = arith.constant 0 : index
    %c0_37 = arith.constant 0 : index
    %69 = vector.load %arg16[%c0_35, %c0_36, %c0_37] : memref<2x128x1xf32, #tpu.memory_space<vmem>>, vector<1x128x1xf32>
    %70 = vector.shape_cast %69 : vector<1x128x1xf32> to vector<128x1xf32>
    %71 = vector.shape_cast %46 : vector<128x1xf32> to vector<1x128x1xf32>
    tpu.vector_store %arg16[%c0_35, %c0_36, %c0_37], %71 {strides = array<i32>} : memref<2x128x1xf32, #tpu.memory_space<vmem>>, vector<1x128x1xf32>,
    %72 = vector.extract_strided_slice %38 {offsets = [0, 128], sizes = [128, 128], strides = [1, 1]} : vector<128x256xbf16> to vector<128x128xbf16>
    %73 = vector.extract_strided_slice %34 {offsets = [0, 128], sizes = [128, 128], strides = [1, 1]} : vector<128x256xbf16> to vector<128x128xbf16>
    %cst_38 = arith.constant dense<0.000000e+00> : vector<128x128xf32>
    %74 = tpu.matmul %72, %73, %cst_38 {dimension_numbers = #tpu.dot_dimension_numbers<[1], [1], [0], [0], [0, 0, 1, 0], [], []>} : vector<128x128xbf16>, vector<128x128xbf16>, vector<128x128xf32> -> vector<128x128xf32>
    %c1 = arith.constant 1 : index
    %c0_39 = arith.constant 0 : index
    %c0_40 = arith.constant 0 : index
    %75 = vector.load %arg16[%c1, %c0_39, %c0_40] : memref<2x128x1xf32, #tpu.memory_space<vmem>>, vector<1x128x1xf32>
    %76 = vector.shape_cast %75 : vector<1x128x1xf32> to vector<128x1xf32>
    %cst_41 = arith.constant dense<0xFF800000> : vector<128xf32>
    %77 = vector.multi_reduction <maximumf>, %74, %cst_41 [1] : vector<128x128xf32> to vector<128xf32>
    %78 = vector.shape_cast %77 : vector<128xf32> to vector<128x1xf32>
    %79 = arith.maximumf %76, %78 : vector<128x1xf32>
    %80 = arith.subf %76, %79 : vector<128x1xf32>
    %81 = math.exp %80 : vector<128x1xf32>
    %82 = vector.broadcast %79 : vector<128x1xf32> to vector<128x128xf32>
    %83 = arith.subf %74, %82 : vector<128x128xf32>
    %84 = math.exp %83 : vector<128x128xf32>
    %c1_42 = arith.constant 1 : index
    %c0_43 = arith.constant 0 : index
    %c0_44 = arith.constant 0 : index
    %85 = vector.load %arg17[%c1_42, %c0_43, %c0_44] : memref<2x128x1xf32, #tpu.memory_space<vmem>>, vector<1x128x1xf32>
    %86 = vector.shape_cast %85 : vector<1x128x1xf32> to vector<128x1xf32>
    %87 = arith.mulf %81, %86 : vector<128x1xf32>
    %cst_45 = arith.constant dense<0.000000e+00> : vector<128xf32>
    %88 = vector.multi_reduction <add>, %84, %cst_45 [1] : vector<128x128xf32> to vector<128xf32>
    %89 = vector.shape_cast %88 : vector<128xf32> to vector<128x1xf32>
    %90 = arith.addf %87, %89 : vector<128x1xf32>
    %c1_46 = arith.constant 1 : index
    %c0_47 = arith.constant 0 : index
    %c0_48 = arith.constant 0 : index
    %91 = vector.load %arg17[%c1_46, %c0_47, %c0_48] : memref<2x128x1xf32, #tpu.memory_space<vmem>>, vector<1x128x1xf32>
    %92 = vector.shape_cast %91 : vector<1x128x1xf32> to vector<128x1xf32>
    %93 = vector.shape_cast %90 : vector<128x1xf32> to vector<1x128x1xf32>
    tpu.vector_store %arg17[%c1_46, %c0_47, %c0_48], %93 {strides = array<i32>} : memref<2x128x1xf32, #tpu.memory_space<vmem>>, vector<1x128x1xf32>,
    %c0_49 = arith.constant 0 : index
    %c128 = arith.constant 128 : index
    %94 = vector.load %arg18[%c0_49, %c128] : memref<128x256xf32, #tpu.memory_space<vmem>>, vector<128x128xf32>
    %95 = vector.broadcast %81 : vector<128x1xf32> to vector<128x128xf32>
    %96 = arith.mulf %95, %94 : vector<128x128xf32>
    %97 = arith.truncf %84 : vector<128x128xf32> to vector<128x128xbf16>
    %98 = vector.extract_strided_slice %37 {offsets = [0, 128], sizes = [128, 128], strides = [1, 1]} : vector<128x256xbf16> to vector<128x128xbf16>
    %cst_50 = arith.constant dense<0.000000e+00> : vector<128x128xf32>
    %99 = tpu.matmul %97, %98, %cst_50 {dimension_numbers = #tpu.dot_dimension_numbers<[1], [0], [0], [1], [0, 0, 1, 1], [], []>} : vector<128x128xbf16>, vector<128x128xbf16>, vector<128x128xf32> -> vector<128x128xf32>
    %100 = arith.addf %96, %99 : vector<128x128xf32>
    %c0_51 = arith.constant 0 : index
    %c128_52 = arith.constant 128 : index
    %101 = vector.load %arg18[%c0_51, %c128_52] : memref<128x256xf32, #tpu.memory_space<vmem>>, vector<128x128xf32>
    tpu.vector_store %arg18[%c0_51, %c128_52], %100 {strides = array<i32>} : memref<128x256xf32, #tpu.memory_space<vmem>>, vector<128x128xf32>,
    %c1_53 = arith.constant 1 : index
    %c0_54 = arith.constant 0 : index
    %c0_55 = arith.constant 0 : index
    %102 = vector.load %arg16[%c1_53, %c0_54, %c0_55] : memref<2x128x1xf32, #tpu.memory_space<vmem>>, vector<1x128x1xf32>
    %103 = vector.shape_cast %102 : vector<1x128x1xf32> to vector<128x1xf32>
    %104 = vector.shape_cast %79 : vector<128x1xf32> to vector<1x128x1xf32>
    tpu.vector_store %arg16[%c1_53, %c0_54, %c0_55], %104 {strides = array<i32>} : memref<2x128x1xf32, #tpu.memory_space<vmem>>, vector<1x128x1xf32>,
    %c1_i32_56 = arith.constant 1 : i32
    %105 = arith.cmpi eq, %arg2, %c1_i32_56 : i32
    %106 = arith.extui %105 : i1 to i32
    %c0_i32_57 = arith.constant 0 : i32
    %107 = arith.cmpi ne, %106, %c0_i32_57 : i32
    scf.if %107 {
      %c0_58 = arith.constant 0 : index
      %c0_59 = arith.constant 0 : index
      %108 = vector.load %arg18[%c0_58, %c0_59] : memref<128x256xf32, #tpu.memory_space<vmem>>, vector<128x128xf32>
      %c0_60 = arith.constant 0 : index
      %c0_61 = arith.constant 0 : index
      %c0_62 = arith.constant 0 : index
      %109 = vector.load %arg17[%c0_60, %c0_61, %c0_62] : memref<2x128x1xf32, #tpu.memory_space<vmem>>, vector<1x128x1xf32>
      %110 = vector.shape_cast %109 : vector<1x128x1xf32> to vector<128x1xf32>
      %111 = tpu.reciprocal %110 {approx = true} : vector<128x1xf32> -> vector<128x1xf32>
      %112 = vector.broadcast %111 : vector<128x1xf32> to vector<128x128xf32>
      %113 = arith.mulf %108, %112 : vector<128x128xf32>
      %c0_63 = arith.constant 0 : index
      %c0_64 = arith.constant 0 : index
      %114 = vector.load %arg18[%c0_63, %c0_64] : memref<128x256xf32, #tpu.memory_space<vmem>>, vector<128x128xf32>
      tpu.vector_store %arg18[%c0_63, %c0_64], %113 {strides = array<i32>} : memref<128x256xf32, #tpu.memory_space<vmem>>, vector<128x128xf32>,
      %c0_65 = arith.constant 0 : index
      %c128_66 = arith.constant 128 : index
      %115 = vector.load %arg18[%c0_65, %c128_66] : memref<128x256xf32, #tpu.memory_space<vmem>>, vector<128x128xf32>
      %c1_67 = arith.constant 1 : index
      %c0_68 = arith.constant 0 : index
      %c0_69 = arith.constant 0 : index
      %116 = vector.load %arg17[%c1_67, %c0_68, %c0_69] : memref<2x128x1xf32, #tpu.memory_space<vmem>>, vector<1x128x1xf32>
      %117 = vector.shape_cast %116 : vector<1x128x1xf32> to vector<128x1xf32>
      %118 = tpu.reciprocal %117 {approx = true} : vector<128x1xf32> -> vector<128x1xf32>
      %119 = vector.broadcast %118 : vector<128x1xf32> to vector<128x128xf32>
      %120 = arith.mulf %115, %119 : vector<128x128xf32>
      %c0_70 = arith.constant 0 : index
      %c128_71 = arith.constant 128 : index
      %121 = vector.load %arg18[%c0_70, %c128_71] : memref<128x256xf32, #tpu.memory_space<vmem>>, vector<128x128xf32>
      tpu.vector_store %arg18[%c0_70, %c128_71], %120 {strides = array<i32>} : memref<128x256xf32, #tpu.memory_space<vmem>>, vector<128x128xf32>,
      %c0_72 = arith.constant 0 : index
      %c0_73 = arith.constant 0 : index
      %122 = vector.load %arg18[%c0_72, %c0_73] : memref<128x256xf32, #tpu.memory_space<vmem>>, vector<128x256xf32>
      %c0_74 = arith.constant 0 : index
      %c0_75 = arith.constant 0 : index
      %c0_76 = arith.constant 0 : index
      %123 = vector.load %arg14[%c0_74, %c0_75, %c0_76] : memref<1x128x256xf32, #tpu.memory_space<vmem>>, vector<1x128x256xf32>
      %124 = vector.shape_cast %123 : vector<1x128x256xf32> to vector<128x256xf32>
      %125 = vector.shape_cast %122 : vector<128x256xf32> to vector<1x128x256xf32>
      tpu.vector_store %arg14[%c0_74, %c0_75, %c0_76], %125 {strides = array<i32>} : memref<1x128x256xf32, #tpu.memory_space<vmem>>, vector<1x128x256xf32>,
    } else {
    }
    return
  }
  func.func @transform_0(%arg0: i32, %arg1: i32, %arg2: i32) -> (i32, i32, i32) {
    %c0_i32 = arith.constant 0 : i32
    %c0_i32_0 = arith.constant 0 : i32
    return %arg0, %arg1, %c0_i32 : i32, i32, i32
  }
  func.func @transform_1(%arg0: i32, %arg1: i32, %arg2: i32) -> (i32, i32, i32) {
    %c1_i32 = arith.constant 1 : i32
    %c0_i32 = arith.constant 0 : i32
    return %arg0, %arg2, %c1_i32 : i32, i32, i32
  }
  func.func @transform_2(%arg0: i32, %arg1: i32, %arg2: i32) -> (i32, i32, i32) {
    %c2_i32 = arith.constant 2 : i32
    %c0_i32 = arith.constant 0 : i32
    return %arg0, %arg2, %c2_i32 : i32, i32, i32
  }
  func.func @transform_3(%arg0: i32, %arg1: i32, %arg2: i32) -> (i32, i32, i32) {
    %c0_i32 = arith.constant 0 : i32
    %c1_i32 = arith.constant 1 : i32
    %c0_i32_0 = arith.constant 0 : i32
    return %arg0, %c0_i32, %c1_i32 : i32, i32, i32
  }
  func.func @transform_4(%arg0: i32, %arg1: i32, %arg2: i32) -> (i32, i32, i32) {
    %c0_i32 = arith.constant 0 : i32
    %c2_i32 = arith.constant 2 : i32
    %c0_i32_0 = arith.constant 0 : i32
    return %arg0, %c0_i32, %c2_i32 : i32, i32, i32
  }
  func.func @transform_5(%arg0: i32, %arg1: i32, %arg2: i32) -> (i32, i32) {
    %c0_i32 = arith.constant 0 : i32
    %c0_i32_0 = arith.constant 0 : i32
    return %arg1, %c0_i32 : i32, i32
  }
  func.func @transform_6(%arg0: i32, %arg1: i32, %arg2: i32) -> (i32, i32) {
    %c0_i32 = arith.constant 0 : i32
    %c0_i32_0 = arith.constant 0 : i32
    return %arg1, %c0_i32 : i32, i32
  }
  func.func @transform_7(%arg0: i32, %arg1: i32, %arg2: i32) -> (i32, i32) {
    %c0_i32 = arith.constant 0 : i32
    %c0_i32_0 = arith.constant 0 : i32
    return %arg2, %c0_i32 : i32, i32
  }
  func.func @transform_8(%arg0: i32, %arg1: i32, %arg2: i32) -> (i32, i32) {
    %c0_i32 = arith.constant 0 : i32
    %c0_i32_0 = arith.constant 0 : i32
    return %arg2, %c0_i32 : i32, i32
  }
  func.func @transform_9(%arg0: i32, %arg1: i32, %arg2: i32) -> (i32, i32) {
    %c0_i32 = arith.constant 0 : i32
    %c0_i32_0 = arith.constant 0 : i32
    %c0_i32_1 = arith.constant 0 : i32
    return %c0_i32, %c0_i32_0 : i32, i32
  }
  func.func @transform_10(%arg0: i32, %arg1: i32, %arg2: i32) -> (i32, i32) {
    %c0_i32 = arith.constant 0 : i32
    %c0_i32_0 = arith.constant 0 : i32
    %c0_i32_1 = arith.constant 0 : i32
    return %c0_i32, %c0_i32_0 : i32, i32
  }
  func.func @transform_11(%arg0: i32, %arg1: i32, %arg2: i32) -> (i32, i32, i32) {
    %c0_i32 = arith.constant 0 : i32
    %c0_i32_0 = arith.constant 0 : i32
    return %arg0, %arg1, %c0_i32 : i32, i32, i32
  }
}

module attributes {stable_mosaic.version = 11 : i64} {
  func.func @_linear_kernel(%arg0: i32, %arg1: i32, %arg2: i32, %arg3: memref<256x256xbf16, #tpu.memory_space<vmem>>, %arg4: memref<256x256xbf16, #tpu.memory_space<vmem>>, %arg5: memref<1x256xf32, #tpu.memory_space<vmem>>, %arg6: memref<256x256xf32, #tpu.memory_space<vmem>>, %arg7: memref<256x256xf32, #tpu.memory_space<vmem>>) attributes {dimension_semantics = [#tpu.dimension_semantics<parallel>, #tpu.dimension_semantics<parallel>, #tpu.dimension_semantics<arbitrary>], iteration_bounds = array<i64: 3, 1, 1>, scalar_prefetch = 0 : i64, scratch_operands = 1 : i64, tpu.core_type = #tpu.core_type<tc>, window_params = [{transform_indices = @transform_0, window_bounds = array<i64: 256, 256>}, {transform_indices = @transform_1, window_bounds = array<i64: 256, 256>}, {transform_indices = @transform_2, window_bounds = array<i64: 1, 256>}, {transform_indices = @transform_3, window_bounds = array<i64: 256, 256>}]} {
    %c0_i32 = arith.constant 0 : i32
    %0 = arith.cmpi eq, %arg2, %c0_i32 : i32
    %1 = arith.extui %0 : i1 to i32
    %c0_i32_0 = arith.constant 0 : i32
    %2 = arith.cmpi ne, %1, %c0_i32_0 : i32
    scf.if %2 {
      %cst_10 = arith.constant 0.000000e+00 : f32
      %12 = vector.broadcast %cst_10 : f32 to vector<256x256xf32>
      %c0_11 = arith.constant 0 : index
      %c0_12 = arith.constant 0 : index
      %13 = vector.load %arg7[%c0_11, %c0_12] : memref<256x256xf32, #tpu.memory_space<vmem>>, vector<256x256xf32>
      tpu.vector_store %arg7[%c0_11, %c0_12], %12 {strides = array<i32>} : memref<256x256xf32, #tpu.memory_space<vmem>>, vector<256x256xf32>,
    } else {
    }
    %c0 = arith.constant 0 : index
    %c0_1 = arith.constant 0 : index
    %3 = vector.load %arg7[%c0, %c0_1] : memref<256x256xf32, #tpu.memory_space<vmem>>, vector<256x256xf32>
    %c0_2 = arith.constant 0 : index
    %c0_3 = arith.constant 0 : index
    %4 = vector.load %arg3[%c0_2, %c0_3] : memref<256x256xbf16, #tpu.memory_space<vmem>>, vector<256x256xbf16>
    %c0_4 = arith.constant 0 : index
    %c0_5 = arith.constant 0 : index
    %5 = vector.load %arg4[%c0_4, %c0_5] : memref<256x256xbf16, #tpu.memory_space<vmem>>, vector<256x256xbf16>
    %cst = arith.constant dense<0.000000e+00> : vector<256x256xf32>
    %6 = tpu.matmul %4, %5, %cst {dimension_numbers = #tpu.dot_dimension_numbers<[1], [0], [0], [1], [0, 0, 1, 1], [], []>} : vector<256x256xbf16>, vector<256x256xbf16>, vector<256x256xf32> -> vector<256x256xf32>
    %7 = arith.addf %3, %6 : vector<256x256xf32>
    %c0_6 = arith.constant 0 : index
    %c0_7 = arith.constant 0 : index
    %8 = vector.load %arg7[%c0_6, %c0_7] : memref<256x256xf32, #tpu.memory_space<vmem>>, vector<256x256xf32>
    tpu.vector_store %arg7[%c0_6, %c0_7], %7 {strides = array<i32>} : memref<256x256xf32, #tpu.memory_space<vmem>>, vector<256x256xf32>,
    %c0_i32_8 = arith.constant 0 : i32
    %9 = arith.cmpi eq, %arg2, %c0_i32_8 : i32
    %10 = arith.extui %9 : i1 to i32
    %c0_i32_9 = arith.constant 0 : i32
    %11 = arith.cmpi ne, %10, %c0_i32_9 : i32
    scf.if %11 {
      %c0_10 = arith.constant 0 : index
      %c0_11 = arith.constant 0 : index
      %12 = vector.load %arg7[%c0_10, %c0_11] : memref<256x256xf32, #tpu.memory_space<vmem>>, vector<256x256xf32>
      %c0_12 = arith.constant 0 : index
      %c0_13 = arith.constant 0 : index
      %13 = vector.load %arg5[%c0_12, %c0_13] : memref<1x256xf32, #tpu.memory_space<vmem>>, vector<1x256xf32>
      %14 = vector.broadcast %13 : vector<1x256xf32> to vector<256x256xf32>
      %15 = arith.addf %12, %14 : vector<256x256xf32>
      %c0_14 = arith.constant 0 : index
      %c0_15 = arith.constant 0 : index
      %16 = vector.load %arg6[%c0_14, %c0_15] : memref<256x256xf32, #tpu.memory_space<vmem>>, vector<256x256xf32>
      tpu.vector_store %arg6[%c0_14, %c0_15], %15 {strides = array<i32>} : memref<256x256xf32, #tpu.memory_space<vmem>>, vector<256x256xf32>,
    } else {
    }
    return
  }
  func.func @transform_0(%arg0: i32, %arg1: i32, %arg2: i32) -> (i32, i32) {
    %c0_i32 = arith.constant 0 : i32
    return %arg0, %arg2 : i32, i32
  }
  func.func @transform_1(%arg0: i32, %arg1: i32, %arg2: i32) -> (i32, i32) {
    %c0_i32 = arith.constant 0 : i32
    return %arg2, %arg1 : i32, i32
  }
  func.func @transform_2(%arg0: i32, %arg1: i32, %arg2: i32) -> (i32, i32) {
    %c0_i32 = arith.constant 0 : i32
    %c0_i32_0 = arith.constant 0 : i32
    return %c0_i32, %arg1 : i32, i32
  }
  func.func @transform_3(%arg0: i32, %arg1: i32, %arg2: i32) -> (i32, i32) {
    %c0_i32 = arith.constant 0 : i32
    return %arg0, %arg1 : i32, i32
  }
}

</mosaic_0001>

<bundles_post_ra>
// kernel: video_camera_attention_forward.4
= control target key start
LH: loop header
LB: loop body
LE: loop exit
PB: predicated region body
PF: predicated region fallthrough
CT: control target
= control target key end

     0   :  { %s2098_s12 = smov 0   ;;  %s2100_s13 = smov 0   ;;  %s2628_s0 = inlined_call_operand.vmem [shape: bf16[768,256], index: 0, kind: input, shape index: {}]   ;;  %s2629_s1 = inlined_call_operand.vmem [shape: bf16[256,768], index: 1, kind: input, shape index: {}]   ;;  %s2630_s2 = inlined_call_operand.vmem [shape: f32[1,768], index: 2, kind: input, shape index: {}]   ;;  %s2631_s3 = inlined_call_operand.vmem [shape: f32[768,768], index: 3, kind: output, shape index: {}]  }
   0x1   :  { %s2102_s14 = smov 0   ;;  %s2104_s15 = smov 0  }
   0x2   :  { %s2106_s16 = smov 0   ;;  %s2108_s17 = smov 0  }
   0x3   :  { %s2110_s18 = smov 0   ;;  %s2112_s19 = smov 0  }
   0x4   :  { %s2114_s20 = smov 0  }
   0x5 LB: > { %s1718_s21 = sadd.s32 4294967295, %s2076_s20   ;;  %s28_s22 = sadd.s32 1, %s2068_s18  ;;  %s2076_s20 = sphi %s2114_s20, %s13_s20   ;;  %s2072_s19 = sphi %s2112_s19, %s2640_s19   ;;  %s2068_s18 = sphi %s2110_s18, %s2639_s18   ;;  %s2064_s17 = sphi %s2108_s17, %s2638_s17   ;;  %s2060_s16 = sphi %s2106_s16, %s2637_s16   ;;  %s2056_s15 = sphi %s2104_s15, %s2636_s15   ;;  %s2052_s14 = sphi %s2102_s14, %s2635_s14   ;;  %s2048_s13 = sphi %s2100_s13, %s2634_s13   ;;  %s2044_s12 = sphi %s2098_s12, %s2633_s12  }
   0x6   : > { %p30_p0 = scmp.ge.s32.totalorder %s28_s22, 3  ;;  %s32_s23 = sadd.s32 1, %s2072_s19 }
   0x7   : > { %s69_s24 = sadd.s32 1, %s2056_s15  ;;  %p76_p1 = scmp.ne.s32.totalorder %s2056_s15, %s2052_s14 }
   0x8   : > { %s2642_s22 = smov (%p30_p0, %s28_s22), 0  ;;  %s2644_s23 = smov (!%p30_p0, %s32_s23), %s2072_s19 }
   0x9   : > { %s65_s25 = ssub.s32 %s2068_s18, %s2642_s22  ;;  %p77_p2 = scmp.eq.s32.totalorder %s2076_s20, 0 }
   0xa   : > { %p34_p3 = scmp.ge.s32.totalorder %s2644_s23, 3  ;;  %p67_p4 = scmp.eq.s32.totalorder %s65_s25, 0 }
   0xb   : > { %p78_p5 = por %p77_p2, %p76_p1  ;;  %s123_s26 = sadd.s32 1, %s2048_s13 }
   0xc   : > { %s2646_s23 = smov (%p34_p3, %s2644_s23), 0  ;;  %p133_p6 = scmp.ne.s32.totalorder %s2048_s13, %s2044_s12 }
   0xd   : > { %s2159_s27 = scalar_select %p67_p4, %s2056_s15, %s69_s24  }
   0xe   : > { %s118_s28 = ssub.s32 %s2072_s19, %s2646_s23  ;;  %p134_p7 = scmp.eq.s32.totalorder %s1718_s21, 8 }
   0xf   : > { %s120_s29 = sor.u32 %s118_s28, %s65_s25  ;;  %p1721_p10 = scmp.ge.s32.totalorder %s2076_s20, 9 }
  0x10   : > { %p121_p8 = scmp.eq.s32.totalorder %s120_s29, 0  ;;  %p2165_p9 = por %p134_p7, %p133_p6 }
  0x11   : > { %156 = sbr.rel (%p1721_p10) target bundleno = 44 (0x2c), region = 16 }
  0x12   : > { %s2170_s4 = scalar_select %p121_p8, %s2048_s13, %s123_s26  }
  0x18   : > { %174 = sbr.rel (!%p78_p5) target bundleno = 44 (0x2c), region = 24  ;;  %s176_s5 = sand.u32 (%p78_p5), 1, %s2056_s15  }
  0x19   : > { %s1803_s6 = sshll.u32 (%p78_p5), %s2068_s18, 3  ;;  %s1722_s7 = sshll.u32 (%p78_p5), %s176_s5, 8 }
  0x1a   : > { %s2178_s10 = scalar_lea.vmem (%p78_p5), %s2629_s1, %s1803_s6  ;;  %s2183_s11 = scalar_lea.vmem (%p78_p5), [#allocation3], %s1722_s7 }
  0x1b   : > { %v274_v0 = vld [vmem:[%s2178_s10] sm:$0xff] (%p78_p5)  ;;  %v276_v1 = vld [vmem:[%s2178_s10 + $0x18] sm:$0xff] (%p78_p5)  ;;  %v278_v2 = vld [vmem:[%s2178_s10 + $0x30] sm:$0xff] (%p78_p5) }
  0x1c   : > { %275 = vst [vmem:[%s2183_s11] sm:$0xff] (%p78_p5), %v274_v0  ;;  %277 = vst [vmem:[%s2183_s11 + $0x8] sm:$0xff] (%p78_p5), %v276_v1  ;;  %v280_v3 = vld [vmem:[%s2178_s10 + $0x48] sm:$0xff] (%p78_p5)  ;;  %v282_v4 = vld [vmem:[%s2178_s10 + $0x60] sm:$0xff] (%p78_p5) }
  0x1d   : > { %279 = vst [vmem:[%s2183_s11 + $0x10] sm:$0xff] (%p78_p5), %v278_v2  ;;  %v284_v5 = vld [vmem:[%s2178_s10 + $0x78] sm:$0xff] (%p78_p5)  ;;  %281 = vst [vmem:[%s2183_s11 + $0x18] sm:$0xff] (%p78_p5), %v280_v3  ;;  %v286_v6 = vld [vmem:[%s2178_s10 + $0x90] sm:$0xff] (%p78_p5) }
  0x1e   : > { %283 = vst [vmem:[%s2183_s11 + $0x20] sm:$0xff] (%p78_p5), %v282_v4  ;;  %285 = vst [vmem:[%s2183_s11 + $0x28] sm:$0xff] (%p78_p5), %v284_v5  ;;  %v288_v7 = vld [vmem:[%s2178_s10 + $0xa8] sm:$0xff] (%p78_p5)  ;;  %v290_v8 = vld [vmem:[%s2178_s10 + $0xc0] sm:$0xff] (%p78_p5) }
  0x1f   : > { %287 = vst [vmem:[%s2183_s11 + $0x30] sm:$0xff] %v286_v6  ;;  %289 = vst [vmem:[%s2183_s11 + $0x38] sm:$0xff] %v288_v7  ;;  %v292_v9 = vld [vmem:[%s2178_s10 + $0xd8] sm:$0xff]  ;;  %v294_v10 = vld [vmem:[%s2178_s10 + $0xf0] sm:$0xff] }
  0x20   : > { %291 = vst [vmem:[%s2183_s11 + $0x40] sm:$0xff] %v290_v8  ;;  %v296_v11 = vld [vmem:[%s2178_s10 + $0x108] sm:$0xff]  ;;  %293 = vst [vmem:[%s2183_s11 + $0x48] sm:$0xff] %v292_v9  ;;  %v298_v12 = vld [vmem:[%s2178_s10 + $0x120] sm:$0xff] }
  0x21   : > { %295 = vst [vmem:[%s2183_s11 + $0x50] sm:$0xff] %v294_v10  ;;  %297 = vst [vmem:[%s2183_s11 + $0x58] sm:$0xff] %v296_v11  ;;  %v300_v13 = vld [vmem:[%s2178_s10 + $0x138] sm:$0xff]  ;;  %v302_v14 = vld [vmem:[%s2178_s10 + $0x150] sm:$0xff] }
  0x22   : > { %299 = vst [vmem:[%s2183_s11 + $0x60] sm:$0xff] %v298_v12  ;;  %301 = vst [vmem:[%s2183_s11 + $0x68] sm:$0xff] %v300_v13  ;;  %v304_v15 = vld [vmem:[%s2178_s10 + $0x168] sm:$0xff]  ;;  %v306_v16 = vld [vmem:[%s2178_s10 + $0x180] sm:$0xff] }
  0x23   : > { %303 = vst [vmem:[%s2183_s11 + $0x70] sm:$0xff] %v302_v14  ;;  %v308_v17 = vld [vmem:[%s2178_s10 + $0x198] sm:$0xff]  ;;  %305 = vst [vmem:[%s2183_s11 + $0x78] sm:$0xff] %v304_v15  ;;  %v310_v18 = vld [vmem:[%s2178_s10 + $0x1b0] sm:$0xff] }
  0x24   : > { %307 = vst [vmem:[%s2183_s11 + $0x80] sm:$0xff] %v306_v16  ;;  %309 = vst [vmem:[%s2183_s11 + $0x88] sm:$0xff] %v308_v17  ;;  %v312_v19 = vld [vmem:[%s2178_s10 + $0x1c8] sm:$0xff]  ;;  %v314_v20 = vld [vmem:[%s2178_s10 + $0x1e0] sm:$0xff] }
  0x25   : > { %311 = vst [vmem:[%s2183_s11 + $0x90] sm:$0xff] %v310_v18  ;;  %313 = vst [vmem:[%s2183_s11 + $0x98] sm:$0xff] %v312_v19  ;;  %v316_v21 = vld [vmem:[%s2178_s10 + $0x1f8] sm:$0xff]  ;;  %v318_v22 = vld [vmem:[%s2178_s10 + $0x210] sm:$0xff] }
  0x26   : > { %315 = vst [vmem:[%s2183_s11 + $0xa0] sm:$0xff] %v314_v20  ;;  %v320_v23 = vld [vmem:[%s2178_s10 + $0x228] sm:$0xff]  ;;  %317 = vst [vmem:[%s2183_s11 + $0xa8] sm:$0xff] %v316_v21  ;;  %v322_v24 = vld [vmem:[%s2178_s10 + $0x240] sm:$0xff] }
  0x27   : > { %319 = vst [vmem:[%s2183_s11 + $0xb0] sm:$0xff] %v318_v22  ;;  %321 = vst [vmem:[%s2183_s11 + $0xb8] sm:$0xff] %v320_v23  ;;  %v324_v25 = vld [vmem:[%s2178_s10 + $0x258] sm:$0xff]  ;;  %v326_v26 = vld [vmem:[%s2178_s10 + $0x270] sm:$0xff] }
  0x28   : > { %323 = vst [vmem:[%s2183_s11 + $0xc0] sm:$0xff] %v322_v24  ;;  %325 = vst [vmem:[%s2183_s11 + $0xc8] sm:$0xff] %v324_v25  ;;  %v328_v27 = vld [vmem:[%s2178_s10 + $0x288] sm:$0xff]  ;;  %v330_v28 = vld [vmem:[%s2178_s10 + $0x2a0] sm:$0xff] }
  0x29   : > { %327 = vst [vmem:[%s2183_s11 + $0xd0] sm:$0xff] %v326_v26  ;;  %v332_v29 = vld [vmem:[%s2178_s10 + $0x2b8] sm:$0xff]  ;;  %329 = vst [vmem:[%s2183_s11 + $0xd8] sm:$0xff] %v328_v27  ;;  %v334_v30 = vld [vmem:[%s2178_s10 + $0x2d0] sm:$0xff] }
  0x2a   : > { %331 = vst [vmem:[%s2183_s11 + $0xe0] sm:$0xff] %v330_v28  ;;  %333 = vst [vmem:[%s2183_s11 + $0xe8] sm:$0xff] %v332_v29  ;;  %v336_v31 = vld [vmem:[%s2178_s10 + $0x2e8] sm:$0xff] }
  0x2b   : > { %335 = vst [vmem:[%s2183_s11 + $0xf0] sm:$0xff] %v334_v30  ;;  %337 = vst [vmem:[%s2183_s11 + $0xf8] sm:$0xff] %v336_v31 }
  0x2c PF: > { %p1725_p11 = scmp.ge.s32.totalorder %s2076_s20, 1  ;;  %p350_p12 = scmp.lt.s32.totalorder %s2076_s20, 10 }
  0x2e   : > { %p351_p13 = pnand %p1725_p11, %p350_p12 }
  0x2f   : > { %s357_s21 = sand.u32 (!%p351_p13), 1, %s2052_s14   ;;  %s1728_s14 = sshll.u32 (!%p351_p13), %s2064_s17, 5 }
  0x30   : > { %354 = sbr.rel (%p351_p13) target bundleno = 410 (0x19a), region = 66  ;;  %s1726_s24 = sshll.u32 (!%p351_p13), %s357_s21, 8 }
  0x31   : > { %s2249_s25 = scalar_lea.vmem (!%p351_p13), [#allocation3], %s1726_s24  ;;  %p395_p0 = scmp.lt.s32.totalorder (!%p351_p13), %s1728_s14, 95 }
  0x32   : > { %v1910_v32 = vld [vmem:[%s2249_s25 + $0x4] ss:$8 sps:$4 sm:$0xff] (!%p351_p13)   ;;  %v1912_v33 = vld [vmem:[%s2249_s25] ss:$8 sps:$4 sm:$0xff] (!%p351_p13)   ;;  %v1913_v34 = vld [vmem:[%s2249_s25 + $0x14] ss:$8 sps:$4 sm:$0xff] (!%p351_p13)  }
  0x33   : > { %930 = vmatprep.subr.bf16.mxu0 (!%p351_p13), %v1910_v32  ;;  %1805 = vmatprep.subr.bf16.mxu1 (!%p351_p13), %v1910_v32  ;;  %v1915_v35 = vld [vmem:[%s2249_s25 + $0x10] ss:$8 sps:$4 sm:$0xff] (!%p351_p13)   ;;  %v1916_v36 = vld [vmem:[%s2249_s25 + $0x24] ss:$8 sps:$4 sm:$0xff] (!%p351_p13)   ;;  %v1918_v37 = vld [vmem:[%s2249_s25 + $0x20] ss:$8 sps:$4 sm:$0xff] (!%p351_p13)   ;;  %v1320_v32 = vlaneseq (!%p351_p13) }
  0x34   : > { %931 = vmatpush1.bf16.msra.mxu0 (!%p351_p13), %v1912_v33  ;;  %1821 = vmatpush1.bf16.msra.mxu1 (!%p351_p13), %v1912_v33  ;;  %v1919_v38 = vld [vmem:[%s2249_s25 + $0x34] ss:$8 sps:$4 sm:$0xff] (!%p351_p13)   ;;  %v1921_v39 = vld [vmem:[%s2249_s25 + $0x30] ss:$8 sps:$4 sm:$0xff] (!%p351_p13)   ;;  %v1922_v40 = vld [vmem:[%s2249_s25 + $0x44] ss:$8 sps:$4 sm:$0xff] (!%p351_p13)  }
  0x35   : > { %932 = vmatprep.subr.bf16.mxu0 (!%p351_p13), %v1913_v34  ;;  %1806 = vmatprep.subr.bf16.mxu1 (!%p351_p13), %v1913_v34  ;;  %v1924_v41 = vld [vmem:[%s2249_s25 + $0x40] ss:$8 sps:$4 sm:$0xff] (!%p351_p13)   ;;  %v1925_v42 = vld [vmem:[%s2249_s25 + $0x54] ss:$8 sps:$4 sm:$0xff] (!%p351_p13)   ;;  %v1927_v43 = vld [vmem:[%s2249_s25 + $0x50] ss:$8 sps:$4 sm:$0xff] (!%p351_p13)  }
  0x36   : > { %v1928_v44 = vld [vmem:[%s2249_s25 + $0x64] ss:$8 sps:$4 sm:$0xff] (!%p351_p13)   ;;  %v1930_v46 = vld [vmem:[%s2249_s25 + $0x60] ss:$8 sps:$4 sm:$0xff] (!%p351_p13)   ;;  %v1931_v48 = vld [vmem:[%s2249_s25 + $0x74] ss:$8 sps:$4 sm:$0xff] (!%p351_p13)  }
  0x37   : > { %s2648_s14 = smov (!%p395_p0, %s1728_s14), 95  ;;  %v1933_v49 = vld [vmem:[%s2249_s25 + $0x70] ss:$8 sps:$4 sm:$0xff]   ;;  %v1934_v50 = vld [vmem:[%s2249_s25 + $0x84] ss:$8 sps:$4 sm:$0xff]   ;;  %s2322_s6 = sshll.u32 %s2060_s16, 1 }
  0x38   : > { %933 = vmatpush1.bf16.msra.mxu0 %v1915_v35  ;;  %1822 = vmatpush1.bf16.msra.mxu1 %v1915_v35  ;;  %s1804_s26 = sshll.u32 %s2648_s14, 3  ;;  %v1936_v51 = vld [vmem:[%s2249_s25 + $0x80] ss:$8 sps:$4 sm:$0xff]   ;;  %v1937_v52 = vld [vmem:[%s2249_s25 + $0x94] ss:$8 sps:$4 sm:$0xff]   ;;  %p408_p1 = scmp.lt.s32.totalorder %s2322_s6, 5 }
  0x39   : > { %934 = vmatprep.subr.bf16.mxu0 %v1916_v36  ;;  %1807 = vmatprep.subr.bf16.mxu1 %v1916_v36  ;;  %s2267_s5 = scalar_lea.vmem %s2628_s0, %s1804_s26  ;;  %v1939_v53 = vld [vmem:[%s2249_s25 + $0x90] ss:$8 sps:$4 sm:$0xff]   ;;  %v1940_v54 = vld [vmem:[%s2249_s25 + $0xa4] ss:$8 sps:$4 sm:$0xff]   ;;  %v1942_v55 = vld [vmem:[%s2249_s25 + $0xa0] ss:$8 sps:$4 sm:$0xff]  }
  0x3a   : > { %v1960_v45 = vld [vmem:[%s2267_s5 + $0x4] ss:$8 sps:$4 sm:$0xff]   ;;  %v1943_v56 = vld [vmem:[%s2249_s25 + $0xb4] ss:$8 sps:$4 sm:$0xff]   ;;  %v1945_v57 = vld [vmem:[%s2249_s25 + $0xb0] ss:$8 sps:$4 sm:$0xff]  }
  0x3b   : > { %v1963_v47 = vld [vmem:[%s2267_s5 + $0x84] ss:$8 sps:$4 sm:$0xff]   ;;  %962 = vmatprep.mubr.bf16.mxu0 %v1960_v45  ;;  %v1948_v59 = vld [vmem:[%s2249_s25 + $0xc0] ss:$8 sps:$4 sm:$0xff]   ;;  %v1949_v60 = vld [vmem:[%s2249_s25 + $0xd4] ss:$8 sps:$4 sm:$0xff]  }
  0x3c   : > { %935 = vmatpush1.bf16.msra.mxu0 %v1918_v37  ;;  %1823 = vmatpush1.bf16.msra.mxu1 %v1918_v37  ;;  %v1946_v58 = vld [vmem:[%s2249_s25 + $0xc4] ss:$8 sps:$4 sm:$0xff]   ;;  %v1951_v61 = vld [vmem:[%s2249_s25 + $0xd0] ss:$8 sps:$4 sm:$0xff]   ;;  %v1954_v63 = vld [vmem:[%s2249_s25 + $0xe0] ss:$8 sps:$4 sm:$0xff]  }
  0x3d   : > { %936 = vmatprep.subr.bf16.mxu0 %v1919_v38  ;;  %1808 = vmatprep.subr.bf16.mxu1 %v1919_v38  ;;  %v1952_v62 = vld [vmem:[%s2249_s25 + $0xe4] ss:$8 sps:$4 sm:$0xff]   ;;  %v1955_v0 = vld [vmem:[%s2249_s25 + $0xf4] ss:$8 sps:$4 sm:$0xff]   ;;  %v1957_v1 = vld [vmem:[%s2249_s25 + $0xf0] ss:$8 sps:$4 sm:$0xff]  }
  0x3e   : > { %1042 = vmatprep.mubr.bf16.mxu1 %v1963_v47  ;;  %v1958_v2 = vld [vmem:[%s2267_s5] ss:$8 sps:$4 sm:$0xff]   ;;  %v1964_v4 = vld [vmem:[%s2267_s5 + $0x14] ss:$8 sps:$4 sm:$0xff]   ;;  %v1968_v6 = vld [vmem:[%s2267_s5 + $0x10] ss:$8 sps:$4 sm:$0xff]  }
  0x3f   : > { %v1961_v3 = vld [vmem:[%s2267_s5 + $0x80] ss:$8 sps:$4 sm:$0xff]   ;;  %v1966_v5 = vld [vmem:[%s2267_s5 + $0x94] ss:$8 sps:$4 sm:$0xff]   ;;  %v1969_v7 = vld [vmem:[%s2267_s5 + $0x90] ss:$8 sps:$4 sm:$0xff]  }
  0x40   : > { %937 = vmatpush1.bf16.msra.mxu0 %v1921_v39  ;;  %1824 = vmatpush1.bf16.msra.mxu1 %v1921_v39  ;;  %v1970_v8 = vld [vmem:[%s2267_s5 + $0x24] ss:$8 sps:$4 sm:$0xff]   ;;  %v1974_v10 = vld [vmem:[%s2267_s5 + $0x20] ss:$8 sps:$4 sm:$0xff]   ;;  %v1976_v12 = vld [vmem:[%s2267_s5 + $0x34] ss:$8 sps:$4 sm:$0xff]  }
  0x41   : > { %938 = vmatprep.subr.bf16.mxu0 %v1922_v40  ;;  %1809 = vmatprep.subr.bf16.mxu1 %v1922_v40  ;;  %v1972_v9 = vld [vmem:[%s2267_s5 + $0xa4] ss:$8 sps:$4 sm:$0xff]   ;;  %v1975_v11 = vld [vmem:[%s2267_s5 + $0xa0] ss:$8 sps:$4 sm:$0xff]   ;;  %v1978_v13 = vld [vmem:[%s2267_s5 + $0xb4] ss:$8 sps:$4 sm:$0xff]  }
  0x42   : > { %v1980_v14 = vld [vmem:[%s2267_s5 + $0x30] ss:$8 sps:$4 sm:$0xff]   ;;  %v1982_v16 = vld [vmem:[%s2267_s5 + $0x44] ss:$8 sps:$4 sm:$0xff]   ;;  %v1986_v18 = vld [vmem:[%s2267_s5 + $0x40] ss:$8 sps:$4 sm:$0xff]  }
  0x43   : > { %v1981_v15 = vld [vmem:[%s2267_s5 + $0xb0] ss:$8 sps:$4 sm:$0xff]   ;;  %v1984_v17 = vld [vmem:[%s2267_s5 + $0xc4] ss:$8 sps:$4 sm:$0xff]   ;;  %v1987_v19 = vld [vmem:[%s2267_s5 + $0xc0] ss:$8 sps:$4 sm:$0xff]  }
  0x44   : > { %939 = vmatpush1.bf16.msra.mxu0 %v1924_v41  ;;  %1825 = vmatpush1.bf16.msra.mxu1 %v1924_v41  ;;  %v1988_v20 = vld [vmem:[%s2267_s5 + $0x54] ss:$8 sps:$4 sm:$0xff]   ;;  %v1992_v22 = vld [vmem:[%s2267_s5 + $0x50] ss:$8 sps:$4 sm:$0xff]   ;;  %v1994_v24 = vld [vmem:[%s2267_s5 + $0x64] ss:$8 sps:$4 sm:$0xff]  }
  0x45   : > { %940 = vmatprep.subr.bf16.mxu0 %v1925_v42  ;;  %1810 = vmatprep.subr.bf16.mxu1 %v1925_v42  ;;  %v1990_v21 = vld [vmem:[%s2267_s5 + $0xd4] ss:$8 sps:$4 sm:$0xff]   ;;  %v1993_v23 = vld [vmem:[%s2267_s5 + $0xd0] ss:$8 sps:$4 sm:$0xff]   ;;  %v1996_v25 = vld [vmem:[%s2267_s5 + $0xe4] ss:$8 sps:$4 sm:$0xff]  }
  0x46   : > { %v1998_v26 = vld [vmem:[%s2267_s5 + $0x60] ss:$8 sps:$4 sm:$0xff]   ;;  %v2000_v28 = vld [vmem:[%s2267_s5 + $0x74] ss:$8 sps:$4 sm:$0xff]   ;;  %v2004_v30 = vld [vmem:[%s2267_s5 + $0x70] ss:$8 sps:$4 sm:$0xff]  }
  0x47   : > { %v1999_v27 = vld [vmem:[%s2267_s5 + $0xe0] ss:$8 sps:$4 sm:$0xff]   ;;  %v2002_v29 = vld [vmem:[%s2267_s5 + $0xf4] ss:$8 sps:$4 sm:$0xff]   ;;  %v2005_v31 = vld [vmem:[%s2267_s5 + $0xf0] ss:$8 sps:$4 sm:$0xff]  }
  0x48   : > { %941 = vmatpush1.bf16.msra.mxu0 %v1927_v43  ;;  %1826 = vmatpush1.bf16.msra.mxu1 %v1927_v43  ;;  %s409_s7 = scalar_select %p408_p1, %s2322_s6, 5  ;;  %v1321_v33 = vshrl.u32 %v1320_v32, 7 }
  0x49   : > { %942 = vmatprep.subr.bf16.mxu0 %v1928_v44  ;;  %1811 = vmatprep.subr.bf16.mxu1 %v1928_v44  ;;  %s390_s11 = sand.u32 1, %s2044_s12   ;;  %s1837_s16 = smul.u32 (%p2165_p9), 192, %s2064_s17 }
  0x4a   : > { %s410_s10 = scalar_lea.vmem %s2630_s2, %s409_s7  ;;  %v1322_v34 = vsub.s32 0, %v1321_v33  ;;  %v1326_v36 = vsub.s32 1, %v1321_v33  ;;  %s1727_s21 = sshll.u32 %s390_s11, 9 }
  0x4b   : > { %v1318_v35 = vld [vmem:[%s410_s10] sm:$0x3]  ;;  %s2338_s12 = scalar_lea.vmem [#allocation4], %s1727_s21  ;;  %s1468_s30 = sadd.s32 (%p2165_p9), %s1837_s16, %s2322_s6 }
  0x4c   : > { %943 = vmatpush1.bf16.msra.mxu0 %v1930_v46  ;;  %1827 = vmatpush1.bf16.msra.mxu1 %v1930_v46  ;;  %v2330_v37 = vrot.slane %v1318_v35, %v1322_v34  ;;  %v2332_v38 = vrot.slane %v1318_v35, %v1326_v36  ;;  %s1800_s24 = sshll.u32 (%p2165_p9), %s1468_s30, 3 }
  0x4d   : > { %944 = vmatprep.subr.bf16.mxu0 %v1931_v48  ;;  %1812 = vmatprep.subr.bf16.mxu1 %v1931_v48  ;;  %s2483_s17 = scalar_lea.vmem (%p2165_p9), %s2631_s3, %s1800_s24 }
  0x50   : > { %945 = vmatpush1.bf16.msra.mxu0 %v1933_v49  ;;  %1828 = vmatpush1.bf16.msra.mxu1 %v1933_v49 }
  0x51   : > { %946 = vmatprep.subr.bf16.mxu0 %v1934_v50  ;;  %1813 = vmatprep.subr.bf16.mxu1 %v1934_v50 }
  0x54   : > { %947 = vmatpush1.bf16.msra.mxu0 %v1936_v51  ;;  %1829 = vmatpush1.bf16.msra.mxu1 %v1936_v51 }
  0x55   : > { %948 = vmatprep.subr.bf16.mxu0 %v1937_v52  ;;  %1814 = vmatprep.subr.bf16.mxu1 %v1937_v52 }
  0x58   : > { %949 = vmatpush1.bf16.msra.mxu0 %v1939_v53  ;;  %1830 = vmatpush1.bf16.msra.mxu1 %v1939_v53 }
  0x59   : > { %950 = vmatprep.subr.bf16.mxu0 %v1940_v54  ;;  %1815 = vmatprep.subr.bf16.mxu1 %v1940_v54 }
  0x5c   : > { %951 = vmatpush1.bf16.msra.mxu0 %v1942_v55  ;;  %1831 = vmatpush1.bf16.msra.mxu1 %v1942_v55 }
  0x5d   : > { %952 = vmatprep.subr.bf16.mxu0 %v1943_v56  ;;  %1816 = vmatprep.subr.bf16.mxu1 %v1943_v56 }
  0x60   : > { %953 = vmatpush1.bf16.msra.mxu0 %v1945_v57  ;;  %1832 = vmatpush1.bf16.msra.mxu1 %v1945_v57 }
  0x61   : > { %954 = vmatprep.subr.bf16.mxu0 %v1946_v58  ;;  %1817 = vmatprep.subr.bf16.mxu1 %v1946_v58 }
  0x64   : > { %955 = vmatpush1.bf16.msra.mxu0 %v1948_v59  ;;  %1833 = vmatpush1.bf16.msra.mxu1 %v1948_v59 }
  0x65   : > { %956 = vmatprep.subr.bf16.mxu0 %v1949_v60  ;;  %1818 = vmatprep.subr.bf16.mxu1 %v1949_v60 }
  0x68   : > { %957 = vmatpush1.bf16.msra.mxu0 %v1951_v61  ;;  %1834 = vmatpush1.bf16.msra.mxu1 %v1951_v61 }
  0x69   : > { %958 = vmatprep.subr.bf16.mxu0 %v1952_v62  ;;  %1819 = vmatprep.subr.bf16.mxu1 %v1952_v62 }
  0x6c   : > { %959 = vmatpush1.bf16.msra.mxu0 %v1954_v63  ;;  %1835 = vmatpush1.bf16.msra.mxu1 %v1954_v63 }
  0x6d   : > { %960 = vmatprep.subr.bf16.mxu0 %v1955_v0  ;;  %1820 = vmatprep.subr.bf16.mxu1 %v1955_v0 }
  0x70   : > { %961 = vmatpush1.bf16.msra.mxu0 %v1957_v1  ;;  %1836 = vmatpush1.bf16.msra.mxu1 %v1957_v1 }
  0x73   : > { %963 = vmatmul.mubr.bf16.vlgmr.msra.gmra.mrb[0].mxu0 %v1958_v2  ;;  %1043 = vmatmul.mubr.bf16.vlgmr.msra.gmra.mrb[0].mxu1 %v1961_v3 }
  0x74   : > { %972 = vmatprep.mubr.bf16.mxu0 %v1964_v4  ;;  %1052 = vmatprep.mubr.bf16.mxu1 %v1966_v5 }
  0x7b   : > { %973 = vmatmul.mubr.bf16.gmra.mrb[4].mxu0 %v1968_v6  ;;  %1053 = vmatmul.mubr.bf16.gmra.mrb[4].mxu1 %v1969_v7 }
  0x7c   : > { %982 = vmatprep.mubr.bf16.mxu0 %v1970_v8  ;;  %1062 = vmatprep.mubr.bf16.mxu1 %v1972_v9 }
  0x83   : > { %983 = vmatmul.mubr.bf16.gmra.mrb[8].mxu0 %v1974_v10  ;;  %1063 = vmatmul.mubr.bf16.gmra.mrb[8].mxu1 %v1975_v11 }
  0x84   : > { %992 = vmatprep.mubr.bf16.mxu0 %v1976_v12  ;;  %1072 = vmatprep.mubr.bf16.mxu1 %v1978_v13 }
  0x8b   : > { %993 = vmatmul.mubr.bf16.gmra.mrb[12].mxu0 %v1980_v14  ;;  %1073 = vmatmul.mubr.bf16.gmra.mrb[12].mxu1 %v1981_v15 }
  0x8c   : > { %1002 = vmatprep.mubr.bf16.mxu0 %v1982_v16  ;;  %1082 = vmatprep.mubr.bf16.mxu1 %v1984_v17 }
  0x93   : > { %1003 = vmatmul.mubr.bf16.gmra.mrb[16].mxu0 %v1986_v18  ;;  %1083 = vmatmul.mubr.bf16.gmra.mrb[16].mxu1 %v1987_v19 }
  0x94   : > { %1012 = vmatprep.mubr.bf16.mxu0 %v1988_v20  ;;  %1092 = vmatprep.mubr.bf16.mxu1 %v1990_v21 }
  0x9b   : > { %1013 = vmatmul.mubr.bf16.gmra.mrb[20].mxu0 %v1992_v22  ;;  %1093 = vmatmul.mubr.bf16.gmra.mrb[20].mxu1 %v1993_v23 }
  0x9c   : > { %1022 = vmatprep.mubr.bf16.mxu0 %v1994_v24  ;;  %1102 = vmatprep.mubr.bf16.mxu1 %v1996_v25 }
  0xa3   : > { %1023 = vmatmul.mubr.bf16.gmra.mrb[24].mxu0 %v1998_v26  ;;  %1103 = vmatmul.mubr.bf16.gmra.mrb[24].mxu1 %v1999_v27 }
  0xa4   : > { %1032 = vmatprep.mubr.bf16.mxu0 %v2000_v28  ;;  %1112 = vmatprep.mubr.bf16.mxu1 %v2002_v29 }
  0xab   : > { %1033 = vmatmul.mubr.bf16.gmra.mrb[28].mxu0 %v2004_v30  ;;  %1113 = vmatmul.mubr.bf16.gmra.mrb[28].mxu1 %v2005_v31 }
 0x146   : > { %v964_v39 = vpop.f32.mrb[0].mxu0  ;;  %v1044_v40 = vpop.f32.mrb[0].mxu1 }
 0x147   : > { %v1330_v41 = vadd.f32 %v2330_v37, %v964_v39  ;;  %v1362_v42 = vadd.f32 %v2330_v37, %v1044_v40  ;;  %v966_v43 = vpop.f32.mrb[1].mxu0  ;;  %v1046_v44 = vpop.f32.mrb[1].mxu1 }
 0x148   : > { %v1331_v45 = vadd.f32 %v2332_v38, %v966_v43  ;;  %v1363_v46 = vadd.f32 %v2332_v38, %v1046_v44  ;;  %v968_v47 = vpop.f32.mrb[2].mxu0  ;;  %v1048_v48 = vpop.f32.mrb[2].mxu1 }
 0x149   : > { %1394 = vst [vmem:[%s2338_s12] sm:$0xff] %v1330_v41  ;;  %1426 = vst [vmem:[%s2338_s12 + $0x100] sm:$0xff] %v1362_v42  ;;  %v1332_v49 = vadd.f32 %v2330_v37, %v968_v47  ;;  %v1364_v50 = vadd.f32 %v2330_v37, %v1048_v48  ;;  %v970_v51 = vpop.f32.mrb[3].mxu0  ;;  %v1050_v52 = vpop.f32.mrb[3].mxu1 }
 0x14a   : > { %1395 = vst [vmem:[%s2338_s12 + $0x8] sm:$0xff] %v1331_v45  ;;  %1427 = vst [vmem:[%s2338_s12 + $0x108] sm:$0xff] %v1363_v46  ;;  %v1333_v53 = vadd.f32 %v2332_v38, %v970_v51  ;;  %v1365_v54 = vadd.f32 %v2332_v38, %v1050_v52 }
 0x14b   : > { %1396 = vst [vmem:[%s2338_s12 + $0x10] sm:$0xff] %v1332_v49  ;;  %1428 = vst [vmem:[%s2338_s12 + $0x110] sm:$0xff] %v1364_v50 }
 0x14c   : > { %1397 = vst [vmem:[%s2338_s12 + $0x18] sm:$0xff] %v1333_v53  ;;  %1429 = vst [vmem:[%s2338_s12 + $0x118] sm:$0xff] %v1365_v54 }
 0x14e   : > { %v974_v55 = vpop.f32.mrb[4].mxu0  ;;  %v1054_v56 = vpop.f32.mrb[4].mxu1 }
 0x14f   : > { %v1334_v57 = vadd.f32 %v2330_v37, %v974_v55  ;;  %v1366_v58 = vadd.f32 %v2330_v37, %v1054_v56  ;;  %v976_v59 = vpop.f32.mrb[5].mxu0  ;;  %v1056_v60 = vpop.f32.mrb[5].mxu1 }
 0x150   : > { %v1335_v61 = vadd.f32 %v2332_v38, %v976_v59  ;;  %v1367_v62 = vadd.f32 %v2332_v38, %v1056_v60  ;;  %v978_v63 = vpop.f32.mrb[6].mxu0  ;;  %v1058_v0 = vpop.f32.mrb[6].mxu1 }
 0x151   : > { %1398 = vst [vmem:[%s2338_s12 + $0x20] sm:$0xff] %v1334_v57  ;;  %1430 = vst [vmem:[%s2338_s12 + $0x120] sm:$0xff] %v1366_v58  ;;  %v1336_v1 = vadd.f32 %v2330_v37, %v978_v63  ;;  %v1368_v2 = vadd.f32 %v2330_v37, %v1058_v0  ;;  %v980_v3 = vpop.f32.mrb[7].mxu0  ;;  %v1060_v4 = vpop.f32.mrb[7].mxu1 }
 0x152   : > { %1399 = vst [vmem:[%s2338_s12 + $0x28] sm:$0xff] %v1335_v61  ;;  %1431 = vst [vmem:[%s2338_s12 + $0x128] sm:$0xff] %v1367_v62  ;;  %v1337_v5 = vadd.f32 %v2332_v38, %v980_v3  ;;  %v1369_v6 = vadd.f32 %v2332_v38, %v1060_v4 }
 0x153   : > { %1400 = vst [vmem:[%s2338_s12 + $0x30] sm:$0xff] %v1336_v1  ;;  %1432 = vst [vmem:[%s2338_s12 + $0x130] sm:$0xff] %v1368_v2 }
 0x154   : > { %1401 = vst [vmem:[%s2338_s12 + $0x38] sm:$0xff] %v1337_v5  ;;  %1433 = vst [vmem:[%s2338_s12 + $0x138] sm:$0xff] %v1369_v6 }
 0x156   : > { %v984_v7 = vpop.f32.mrb[8].mxu0  ;;  %v1064_v8 = vpop.f32.mrb[8].mxu1 }
 0x157   : > { %v1338_v9 = vadd.f32 %v2330_v37, %v984_v7  ;;  %v1370_v10 = vadd.f32 %v2330_v37, %v1064_v8  ;;  %v986_v11 = vpop.f32.mrb[9].mxu0  ;;  %v1066_v12 = vpop.f32.mrb[9].mxu1 }
 0x158   : > { %v1339_v13 = vadd.f32 %v2332_v38, %v986_v11  ;;  %v1371_v14 = vadd.f32 %v2332_v38, %v1066_v12  ;;  %v988_v15 = vpop.f32.mrb[10].mxu0  ;;  %v1068_v16 = vpop.f32.mrb[10].mxu1 }
 0x159   : > { %1402 = vst [vmem:[%s2338_s12 + $0x40] sm:$0xff] %v1338_v9  ;;  %1434 = vst [vmem:[%s2338_s12 + $0x140] sm:$0xff] %v1370_v10  ;;  %v1340_v17 = vadd.f32 %v2330_v37, %v988_v15  ;;  %v1372_v18 = vadd.f32 %v2330_v37, %v1068_v16  ;;  %v990_v19 = vpop.f32.mrb[11].mxu0  ;;  %v1070_v20 = vpop.f32.mrb[11].mxu1 }
 0x15a   : > { %1403 = vst [vmem:[%s2338_s12 + $0x48] sm:$0xff] %v1339_v13  ;;  %1435 = vst [vmem:[%s2338_s12 + $0x148] sm:$0xff] %v1371_v14  ;;  %v1341_v21 = vadd.f32 %v2332_v38, %v990_v19  ;;  %v1373_v22 = vadd.f32 %v2332_v38, %v1070_v20 }
 0x15b   : > { %1404 = vst [vmem:[%s2338_s12 + $0x50] sm:$0xff] %v1340_v17  ;;  %1436 = vst [vmem:[%s2338_s12 + $0x150] sm:$0xff] %v1372_v18 }
 0x15c   : > { %1405 = vst [vmem:[%s2338_s12 + $0x58] sm:$0xff] %v1341_v21  ;;  %1437 = vst [vmem:[%s2338_s12 + $0x158] sm:$0xff] %v1373_v22 }
 0x15e   : > { %v994_v23 = vpop.f32.mrb[12].mxu0  ;;  %v1074_v24 = vpop.f32.mrb[12].mxu1 }
 0x15f   : > { %v1342_v25 = vadd.f32 %v2330_v37, %v994_v23  ;;  %v1374_v26 = vadd.f32 %v2330_v37, %v1074_v24  ;;  %v996_v27 = vpop.f32.mrb[13].mxu0  ;;  %v1076_v28 = vpop.f32.mrb[13].mxu1 }
 0x160   : > { %v1343_v29 = vadd.f32 %v2332_v38, %v996_v27  ;;  %v1375_v30 = vadd.f32 %v2332_v38, %v1076_v28  ;;  %v998_v31 = vpop.f32.mrb[14].mxu0  ;;  %v1078_v32 = vpop.f32.mrb[14].mxu1 }
 0x161   : > { %1406 = vst [vmem:[%s2338_s12 + $0x60] sm:$0xff] %v1342_v25  ;;  %1438 = vst [vmem:[%s2338_s12 + $0x160] sm:$0xff] %v1374_v26  ;;  %v1344_v33 = vadd.f32 %v2330_v37, %v998_v31  ;;  %v1376_v34 = vadd.f32 %v2330_v37, %v1078_v32  ;;  %v1000_v35 = vpop.f32.mrb[15].mxu0  ;;  %v1080_v36 = vpop.f32.mrb[15].mxu1 }
 0x162   : > { %1407 = vst [vmem:[%s2338_s12 + $0x68] sm:$0xff] %v1343_v29  ;;  %1439 = vst [vmem:[%s2338_s12 + $0x168] sm:$0xff] %v1375_v30  ;;  %v1345_v39 = vadd.f32 %v2332_v38, %v1000_v35  ;;  %v1377_v40 = vadd.f32 %v2332_v38, %v1080_v36 }
 0x163   : > { %1408 = vst [vmem:[%s2338_s12 + $0x70] sm:$0xff] %v1344_v33  ;;  %1440 = vst [vmem:[%s2338_s12 + $0x170] sm:$0xff] %v1376_v34 }
 0x164   : > { %1409 = vst [vmem:[%s2338_s12 + $0x78] sm:$0xff] %v1345_v39  ;;  %1441 = vst [vmem:[%s2338_s12 + $0x178] sm:$0xff] %v1377_v40 }
 0x166   : > { %v1004_v41 = vpop.f32.mrb[16].mxu0  ;;  %v1084_v42 = vpop.f32.mrb[16].mxu1 }
 0x167   : > { %v1346_v43 = vadd.f32 %v2330_v37, %v1004_v41  ;;  %v1378_v44 = vadd.f32 %v2330_v37, %v1084_v42  ;;  %v1006_v45 = vpop.f32.mrb[17].mxu0  ;;  %v1086_v46 = vpop.f32.mrb[17].mxu1 }
 0x168   : > { %v1347_v47 = vadd.f32 %v2332_v38, %v1006_v45  ;;  %v1379_v48 = vadd.f32 %v2332_v38, %v1086_v46  ;;  %v1008_v49 = vpop.f32.mrb[18].mxu0  ;;  %v1088_v50 = vpop.f32.mrb[18].mxu1  ;;  %v1491_v45 = vld [vmem:[%s2338_s12 + $0x20] sm:$0xff] (%p2165_p9)  ;;  %v1493_v46 = vld [vmem:[%s2338_s12 + $0x28] sm:$0xff] (%p2165_p9) }
 0x169   : > { %1410 = vst [vmem:[%s2338_s12 + $0x80] sm:$0xff] %v1346_v43  ;;  %1442 = vst [vmem:[%s2338_s12 + $0x180] sm:$0xff] %v1378_v44  ;;  %v1348_v51 = vadd.f32 %v2330_v37, %v1008_v49  ;;  %v1380_v52 = vadd.f32 %v2330_v37, %v1088_v50  ;;  %v1010_v53 = vpop.f32.mrb[19].mxu0  ;;  %v1090_v54 = vpop.f32.mrb[19].mxu1  ;;  %v1487_v43 = vld [vmem:[%s2338_s12 + $0x10] sm:$0xff] (%p2165_p9)  ;;  %v1489_v44 = vld [vmem:[%s2338_s12 + $0x18] sm:$0xff] (%p2165_p9) }
 0x16a   : > { %1411 = vst [vmem:[%s2338_s12 + $0x88] sm:$0xff] %v1347_v47  ;;  %1443 = vst [vmem:[%s2338_s12 + $0x188] sm:$0xff] %v1379_v48  ;;  %v1349_v55 = vadd.f32 %v2332_v38, %v1010_v53  ;;  %v1381_v56 = vadd.f32 %v2332_v38, %v1090_v54  ;;  %v1495_v47 = vld [vmem:[%s2338_s12 + $0x30] sm:$0xff] (%p2165_p9)  ;;  %v1497_v48 = vld [vmem:[%s2338_s12 + $0x38] sm:$0xff] (%p2165_p9) }
 0x16b   : > { %1412 = vst [vmem:[%s2338_s12 + $0x90] sm:$0xff] %v1348_v51  ;;  %1444 = vst [vmem:[%s2338_s12 + $0x190] sm:$0xff] %v1380_v52  ;;  %v1499_v49 = vld [vmem:[%s2338_s12 + $0x40] sm:$0xff] (%p2165_p9)  ;;  %v1501_v50 = vld [vmem:[%s2338_s12 + $0x48] sm:$0xff] (%p2165_p9) }
 0x16c   : > { %1413 = vst [vmem:[%s2338_s12 + $0x98] sm:$0xff] %v1349_v55  ;;  %1445 = vst [vmem:[%s2338_s12 + $0x198] sm:$0xff] %v1381_v56  ;;  %v1503_v51 = vld [vmem:[%s2338_s12 + $0x50] sm:$0xff] (%p2165_p9)  ;;  %v1505_v52 = vld [vmem:[%s2338_s12 + $0x58] sm:$0xff] (%p2165_p9) }
 0x16d   : > { %v1507_v53 = vld [vmem:[%s2338_s12 + $0x60] sm:$0xff] (%p2165_p9)  ;;  %v1509_v54 = vld [vmem:[%s2338_s12 + $0x68] sm:$0xff] (%p2165_p9)  ;;  %v1511_v55 = vld [vmem:[%s2338_s12 + $0x70] sm:$0xff] (%p2165_p9)  ;;  %1488 = vst [vmem:[%s2483_s17 + $0x30] sm:$0xff] (%p2165_p9), %v1487_v43 }
 0x16e   : > { %v1014_v57 = vpop.f32.mrb[20].mxu0  ;;  %v1094_v58 = vpop.f32.mrb[20].mxu1  ;;  %1490 = vst [vmem:[%s2483_s17 + $0x38] sm:$0xff] (%p2165_p9), %v1489_v44  ;;  %1492 = vst [vmem:[%s2483_s17 + $0x60] sm:$0xff] (%p2165_p9), %v1491_v45  ;;  %v1513_v56 = vld [vmem:[%s2338_s12 + $0x78] sm:$0xff] (%p2165_p9) }
 0x16f   : > { %v1350_v59 = vadd.f32 %v2330_v37, %v1014_v57  ;;  %v1382_v60 = vadd.f32 %v2330_v37, %v1094_v58  ;;  %v1016_v61 = vpop.f32.mrb[21].mxu0  ;;  %v1096_v62 = vpop.f32.mrb[21].mxu1  ;;  %1494 = vst [vmem:[%s2483_s17 + $0x68] sm:$0xff] (%p2165_p9), %v1493_v46  ;;  %1496 = vst [vmem:[%s2483_s17 + $0x90] sm:$0xff] (%p2165_p9), %v1495_v47 }
 0x170   : > { %v1351_v63 = vadd.f32 %v2332_v38, %v1016_v61  ;;  %v1383_v0 = vadd.f32 %v2332_v38, %v1096_v62  ;;  %v1018_v1 = vpop.f32.mrb[22].mxu0  ;;  %v1098_v2 = vpop.f32.mrb[22].mxu1  ;;  %1498 = vst [vmem:[%s2483_s17 + $0x98] sm:$0xff] (%p2165_p9), %v1497_v48  ;;  %1500 = vst [vmem:[%s2483_s17 + $0xc0] sm:$0xff] (%p2165_p9), %v1499_v49  ;;  %v1515_v57 = vld [vmem:[%s2338_s12 + $0x80] sm:$0xff] (%p2165_p9) }
 0x171   : > { %1414 = vst [vmem:[%s2338_s12 + $0xa0] sm:$0xff] %v1350_v59  ;;  %1446 = vst [vmem:[%s2338_s12 + $0x1a0] sm:$0xff] %v1382_v60  ;;  %v1352_v3 = vadd.f32 %v2330_v37, %v1018_v1  ;;  %v1384_v4 = vadd.f32 %v2330_v37, %v1098_v2  ;;  %v1020_v5 = vpop.f32.mrb[23].mxu0  ;;  %v1100_v6 = vpop.f32.mrb[23].mxu1  ;;  %v1517_v58 = vld [vmem:[%s2338_s12 + $0x88] sm:$0xff] (%p2165_p9) }
 0x172   : > { %1415 = vst [vmem:[%s2338_s12 + $0xa8] sm:$0xff] %v1351_v63  ;;  %1447 = vst [vmem:[%s2338_s12 + $0x1a8] sm:$0xff] %v1383_v0  ;;  %v1353_v7 = vadd.f32 %v2332_v38, %v1020_v5  ;;  %v1385_v8 = vadd.f32 %v2332_v38, %v1100_v6  ;;  %v1519_v59 = vld [vmem:[%s2338_s12 + $0x90] sm:$0xff] (%p2165_p9) }
 0x173   : > { %1416 = vst [vmem:[%s2338_s12 + $0xb0] sm:$0xff] %v1352_v3  ;;  %1448 = vst [vmem:[%s2338_s12 + $0x1b0] sm:$0xff] %v1384_v4  ;;  %v1521_v60 = vld [vmem:[%s2338_s12 + $0x98] sm:$0xff] (%p2165_p9) }
 0x174   : > { %1417 = vst [vmem:[%s2338_s12 + $0xb8] sm:$0xff] %v1353_v7  ;;  %1449 = vst [vmem:[%s2338_s12 + $0x1b8] sm:$0xff] %v1385_v8 }
 0x175   : > { %1502 = vst [vmem:[%s2483_s17 + $0xc8] sm:$0xff] (%p2165_p9), %v1501_v50  ;;  %1504 = vst [vmem:[%s2483_s17 + $0xf0] sm:$0xff] (%p2165_p9), %v1503_v51 }
 0x176   : > { %v1024_v9 = vpop.f32.mrb[24].mxu0  ;;  %v1104_v10 = vpop.f32.mrb[24].mxu1  ;;  %1506 = vst [vmem:[%s2483_s17 + $0xf8] sm:$0xff] (%p2165_p9), %v1505_v52  ;;  %1508 = vst [vmem:[%s2483_s17 + $0x120] sm:$0xff] (%p2165_p9), %v1507_v53 }
 0x177   : > { %v1354_v11 = vadd.f32 %v2330_v37, %v1024_v9  ;;  %v1386_v12 = vadd.f32 %v2330_v37, %v1104_v10  ;;  %v1026_v13 = vpop.f32.mrb[25].mxu0  ;;  %v1106_v14 = vpop.f32.mrb[25].mxu1  ;;  %1510 = vst [vmem:[%s2483_s17 + $0x128] sm:$0xff] (%p2165_p9), %v1509_v54  ;;  %1512 = vst [vmem:[%s2483_s17 + $0x150] sm:$0xff] (%p2165_p9), %v1511_v55  ;;  %v1547_v9 = vld [vmem:[%s2338_s12 + $0x100] sm:$0xff] (%p2165_p9)  ;;  %v1549_v10 = vld [vmem:[%s2338_s12 + $0x108] sm:$0xff] (%p2165_p9) }
 0x178   : > { %v1355_v15 = vadd.f32 %v2332_v38, %v1026_v13  ;;  %v1387_v16 = vadd.f32 %v2332_v38, %v1106_v14  ;;  %v1028_v17 = vpop.f32.mrb[26].mxu0  ;;  %v1108_v18 = vpop.f32.mrb[26].mxu1  ;;  %1514 = vst [vmem:[%s2483_s17 + $0x158] sm:$0xff] (%p2165_p9), %v1513_v56  ;;  %1516 = vst [vmem:[%s2483_s17 + $0x180] sm:$0xff] (%p2165_p9), %v1515_v57  ;;  %v1523_v61 = vld [vmem:[%s2338_s12 + $0xa0] sm:$0xff] (%p2165_p9)  ;;  %v1557_v14 = vld [vmem:[%s2338_s12 + $0x128] sm:$0xff] (%p2165_p9) }
 0x179   : > { %1418 = vst [vmem:[%s2338_s12 + $0xc0] sm:$0xff] %v1354_v11  ;;  %1450 = vst [vmem:[%s2338_s12 + $0x1c0] sm:$0xff] %v1386_v12  ;;  %v1356_v19 = vadd.f32 %v2330_v37, %v1028_v17  ;;  %v1388_v20 = vadd.f32 %v2330_v37, %v1108_v18  ;;  %v1030_v21 = vpop.f32.mrb[27].mxu0  ;;  %v1110_v22 = vpop.f32.mrb[27].mxu1  ;;  %v1525_v62 = vld [vmem:[%s2338_s12 + $0xa8] sm:$0xff] (%p2165_p9)  ;;  %v1551_v11 = vld [vmem:[%s2338_s12 + $0x110] sm:$0xff] (%p2165_p9) }
 0x17a   : > { %1419 = vst [vmem:[%s2338_s12 + $0xc8] sm:$0xff] %v1355_v15  ;;  %1451 = vst [vmem:[%s2338_s12 + $0x1c8] sm:$0xff] %v1387_v16  ;;  %v1357_v23 = vadd.f32 %v2332_v38, %v1030_v21  ;;  %v1389_v24 = vadd.f32 %v2332_v38, %v1110_v22  ;;  %v1527_v63 = vld [vmem:[%s2338_s12 + $0xb0] sm:$0xff] (%p2165_p9)  ;;  %v1553_v12 = vld [vmem:[%s2338_s12 + $0x118] sm:$0xff] (%p2165_p9) }
 0x17b   : > { %1420 = vst [vmem:[%s2338_s12 + $0xd0] sm:$0xff] %v1356_v19  ;;  %1452 = vst [vmem:[%s2338_s12 + $0x1d0] sm:$0xff] %v1388_v20  ;;  %v1529_v0 = vld [vmem:[%s2338_s12 + $0xb8] sm:$0xff] (%p2165_p9)  ;;  %v1555_v13 = vld [vmem:[%s2338_s12 + $0x120] sm:$0xff] (%p2165_p9) }
 0x17c   : > { %1421 = vst [vmem:[%s2338_s12 + $0xd8] sm:$0xff] %v1357_v23  ;;  %1453 = vst [vmem:[%s2338_s12 + $0x1d8] sm:$0xff] %v1389_v24  ;;  %v1559_v15 = vld [vmem:[%s2338_s12 + $0x130] sm:$0xff] (%p2165_p9)  ;;  %v1561_v16 = vld [vmem:[%s2338_s12 + $0x138] sm:$0xff] (%p2165_p9) }
 0x17d   : > { %1518 = vst [vmem:[%s2483_s17 + $0x188] sm:$0xff] (%p2165_p9), %v1517_v58  ;;  %1520 = vst [vmem:[%s2483_s17 + $0x1b0] sm:$0xff] (%p2165_p9), %v1519_v59  ;;  %v1563_v17 = vld [vmem:[%s2338_s12 + $0x140] sm:$0xff] (%p2165_p9)  ;;  %v1565_v18 = vld [vmem:[%s2338_s12 + $0x148] sm:$0xff] (%p2165_p9) }
 0x17e   : > { %v1034_v25 = vpop.f32.mrb[28].mxu0  ;;  %v1114_v26 = vpop.f32.mrb[28].mxu1  ;;  %1464 = sbr.rel (!%p2165_p9) target bundleno = 410 (0x19a), region = 82  ;;  %1522 = vst [vmem:[%s2483_s17 + $0x1b8] sm:$0xff] (%p2165_p9), %v1521_v60  ;;  %1524 = vst [vmem:[%s2483_s17 + $0x1e0] sm:$0xff] (%p2165_p9), %v1523_v61  ;;  %v1567_v19 = vld [vmem:[%s2338_s12 + $0x150] sm:$0xff] (%p2165_p9) }
 0x17f   : > { %v1358_v27 = vadd.f32 %v2330_v37, %v1034_v25  ;;  %v1390_v28 = vadd.f32 %v2330_v37, %v1114_v26  ;;  %v1036_v29 = vpop.f32.mrb[29].mxu0  ;;  %v1116_v30 = vpop.f32.mrb[29].mxu1  ;;  %1526 = vst [vmem:[%s2483_s17 + $0x1e8] sm:$0xff] (%p2165_p9), %v1525_v62  ;;  %1528 = vst [vmem:[%s2483_s17 + $0x210] sm:$0xff] (%p2165_p9), %v1527_v63  ;;  %v1569_v20 = vld [vmem:[%s2338_s12 + $0x158] sm:$0xff] (%p2165_p9)  ;;  %v1571_v21 = vld [vmem:[%s2338_s12 + $0x160] sm:$0xff] (%p2165_p9) }
 0x180   : > { %v1359_v31 = vadd.f32 %v2332_v38, %v1036_v29  ;;  %v1391_v32 = vadd.f32 %v2332_v38, %v1116_v30  ;;  %v1038_v33 = vpop.f32.mrb[30].mxu0  ;;  %v1118_v34 = vpop.f32.mrb[30].mxu1  ;;  %1530 = vst [vmem:[%s2483_s17 + $0x218] sm:$0xff] (%p2165_p9), %v1529_v0  ;;  %v1531_v1 = vld [vmem:[%s2338_s12 + $0xc0] sm:$0xff] (%p2165_p9)  ;;  %1548 = vst [vmem:[%s2483_s17 + $0x300] sm:$0xff] (%p2165_p9), %v1547_v9  ;;  %v1573_v22 = vld [vmem:[%s2338_s12 + $0x168] sm:$0xff] (%p2165_p9) }
 0x181   : > { %1422 = vst [vmem:[%s2338_s12 + $0xe0] sm:$0xff] %v1358_v27  ;;  %1454 = vst [vmem:[%s2338_s12 + $0x1e0] sm:$0xff] %v1390_v28  ;;  %v1360_v35 = vadd.f32 %v2330_v37, %v1038_v33  ;;  %v1392_v36 = vadd.f32 %v2330_v37, %v1118_v34  ;;  %v1040_v39 = vpop.f32.mrb[31].mxu0  ;;  %v1120_v40 = vpop.f32.mrb[31].mxu1  ;;  %v1483_v37 = vld [vmem:[%s2338_s12] sm:$0xff] (%p2165_p9)  ;;  %v1533_v2 = vld [vmem:[%s2338_s12 + $0xc8] sm:$0xff] (%p2165_p9) }
 0x182   : > { %1423 = vst [vmem:[%s2338_s12 + $0xe8] sm:$0xff] %v1359_v31  ;;  %1455 = vst [vmem:[%s2338_s12 + $0x1e8] sm:$0xff] %v1391_v32  ;;  %v1361_v41 = vadd.f32 %v2332_v38, %v1040_v39  ;;  %v1393_v42 = vadd.f32 %v2332_v38, %v1120_v40  ;;  %v1485_v38 = vld [vmem:[%s2338_s12 + $0x8] sm:$0xff] (%p2165_p9)  ;;  %v1535_v3 = vld [vmem:[%s2338_s12 + $0xd0] sm:$0xff] (%p2165_p9) }
 0x183   : > { %1424 = vst [vmem:[%s2338_s12 + $0xf0] sm:$0xff] %v1360_v35  ;;  %1456 = vst [vmem:[%s2338_s12 + $0x1f0] sm:$0xff] %v1392_v36  ;;  %v1537_v4 = vld [vmem:[%s2338_s12 + $0xd8] sm:$0xff] (%p2165_p9)  ;;  %v1575_v23 = vld [vmem:[%s2338_s12 + $0x170] sm:$0xff] (%p2165_p9) }
 0x184   : > { %1425 = vst [vmem:[%s2338_s12 + $0xf8] sm:$0xff] %v1361_v41  ;;  %1457 = vst [vmem:[%s2338_s12 + $0x1f8] sm:$0xff] %v1393_v42  ;;  %v1577_v24 = vld [vmem:[%s2338_s12 + $0x178] sm:$0xff] (%p2165_p9)  ;;  %v1579_v25 = vld [vmem:[%s2338_s12 + $0x180] sm:$0xff] (%p2165_p9) }
 0x185   : > { %1484 = vst [vmem:[%s2483_s17] sm:$0xff] %v1483_v37  ;;  %1486 = vst [vmem:[%s2483_s17 + $0x8] sm:$0xff] %v1485_v38  ;;  %v1581_v26 = vld [vmem:[%s2338_s12 + $0x188] sm:$0xff]  ;;  %v1583_v27 = vld [vmem:[%s2338_s12 + $0x190] sm:$0xff] }
 0x186   : > { %1532 = vst [vmem:[%s2483_s17 + $0x240] sm:$0xff] %v1531_v1  ;;  %1534 = vst [vmem:[%s2483_s17 + $0x248] sm:$0xff] %v1533_v2  ;;  %v1585_v28 = vld [vmem:[%s2338_s12 + $0x198] sm:$0xff]  ;;  %v1587_v29 = vld [vmem:[%s2338_s12 + $0x1a0] sm:$0xff] }
 0x187   : > { %1536 = vst [vmem:[%s2483_s17 + $0x270] sm:$0xff] %v1535_v3  ;;  %1538 = vst [vmem:[%s2483_s17 + $0x278] sm:$0xff] %v1537_v4  ;;  %v1589_v30 = vld [vmem:[%s2338_s12 + $0x1a8] sm:$0xff]  ;;  %v1591_v31 = vld [vmem:[%s2338_s12 + $0x1b0] sm:$0xff] }
 0x188   : > { %v1539_v5 = vld [vmem:[%s2338_s12 + $0xe0] sm:$0xff]  ;;  %1550 = vst [vmem:[%s2483_s17 + $0x308] sm:$0xff] %v1549_v10  ;;  %1552 = vst [vmem:[%s2483_s17 + $0x330] sm:$0xff] %v1551_v11  ;;  %v1593_v32 = vld [vmem:[%s2338_s12 + $0x1b8] sm:$0xff] }
 0x189   : > { %v1541_v6 = vld [vmem:[%s2338_s12 + $0xe8] sm:$0xff]  ;;  %1540 = vst [vmem:[%s2483_s17 + $0x2a0] sm:$0xff] %v1539_v5  ;;  %1554 = vst [vmem:[%s2483_s17 + $0x338] sm:$0xff] %v1553_v12  ;;  %v1595_v33 = vld [vmem:[%s2338_s12 + $0x1c0] sm:$0xff] }
 0x18a   : > { %1542 = vst [vmem:[%s2483_s17 + $0x2a8] sm:$0xff] %v1541_v6  ;;  %v1543_v7 = vld [vmem:[%s2338_s12 + $0xf0] sm:$0xff]  ;;  %1556 = vst [vmem:[%s2483_s17 + $0x360] sm:$0xff] %v1555_v13  ;;  %v1597_v34 = vld [vmem:[%s2338_s12 + $0x1c8] sm:$0xff] }
 0x18b   : > { %v1545_v8 = vld [vmem:[%s2338_s12 + $0xf8] sm:$0xff]  ;;  %1544 = vst [vmem:[%s2483_s17 + $0x2d0] sm:$0xff] %v1543_v7  ;;  %1558 = vst [vmem:[%s2483_s17 + $0x368] sm:$0xff] %v1557_v14  ;;  %v1599_v35 = vld [vmem:[%s2338_s12 + $0x1d0] sm:$0xff] }
 0x18c   : > { %1546 = vst [vmem:[%s2483_s17 + $0x2d8] sm:$0xff] %v1545_v8  ;;  %1560 = vst [vmem:[%s2483_s17 + $0x390] sm:$0xff] %v1559_v15  ;;  %v1601_v36 = vld [vmem:[%s2338_s12 + $0x1d8] sm:$0xff]  ;;  %v1603_v39 = vld [vmem:[%s2338_s12 + $0x1e0] sm:$0xff] }
 0x18d   : > { %1562 = vst [vmem:[%s2483_s17 + $0x398] sm:$0xff] %v1561_v16  ;;  %1564 = vst [vmem:[%s2483_s17 + $0x3c0] sm:$0xff] %v1563_v17  ;;  %v1605_v40 = vld [vmem:[%s2338_s12 + $0x1e8] sm:$0xff]  ;;  %v1607_v41 = vld [vmem:[%s2338_s12 + $0x1f0] sm:$0xff] }
 0x18e   : > { %1566 = vst [vmem:[%s2483_s17 + $0x3c8] sm:$0xff] %v1565_v18  ;;  %1568 = vst [vmem:[%s2483_s17 + $0x3f0] sm:$0xff] %v1567_v19  ;;  %v1609_v42 = vld [vmem:[%s2338_s12 + $0x1f8] sm:$0xff] }
 0x18f   : > { %1570 = vst [vmem:[%s2483_s17 + $0x3f8] sm:$0xff] %v1569_v20  ;;  %1572 = vst [vmem:[%s2483_s17 + $0x420] sm:$0xff] %v1571_v21 }
 0x190   : > { %1574 = vst [vmem:[%s2483_s17 + $0x428] sm:$0xff] %v1573_v22  ;;  %1576 = vst [vmem:[%s2483_s17 + $0x450] sm:$0xff] %v1575_v23 }
 0x191   : > { %1578 = vst [vmem:[%s2483_s17 + $0x458] sm:$0xff] %v1577_v24  ;;  %1580 = vst [vmem:[%s2483_s17 + $0x480] sm:$0xff] %v1579_v25 }
 0x192   : > { %1582 = vst [vmem:[%s2483_s17 + $0x488] sm:$0xff] %v1581_v26  ;;  %1584 = vst [vmem:[%s2483_s17 + $0x4b0] sm:$0xff] %v1583_v27 }
 0x193   : > { %1586 = vst [vmem:[%s2483_s17 + $0x4b8] sm:$0xff] %v1585_v28  ;;  %1588 = vst [vmem:[%s2483_s17 + $0x4e0] sm:$0xff] %v1587_v29 }
 0x194   : > { %1590 = vst [vmem:[%s2483_s17 + $0x4e8] sm:$0xff] %v1589_v30  ;;  %1592 = vst [vmem:[%s2483_s17 + $0x510] sm:$0xff] %v1591_v31 }
 0x195   : > { %1594 = vst [vmem:[%s2483_s17 + $0x518] sm:$0xff] %v1593_v32  ;;  %1596 = vst [vmem:[%s2483_s17 + $0x540] sm:$0xff] %v1595_v33 }
 0x196   : > { %1598 = vst [vmem:[%s2483_s17 + $0x548] sm:$0xff] %v1597_v34  ;;  %1600 = vst [vmem:[%s2483_s17 + $0x570] sm:$0xff] %v1599_v35 }
 0x197   : > { %1602 = vst [vmem:[%s2483_s17 + $0x578] sm:$0xff] %v1601_v36  ;;  %1604 = vst [vmem:[%s2483_s17 + $0x5a0] sm:$0xff] %v1603_v39 }
 0x198   : > { %1606 = vst [vmem:[%s2483_s17 + $0x5a8] sm:$0xff] %v1605_v40  ;;  %1608 = vst [vmem:[%s2483_s17 + $0x5d0] sm:$0xff] %v1607_v41 }
 0x199   : > { %1610 = vst [vmem:[%s2483_s17 + $0x5d8] sm:$0xff] %v1609_v42 }
 0x19a PF: > { %s13_s20 = sadd.s32 1, %s2076_s20   ;;  %s2633_s12 = smov %s2048_s13 }
 0x19b   : > { %p10_p2 = scmp.ge.s32.totalorder %s13_s20, 11   ;;  %s2634_s13 = smov %s2170_s4 }
 0x19c   : > { %s2635_s14 = smov %s2056_s15  ;;  %s2636_s15 = smov %s2159_s27 }
 0x19d   : > { %s2637_s16 = smov %s2068_s18  ;;  %s2638_s17 = smov %s2072_s19 }
 0x19e   : > { %s2639_s18 = smov %s2642_s22  ;;  %s2640_s19 = smov %s2646_s23 }
 0x19f   :  { %12 = sbr.rel (!%p10_p2) target bundleno = 5 (0x5), region = 142 }

// kernel: video_camera_attention_forward.6
= control target key start
LH: loop header
LB: loop body
LE: loop exit
PB: predicated region body
PF: predicated region fallthrough
CT: control target
= control target key end

     0   :  { %s3647_s0 = inlined_call_operand.vmem [shape: f32[2,4,768], index: 0, kind: input, shape index: {}, may-alias: {0,3,4}]   ;;  %s3648_s1 = inlined_call_operand.vmem [shape: f32[2,256,768], index: 1, kind: input, shape index: {}, may-alias: {1,2}]   ;;  %s3649_s2 = inlined_call_operand.vmem [shape: f32[2,256,768], index: 2, kind: input, shape index: {}, may-alias: {1,2}]   ;;  %s3650_s3 = inlined_call_operand.vmem [shape: f32[2,4,768], index: 3, kind: input, shape index: {}, may-alias: {0,3,4}]   ;;  %s3651_s4 = inlined_call_operand.vmem [shape: f32[2,4,768], index: 4, kind: input, shape index: {}, may-alias: {0,3,4}]   ;;  %s3652_s5 = inlined_call_operand.vmem [shape: f32[4,256], index: 5, kind: input, shape index: {}, may-alias: {5,9}]   ;;  %s3653_s6 = inlined_call_operand.vmem [shape: f32[4,256], index: 6, kind: input, shape index: {}, may-alias: {6,10}]   ;;  %s3654_s7 = inlined_call_operand.vmem [shape: f32[256,256], index: 7, kind: input, shape index: {}]   ;;  %s3655_s8 = inlined_call_operand.vmem [shape: f32[256,256], index: 8, kind: input, shape index: {}]   ;;  %s3656_s9 = inlined_call_operand.vmem [shape: f32[4,256], index: 9, kind: input, shape index: {}, may-alias: {5,9}]   ;;  %s3657_s10 = inlined_call_operand.vmem [shape: f32[4,256], index: 10, kind: input, shape index: {}, may-alias: {6,10}]   ;;  %s3658_s11 = inlined_call_operand.vmem [shape: f32[4,4], index: 11, kind: input, shape index: {}]   ;;  %s3659_s12 = inlined_call_operand.vmem [shape: f32[4,256], index: 12, kind: input, shape index: {}]   ;;  %s3660_s13 = inlined_call_operand.vmem [shape: f32[2,4,256], index: 13, kind: output, shape index: {}]  }
   0x1   :  { %3668 = sst [smem:[#allocation15_spill]] %s3647_s0 }
   0x2   :  { %3669 = sst [smem:[#allocation16_spill]] %s3648_s1 }
   0x3   :  { %3670 = sst [smem:[#allocation17_spill]] %s3649_s2 }
   0x4   :  { %3671 = sst [smem:[#allocation18_spill]] %s3652_s5 }
   0x5   :  { %3672 = sst [smem:[#allocation19_spill]] %s3658_s11 }
   0x6   :  { %s2601_s25 = smov 0   ;;  %s2603_s26 = smov 0  }
   0x7   :  { %s2605_s27 = smov 0   ;;  %s2607_s28 = smov 0  }
   0x8   :  { %s2609_s29 = smov 0   ;;  %s2611_s30 = smov 0  }
   0x9   :  { %s2613_s14 = smov 0  }
   0xa LB: > { %3673 = sst [smem:[#allocation8_spill]] %s2498_s26  ;;  %s35_s15 = sadd.s32 1, %s2510_s29  ;;  %s2518_s14 = sphi %s2613_s14, %s23_s14   ;;  %s2514_s30 = sphi %s2611_s30, %s3700_s30   ;;  %s2510_s29 = sphi %s2609_s29, %s3699_s29   ;;  %s2506_s28 = sphi %s2607_s28, %s3698_s28   ;;  %s2502_s27 = sphi %s2605_s27, %s3697_s27   ;;  %s2498_s26 = sphi %s2603_s26, %s3696_s26   ;;  %s2494_s25 = sphi %s2601_s25, %s3695_s25  }
   0xb   : > { %3674 = sst [smem:[#allocation9_spill]] %s2510_s29  ;;  %p36_p0 = scmp.ge.s32.totalorder %s35_s15, 2 }
   0xc   : > { %3675 = sst [smem:[#allocation10_spill]] %s2514_s30  ;;  %s42_s16 = sadd.s32 1, %s2514_s30 }
   0xd   : > { %3676 = sst [smem:[#allocation11_spill]] %s2518_s14  ;;  %p84_p1 = scmp.ne.s32.totalorder %s2498_s26, %s2494_s25 }
   0xe   : > { %p85_p2 = scmp.eq.s32.totalorder %s2518_s14, 0  ;;  %s3702_s15 = smov (%p36_p0, %s35_s15), 0 }
   0xf   : > { %3677 = sst [smem:[#allocation12_spill]] %s3702_s15  ;;  %s3704_s16 = smov (!%p36_p0, %s42_s16), %s2514_s30 }
  0x10   : > { %p2644_p3 = por %p85_p2, %p84_p1  ;;  %p44_p4 = scmp.ge.s32.totalorder %s3704_s16, 2 }
  0x11   : > { %s73_s18 = ssub.s32 %s2510_s29, %s3702_s15  ;;  %s77_s21 = sadd.s32 1, %s2498_s26 }
  0x12   : > { %s3706_s16 = smov (%p44_p4, %s3704_s16), 0  ;;  %p2127_p6 = scmp.ge.s32.totalorder %s2518_s14, 4 }
  0x13   : > { %3679 = sst [smem:[#allocation13_spill]] %s3706_s16  ;;  %s72_s19 = ssub.s32 %s2514_s30, %s3706_s16 }
  0x14   : > { %s74_s20 = sor.u32 %s73_s18, %s72_s19  ;;  %414 = sbr.rel (%p2127_p6) target bundleno = 79 (0x4f), region = 36 }
  0x15   : > { %p75_p5 = scmp.eq.s32.totalorder %s74_s20, 0 }
  0x17   : > { %s2656_s22 = scalar_select %p75_p5, %s2498_s26, %s77_s21  }
  0x19   : > { %3680 = sst [smem:[#allocation14_spill]] %s2656_s22 }
  0x1b   : > { %425 = sbr.rel (!%p2644_p3) target bundleno = 53 (0x35), region = 44  ;;  %s427_s23 = sand.u32 (%p2644_p3), 1, %s2498_s26  }
  0x1c   : > { %s1967_s24 = smul.u32 (%p2644_p3), 96, %s2510_s29  ;;  %s2128_s15 = sshll.u32 (%p2644_p3), %s427_s23, 8 }
  0x1d   : > { %s1968_s11 = smul.u32 (%p2644_p3), 192, %s2514_s30  ;;  %s3681_s1 = sld [smem:[#allocation16_spill]] (%p2644_p3) }
  0x1e   : > { %s2672_s21 = scalar_lea.vmem (%p2644_p3), [#allocation6], %s2128_s15 }
  0x1f   : > { %s1969_s5 = sadd.s32 (%p2644_p3), %s1968_s11, %s1967_s24 }
  0x20   : > { %s2129_s16 = sshll.u32 (%p2644_p3), %s1969_s5, 3 }
  0x23   : > { %s2667_s20 = scalar_lea.vmem %s3681_s1, %s2129_s16 }
  0x24   : > { %v2130_v0 = vld [vmem:[%s2667_s20 + $0x10] sm:$0xff]  ;;  %v2131_v1 = vld [vmem:[%s2667_s20 + $0x18] sm:$0xff]  ;;  %v2132_v2 = vld [vmem:[%s2667_s20 + $0x40] sm:$0xff] }
  0x25   : > { %450 = vst [vmem:[%s2672_s21] sm:$0xff] %v2130_v0  ;;  %452 = vst [vmem:[%s2672_s21 + $0x8] sm:$0xff] %v2131_v1  ;;  %v2133_v3 = vld [vmem:[%s2667_s20 + $0x48] sm:$0xff]  ;;  %v2134_v4 = vld [vmem:[%s2667_s20 + $0x70] sm:$0xff] }
  0x26   : > { %454 = vst [vmem:[%s2672_s21 + $0x10] sm:$0xff] %v2132_v2  ;;  %v2135_v5 = vld [vmem:[%s2667_s20 + $0x78] sm:$0xff]  ;;  %456 = vst [vmem:[%s2672_s21 + $0x18] sm:$0xff] %v2133_v3  ;;  %v2136_v6 = vld [vmem:[%s2667_s20 + $0xa0] sm:$0xff] }
  0x27   : > { %458 = vst [vmem:[%s2672_s21 + $0x20] sm:$0xff] %v2134_v4  ;;  %460 = vst [vmem:[%s2672_s21 + $0x28] sm:$0xff] %v2135_v5  ;;  %v2137_v7 = vld [vmem:[%s2667_s20 + $0xa8] sm:$0xff]  ;;  %v2138_v8 = vld [vmem:[%s2667_s20 + $0xd0] sm:$0xff] }
  0x28   : > { %462 = vst [vmem:[%s2672_s21 + $0x30] sm:$0xff] %v2136_v6  ;;  %464 = vst [vmem:[%s2672_s21 + $0x38] sm:$0xff] %v2137_v7  ;;  %v2139_v9 = vld [vmem:[%s2667_s20 + $0xd8] sm:$0xff]  ;;  %v2140_v10 = vld [vmem:[%s2667_s20 + $0x100] sm:$0xff] }
  0x29   : > { %466 = vst [vmem:[%s2672_s21 + $0x40] sm:$0xff] %v2138_v8  ;;  %v2141_v11 = vld [vmem:[%s2667_s20 + $0x108] sm:$0xff]  ;;  %468 = vst [vmem:[%s2672_s21 + $0x48] sm:$0xff] %v2139_v9  ;;  %v2142_v12 = vld [vmem:[%s2667_s20 + $0x130] sm:$0xff] }
  0x2a   : > { %470 = vst [vmem:[%s2672_s21 + $0x50] sm:$0xff] %v2140_v10  ;;  %472 = vst [vmem:[%s2672_s21 + $0x58] sm:$0xff] %v2141_v11  ;;  %v2143_v13 = vld [vmem:[%s2667_s20 + $0x138] sm:$0xff]  ;;  %v2144_v14 = vld [vmem:[%s2667_s20 + $0x160] sm:$0xff] }
  0x2b   : > { %474 = vst [vmem:[%s2672_s21 + $0x60] sm:$0xff] %v2142_v12  ;;  %476 = vst [vmem:[%s2672_s21 + $0x68] sm:$0xff] %v2143_v13  ;;  %v2145_v15 = vld [vmem:[%s2667_s20 + $0x168] sm:$0xff]  ;;  %v2146_v16 = vld [vmem:[%s2667_s20 + $0x190] sm:$0xff] }
  0x2c   : > { %478 = vst [vmem:[%s2672_s21 + $0x70] sm:$0xff] %v2144_v14  ;;  %v2147_v17 = vld [vmem:[%s2667_s20 + $0x198] sm:$0xff]  ;;  %480 = vst [vmem:[%s2672_s21 + $0x78] sm:$0xff] %v2145_v15  ;;  %v2148_v18 = vld [vmem:[%s2667_s20 + $0x1c0] sm:$0xff] }
  0x2d   : > { %482 = vst [vmem:[%s2672_s21 + $0x80] sm:$0xff] %v2146_v16  ;;  %484 = vst [vmem:[%s2672_s21 + $0x88] sm:$0xff] %v2147_v17  ;;  %v2149_v19 = vld [vmem:[%s2667_s20 + $0x1c8] sm:$0xff]  ;;  %v2150_v20 = vld [vmem:[%s2667_s20 + $0x1f0] sm:$0xff] }
  0x2e   : > { %486 = vst [vmem:[%s2672_s21 + $0x90] sm:$0xff] %v2148_v18  ;;  %488 = vst [vmem:[%s2672_s21 + $0x98] sm:$0xff] %v2149_v19  ;;  %v2151_v21 = vld [vmem:[%s2667_s20 + $0x1f8] sm:$0xff]  ;;  %v2152_v22 = vld [vmem:[%s2667_s20 + $0x220] sm:$0xff] }
  0x2f   : > { %490 = vst [vmem:[%s2672_s21 + $0xa0] sm:$0xff] %v2150_v20  ;;  %v2153_v23 = vld [vmem:[%s2667_s20 + $0x228] sm:$0xff]  ;;  %492 = vst [vmem:[%s2672_s21 + $0xa8] sm:$0xff] %v2151_v21  ;;  %v2154_v24 = vld [vmem:[%s2667_s20 + $0x250] sm:$0xff] }
  0x30   : > { %494 = vst [vmem:[%s2672_s21 + $0xb0] sm:$0xff] %v2152_v22  ;;  %496 = vst [vmem:[%s2672_s21 + $0xb8] sm:$0xff] %v2153_v23  ;;  %v2155_v25 = vld [vmem:[%s2667_s20 + $0x258] sm:$0xff]  ;;  %v2156_v26 = vld [vmem:[%s2667_s20 + $0x280] sm:$0xff] }
  0x31   : > { %498 = vst [vmem:[%s2672_s21 + $0xc0] sm:$0xff] %v2154_v24  ;;  %500 = vst [vmem:[%s2672_s21 + $0xc8] sm:$0xff] %v2155_v25  ;;  %v2157_v27 = vld [vmem:[%s2667_s20 + $0x288] sm:$0xff]  ;;  %v2158_v28 = vld [vmem:[%s2667_s20 + $0x2b0] sm:$0xff] }
  0x32   : > { %502 = vst [vmem:[%s2672_s21 + $0xd0] sm:$0xff] %v2156_v26  ;;  %v2159_v29 = vld [vmem:[%s2667_s20 + $0x2b8] sm:$0xff]  ;;  %504 = vst [vmem:[%s2672_s21 + $0xd8] sm:$0xff] %v2157_v27  ;;  %v2160_v30 = vld [vmem:[%s2667_s20 + $0x2e0] sm:$0xff] }
  0x33   : > { %506 = vst [vmem:[%s2672_s21 + $0xe0] sm:$0xff] %v2158_v28  ;;  %508 = vst [vmem:[%s2672_s21 + $0xe8] sm:$0xff] %v2159_v29  ;;  %v2161_v31 = vld [vmem:[%s2667_s20 + $0x2e8] sm:$0xff] }
  0x34   : > { %510 = vst [vmem:[%s2672_s21 + $0xf0] sm:$0xff] %v2160_v30  ;;  %512 = vst [vmem:[%s2672_s21 + $0xf8] sm:$0xff] %v2161_v31 }
  0x35 PF: > { %518 = sbr.rel (!%p2644_p3) target bundleno = 79 (0x4f), region = 67  ;;  %s520_s5 = sand.u32 (%p2644_p3), 1, %s2498_s26  }
  0x36   : > { %s1975_s11 = smul.u32 (%p2644_p3), 96, %s2510_s29  ;;  %s2162_s15 = sshll.u32 (%p2644_p3), %s520_s5, 8 }
  0x37   : > { %s1976_s16 = smul.u32 (%p2644_p3), 192, %s2514_s30  ;;  %s3682_s2 = sld [smem:[#allocation17_spill]] (%p2644_p3) }
  0x38   : > { %s2748_s17 = scalar_lea.vmem (%p2644_p3), [#allocation7], %s2162_s15 }
  0x39   : > { %s1977_s23 = sadd.s32 (%p2644_p3), %s1976_s16, %s1975_s11 }
  0x3a   : > { %s2163_s24 = sshll.u32 (%p2644_p3), %s1977_s23, 3 }
  0x3d   : > { %s2743_s1 = scalar_lea.vmem %s3682_s2, %s2163_s24 }
  0x3e   : > { %v2164_v32 = vld [vmem:[%s2743_s1 + $0x20] sm:$0xff]  ;;  %v2165_v33 = vld [vmem:[%s2743_s1 + $0x28] sm:$0xff]  ;;  %v2166_v34 = vld [vmem:[%s2743_s1 + $0x50] sm:$0xff] }
  0x3f   : > { %543 = vst [vmem:[%s2748_s17] sm:$0xff] %v2164_v32  ;;  %545 = vst [vmem:[%s2748_s17 + $0x8] sm:$0xff] %v2165_v33  ;;  %v2167_v35 = vld [vmem:[%s2743_s1 + $0x58] sm:$0xff]  ;;  %v2168_v36 = vld [vmem:[%s2743_s1 + $0x80] sm:$0xff] }
  0x40   : > { %547 = vst [vmem:[%s2748_s17 + $0x10] sm:$0xff] %v2166_v34  ;;  %v2169_v37 = vld [vmem:[%s2743_s1 + $0x88] sm:$0xff]  ;;  %549 = vst [vmem:[%s2748_s17 + $0x18] sm:$0xff] %v2167_v35  ;;  %v2170_v38 = vld [vmem:[%s2743_s1 + $0xb0] sm:$0xff] }
  0x41   : > { %551 = vst [vmem:[%s2748_s17 + $0x20] sm:$0xff] %v2168_v36  ;;  %553 = vst [vmem:[%s2748_s17 + $0x28] sm:$0xff] %v2169_v37  ;;  %v2171_v39 = vld [vmem:[%s2743_s1 + $0xb8] sm:$0xff]  ;;  %v2172_v40 = vld [vmem:[%s2743_s1 + $0xe0] sm:$0xff] }
  0x42   : > { %555 = vst [vmem:[%s2748_s17 + $0x30] sm:$0xff] %v2170_v38  ;;  %557 = vst [vmem:[%s2748_s17 + $0x38] sm:$0xff] %v2171_v39  ;;  %v2173_v41 = vld [vmem:[%s2743_s1 + $0xe8] sm:$0xff]  ;;  %v2174_v42 = vld [vmem:[%s2743_s1 + $0x110] sm:$0xff] }
  0x43   : > { %559 = vst [vmem:[%s2748_s17 + $0x40] sm:$0xff] %v2172_v40  ;;  %v2175_v43 = vld [vmem:[%s2743_s1 + $0x118] sm:$0xff]  ;;  %561 = vst [vmem:[%s2748_s17 + $0x48] sm:$0xff] %v2173_v41  ;;  %v2176_v44 = vld [vmem:[%s2743_s1 + $0x140] sm:$0xff] }
  0x44   : > { %563 = vst [vmem:[%s2748_s17 + $0x50] sm:$0xff] %v2174_v42  ;;  %565 = vst [vmem:[%s2748_s17 + $0x58] sm:$0xff] %v2175_v43  ;;  %v2177_v45 = vld [vmem:[%s2743_s1 + $0x148] sm:$0xff]  ;;  %v2178_v46 = vld [vmem:[%s2743_s1 + $0x170] sm:$0xff] }
  0x45   : > { %567 = vst [vmem:[%s2748_s17 + $0x60] sm:$0xff] %v2176_v44  ;;  %569 = vst [vmem:[%s2748_s17 + $0x68] sm:$0xff] %v2177_v45  ;;  %v2179_v47 = vld [vmem:[%s2743_s1 + $0x178] sm:$0xff]  ;;  %v2180_v48 = vld [vmem:[%s2743_s1 + $0x1a0] sm:$0xff] }
  0x46   : > { %571 = vst [vmem:[%s2748_s17 + $0x70] sm:$0xff] %v2178_v46  ;;  %v2181_v49 = vld [vmem:[%s2743_s1 + $0x1a8] sm:$0xff]  ;;  %573 = vst [vmem:[%s2748_s17 + $0x78] sm:$0xff] %v2179_v47  ;;  %v2182_v50 = vld [vmem:[%s2743_s1 + $0x1d0] sm:$0xff] }
  0x47   : > { %575 = vst [vmem:[%s2748_s17 + $0x80] sm:$0xff] %v2180_v48  ;;  %577 = vst [vmem:[%s2748_s17 + $0x88] sm:$0xff] %v2181_v49  ;;  %v2183_v51 = vld [vmem:[%s2743_s1 + $0x1d8] sm:$0xff]  ;;  %v2184_v52 = vld [vmem:[%s2743_s1 + $0x200] sm:$0xff] }
  0x48   : > { %579 = vst [vmem:[%s2748_s17 + $0x90] sm:$0xff] %v2182_v50  ;;  %581 = vst [vmem:[%s2748_s17 + $0x98] sm:$0xff] %v2183_v51  ;;  %v2185_v53 = vld [vmem:[%s2743_s1 + $0x208] sm:$0xff]  ;;  %v2186_v54 = vld [vmem:[%s2743_s1 + $0x230] sm:$0xff] }
  0x49   : > { %583 = vst [vmem:[%s2748_s17 + $0xa0] sm:$0xff] %v2184_v52  ;;  %v2187_v55 = vld [vmem:[%s2743_s1 + $0x238] sm:$0xff]  ;;  %585 = vst [vmem:[%s2748_s17 + $0xa8] sm:$0xff] %v2185_v53  ;;  %v2188_v56 = vld [vmem:[%s2743_s1 + $0x260] sm:$0xff] }
  0x4a   : > { %587 = vst [vmem:[%s2748_s17 + $0xb0] sm:$0xff] %v2186_v54  ;;  %589 = vst [vmem:[%s2748_s17 + $0xb8] sm:$0xff] %v2187_v55  ;;  %v2189_v57 = vld [vmem:[%s2743_s1 + $0x268] sm:$0xff]  ;;  %v2190_v58 = vld [vmem:[%s2743_s1 + $0x290] sm:$0xff] }
  0x4b   : > { %591 = vst [vmem:[%s2748_s17 + $0xc0] sm:$0xff] %v2188_v56  ;;  %593 = vst [vmem:[%s2748_s17 + $0xc8] sm:$0xff] %v2189_v57  ;;  %v2191_v59 = vld [vmem:[%s2743_s1 + $0x298] sm:$0xff]  ;;  %v2192_v60 = vld [vmem:[%s2743_s1 + $0x2c0] sm:$0xff] }
  0x4c   : > { %595 = vst [vmem:[%s2748_s17 + $0xd0] sm:$0xff] %v2190_v58  ;;  %v2193_v61 = vld [vmem:[%s2743_s1 + $0x2c8] sm:$0xff]  ;;  %597 = vst [vmem:[%s2748_s17 + $0xd8] sm:$0xff] %v2191_v59  ;;  %v2194_v62 = vld [vmem:[%s2743_s1 + $0x2f0] sm:$0xff] }
  0x4d   : > { %599 = vst [vmem:[%s2748_s17 + $0xe0] sm:$0xff] %v2192_v60  ;;  %601 = vst [vmem:[%s2748_s17 + $0xe8] sm:$0xff] %v2193_v61  ;;  %v2195_v63 = vld [vmem:[%s2743_s1 + $0x2f8] sm:$0xff] }
  0x4e   : > { %603 = vst [vmem:[%s2748_s17 + $0xf0] sm:$0xff] %v2194_v62  ;;  %605 = vst [vmem:[%s2748_s17 + $0xf8] sm:$0xff] %v2195_v63 }
  0x4f PF: > { %p2196_p7 = scmp.ge.s32.totalorder %s2518_s14, 1  ;;  %p655_p8 = scmp.lt.s32.totalorder %s2518_s14, 5 }
  0x51   : > { %p656_p9 = pnand %p2196_p7, %p655_p8 }
  0x52   : > { %s662_s20 = sand.u32 (!%p656_p9), 1, %s2494_s25   ;;  %p749_p10 = scmp.lt.s32.totalorder (!%p656_p9), %s2506_s28, 1 }
  0x53   : > { %659 = sbr.rel (%p656_p9) target bundleno = 2836 (0xb14), region = 110  ;;  %s2197_s21 = sshll.u32 (!%p656_p9), %s662_s20, 8 }
  0x54   : > { %s2202_s1 = sshll.u32 (!%p656_p9), %s2502_s27, 4  ;;  %p782_p12 = scmp.lt.s32.totalorder (!%p656_p9), %s2502_s27, 1 }
  0x55   : > { %p769_p11 = scmp.lt.s32.totalorder (!%p656_p9), %s2202_s1, 31  ;;  %s3683_s0 = sld [smem:[#allocation15_spill]] (!%p656_p9) }
  0x56   : > { %s2853_s29 = scalar_lea.vmem (!%p656_p9), [#allocation6], %s2197_s21  ;;  %s2855_s30 = scalar_lea.vmem (!%p656_p9), [#allocation7], %s2197_s21 }
  0x57   : > { %p2211_p13 = scmp.ne.s32.totalorder (!%p656_p9), %s2502_s27, 0 }
  0x5a   : > { %s3708_s28 = smov (!%p749_p10, %s2506_s28), 1  ;;  %s3710_s1 = smov (!%p769_p11, %s2202_s1), 31 }
  0x5b   : > { %s2818_s5 = smul.u32 24, %s3708_s28  ;;  %s2223_s11 = sshll.u32 %s3708_s28, 3  ;;  %v2522_v3 = vmov (!%p2211_p13), 0.0   ;;  %vm2523_vm0 = vmmov (!%p2211_p13), 0   ;;  %v807_v5 = vlaneseq (!%p2211_p13)  ;;  %v880_v12 = vld [vmem:[%s3657_s10] sm:$0xff] (!%p2211_p13)  ;;  %vm963_vm5 = vcmask (!%p2211_p13), 27648  }
  0x5c   : > { %s2221_s2 = sshll.u32 %s3710_s1, 4  ;;  %s2846_s24 = scalar_lea.vmem %s3660_s13, %s2223_s11  ;;  %2268 = vmatprep.subr.bf16.mxu0 (!%p2211_p13), %v2522_v3  ;;  %2274 = vmatprep.subr.bf16.mxu1 (!%p2211_p13), %v2522_v3  ;;  %v902_v15 = vcombine.high (!%p2211_p13), %v880_v12, %v880_v12  ;;  %v879_v20 = vld [vmem:[%s3656_s9] sm:$0xff] (!%p2211_p13)  ;;  %vm981_vm6 = vcmask (!%p2211_p13), 1041408   ;;  %vm970_vm7 = vcmask (!%p2211_p13), 3072   ;;  %vm977_vm8 = vcmask (!%p2211_p13), 31744  }
  0x5d   : > { %s753_s23 = scalar_lea.vmem %s3683_s0, %s2818_s5  ;;  %s2025_s18 = scalar_lea.vmem %s3650_s3, %s2818_s5  ;;  %2270 = vmatprep.mubr.msk.bf16.mxu0 (!%p2211_p13), %vm2523_vm0, %v2522_v3  ;;  %2276 = vmatprep.mubr.msk.bf16.mxu1 (!%p2211_p13), %vm2523_vm0, %v2522_v3  ;;  %v808_v6 = vand.u32 (!%p2211_p13), 127, %v807_v5  ;;  %v798_v27 = vld [vmem:[%s3653_s6] sm:$0xff] (!%p2211_p13) }
  0x5e   : > { %s2029_s20 = scalar_lea.vmem %s3651_s4, %s2818_s5  ;;  %s2835_s22 = scalar_lea.vmem %s3654_s7, %s2221_s2  ;;  %v2214_v0 = vld [vmem:[%s2025_s18 + $0x8] sm:$0xff] (!%p2211_p13)  ;;  %v796_v2 = vld [vmem:[%s753_s23] sm:$0xff] (!%p2211_p13)  ;;  %v851_v35 = vcombine.high (!%p2211_p13), %v798_v27, %v798_v27 }
  0x5f   : > { %s2840_s14 = scalar_lea.vmem %s3655_s8, %s2221_s2  ;;  %795 = sbr.rel (%p2211_p13) target bundleno = 1208 (0x4b8), region = 122  ;;  %v883_v1 = vcombine.high (!%p2211_p13), %v2214_v0, %v2214_v0  ;;  %v801_v4 = vcombine.high (!%p2211_p13), %v796_v2, %v796_v2  ;;  %v819_v7 = vadd.s32 (!%p2211_p13), 128, %v808_v6  ;;  %v824_v10 = vand.u32 (!%p2211_p13), 1, %v808_v6 }
  0x60   : > { %s783_s15 = scalar_select %p782_p12, %s2502_s27, 1 }
  0x61   : > { %s2520_s2 = smov (!%p2211_p13), 1   ;;  %s2521_s26 = smov (!%p2211_p13), 127   ;;  %v831_v11 = vand.u32 (!%p2211_p13), 1, %v819_v7  ;;  %vm809_vm1 = vcmp.lt.s32.totalorder (!%p2211_p13), %v808_v6, 127  ;;  %vm816_vm2 = vcmp.lt.s32.totalorder (!%p2211_p13), %v808_v6, 1  ;;  %vm2869_vm3 = vcmp.eq.s32.totalorder (!%p2211_p13), %v824_v10, 0 }
  0x62   : > { %s2208_s25 = sshll.u32 %s783_s15, 2  ;;  %891 = vrot.lane.b32.xlu1 (!%p2211_p13), %v2214_v0, %s2520_s2  ;;  %885 = vrot.lane.b32.xlu0 (!%p2211_p13), %v2214_v0, %s2521_s26  ;;  %v881_v28 = vmul.f32 (!%p2211_p13), %v2214_v0, %v879_v20  ;;  %v2215_v0 = vld [vmem:[%s2029_s20 + $0x10] sm:$0xff] (!%p2211_p13) }
  0x63   : > { %s2851_s1 = scalar_lea.vmem %s3659_s12, %s2208_s25  ;;  %vm2873_vm4 = vcmp.eq.s32.totalorder (!%p2211_p13), %v831_v11, 0  ;;  %s3688_s25 = sld [smem:[#allocation18_spill]] (!%p2211_p13) }
  0x66   : > { %893 = vrot.lane.b32.xlu1 %v883_v1, %s2520_s2  ;;  %887 = vrot.lane.b32.xlu0 %v883_v1, %s2521_s26  ;;  %v918_v1 = vcombine.high %v2215_v0, %v2215_v0 }
  0x69   : > { %v797_v37 = vld [vmem:[%s3688_s25] sm:$0xff] }
  0x6a   : > { %803 = vrot.lane.b32.xlu0 %v796_v2, %s2521_s26  ;;  %805 = vrot.lane.b32.xlu1 %v801_v4, %s2521_s26  ;;  %v799_v47 = vmul.f32 %v797_v37, %v796_v2 }
  0x6e   : > { %812 = vrot.lane.b32.xlu0 %v796_v2, %s2520_s2  ;;  %814 = vrot.lane.b32.xlu1 %v801_v4, %s2520_s2  ;;  %s3689_s2 = sld [smem:[#allocation19_spill]]  ;;  %v920_v2 = vpack.c.bf16 %v2215_v0, %v2215_v0  ;;  %v921_v4 = vpack.c.bf16 %v918_v1, %v918_v1 }
  0x70   : > { %v983_v5 = vsel %vm981_vm6, %v920_v2, 0  ;;  %v1085_v6 = vsel %vm981_vm6, %v921_v4, 0 }
  0x71   : > { %2275 = vmatpush3.bf16.msra.mxu1 %v983_v5 }
  0x72   : > { %2280 = vmatprep.subr.bf16.mxu1 %v2522_v3 }
  0x74   : > { %v922_v57 = vld [vmem:[%s3689_s2] sm:$0xf] }
  0xd4   : > { %v892_v8 = vpop.permute.xlu1 %891  ;;  %v886_v9 = vpop.permute.xlu0 %885 }
  0xd8   : > { %v894_v13 = vpop.permute.xlu1 %893  ;;  %v888_v14 = vpop.permute.xlu0 %887 }
  0xd9   : > { %v889_v16 = vsel %vm809_vm1, %v886_v9, %v888_v14  ;;  %v890_v17 = vsel %vm809_vm1, %v888_v14, %v886_v9  ;;  %v895_v23 = vsel %vm816_vm2, %v892_v8, %v894_v13  ;;  %v896_v24 = vsel %vm816_vm2, %v894_v13, %v892_v8 }
  0xda   : > { %v897_v21 = vsub.f32 0.0, %v889_v16  ;;  %v898_v22 = vsub.f32 0.0, %v890_v17 }
  0xdc   : > { %v804_v25 = vpop.permute.xlu0 %803  ;;  %v806_v26 = vpop.permute.xlu1 %805  ;;  %v899_v29 = vsel %vm2869_vm3, %v897_v21, %v896_v24  ;;  %v900_v30 = vsel %vm2873_vm4, %v898_v22, %v895_v23  ;;  %v1026_v21 = vld [vmem:[%s3689_s2] sm:$0xf] }
  0xdd   : > { %v810_v31 = vsel %vm809_vm1, %v804_v25, %v806_v26  ;;  %v811_v32 = vsel %vm809_vm1, %v806_v26, %v804_v25  ;;  %v904_v33 = vmul.f32 %v899_v29, %v880_v12  ;;  %v905_v34 = vmul.f32 %v902_v15, %v900_v30 }
  0xde   : > { %v846_v38 = vsub.f32 0.0, %v810_v31  ;;  %v847_v39 = vsub.f32 0.0, %v811_v32 }
  0xdf   : > { %v908_v36 = vcombine.low %v904_v33, %v905_v34 }
  0xe0   : > { %v813_v40 = vpop.permute.xlu0 %812  ;;  %v815_v41 = vpop.permute.xlu1 %814 }
  0xe1   : > { %v817_v42 = vsel %vm816_vm2, %v813_v40, %v815_v41  ;;  %v818_v43 = vsel %vm816_vm2, %v815_v41, %v813_v40  ;;  %v910_v44 = vadd.f32 %v908_v36, %v881_v28 }
  0xe2   : > { %v848_v45 = vsel %vm2869_vm3, %v846_v38, %v818_v43  ;;  %v849_v46 = vsel %vm2873_vm4, %v847_v39, %v817_v42 }
  0xe3   : > { %v853_v48 = vmul.f32 %v848_v45, %v798_v27  ;;  %v854_v49 = vmul.f32 %v851_v35, %v849_v46  ;;  %v914_v50 = vpack.c.bf16 %v910_v44, %v910_v44  ;;  %v912_v10 = vcombine.high %v910_v44, %v910_v44 }
  0xe5   : > { %v857_v51 = vcombine.low %v853_v48, %v854_v49  ;;  %2269 = vmatpush3.bf16.xpose.msra.mxu0 %v914_v50  ;;  %v915_v14 = vpack.c.bf16 %v912_v10, %v912_v10 }
  0xe6   : > { %2286 = vmatprep.subr.bf16.mxu0 %v2522_v3 }
  0xe7   : > { %v859_v52 = vadd.f32 %v857_v51, %v799_v47 }
  0xe9   : > { %v860_v53 = vmul.f32 0.088388346, %v859_v52 }
  0xeb   : > { %v864_v54 = vpack.c.bf16 %v860_v53, %v860_v53  ;;  %v862_v55 = vcombine.high %v860_v53, %v860_v53 }
  0xed   : > { %2271 = vmatmul.mubr.bf16.vlgmr.msra.gmra.mrb[0].mxu0 %v864_v54  ;;  %v2212_v56 = vpack.c.bf16 %v862_v55, %v860_v53  ;;  %v865_v15 = vpack.c.bf16 %v862_v55, %v862_v55 }
  0xee   : > { %2288 = vmatprep.mubr.msk.bf16.mxu0 %vm2523_vm0, %v2522_v3  ;;  %2287 = vmatpush3.bf16.msra.mxu0 %v1085_v6 }
  0xef   : > { %2213 = vst.sshfl [vmem:[#allocation2] sm:$0x33 pattern:$0x76325410] %v2212_v56 }
 0x1c0   : > { %v957_v58 = vpop.f32.mrb[0].mxu0 }
 0x1c1   : > { %v958_v59 = vadd.f32 %v957_v58, %v922_v57  ;;  %v2272_v60 = vpop.f32.mrb[1].mxu0 }
 0x1c2   : > { %v960_v61 = vpop.f32.mrb[2].mxu0 }
 0x1c3   : > { %v2273_v62 = vpop.f32.mrb[3].mxu0  ;;  %v964_v63 = vsel %vm963_vm5, %v958_v59, -inf }
 0x1c4   : > { %965 = vmax.xlane.f32.xlu0 %v964_v63 }
 0x251   : > { %v966_v7 = vpop.xlane.xlu0 %965 }
 0x252   : > { %v967_v8 = vsub.f32 %v958_v59, %v966_v7  ;;  %971 = vst.msk [vmem:[#allocation3] sm:$0xf] %vm970_vm7, %v966_v7 }
 0x254   : > { %v968_v9 = vmul.f32 1.442695, %v967_v8 }
 0x256   : > { %2445 = vpow2.f32 %v968_v9 }
 0x260   : > { %v2446_v11 = vpop.eup %2445 }
 0x261   : > { %v972_v12 = vsel %vm963_vm5, %v2446_v11, 0.0  ;;  %v976_v13 = vpack.c.bf16 %v2446_v11, %v2446_v11 }
 0x262   : > { %973 = vadd.xlane.f32.xlu0 %v972_v12 }
 0x263   : > { %2277 = vmatmul.mubr.msk.bf16.vlgmr.msra.gmra.mrb[0].mxu1 %vm977_vm8, %v976_v13 }
 0x264   : > { %2281 = vmatpush3.bf16.xpose.msra.mxu1 %v915_v14  ;;  %2282 = vmatprep.mubr.msk.bf16.mxu1 %vm2523_vm0, %v2522_v3 }
 0x26b   : > { %2283 = vmatmul.mubr.bf16.vlgmr.msra.gmra.mrb[4].mxu1 %v865_v15 }
 0x2ef   : > { %v974_v16 = vpop.xlane.xlu0 %973 }
 0x2f0   : > { %975 = vst.msk [vmem:[#allocation4] sm:$0xf] %vm970_vm7, %v974_v16 }
 0x336   : > { %v1019_v17 = vpop.f32.mrb[0].mxu1 }
 0x337   : > { %1025 = vst [vmem:[#allocation5] sm:$0xf] %v1019_v17  ;;  %v2278_v18 = vpop.f32.mrb[1].mxu1 }
 0x338   : > { %v1022_v19 = vpop.f32.mrb[2].mxu1 }
 0x339   : > { %v2279_v20 = vpop.f32.mrb[3].mxu1 }
 0x33e   : > { %v1061_v22 = vpop.f32.mrb[4].mxu1 }
 0x33f   : > { %v1062_v23 = vadd.f32 %v1061_v22, %v1026_v21  ;;  %v2284_v24 = vpop.f32.mrb[5].mxu1 }
 0x340   : > { %v1064_v25 = vpop.f32.mrb[6].mxu1 }
 0x341   : > { %v2285_v26 = vpop.f32.mrb[7].mxu1  ;;  %v1067_v3 = vsel %vm963_vm5, %v1062_v23, -inf }
 0x342   : > { %1068 = vmax.xlane.f32.xlu1 %v1067_v3 }
 0x3cf   : > { %v1069_v27 = vpop.xlane.xlu1 %1068 }
 0x3d0   : > { %v1070_v28 = vsub.f32 %v1062_v23, %v1069_v27  ;;  %1074 = vst.msk [vmem:[#allocation3 + $0x4] sm:$0xf] %vm970_vm7, %v1069_v27 }
 0x3d2   : > { %v1071_v29 = vmul.f32 1.442695, %v1070_v28 }
 0x3d4   : > { %2447 = vpow2.f32 %v1071_v29 }
 0x3de   : > { %v2448_v30 = vpop.eup %2447 }
 0x3df   : > { %v1075_v31 = vsel %vm963_vm5, %v2448_v30, 0.0  ;;  %v1080_v32 = vpack.c.bf16 %v2448_v30, %v2448_v30 }
 0x3e0   : > { %1076 = vadd.xlane.f32.xlu0 %v1075_v31 }
 0x3e1   : > { %2289 = vmatmul.mubr.msk.bf16.vlgmr.msra.gmra.mrb[4].mxu0 %vm977_vm8, %v1080_v32 }
 0x46d   : > { %v1077_v33 = vpop.xlane.xlu0 %1076 }
 0x46e   : > { %1079 = vst.msk [vmem:[#allocation4 + $0x4] sm:$0xf] %vm970_vm7, %v1077_v33 }
 0x4b4   : > { %v1121_v34 = vpop.f32.mrb[4].mxu0 }
 0x4b5   : > { %1127 = vst [vmem:[#allocation5 + $0x4] sm:$0xf] %v1121_v34  ;;  %v2290_v35 = vpop.f32.mrb[5].mxu0 }
 0x4b6   : > { %v1124_v36 = vpop.f32.mrb[6].mxu0 }
 0x4b7   : > { %v2291_v37 = vpop.f32.mrb[7].mxu0 }
 0x4b8 PF: > { %v2928_v38 = vld [vmem:[%s2853_s29 + $0x8] sm:$0xff]  ;;  %v2931_v39 = vld [vmem:[%s2853_s29] sm:$0xff]  ;;  %s2524_s21 = smov 127   ;;  %v2938_v40 = vld [vmem:[%s2853_s29 + $0x18] sm:$0xff]  ;;  %v2525_v42 = vmov 0.0   ;;  %s2526_s11 = smov 1   ;;  %v1320_v4 = vlaneseq }
 0x4b9   : > { %1288 = vrot.lane.b32.xlu1 %v2928_v38, %s2524_s21  ;;  %1256 = vrot.lane.b32.xlu0 %v2931_v39, %s2524_s21  ;;  %v2941_v41 = vld [vmem:[%s2853_s29 + $0x10] sm:$0xff]  ;;  %v2961_v44 = vld [vmem:[%s2853_s29 + $0x20] sm:$0xff]  ;;  %vm2527_vm10 = vmmov 0   ;;  %vm1714_vm14 = vcmask 1043456   ;;  %vm1736_vm15 = vcmask 3072   ;;  %p2218_p0 = scmp.ne.s32.totalorder %s2502_s27, 1 }
 0x4ba   : > { %2292 = vmatprep.subr.bf16.mxu0 %v2525_v42  ;;  %2312 = vmatprep.subr.bf16.mxu1 %v2525_v42  ;;  %v2958_v43 = vld [vmem:[%s2853_s29 + $0x30] sm:$0xff]  ;;  %v2968_v45 = vld [vmem:[%s2853_s29 + $0x38] sm:$0xff]  ;;  %v2971_v46 = vld [vmem:[%s2853_s29 + $0x28] sm:$0xff]  ;;  %v3126_v5 = vand.u32 127, %v1320_v4 }
 0x4bb   : > { %v2986_v47 = vld [vmem:[%s2853_s29 + $0x50] sm:$0xff]  ;;  %v2989_v48 = vld [vmem:[%s2853_s29 + $0x40] sm:$0xff]  ;;  %v2996_v49 = vld [vmem:[%s2853_s29 + $0x58] sm:$0xff]  ;;  %2308 = vmatprep.mubr.msk.bf16.mxu0 %vm2527_vm10, %v2525_v42  ;;  %2328 = vmatprep.mubr.msk.bf16.mxu1 %vm2527_vm10, %v2525_v42 }
 0x4bc   : > { %v2999_v50 = vld [vmem:[%s2853_s29 + $0x48] sm:$0xff]  ;;  %v3014_v51 = vld [vmem:[%s2853_s29 + $0x70] sm:$0xff]  ;;  %v3017_v52 = vld [vmem:[%s2853_s29 + $0x60] sm:$0xff]  ;;  %vm1322_vm9 = vcmp.lt.s32.totalorder %v3126_v5, 127  ;;  %v1452_v13 = vadd.s32 128, %v3126_v5  ;;  %v1457_v19 = vand.u32 1, %v3126_v5 }
 0x4bd   : > { %1290 = vrot.lane.b32.xlu1 %v2938_v40, %s2524_s21  ;;  %1258 = vrot.lane.b32.xlu0 %v2941_v41, %s2524_s21  ;;  %v3024_v53 = vld [vmem:[%s2853_s29 + $0x78] sm:$0xff]  ;;  %v3027_v54 = vld [vmem:[%s2853_s29 + $0x68] sm:$0xff]  ;;  %vm1419_vm11 = vcmp.lt.s32.totalorder %v3126_v5, 1  ;;  %v3516_v32 = vld [vmem:[#allocation2] sm:$0xf] }
 0x4be   : > { %v3042_v55 = vld [vmem:[%s2853_s29 + $0x90] sm:$0xff]  ;;  %v3045_v56 = vld [vmem:[%s2853_s29 + $0x80] sm:$0xff]  ;;  %v3052_v57 = vld [vmem:[%s2853_s29 + $0x98] sm:$0xff]  ;;  %v1464_v20 = vand.u32 1, %v1452_v13  ;;  %vm3182_vm12 = vcmp.eq.s32.totalorder %v1457_v19, 0 }
 0x4bf   : > { %v3055_v58 = vld [vmem:[%s2853_s29 + $0x88] sm:$0xff]  ;;  %v3070_v59 = vld [vmem:[%s2853_s29 + $0xb0] sm:$0xff]  ;;  %v3073_v60 = vld [vmem:[%s2853_s29 + $0xa0] sm:$0xff] }
 0x4c0   : > { %v3080_v61 = vld [vmem:[%s2853_s29 + $0xb8] sm:$0xff]  ;;  %v3083_v62 = vld [vmem:[%s2853_s29 + $0xa8] sm:$0xff]  ;;  %v3098_v63 = vld [vmem:[%s2853_s29 + $0xd0] sm:$0xff]  ;;  %vm3186_vm13 = vcmp.eq.s32.totalorder %v1464_v20, 0 }
 0x4c1   : > { %1357 = vrot.lane.b32.xlu1 %v2941_v41, %s2526_s11  ;;  %1355 = vrot.lane.b32.xlu0 %v2931_v39, %s2526_s11  ;;  %v3101_v0 = vld [vmem:[%s2853_s29 + $0xc0] sm:$0xff]  ;;  %v3108_v1 = vld [vmem:[%s2853_s29 + $0xd8] sm:$0xff] }
 0x4c2   : > { %v3111_v2 = vld [vmem:[%s2853_s29 + $0xc8] sm:$0xff]  ;;  %v3129_v6 = vld [vmem:[%s2853_s29 + $0xf0] sm:$0xff]  ;;  %v3132_v7 = vld [vmem:[%s2853_s29 + $0xe0] sm:$0xff] }
 0x4c3   : > { %v3140_v8 = vld [vmem:[%s2853_s29 + $0xf8] sm:$0xff]  ;;  %v3143_v9 = vld [vmem:[%s2853_s29 + $0xe8] sm:$0xff]  ;;  %v1672_v33 = vld [vmem:[%s2851_s1] sm:$0xf] }
 0x4c4   : > { %v1161_v17 = vld [vmem:[%s2835_s22 + $0x8] sm:$0xff]  ;;  %v1160_v18 = vld [vmem:[%s2835_s22] sm:$0xff]  ;;  %v1163_v21 = vld [vmem:[%s2835_s22 + $0x18] sm:$0xff] }
 0x4c5   : > { %1389 = vrot.lane.b32.xlu1 %v2938_v40, %s2526_s11  ;;  %1387 = vrot.lane.b32.xlu0 %v2928_v38, %s2526_s11  ;;  %v1162_v22 = vld [vmem:[%s2835_s22 + $0x10] sm:$0xff]  ;;  %v1225_v3 = vmul.f32 %v1161_v17, %v2928_v38  ;;  %v1224_v27 = vmul.f32 %v1160_v18, %v2931_v39  ;;  %v1227_v28 = vmul.f32 %v1163_v21, %v2938_v40  ;;  %v1195_v31 = vld [vmem:[%s2840_s14 + $0x18] sm:$0xff] }
 0x4c6   : > { %v1226_v29 = vmul.f32 %v1162_v22, %v2941_v41  ;;  %v1194_v30 = vld [vmem:[%s2840_s14 + $0x10] sm:$0xff]  ;;  %v1192_v39 = vld [vmem:[%s2840_s14] sm:$0xff] }
 0x4c9   : > { %1262 = vrot.lane.b32.xlu1 %v2958_v43, %s2524_s21  ;;  %1260 = vrot.lane.b32.xlu0 %v2961_v44, %s2524_s21 }
 0x4cd   : > { %1294 = vrot.lane.b32.xlu1 %v2968_v45, %s2524_s21  ;;  %1292 = vrot.lane.b32.xlu0 %v2971_v46, %s2524_s21 }
 0x4d1   : > { %1361 = vrot.lane.b32.xlu1 %v2958_v43, %s2526_s11  ;;  %1359 = vrot.lane.b32.xlu0 %v2961_v44, %s2526_s11 }
 0x4d5   : > { %1393 = vrot.lane.b32.xlu1 %v2968_v45, %s2526_s11  ;;  %1391 = vrot.lane.b32.xlu0 %v2971_v46, %s2526_s11 }
 0x4d9   : > { %1266 = vrot.lane.b32.xlu1 %v2986_v47, %s2524_s21  ;;  %1264 = vrot.lane.b32.xlu0 %v2989_v48, %s2524_s21 }
 0x4dd   : > { %1298 = vrot.lane.b32.xlu1 %v2996_v49, %s2524_s21  ;;  %1296 = vrot.lane.b32.xlu0 %v2999_v50, %s2524_s21 }
 0x4e1   : > { %1365 = vrot.lane.b32.xlu1 %v2986_v47, %s2526_s11  ;;  %1363 = vrot.lane.b32.xlu0 %v2989_v48, %s2526_s11 }
 0x4e5   : > { %1397 = vrot.lane.b32.xlu1 %v2996_v49, %s2526_s11  ;;  %1395 = vrot.lane.b32.xlu0 %v2999_v50, %s2526_s11 }
 0x4e9   : > { %1270 = vrot.lane.b32.xlu1 %v3014_v51, %s2524_s21  ;;  %1268 = vrot.lane.b32.xlu0 %v3017_v52, %s2524_s21 }
 0x4ed   : > { %1302 = vrot.lane.b32.xlu1 %v3024_v53, %s2524_s21  ;;  %1300 = vrot.lane.b32.xlu0 %v3027_v54, %s2524_s21 }
 0x4f1   : > { %1369 = vrot.lane.b32.xlu1 %v3014_v51, %s2526_s11  ;;  %1367 = vrot.lane.b32.xlu0 %v3017_v52, %s2526_s11 }
 0x4f5   : > { %1401 = vrot.lane.b32.xlu1 %v3024_v53, %s2526_s11  ;;  %1399 = vrot.lane.b32.xlu0 %v3027_v54, %s2526_s11 }
 0x4f9   : > { %1274 = vrot.lane.b32.xlu1 %v3042_v55, %s2524_s21  ;;  %1272 = vrot.lane.b32.xlu0 %v3045_v56, %s2524_s21 }
 0x4fd   : > { %1306 = vrot.lane.b32.xlu1 %v3052_v57, %s2524_s21  ;;  %1304 = vrot.lane.b32.xlu0 %v3055_v58, %s2524_s21 }
 0x501   : > { %1373 = vrot.lane.b32.xlu1 %v3042_v55, %s2526_s11  ;;  %1371 = vrot.lane.b32.xlu0 %v3045_v56, %s2526_s11 }
 0x505   : > { %1405 = vrot.lane.b32.xlu1 %v3052_v57, %s2526_s11  ;;  %1403 = vrot.lane.b32.xlu0 %v3055_v58, %s2526_s11 }
 0x509   : > { %1278 = vrot.lane.b32.xlu1 %v3070_v59, %s2524_s21  ;;  %1276 = vrot.lane.b32.xlu0 %v3073_v60, %s2524_s21 }
 0x50d   : > { %1310 = vrot.lane.b32.xlu1 %v3080_v61, %s2524_s21  ;;  %1308 = vrot.lane.b32.xlu0 %v3083_v62, %s2524_s21 }
 0x511   : > { %1377 = vrot.lane.b32.xlu1 %v3070_v59, %s2526_s11  ;;  %1375 = vrot.lane.b32.xlu0 %v3073_v60, %s2526_s11 }
 0x515   : > { %1409 = vrot.lane.b32.xlu1 %v3080_v61, %s2526_s11  ;;  %1407 = vrot.lane.b32.xlu0 %v3083_v62, %s2526_s11 }
 0x519   : > { %1282 = vrot.lane.b32.xlu1 %v3098_v63, %s2524_s21  ;;  %1280 = vrot.lane.b32.xlu0 %v3101_v0, %s2524_s21 }
 0x51d   : > { %1314 = vrot.lane.b32.xlu1 %v3108_v1, %s2524_s21  ;;  %1312 = vrot.lane.b32.xlu0 %v3111_v2, %s2524_s21 }
 0x521   : > { %1381 = vrot.lane.b32.xlu1 %v3098_v63, %s2526_s11  ;;  %1379 = vrot.lane.b32.xlu0 %v3101_v0, %s2526_s11 }
 0x525   : > { %1413 = vrot.lane.b32.xlu1 %v3108_v1, %s2526_s11  ;;  %1411 = vrot.lane.b32.xlu0 %v3111_v2, %s2526_s11 }
 0x529   : > { %1286 = vrot.lane.b32.xlu1 %v3129_v6, %s2524_s21  ;;  %1284 = vrot.lane.b32.xlu0 %v3132_v7, %s2524_s21 }
 0x52b   : > { %v1289_v10 = vpop.permute.xlu1 %1288  ;;  %v1257_v11 = vpop.permute.xlu0 %1256 }
 0x52c   : > { %v1339_v12 = vsel %vm1322_vm9, %v1289_v10, %v1257_v11  ;;  %v1323_v25 = vsel %vm1322_vm9, %v1257_v11, %v1289_v10  ;;  %v1193_v10 = vld [vmem:[%s2840_s14 + $0x8] sm:$0xff] }
 0x52d   : > { %1318 = vrot.lane.b32.xlu1 %v3140_v8, %s2524_s21  ;;  %1316 = vrot.lane.b32.xlu0 %v3143_v9, %s2524_s21  ;;  %v1479_v34 = vsub.f32 0.0, %v1323_v25  ;;  %v1480_v35 = vsub.f32 0.0, %v1339_v12 }
 0x52f   : > { %v1291_v14 = vpop.permute.xlu1 %1290  ;;  %v1259_v15 = vpop.permute.xlu0 %1258 }
 0x530   : > { %v1340_v16 = vsel %vm1322_vm9, %v1291_v14, %v1259_v15  ;;  %v1324_v26 = vsel %vm1322_vm9, %v1259_v15, %v1291_v14 }
 0x531   : > { %1385 = vrot.lane.b32.xlu1 %v3129_v6, %s2526_s11  ;;  %1383 = vrot.lane.b32.xlu0 %v3132_v7, %s2526_s11  ;;  %v1481_v36 = vsub.f32 0.0, %v1324_v26  ;;  %v1482_v37 = vsub.f32 0.0, %v1340_v16 }
 0x533   : > { %v1358_v23 = vpop.permute.xlu1 %1357  ;;  %v1356_v24 = vpop.permute.xlu0 %1355 }
 0x535   : > { %1417 = vrot.lane.b32.xlu1 %v3140_v8, %s2526_s11  ;;  %1415 = vrot.lane.b32.xlu0 %v3143_v9, %s2526_s11 }
 0x537   : > { %v1390_v38 = vpop.permute.xlu1 %1389  ;;  %v1388_v40 = vpop.permute.xlu0 %1387 }
 0x538   : > { %v1421_v41 = vsel %vm1419_vm11, %v1358_v23, %v1390_v38  ;;  %v1437_v11 = vsel %vm1419_vm11, %v1390_v38, %v1358_v23  ;;  %v1420_v13 = vsel %vm1419_vm11, %v1356_v24, %v1388_v40  ;;  %v1436_v14 = vsel %vm1419_vm11, %v1388_v40, %v1356_v24 }
 0x539   : > { %v1513_v12 = vsel %vm3182_vm12, %v1481_v36, %v1437_v11  ;;  %v1514_v15 = vsel %vm3186_vm13, %v1482_v37, %v1421_v41  ;;  %v1511_v16 = vsel %vm3182_vm12, %v1479_v34, %v1436_v14  ;;  %v1512_v17 = vsel %vm3186_vm13, %v1480_v35, %v1420_v13 }
 0x53a   : > { %v1545_v18 = vmul.f32 %v1513_v12, %v1194_v30  ;;  %v1546_v19 = vmul.f32 %v1514_v15, %v1195_v31  ;;  %v1543_v20 = vmul.f32 %v1511_v16, %v1192_v39  ;;  %v1544_v21 = vmul.f32 %v1512_v17, %v1193_v10  ;;  %v1198_v15 = vld [vmem:[%s2840_s14 + $0x30] sm:$0xff]  ;;  %v1199_v16 = vld [vmem:[%s2840_s14 + $0x38] sm:$0xff] }
 0x53b   : > { %v1263_v22 = vpop.permute.xlu1 %1262  ;;  %v1261_v23 = vpop.permute.xlu0 %1260 }
 0x53c   : > { %v3208_v24 = vadd.f32 %v1546_v19, %v1227_v28  ;;  %v3210_v25 = vadd.f32 %v1544_v21, %v1225_v3  ;;  %v1575_v26 = vadd.f32 %v1543_v20, %v1224_v27  ;;  %v1577_v36 = vadd.f32 %v1545_v18, %v1226_v29  ;;  %v1166_v3 = vld [vmem:[%s2835_s22 + $0x30] sm:$0xff]  ;;  %v1164_v27 = vld [vmem:[%s2835_s22 + $0x20] sm:$0xff]  ;;  %v1167_v28 = vld [vmem:[%s2835_s22 + $0x38] sm:$0xff] }
 0x53d   : > { %v1165_v29 = vld [vmem:[%s2835_s22 + $0x28] sm:$0xff]  ;;  %v1230_v11 = vmul.f32 %v1166_v3, %v2958_v43  ;;  %v1228_v13 = vmul.f32 %v1164_v27, %v2961_v44  ;;  %v1231_v14 = vmul.f32 %v1167_v28, %v2968_v45 }
 0x53e   : > { %v1607_v34 = vpack.c.bf16 %v1577_v36, %v1575_v26  ;;  %v1608_v35 = vpack.c.bf16 %v3208_v24, %v3210_v25  ;;  %v1229_v12 = vmul.f32 %v1165_v29, %v2971_v46  ;;  %v1196_v26 = vld [vmem:[%s2840_s14 + $0x20] sm:$0xff]  ;;  %v2529_v24 = vmov 1983009808  }
 0x53f   : > { %v1295_v30 = vpop.permute.xlu1 %1294  ;;  %v1293_v31 = vpop.permute.xlu0 %1292  ;;  %v1792_v25 = vunpack.c.l.s4 %v2529_v24 }
 0x540   : > { %v1342_v37 = vsel %vm1322_vm9, %v1295_v30, %v1263_v22  ;;  %v1341_v38 = vsel %vm1322_vm9, %v1293_v31, %v1261_v23  ;;  %2293 = vmatpush3.bf16.xpose.msra.mxu0 %v1607_v34  ;;  %v1326_v40 = vsel %vm1322_vm9, %v1263_v22, %v1295_v30  ;;  %v1325_v41 = vsel %vm1322_vm9, %v1261_v23, %v1293_v31  ;;  %v1197_v22 = vld [vmem:[%s2840_s14 + $0x28] sm:$0xff] }
 0x541   : > { %2294 = vmatprep.subr.bf16.mxu0 %v2525_v42  ;;  %v1485_v17 = vsub.f32 0.0, %v1326_v40  ;;  %v1486_v18 = vsub.f32 0.0, %v1342_v37  ;;  %v1483_v19 = vsub.f32 0.0, %v1325_v41  ;;  %v1484_v20 = vsub.f32 0.0, %v1341_v38 }
 0x543   : > { %v1362_v39 = vpop.permute.xlu1 %1361  ;;  %v1360_v10 = vpop.permute.xlu0 %1359 }
 0x547   : > { %v1394_v21 = vpop.permute.xlu1 %1393  ;;  %v1392_v36 = vpop.permute.xlu0 %1391 }
 0x548   : > { %v1423_v23 = vsel %vm1419_vm11, %v1362_v39, %v1394_v21  ;;  %v1439_v43 = vsel %vm1419_vm11, %v1394_v21, %v1362_v39  ;;  %v1422_v44 = vsel %vm1419_vm11, %v1360_v10, %v1392_v36  ;;  %v1438_v45 = vsel %vm1419_vm11, %v1392_v36, %v1360_v10 }
 0x549   : > { %v1517_v46 = vsel %vm3182_vm12, %v1485_v17, %v1439_v43  ;;  %v1518_v34 = vsel %vm3186_vm13, %v1486_v18, %v1423_v23  ;;  %v1515_v30 = vsel %vm3182_vm12, %v1483_v19, %v1438_v45  ;;  %v1516_v31 = vsel %vm3186_vm13, %v1484_v20, %v1422_v44 }
 0x54a   : > { %v1549_v37 = vmul.f32 %v1517_v46, %v1198_v15  ;;  %v1550_v38 = vmul.f32 %v1518_v34, %v1199_v16  ;;  %v1547_v3 = vmul.f32 %v1515_v30, %v1196_v26  ;;  %v1548_v27 = vmul.f32 %v1516_v31, %v1197_v22  ;;  %v1202_v46 = vld [vmem:[%s2840_s14 + $0x50] sm:$0xff]  ;;  %v1203_v34 = vld [vmem:[%s2840_s14 + $0x58] sm:$0xff] }
 0x54b   : > { %v1267_v28 = vpop.permute.xlu1 %1266  ;;  %v1265_v29 = vpop.permute.xlu0 %1264 }
 0x54c   : > { %v3251_v39 = vadd.f32 %v1550_v38, %v1231_v14  ;;  %v3253_v10 = vadd.f32 %v1548_v27, %v1229_v12  ;;  %v1579_v40 = vadd.f32 %v1547_v3, %v1228_v13  ;;  %v1581_v41 = vadd.f32 %v1549_v37, %v1230_v11  ;;  %v1170_v14 = vld [vmem:[%s2835_s22 + $0x50] sm:$0xff]  ;;  %v1168_v13 = vld [vmem:[%s2835_s22 + $0x40] sm:$0xff]  ;;  %v1171_v11 = vld [vmem:[%s2835_s22 + $0x58] sm:$0xff] }
 0x54d   : > { %v1169_v12 = vld [vmem:[%s2835_s22 + $0x48] sm:$0xff]  ;;  %v1234_v23 = vmul.f32 %v1170_v14, %v2986_v47  ;;  %v1232_v43 = vmul.f32 %v1168_v13, %v2989_v48  ;;  %v1235_v44 = vmul.f32 %v1171_v11, %v2996_v49  ;;  %v1200_v27 = vld [vmem:[%s2840_s14 + $0x40] sm:$0xff] }
 0x54e   : > { %v1609_v17 = vpack.c.bf16 %v1581_v41, %v1579_v40  ;;  %v1610_v18 = vpack.c.bf16 %v3251_v39, %v3253_v10  ;;  %v1233_v45 = vmul.f32 %v1169_v12, %v2999_v50  ;;  %v1795_v39 = vshrl.u32 %v1320_v4, 7 }
 0x54f   : > { %v1299_v15 = vpop.permute.xlu1 %1298  ;;  %v1297_v16 = vpop.permute.xlu0 %1296 }
 0x550   : > { %v1344_v19 = vsel %vm1322_vm9, %v1299_v15, %v1267_v28  ;;  %v1343_v20 = vsel %vm1322_vm9, %v1297_v16, %v1265_v29  ;;  %2295 = vmatpush3.bf16.xpose.msra.mxu0 %v1609_v17  ;;  %v1328_v22 = vsel %vm1322_vm9, %v1267_v28, %v1299_v15  ;;  %v1327_v36 = vsel %vm1322_vm9, %v1265_v29, %v1297_v16  ;;  %v1201_v28 = vld [vmem:[%s2840_s14 + $0x48] sm:$0xff] }
 0x551   : > { %2296 = vmatprep.subr.bf16.mxu0 %v2525_v42  ;;  %v1489_v30 = vsub.f32 0.0, %v1328_v22  ;;  %v1490_v31 = vsub.f32 0.0, %v1344_v19  ;;  %v1487_v37 = vsub.f32 0.0, %v1327_v36  ;;  %v1488_v38 = vsub.f32 0.0, %v1343_v20 }
 0x553   : > { %v1366_v21 = vpop.permute.xlu1 %1365  ;;  %v1364_v26 = vpop.permute.xlu0 %1363 }
 0x557   : > { %v1398_v3 = vpop.permute.xlu1 %1397  ;;  %v1396_v40 = vpop.permute.xlu0 %1395 }
 0x558   : > { %v1425_v29 = vsel %vm1419_vm11, %v1366_v21, %v1398_v3  ;;  %v1441_v47 = vsel %vm1419_vm11, %v1398_v3, %v1366_v21  ;;  %v1424_v48 = vsel %vm1419_vm11, %v1364_v26, %v1396_v40  ;;  %v1440_v49 = vsel %vm1419_vm11, %v1396_v40, %v1364_v26 }
 0x559   : > { %v1521_v50 = vsel %vm3182_vm12, %v1489_v30, %v1441_v47  ;;  %v1522_v41 = vsel %vm3186_vm13, %v1490_v31, %v1425_v29  ;;  %v1519_v17 = vsel %vm3182_vm12, %v1487_v37, %v1440_v49  ;;  %v1520_v15 = vsel %vm3186_vm13, %v1488_v38, %v1424_v48  ;;  %v1206_v49 = vld [vmem:[%s2840_s14 + $0x70] sm:$0xff] }
 0x55a   : > { %v1553_v16 = vmul.f32 %v1521_v50, %v1202_v46  ;;  %v1554_v19 = vmul.f32 %v1522_v41, %v1203_v34  ;;  %v1551_v20 = vmul.f32 %v1519_v17, %v1200_v27  ;;  %v1552_v14 = vmul.f32 %v1520_v15, %v1201_v28  ;;  %v1207_v50 = vld [vmem:[%s2840_s14 + $0x78] sm:$0xff] }
 0x55b   : > { %v1271_v13 = vpop.permute.xlu1 %1270  ;;  %v1269_v11 = vpop.permute.xlu0 %1268 }
 0x55c   : > { %v3294_v12 = vadd.f32 %v1554_v19, %v1235_v44  ;;  %v3296_v21 = vadd.f32 %v1552_v14, %v1233_v45  ;;  %v1583_v26 = vadd.f32 %v1551_v20, %v1232_v43  ;;  %v1585_v22 = vadd.f32 %v1553_v16, %v1234_v23  ;;  %v1174_v44 = vld [vmem:[%s2835_s22 + $0x70] sm:$0xff]  ;;  %v1172_v43 = vld [vmem:[%s2835_s22 + $0x60] sm:$0xff]  ;;  %v1175_v23 = vld [vmem:[%s2835_s22 + $0x78] sm:$0xff] }
 0x55d   : > { %v1173_v45 = vld [vmem:[%s2835_s22 + $0x68] sm:$0xff]  ;;  %v1238_v40 = vmul.f32 %v1174_v44, %v3014_v51  ;;  %v1236_v29 = vmul.f32 %v1172_v43, %v3017_v52  ;;  %v1239_v47 = vmul.f32 %v1175_v23, %v3024_v53  ;;  %v1204_v20 = vld [vmem:[%s2840_s14 + $0x60] sm:$0xff] }
 0x55e   : > { %v1611_v36 = vpack.c.bf16 %v1585_v22, %v1583_v26  ;;  %v1612_v30 = vpack.c.bf16 %v3294_v12, %v3296_v21  ;;  %v1237_v48 = vmul.f32 %v1173_v45, %v3027_v54  ;;  %v1205_v14 = vld [vmem:[%s2840_s14 + $0x68] sm:$0xff] }
 0x55f   : > { %v1303_v46 = vpop.permute.xlu1 %1302  ;;  %v1301_v34 = vpop.permute.xlu0 %1300 }
 0x560   : > { %v1346_v31 = vsel %vm1322_vm9, %v1303_v46, %v1271_v13  ;;  %v1345_v37 = vsel %vm1322_vm9, %v1301_v34, %v1269_v11  ;;  %2297 = vmatpush3.bf16.xpose.msra.mxu0 %v1611_v36  ;;  %v1330_v27 = vsel %vm1322_vm9, %v1271_v13, %v1303_v46  ;;  %v1329_v28 = vsel %vm1322_vm9, %v1269_v11, %v1301_v34 }
 0x561   : > { %2298 = vmatprep.subr.bf16.mxu0 %v2525_v42  ;;  %v1493_v41 = vsub.f32 0.0, %v1330_v27  ;;  %v1494_v17 = vsub.f32 0.0, %v1346_v31  ;;  %v1491_v15 = vsub.f32 0.0, %v1329_v28  ;;  %v1492_v16 = vsub.f32 0.0, %v1345_v37 }
 0x563   : > { %v1370_v38 = vpop.permute.xlu1 %1369  ;;  %v1368_v3 = vpop.permute.xlu0 %1367 }
 0x567   : > { %v1402_v19 = vpop.permute.xlu1 %1401  ;;  %v1400_v13 = vpop.permute.xlu0 %1399 }
 0x568   : > { %v1427_v11 = vsel %vm1419_vm11, %v1370_v38, %v1402_v19  ;;  %v1443_v51 = vsel %vm1419_vm11, %v1402_v19, %v1370_v38  ;;  %v1426_v52 = vsel %vm1419_vm11, %v1368_v3, %v1400_v13  ;;  %v1442_v53 = vsel %vm1419_vm11, %v1400_v13, %v1368_v3 }
 0x569   : > { %v1525_v54 = vsel %vm3182_vm12, %v1493_v41, %v1443_v51  ;;  %v1526_v26 = vsel %vm3186_vm13, %v1494_v17, %v1427_v11  ;;  %v1523_v22 = vsel %vm3182_vm12, %v1491_v15, %v1442_v53  ;;  %v1524_v36 = vsel %vm3186_vm13, %v1492_v16, %v1426_v52  ;;  %v1210_v52 = vld [vmem:[%s2840_s14 + $0x90] sm:$0xff]  ;;  %v1211_v53 = vld [vmem:[%s2840_s14 + $0x98] sm:$0xff] }
 0x56a   : > { %v1557_v46 = vmul.f32 %v1525_v54, %v1206_v49  ;;  %v1558_v34 = vmul.f32 %v1526_v26, %v1207_v50  ;;  %v1555_v31 = vmul.f32 %v1523_v22, %v1204_v20  ;;  %v1556_v37 = vmul.f32 %v1524_v36, %v1205_v14 }
 0x56b   : > { %v1275_v44 = vpop.permute.xlu1 %1274  ;;  %v1273_v43 = vpop.permute.xlu0 %1272 }
 0x56c   : > { %v3337_v23 = vadd.f32 %v1558_v34, %v1239_v47  ;;  %v3339_v45 = vadd.f32 %v1556_v37, %v1237_v48  ;;  %v1587_v38 = vadd.f32 %v1555_v31, %v1236_v29  ;;  %v1589_v3 = vadd.f32 %v1557_v46, %v1238_v40  ;;  %v1178_v47 = vld [vmem:[%s2835_s22 + $0x90] sm:$0xff]  ;;  %v1176_v29 = vld [vmem:[%s2835_s22 + $0x80] sm:$0xff]  ;;  %v1179_v40 = vld [vmem:[%s2835_s22 + $0x98] sm:$0xff] }
 0x56d   : > { %v1177_v48 = vld [vmem:[%s2835_s22 + $0x88] sm:$0xff]  ;;  %v1242_v14 = vmul.f32 %v1178_v47, %v3042_v55  ;;  %v1240_v13 = vmul.f32 %v1176_v29, %v3045_v56  ;;  %v1243_v11 = vmul.f32 %v1179_v40, %v3052_v57  ;;  %v1208_v34 = vld [vmem:[%s2840_s14 + $0x80] sm:$0xff] }
 0x56e   : > { %v1613_v27 = vpack.c.bf16 %v1589_v3, %v1587_v38  ;;  %v1614_v28 = vpack.c.bf16 %v3337_v23, %v3339_v45  ;;  %v1241_v51 = vmul.f32 %v1177_v48, %v3055_v58  ;;  %v1209_v31 = vld [vmem:[%s2840_s14 + $0x88] sm:$0xff]  ;;  %v1789_v45 = vld [vmem:[%s2851_s1] sm:$0xf] }
 0x56f   : > { %v1307_v49 = vpop.permute.xlu1 %1306  ;;  %v1305_v50 = vpop.permute.xlu0 %1304 }
 0x570   : > { %v1348_v41 = vsel %vm1322_vm9, %v1307_v49, %v1275_v44  ;;  %v1347_v17 = vsel %vm1322_vm9, %v1305_v50, %v1273_v43  ;;  %2299 = vmatpush3.bf16.xpose.msra.mxu0 %v1613_v27  ;;  %v1332_v19 = vsel %vm1322_vm9, %v1275_v44, %v1307_v49  ;;  %v1331_v20 = vsel %vm1322_vm9, %v1273_v43, %v1305_v50 }
 0x571   : > { %2300 = vmatprep.subr.bf16.mxu0 %v2525_v42  ;;  %v1497_v54 = vsub.f32 0.0, %v1332_v19  ;;  %v1498_v26 = vsub.f32 0.0, %v1348_v41  ;;  %v1495_v22 = vsub.f32 0.0, %v1331_v20  ;;  %v1496_v36 = vsub.f32 0.0, %v1347_v17 }
 0x573   : > { %v1374_v15 = vpop.permute.xlu1 %1373  ;;  %v1372_v16 = vpop.permute.xlu0 %1371 }
 0x577   : > { %v1406_v46 = vpop.permute.xlu1 %1405  ;;  %v1404_v37 = vpop.permute.xlu0 %1403 }
 0x578   : > { %v1429_v44 = vsel %vm1419_vm11, %v1374_v15, %v1406_v46  ;;  %v1445_v55 = vsel %vm1419_vm11, %v1406_v46, %v1374_v15  ;;  %v1428_v56 = vsel %vm1419_vm11, %v1372_v16, %v1404_v37  ;;  %v1444_v57 = vsel %vm1419_vm11, %v1404_v37, %v1372_v16 }
 0x579   : > { %v1529_v58 = vsel %vm3182_vm12, %v1497_v54, %v1445_v55  ;;  %v1530_v43 = vsel %vm3186_vm13, %v1498_v26, %v1429_v44  ;;  %v1527_v38 = vsel %vm3182_vm12, %v1495_v22, %v1444_v57  ;;  %v1528_v3 = vsel %vm3186_vm13, %v1496_v36, %v1428_v56  ;;  %v1214_v55 = vld [vmem:[%s2840_s14 + $0xb0] sm:$0xff]  ;;  %v1215_v56 = vld [vmem:[%s2840_s14 + $0xb8] sm:$0xff] }
 0x57a   : > { %v1561_v27 = vmul.f32 %v1529_v58, %v1210_v52  ;;  %v1562_v49 = vmul.f32 %v1530_v43, %v1211_v53  ;;  %v1559_v50 = vmul.f32 %v1527_v38, %v1208_v34  ;;  %v1560_v41 = vmul.f32 %v1528_v3, %v1209_v31 }
 0x57b   : > { %v1279_v17 = vpop.permute.xlu1 %1278  ;;  %v1277_v47 = vpop.permute.xlu0 %1276 }
 0x57c   : > { %v3380_v29 = vadd.f32 %v1562_v49, %v1243_v11  ;;  %v3382_v40 = vadd.f32 %v1560_v41, %v1241_v51  ;;  %v1591_v48 = vadd.f32 %v1559_v50, %v1240_v13  ;;  %v1593_v15 = vadd.f32 %v1561_v27, %v1242_v14  ;;  %v1182_v11 = vld [vmem:[%s2835_s22 + $0xb0] sm:$0xff]  ;;  %v1180_v13 = vld [vmem:[%s2835_s22 + $0xa0] sm:$0xff]  ;;  %v1183_v14 = vld [vmem:[%s2835_s22 + $0xb8] sm:$0xff] }
 0x57d   : > { %v1181_v51 = vld [vmem:[%s2835_s22 + $0xa8] sm:$0xff]  ;;  %v1246_v34 = vmul.f32 %v1182_v11, %v3070_v59  ;;  %v1244_v31 = vmul.f32 %v1180_v13, %v3073_v60  ;;  %v1247_v37 = vmul.f32 %v1183_v14, %v3080_v61  ;;  %v1212_v27 = vld [vmem:[%s2840_s14 + $0xa0] sm:$0xff] }
 0x57e   : > { %v1615_v16 = vpack.c.bf16 %v1593_v15, %v1591_v48  ;;  %v1616_v19 = vpack.c.bf16 %v3380_v29, %v3382_v40  ;;  %v1245_v44 = vmul.f32 %v1181_v51, %v3083_v62  ;;  %v1213_v49 = vld [vmem:[%s2840_s14 + $0xa8] sm:$0xff] }
 0x57f   : > { %v1311_v20 = vpop.permute.xlu1 %1310  ;;  %v1309_v52 = vpop.permute.xlu0 %1308 }
 0x580   : > { %v1350_v53 = vsel %vm1322_vm9, %v1311_v20, %v1279_v17  ;;  %v1349_v54 = vsel %vm1322_vm9, %v1309_v52, %v1277_v47  ;;  %2301 = vmatpush3.bf16.xpose.msra.mxu0 %v1615_v16  ;;  %v1334_v36 = vsel %vm1322_vm9, %v1279_v17, %v1311_v20  ;;  %v1333_v46 = vsel %vm1322_vm9, %v1277_v47, %v1309_v52 }
 0x581   : > { %2302 = vmatprep.subr.bf16.mxu0 %v2525_v42  ;;  %v1501_v57 = vsub.f32 0.0, %v1334_v36  ;;  %v1502_v58 = vsub.f32 0.0, %v1350_v53  ;;  %v1499_v43 = vsub.f32 0.0, %v1333_v46  ;;  %v1500_v38 = vsub.f32 0.0, %v1349_v54 }
 0x583   : > { %v1378_v26 = vpop.permute.xlu1 %1377  ;;  %v1376_v22 = vpop.permute.xlu0 %1375 }
 0x587   : > { %v1410_v3 = vpop.permute.xlu1 %1409  ;;  %v1408_v50 = vpop.permute.xlu0 %1407 }
 0x588   : > { %v1431_v41 = vsel %vm1419_vm11, %v1378_v26, %v1410_v3  ;;  %v1447_v59 = vsel %vm1419_vm11, %v1410_v3, %v1378_v26  ;;  %v1430_v60 = vsel %vm1419_vm11, %v1376_v22, %v1408_v50  ;;  %v1446_v61 = vsel %vm1419_vm11, %v1408_v50, %v1376_v22 }
 0x589   : > { %v1533_v62 = vsel %vm3182_vm12, %v1501_v57, %v1447_v59  ;;  %v1534_v17 = vsel %vm3186_vm13, %v1502_v58, %v1431_v41  ;;  %v1531_v47 = vsel %vm3182_vm12, %v1499_v43, %v1446_v61  ;;  %v1532_v48 = vsel %vm3186_vm13, %v1500_v38, %v1430_v60  ;;  %v1218_v41 = vld [vmem:[%s2840_s14 + $0xd0] sm:$0xff]  ;;  %v1219_v59 = vld [vmem:[%s2840_s14 + $0xd8] sm:$0xff] }
 0x58a   : > { %v1565_v15 = vmul.f32 %v1533_v62, %v1214_v55  ;;  %v1566_v16 = vmul.f32 %v1534_v17, %v1215_v56  ;;  %v1563_v20 = vmul.f32 %v1531_v47, %v1212_v27  ;;  %v1564_v52 = vmul.f32 %v1532_v48, %v1213_v49  ;;  %v1216_v48 = vld [vmem:[%s2840_s14 + $0xc0] sm:$0xff] }
 0x58b   : > { %v1283_v53 = vpop.permute.xlu1 %1282  ;;  %v1281_v54 = vpop.permute.xlu0 %1280 }
 0x58c   : > { %v3423_v11 = vadd.f32 %v1566_v16, %v1247_v37  ;;  %v3425_v13 = vadd.f32 %v1564_v52, %v1245_v44  ;;  %v1595_v14 = vadd.f32 %v1563_v20, %v1244_v31  ;;  %v1597_v51 = vadd.f32 %v1565_v15, %v1246_v34  ;;  %v1186_v37 = vld [vmem:[%s2835_s22 + $0xd0] sm:$0xff]  ;;  %v1184_v31 = vld [vmem:[%s2835_s22 + $0xc0] sm:$0xff]  ;;  %v1187_v34 = vld [vmem:[%s2835_s22 + $0xd8] sm:$0xff] }
 0x58d   : > { %v1185_v44 = vld [vmem:[%s2835_s22 + $0xc8] sm:$0xff]  ;;  %v1250_v3 = vmul.f32 %v1186_v37, %v3098_v63  ;;  %v1248_v27 = vmul.f32 %v1184_v31, %v3101_v0  ;;  %v1251_v49 = vmul.f32 %v1187_v34, %v3108_v1 }
 0x58e   : > { %v1617_v26 = vpack.c.bf16 %v1597_v51, %v1595_v14  ;;  %v1618_v22 = vpack.c.bf16 %v3423_v11, %v3425_v13  ;;  %v1249_v50 = vmul.f32 %v1185_v44, %v3111_v2  ;;  %v1217_v15 = vld [vmem:[%s2840_s14 + $0xc8] sm:$0xff] }
 0x58f   : > { %v1315_v36 = vpop.permute.xlu1 %1314  ;;  %v1313_v46 = vpop.permute.xlu0 %1312 }
 0x590   : > { %v1352_v55 = vsel %vm1322_vm9, %v1315_v36, %v1283_v53  ;;  %v1351_v56 = vsel %vm1322_vm9, %v1313_v46, %v1281_v54  ;;  %2303 = vmatpush3.bf16.xpose.msra.mxu0 %v1617_v26  ;;  %v1336_v43 = vsel %vm1322_vm9, %v1283_v53, %v1315_v36  ;;  %v1335_v38 = vsel %vm1322_vm9, %v1281_v54, %v1313_v46 }
 0x591   : > { %2304 = vmatprep.subr.bf16.mxu0 %v2525_v42  ;;  %v1505_v60 = vsub.f32 0.0, %v1336_v43  ;;  %v1506_v61 = vsub.f32 0.0, %v1352_v55  ;;  %v1503_v62 = vsub.f32 0.0, %v1335_v38  ;;  %v1504_v17 = vsub.f32 0.0, %v1351_v56 }
 0x593   : > { %v1382_v57 = vpop.permute.xlu1 %1381  ;;  %v1380_v58 = vpop.permute.xlu0 %1379 }
 0x597   : > { %v1414_v47 = vpop.permute.xlu1 %1413  ;;  %v1412_v16 = vpop.permute.xlu0 %1411 }
 0x598   : > { %v1433_v20 = vsel %vm1419_vm11, %v1382_v57, %v1414_v47  ;;  %v1449_v63 = vsel %vm1419_vm11, %v1414_v47, %v1382_v57  ;;  %v1432_v0 = vsel %vm1419_vm11, %v1380_v58, %v1412_v16  ;;  %v1448_v1 = vsel %vm1419_vm11, %v1412_v16, %v1380_v58  ;;  %v1222_v16 = vld [vmem:[%s2840_s14 + $0xf0] sm:$0xff] }
 0x599   : > { %v1537_v2 = vsel %vm3182_vm12, %v1505_v60, %v1449_v63  ;;  %v1538_v52 = vsel %vm3186_vm13, %v1506_v61, %v1433_v20  ;;  %v1535_v53 = vsel %vm3182_vm12, %v1503_v62, %v1448_v1  ;;  %v1536_v54 = vsel %vm3186_vm13, %v1504_v17, %v1432_v0  ;;  %v1223_v20 = vld [vmem:[%s2840_s14 + $0xf8] sm:$0xff] }
 0x59a   : > { %v1569_v14 = vmul.f32 %v1537_v2, %v1218_v41  ;;  %v1570_v51 = vmul.f32 %v1538_v52, %v1219_v59  ;;  %v1567_v26 = vmul.f32 %v1535_v53, %v1216_v48  ;;  %v1568_v36 = vmul.f32 %v1536_v54, %v1217_v15  ;;  %v1220_v53 = vld [vmem:[%s2840_s14 + $0xe0] sm:$0xff]  ;;  %v1221_v54 = vld [vmem:[%s2840_s14 + $0xe8] sm:$0xff] }
 0x59b   : > { %v1287_v46 = vpop.permute.xlu1 %1286  ;;  %v1285_v55 = vpop.permute.xlu0 %1284 }
 0x59c   : > { %v3466_v56 = vadd.f32 %v1570_v51, %v1251_v49  ;;  %v3468_v37 = vadd.f32 %v1568_v36, %v1249_v50  ;;  %v1599_v31 = vadd.f32 %v1567_v26, %v1248_v27  ;;  %v1601_v34 = vadd.f32 %v1569_v14, %v1250_v3  ;;  %v1190_v49 = vld [vmem:[%s2835_s22 + $0xf0] sm:$0xff]  ;;  %v1188_v27 = vld [vmem:[%s2835_s22 + $0xe0] sm:$0xff]  ;;  %v1191_v3 = vld [vmem:[%s2835_s22 + $0xf8] sm:$0xff] }
 0x59d   : > { %v1189_v50 = vld [vmem:[%s2835_s22 + $0xe8] sm:$0xff]  ;;  %v1254_v17 = vmul.f32 %v1190_v49, %v3129_v6  ;;  %v1252_v47 = vmul.f32 %v1188_v27, %v3132_v7  ;;  %v1255_v48 = vmul.f32 %v1191_v3, %v3140_v8 }
 0x59e   : > { %v1619_v44 = vpack.c.bf16 %v1601_v34, %v1599_v31  ;;  %v1620_v57 = vpack.c.bf16 %v3466_v56, %v3468_v37  ;;  %v1253_v15 = vmul.f32 %v1189_v50, %v3143_v9 }
 0x59f   : > { %v1319_v58 = vpop.permute.xlu1 %1318  ;;  %v1317_v43 = vpop.permute.xlu0 %1316 }
 0x5a0   : > { %v1354_v38 = vsel %vm1322_vm9, %v1319_v58, %v1287_v46  ;;  %v1353_v41 = vsel %vm1322_vm9, %v1317_v43, %v1285_v55  ;;  %2305 = vmatpush3.bf16.xpose.msra.mxu0 %v1619_v44  ;;  %v1338_v61 = vsel %vm1322_vm9, %v1287_v46, %v1319_v58  ;;  %v1337_v62 = vsel %vm1322_vm9, %v1285_v55, %v1317_v43 }
 0x5a1   : > { %2306 = vmatprep.subr.bf16.mxu0 %v2525_v42  ;;  %v1509_v63 = vsub.f32 0.0, %v1338_v61  ;;  %v1510_v0 = vsub.f32 0.0, %v1354_v38  ;;  %v1507_v1 = vsub.f32 0.0, %v1337_v62  ;;  %v1508_v2 = vsub.f32 0.0, %v1353_v41 }
 0x5a2   : > { %v2528_v62 = vmov 0  }
 0x5a3   : > { %v1386_v59 = vpop.permute.xlu1 %1385  ;;  %v1384_v60 = vpop.permute.xlu0 %1383  ;;  %2449 = vset.pattern.permute.xlu1 %v2528_v62  ;;  %2450 = vset.pattern.permute.xlu0 %v2528_v62 }
 0x5a7   : > { %v1418_v52 = vpop.permute.xlu1 %1417  ;;  %v1416_v14 = vpop.permute.xlu0 %1415 }
 0x5a8   : > { %v1435_v51 = vsel %vm1419_vm11, %v1386_v59, %v1418_v52  ;;  %v1451_v6 = vsel %vm1419_vm11, %v1418_v52, %v1386_v59  ;;  %v1434_v7 = vsel %vm1419_vm11, %v1384_v60, %v1416_v14  ;;  %v1450_v8 = vsel %vm1419_vm11, %v1416_v14, %v1384_v60  ;;  %v1637_v52 = vld [vmem:[%s2855_s30 + $0x70] sm:$0xff] }
 0x5a9   : > { %v1541_v9 = vsel %vm3182_vm12, %v1509_v63, %v1451_v6  ;;  %v1542_v26 = vsel %vm3186_vm13, %v1510_v0, %v1435_v51  ;;  %v1539_v36 = vsel %vm3182_vm12, %v1507_v1, %v1450_v8  ;;  %v1540_v46 = vsel %vm3186_vm13, %v1508_v2, %v1434_v7  ;;  %v1631_v63 = vld [vmem:[%s2855_s30 + $0x40] sm:$0xff]  ;;  %v1633_v0 = vld [vmem:[%s2855_s30 + $0x50] sm:$0xff]  ;;  %v3538_v6 = vld [vmem:[#allocation3] sm:$0xf] }
 0x5aa   : > { %v1573_v55 = vmul.f32 %v1541_v9, %v1222_v16  ;;  %v1574_v31 = vmul.f32 %v1542_v26, %v1223_v20  ;;  %v1571_v34 = vmul.f32 %v1539_v36, %v1220_v53  ;;  %v1572_v44 = vmul.f32 %v1540_v46, %v1221_v54  ;;  %v1629_v16 = vld [vmem:[%s2855_s30 + $0x30] sm:$0xff]  ;;  %v1635_v2 = vld [vmem:[%s2855_s30 + $0x60] sm:$0xff] }
 0x5ab   : > { %v1659_v1 = vpack.c.bf16 %v1633_v0, %v1631_v63  ;;  %v1661_v53 = vpack.c.bf16 %v1637_v52, %v1635_v2  ;;  %v1639_v54 = vld [vmem:[%s2855_s30 + $0x80] sm:$0xff]  ;;  %v1641_v14 = vld [vmem:[%s2855_s30 + $0x90] sm:$0xff]  ;;  %v1640_v0 = vld [vmem:[%s2855_s30 + $0x88] sm:$0xff] }
 0x5ac   : > { %v3509_v58 = vadd.f32 %v1574_v31, %v1255_v48  ;;  %v3511_v5 = vadd.f32 %v1572_v44, %v1253_v15  ;;  %v1603_v43 = vadd.f32 %v1571_v34, %v1252_v47  ;;  %v1605_v38 = vadd.f32 %v1573_v55, %v1254_v17  ;;  %v1623_v17 = vld [vmem:[%s2855_s30] sm:$0xff]  ;;  %v1625_v47 = vld [vmem:[%s2855_s30 + $0x10] sm:$0xff] }
 0x5ad   : > { %v1627_v48 = vld [vmem:[%s2855_s30 + $0x20] sm:$0xff]  ;;  %v1655_v15 = vpack.c.bf16 %v1625_v47, %v1623_v17  ;;  %v1663_v51 = vpack.c.bf16 %v1641_v14, %v1639_v54  ;;  %v1645_v9 = vld [vmem:[%s2855_s30 + $0xb0] sm:$0xff]  ;;  %v1636_v17 = vld [vmem:[%s2855_s30 + $0x68] sm:$0xff] }
 0x5ae   : > { %v1621_v41 = vpack.c.bf16 %v1605_v38, %v1603_v43  ;;  %v1622_v49 = vpack.c.bf16 %v3509_v58, %v3511_v5  ;;  %v1657_v20 = vpack.c.bf16 %v1629_v16, %v1627_v48  ;;  %v1643_v8 = vld [vmem:[%s2855_s30 + $0xa0] sm:$0xff]  ;;  %v1649_v31 = vld [vmem:[%s2855_s30 + $0xd0] sm:$0xff]  ;;  %v1626_v58 = vld [vmem:[%s2855_s30 + $0x18] sm:$0xff] }
 0x5af   : > { %2313 = vmatpush3.bf16.msra.mxu1 %v1655_v15  ;;  %v1665_v36 = vpack.c.bf16 %v1645_v9, %v1643_v8  ;;  %v1647_v55 = vld [vmem:[%s2855_s30 + $0xc0] sm:$0xff]  ;;  %v1653_v43 = vld [vmem:[%s2855_s30 + $0xf0] sm:$0xff]  ;;  %v1628_v5 = vld [vmem:[%s2855_s30 + $0x28] sm:$0xff] }
 0x5b0   : > { %2307 = vmatpush3.bf16.xpose.msra.mxu0 %v1621_v41  ;;  %2314 = vmatprep.subr.bf16.mxu1 %v2525_v42  ;;  %v1667_v34 = vpack.c.bf16 %v1649_v31, %v1647_v55  ;;  %v1651_v44 = vld [vmem:[%s2855_s30 + $0xe0] sm:$0xff]  ;;  %v1638_v47 = vld [vmem:[%s2855_s30 + $0x78] sm:$0xff]  ;;  %v1841_v15 = vld [vmem:[#allocation3 + $0x4] sm:$0xf] }
 0x5b1   : > { %2352 = vmatprep.subr.bf16.mxu0 %v2525_v42  ;;  %v1669_v38 = vpack.c.bf16 %v1653_v43, %v1651_v44  ;;  %v1662_v48 = vpack.c.bf16 %v1638_v47, %v1636_v17  ;;  %v1648_v9 = vld [vmem:[%s2855_s30 + $0xc8] sm:$0xff] }
 0x5b2   : > { %v1652_v31 = vld [vmem:[%s2855_s30 + $0xe8] sm:$0xff] }
 0x5b3   : > { %2315 = vmatpush3.bf16.msra.mxu1 %v1657_v20  ;;  %v1730_v20 = vld [vmem:[#allocation4] sm:$0xf] }
 0x5b4   : > { %2316 = vmatprep.subr.bf16.mxu1 %v2525_v42 }
 0x5b7   : > { %2309 = vmatmul.mubr.bf16.vlgmr.msra.gmra.mrb[0].mxu0 %v3516_v32  ;;  %2317 = vmatpush3.bf16.msra.mxu1 %v1659_v1  ;;  %v1642_v1 = vld [vmem:[%s2855_s30 + $0x98] sm:$0xff] }
 0x5b8   : > { %2368 = vmatprep.mubr.msk.bf16.mxu0 %vm2527_vm10, %v2525_v42  ;;  %2318 = vmatprep.subr.bf16.mxu1 %v2525_v42 }
 0x5bb   : > { %2319 = vmatpush3.bf16.msra.mxu1 %v1661_v53  ;;  %v1664_v53 = vpack.c.bf16 %v1642_v1, %v1640_v0 }
 0x5bc   : > { %2320 = vmatprep.subr.bf16.mxu1 %v2525_v42 }
 0x5bf   : > { %2321 = vmatpush3.bf16.msra.mxu1 %v1663_v51  ;;  %v1738_v51 = vld [vmem:[#allocation5] sm:$0xf] }
 0x5c0   : > { %2322 = vmatprep.subr.bf16.mxu1 %v2525_v42 }
 0x5c3   : > { %2323 = vmatpush3.bf16.msra.mxu1 %v1665_v36 }
 0x5c4   : > { %2324 = vmatprep.subr.bf16.mxu1 %v2525_v42 }
 0x5c7   : > { %2325 = vmatpush3.bf16.msra.mxu1 %v1667_v34  ;;  %v1654_v34 = vld [vmem:[%s2855_s30 + $0xf8] sm:$0xff] }
 0x5c8   : > { %2326 = vmatprep.subr.bf16.mxu1 %v2525_v42  ;;  %v1670_v43 = vpack.c.bf16 %v1654_v34, %v1652_v31 }
 0x5cb   : > { %2327 = vmatpush3.bf16.msra.mxu1 %v1669_v38 }
 0x5cc   : > { %2332 = vmatprep.subr.bf16.mxu1 %v2525_v42 }
 0x68a   : > { %v1707_v27 = vpop.f32.mrb[0].mxu0 }
 0x68b   : > { %v1708_v3 = vadd.f32 %v1707_v27, %v1672_v33  ;;  %v2310_v50 = vpop.f32.mrb[1].mxu0 }
 0x68c   : > { %v1710_v59 = vpop.f32.mrb[2].mxu0 }
 0x68d   : > { %v2311_v60 = vpop.f32.mrb[3].mxu0  ;;  %v1715_v61 = vsel %vm1714_vm14, %v1708_v3, -inf }
 0x68e   : > { %1716 = vmax.xlane.f32.xlu0 %v1715_v61  ;;  %v1632_v60 = vld [vmem:[%s2855_s30 + $0x48] sm:$0xff]  ;;  %v1634_v61 = vld [vmem:[%s2855_s30 + $0x58] sm:$0xff] }
 0x68f   : > { %v1660_v62 = vpack.c.bf16 %v1634_v61, %v1632_v60 }
 0x71b   : > { %v1717_v7 = vpop.xlane.xlu0 %1716 }
 0x71c   : > { %v1718_v26 = vmax.f32 %v3538_v6, %v1717_v7  ;;  %v1646_v7 = vld [vmem:[%s2855_s30 + $0xb8] sm:$0xff] }
 0x71e   : > { %v1719_v46 = vsub.f32 %v3538_v6, %v1718_v26  ;;  %1788 = vst.msk [vmem:[#allocation3] sm:$0xf] %vm1736_vm15, %v1718_v26  ;;  %1724 = vperm.xlu1 %2449, %v1718_v26   ;;  %v1644_v6 = vld [vmem:[%s2855_s30 + $0xa8] sm:$0xff]  ;;  %v1650_v26 = vld [vmem:[%s2855_s30 + $0xd8] sm:$0xff] }
 0x71f   : > { %v1666_v8 = vpack.c.bf16 %v1646_v7, %v1644_v6  ;;  %v1668_v55 = vpack.c.bf16 %v1650_v26, %v1648_v9 }
 0x720   : > { %v1720_v56 = vmul.f32 1.442695, %v1719_v46 }
 0x79d   : > { %v1725_v41 = vpop.permute.xlu1 %1724 }
 0x79e   : > { %v1727_v33 = vsub.f32 %v1708_v3, %v1725_v41 }
 0x7a0   : > { %v1728_v27 = vmul.f32 1.442695, %v1727_v33 }
 0x7a2   : > { %2451 = vpow2.f32 %v1728_v27 }
 0x7a3   : > { %2453 = vpow2.f32 %v1720_v56 }
 0x7ac   : > { %v2452_v50 = vpop.eup %2451 }
 0x7ad   : > { %v1745_v59 = vpack.c.bf16 %v2452_v50, %v2452_v50  ;;  %v2454_v37 = vpop.eup %2453 }
 0x7ae   : > { %v1731_v52 = vmul.f32 %v2454_v37, %v1730_v20 }
 0x7af   : > { %2329 = vmatmul.mubr.bf16.vlgmr.msra.gmra.mrb[0].mxu1 %v1745_v59 }
 0x7b0   : > { %2333 = vmatpush3.bf16.xpose.msra.mxu1 %v1608_v35  ;;  %2348 = vmatprep.mubr.msk.bf16.mxu1 %vm2527_vm10, %v2525_v42  ;;  %v1793_v35 = vunpack.c.0.s8 %v1792_v25 }
 0x7b1   : > { %2334 = vmatprep.subr.bf16.mxu1 %v2525_v42 }
 0x7b2   : > { %v1796_v10 = vsub.s32 %v1793_v35, %v1795_v39  ;;  %v1858_v35 = vld [vmem:[#allocation4 + $0x4] sm:$0xf] }
 0x7b8   : > { %2335 = vmatpush3.bf16.xpose.msra.mxu1 %v1610_v18  ;;  %v1797_v18 = vrot.slane %v3516_v32, %v1796_v10  ;;  %v1630_v32 = vld [vmem:[%s2855_s30 + $0x38] sm:$0xff] }
 0x7b9   : > { %2336 = vmatprep.subr.bf16.mxu1 %v2525_v42  ;;  %v1658_v3 = vpack.c.bf16 %v1630_v32, %v1628_v5 }
 0x7ba   : > { %v1798_v12 = vcombine.high %v1797_v18, %v1797_v18  ;;  %v1865_v18 = vld [vmem:[#allocation5 + $0x4] sm:$0xf] }
 0x7c0   : > { %2337 = vmatpush3.bf16.xpose.msra.mxu1 %v1612_v30 }
 0x7c1   : > { %2338 = vmatprep.subr.bf16.mxu1 %v2525_v42 }
 0x7c8   : > { %2339 = vmatpush3.bf16.xpose.msra.mxu1 %v1614_v28 }
 0x7c9   : > { %2340 = vmatprep.subr.bf16.mxu1 %v2525_v42 }
 0x7d0   : > { %2341 = vmatpush3.bf16.xpose.msra.mxu1 %v1616_v19 }
 0x7d1   : > { %2342 = vmatprep.subr.bf16.mxu1 %v2525_v42 }
 0x7d8   : > { %2343 = vmatpush3.bf16.xpose.msra.mxu1 %v1618_v22  ;;  %v1732_v22 = vsel %vm1714_vm14, %v2452_v50, 0.0 }
 0x7d9   : > { %2344 = vmatprep.subr.bf16.mxu1 %v2525_v42 }
 0x7e0   : > { %2345 = vmatpush3.bf16.xpose.msra.mxu1 %v1620_v57  ;;  %v1624_v57 = vld [vmem:[%s2855_s30 + $0x8] sm:$0xff] }
 0x7e1   : > { %2346 = vmatprep.subr.bf16.mxu1 %v2525_v42 }
 0x7e8   : > { %2347 = vmatpush3.bf16.xpose.msra.mxu1 %v1622_v49  ;;  %v1656_v49 = vpack.c.bf16 %v1626_v58, %v1624_v57 }
 0x7ea   : > { %2353 = vmatpush3.bf16.msra.mxu0 %v1656_v49 }
 0x7eb   : > { %2354 = vmatprep.subr.bf16.mxu0 %v2525_v42 }
 0x7ee   : > { %2355 = vmatpush3.bf16.msra.mxu0 %v1658_v3 }
 0x7ef   : > { %2349 = vmatmul.mubr.bf16.vlgmr.msra.gmra.mrb[4].mxu1 %v1798_v12  ;;  %2356 = vmatprep.subr.bf16.mxu0 %v2525_v42 }
 0x7f2   : > { %2357 = vmatpush3.bf16.msra.mxu0 %v1660_v62 }
 0x7f3   : > { %2358 = vmatprep.subr.bf16.mxu0 %v2525_v42 }
 0x7f6   : > { %2359 = vmatpush3.bf16.msra.mxu0 %v1662_v48 }
 0x7f7   : > { %2360 = vmatprep.subr.bf16.mxu0 %v2525_v42 }
 0x7fa   : > { %2361 = vmatpush3.bf16.msra.mxu0 %v1664_v53 }
 0x7fb   : > { %2362 = vmatprep.subr.bf16.mxu0 %v2525_v42 }
 0x7fe   : > { %2363 = vmatpush3.bf16.msra.mxu0 %v1666_v8 }
 0x7ff   : > { %2364 = vmatprep.subr.bf16.mxu0 %v2525_v42 }
 0x802   : > { %2365 = vmatpush3.bf16.msra.mxu0 %v1668_v55 }
 0x803   : > { %2366 = vmatprep.subr.bf16.mxu0 %v2525_v42 }
 0x806   : > { %2367 = vmatpush3.bf16.msra.mxu0 %v1670_v43 }
 0x882   : > { %v3587_v21 = vpop.f32.mrb[0].mxu1 }
 0x883   : > { %v2330_v30 = vpop.f32.mrb[1].mxu1 }
 0x884   : > { %v1783_v23 = vpop.f32.mrb[2].mxu1 }
 0x885   : > { %v2331_v4 = vpop.f32.mrb[3].mxu1 }
 0x8c2   : > { %v1834_v28 = vpop.f32.mrb[4].mxu1 }
 0x8c3   : > { %v3590_v29 = vadd.f32 %v1834_v28, %v1789_v45  ;;  %v2350_v40 = vpop.f32.mrb[5].mxu1 }
 0x8c4   : > { %v1837_v19 = vpop.f32.mrb[6].mxu1 }
 0x8c5   : > { %v2351_v11 = vpop.f32.mrb[7].mxu1  ;;  %v1842_v13 = vsel %vm1714_vm14, %v3590_v29, -inf  ;;  %v2530_v19 = vmov (!%p2218_p0), 0  }
 0x8c6   : > { %1843 = vmax.xlane.f32.xlu1 %v1842_v13 }
 0x8ca   : > { %1733 = vadd.xlane.f32.xlu1 %v1732_v22 }
 0x8db   : > { %1741 = vperm.xlu1 %2449, %v2454_v37  }
 0x953   : > { %v1844_v16 = vpop.xlane.xlu1 %1843 }
 0x954   : > { %v1845_v63 = vmax.f32 %v1841_v15, %v1844_v16 }
 0x956   : > { %v1846_v2 = vsub.f32 %v1841_v15, %v1845_v63  ;;  %1915 = vst.msk [vmem:[#allocation3 + $0x4] sm:$0xf] %vm1736_vm15, %v1845_v63  ;;  %1851 = vperm.xlu0 %2450, %v1845_v63  }
 0x957   : > { %v1734_v54 = vpop.xlane.xlu1 %1733 }
 0x958   : > { %v1735_v14 = vadd.f32 %v1734_v54, %v1731_v52  ;;  %v1847_v24 = vmul.f32 1.442695, %v1846_v2 }
 0x95a   : > { %1737 = vst.msk [vmem:[#allocation4] sm:$0xf] %vm1736_vm15, %v1735_v14  ;;  %2459 = vset.pattern.permute.xlu0 (!%p2218_p0), %v2530_v19 }
 0x95b   : > { %v1742_v36 = vpop.permute.xlu1 %1741 }
 0x95c   : > { %v1744_v46 = vmul.f32 %v1742_v36, %v1738_v51 }
 0x95e   : > { %v1786_v44 = vadd.f32 %v3587_v21, %v1744_v46 }
 0x960   : > { %1787 = vst [vmem:[#allocation5] sm:$0xf] %v1786_v44 }
 0x967   : > { %v1920_v22 = vld [vmem:[#allocation5] sm:$0xf] (!%p2218_p0) }
 0x9d5   : > { %v1852_v38 = vpop.permute.xlu0 %1851 }
 0x9d6   : > { %v1854_v41 = vsub.f32 %v3590_v29, %v1852_v38  ;;  %v1921_v29 = vld [vmem:[#allocation4] sm:$0xf] (!%p2218_p0) }
 0x9d8   : > { %v1855_v33 = vmul.f32 1.442695, %v1854_v41 }
 0x9da   : > { %2455 = vpow2.f32 %v1855_v33 }
 0x9db   : > { %2457 = vpow2.f32 %v1847_v24 }
 0x9dc   : > { %2460 = vrcp.f32 (!%p2218_p0), %v1921_v29 }
 0x9e4   : > { %v2456_v27 = vpop.eup %2455 }
 0x9e5   : > { %v1860_v50 = vsel %vm1714_vm14, %v2456_v27, 0.0  ;;  %v1872_v59 = vpack.c.bf16 %v2456_v27, %v2456_v27  ;;  %v2458_v25 = vpop.eup %2457 }
 0x9e6   : > { %1861 = vadd.xlane.f32.xlu1 %v1860_v50  ;;  %v1859_v39 = vmul.f32 %v2458_v25, %v1858_v35  ;;  %v2461_v11 = vpop.eup (!%p2218_p0), %2460 }
 0x9e7   : > { %2369 = vmatmul.mubr.bf16.vlgmr.msra.gmra.mrb[4].mxu0 %v1872_v59  ;;  %1925 = vperm.xlu0 (!%p2218_p0), %2459, %v2461_v11  }
 0x9f7   : > { %1868 = vperm.xlu1 %2449, %v2458_v25  }
 0xa66   : > { %v1926_v56 = vpop.permute.xlu0 (!%p2218_p0), %1925 }
 0xa67   : > { %v1928_v37 = vmul.f32 (!%p2218_p0), %v1926_v56, %v1920_v22 }
 0xa69   : > { %1929 = vst [vmem:[#allocation5] sm:$0xf] (!%p2218_p0), %v1928_v37 }
 0xa73   : > { %v1862_v10 = vpop.xlane.xlu1 %1861 }
 0xa74   : > { %v1863_v42 = vadd.f32 %v1862_v10, %v1859_v39 }
 0xa76   : > { %1864 = vst.msk [vmem:[#allocation4 + $0x4] sm:$0xf] %vm1736_vm15, %v1863_v42 }
 0xa77   : > { %v1869_v12 = vpop.permute.xlu1 %1868 }
 0xa78   : > { %v1871_v21 = vmul.f32 %v1869_v12, %v1865_v18 }
 0xa7d   : > { %v1931_v40 = vld [vmem:[#allocation4 + $0x4] sm:$0xf] (!%p2218_p0) }
 0xa7e   : > { %2462 = vrcp.f32 (!%p2218_p0), %v1931_v40 }
 0xa88   : > { %v2463_v13 = vpop.eup (!%p2218_p0), %2462 }
 0xa89   : > { %1935 = vperm.xlu0 (!%p2218_p0), %2459, %v2463_v13  }
 0xab7   : > { %1919 = sbr.rel (%p2218_p0) target bundleno = 2836 (0xb14), region = 126 }
 0xaba   : > { %v1907_v30 = vpop.f32.mrb[4].mxu0 }
 0xabb   : > { %v1913_v23 = vadd.f32 %v1907_v30, %v1871_v21  ;;  %v2370_v4 = vpop.f32.mrb[5].mxu0 }
 0xabc   : > { %v1910_v45 = vpop.f32.mrb[6].mxu0 }
 0xabd   : > { %1914 = vst [vmem:[#allocation5 + $0x4] sm:$0xf] %v1913_v23  ;;  %v2371_v28 = vpop.f32.mrb[7].mxu0 }
 0xac4   : > { %v1930_v57 = vld [vmem:[#allocation5 + $0x4] sm:$0xf] }
 0xb08   : > { %v1936_v58 = vpop.permute.xlu0 %1935 }
 0xb09   : > { %v1938_v5 = vmul.f32 %v1936_v58, %v1930_v57 }
 0xb0b   : > { %1939 = vst [vmem:[#allocation5 + $0x4] sm:$0xf] %v1938_v5 }
 0xb12   : > { %v1940_v49 = vld [vmem:[#allocation5] sm:$0xff] }
 0xb13   : > { %1941 = vst [vmem:[%s2846_s24] sm:$0xff] %v1940_v49 }
 0xb14 PF: > { %s3694_s27 = sld [smem:[#allocation11_spill]]  ;;  %s3695_s25 = sld [smem:[#allocation8_spill]] }
 0xb15   : > { %s3696_s26 = sld [smem:[#allocation14_spill]]  ;;  %s3698_s28 = sld [smem:[#allocation10_spill]] }
 0xb16   : > { %s3699_s29 = sld [smem:[#allocation12_spill]]  ;;  %s3700_s30 = sld [smem:[#allocation13_spill]] }
 0xb1a   : > { %s23_s14 = sadd.s32 1, %s3694_s27   ;;  %s3697_s27 = sld [smem:[#allocation9_spill]] }
 0xb1b   : > { %p20_p1 = scmp.ge.s32.totalorder %s23_s14, 6  }
 0xb1d   :  { %22 = sbr.rel (!%p20_p1) target bundleno = 10 (0xa), region = 191 }

// kernel: video_camera_attention_forward.7
= control target key start
LH: loop header
LB: loop body
LE: loop exit
PB: predicated region body
PF: predicated region fallthrough
CT: control target
= control target key end

     0   :  { %s1732_s12 = smov 0   ;;  %s1734_s13 = smov 0   ;;  %s2039_s0 = inlined_call_operand.vmem [shape: bf16[768,256], index: 0, kind: input, shape index: {}]   ;;  %s2040_s1 = inlined_call_operand.vmem [shape: bf16[256,256], index: 1, kind: input, shape index: {}]   ;;  %s2041_s2 = inlined_call_operand.vmem [shape: f32[1,256], index: 2, kind: input, shape index: {}]   ;;  %s2042_s3 = inlined_call_operand.vmem [shape: f32[768,256], index: 3, kind: output, shape index: {}]  }
   0x1   :  { %s1736_s14 = smov 0  }
   0x2 LB: > { %s32_s15 = sadd.s32 1, %s1706_s13  ;;  %p1461_p0 = scmp.ge.s32.totalorder %s1710_s14, 1  ;;  %s1710_s14 = sphi %s1736_s14, %s13_s14   ;;  %s1706_s13 = sphi %s1734_s13, %s2044_s13   ;;  %s1702_s12 = sphi %s1732_s12, %s2043_s12  }
   0x3   : > { %p34_p1 = scmp.ge.s32.totalorder %s32_s15, 3  ;;  %p196_p2 = scmp.lt.s32.totalorder %s1710_s14, 4 }
   0x5   : > { %s2046_s15 = smov (%p34_p1, %s32_s15), 0  ;;  %p197_p3 = pnand %p1461_p0, %p196_p2 }
   0x6   : > { %v1592_v0 = vld [vmem:[%s2040_s1 + $0x4] ss:$8 sps:$4 sm:$0xff] (!%p197_p3)   ;;  %v1594_v1 = vld [vmem:[%s2040_s1] ss:$8 sps:$4 sm:$0xff] (!%p197_p3)   ;;  %v1595_v2 = vld [vmem:[%s2040_s1 + $0x14] ss:$8 sps:$4 sm:$0xff] (!%p197_p3)  }
   0x7   : > { %200 = sbr.rel (%p197_p3) target bundleno = 345 (0x159), region = 32  ;;  %801 = vmatprep.subr.bf16.mxu0 (!%p197_p3), %v1592_v0  ;;  %1536 = vmatprep.subr.bf16.mxu1 (!%p197_p3), %v1592_v0  ;;  %v1597_v3 = vld [vmem:[%s2040_s1 + $0x10] ss:$8 sps:$4 sm:$0xff] (!%p197_p3)   ;;  %v1598_v4 = vld [vmem:[%s2040_s1 + $0x24] ss:$8 sps:$4 sm:$0xff] (!%p197_p3)   ;;  %s1462_s26 = sshll.u32 (!%p197_p3), %s1702_s12, 5  ;;  %v1191_v0 = vlaneseq (!%p197_p3) }
   0x8   : > { %802 = vmatpush1.bf16.msra.mxu0 (!%p197_p3), %v1594_v1  ;;  %1552 = vmatpush1.bf16.msra.mxu1 (!%p197_p3), %v1594_v1  ;;  %v1600_v5 = vld [vmem:[%s2040_s1 + $0x20] ss:$8 sps:$4 sm:$0xff] (!%p197_p3)   ;;  %v1601_v6 = vld [vmem:[%s2040_s1 + $0x34] ss:$8 sps:$4 sm:$0xff] (!%p197_p3)   ;;  %p246_p4 = scmp.lt.s32.totalorder (!%p197_p3), %s1462_s26, 95 }
   0x9   : > { %803 = vmatprep.subr.bf16.mxu0 (!%p197_p3), %v1595_v2  ;;  %1537 = vmatprep.subr.bf16.mxu1 (!%p197_p3), %v1595_v2  ;;  %v1603_v7 = vld [vmem:[%s2040_s1 + $0x30] ss:$8 sps:$4 sm:$0xff] (!%p197_p3)   ;;  %v1604_v8 = vld [vmem:[%s2040_s1 + $0x44] ss:$8 sps:$4 sm:$0xff] (!%p197_p3)   ;;  %v1606_v9 = vld [vmem:[%s2040_s1 + $0x40] ss:$8 sps:$4 sm:$0xff] (!%p197_p3)  }
   0xa   : > { %v1607_v10 = vld [vmem:[%s2040_s1 + $0x54] ss:$8 sps:$4 sm:$0xff] (!%p197_p3)   ;;  %v1609_v11 = vld [vmem:[%s2040_s1 + $0x50] ss:$8 sps:$4 sm:$0xff] (!%p197_p3)   ;;  %v1610_v12 = vld [vmem:[%s2040_s1 + $0x64] ss:$8 sps:$4 sm:$0xff] (!%p197_p3)  }
   0xb   : > { %v1612_v14 = vld [vmem:[%s2040_s1 + $0x60] ss:$8 sps:$4 sm:$0xff] (!%p197_p3)   ;;  %v1613_v16 = vld [vmem:[%s2040_s1 + $0x74] ss:$8 sps:$4 sm:$0xff] (!%p197_p3)   ;;  %v1615_v17 = vld [vmem:[%s2040_s1 + $0x70] ss:$8 sps:$4 sm:$0xff] (!%p197_p3)  }
   0xc   : > { %804 = vmatpush1.bf16.msra.mxu0 (!%p197_p3), %v1597_v3  ;;  %1553 = vmatpush1.bf16.msra.mxu1 (!%p197_p3), %v1597_v3  ;;  %v1616_v18 = vld [vmem:[%s2040_s1 + $0x84] ss:$8 sps:$4 sm:$0xff] (!%p197_p3)   ;;  %v1618_v19 = vld [vmem:[%s2040_s1 + $0x80] ss:$8 sps:$4 sm:$0xff] (!%p197_p3)   ;;  %v1619_v20 = vld [vmem:[%s2040_s1 + $0x94] ss:$8 sps:$4 sm:$0xff] (!%p197_p3)  }
   0xd   : > { %805 = vmatprep.subr.bf16.mxu0 (!%p197_p3), %v1598_v4  ;;  %1538 = vmatprep.subr.bf16.mxu1 (!%p197_p3), %v1598_v4  ;;  %v1621_v21 = vld [vmem:[%s2040_s1 + $0x90] ss:$8 sps:$4 sm:$0xff] (!%p197_p3)   ;;  %v1622_v22 = vld [vmem:[%s2040_s1 + $0xa4] ss:$8 sps:$4 sm:$0xff] (!%p197_p3)   ;;  %v1624_v23 = vld [vmem:[%s2040_s1 + $0xa0] ss:$8 sps:$4 sm:$0xff] (!%p197_p3)  }
   0xe   : > { %s2048_s26 = smov (!%p246_p4, %s1462_s26), 95  ;;  %v1625_v24 = vld [vmem:[%s2040_s1 + $0xb4] ss:$8 sps:$4 sm:$0xff]   ;;  %v1627_v25 = vld [vmem:[%s2040_s1 + $0xb0] ss:$8 sps:$4 sm:$0xff]   ;;  %v1192_v1 = vshrl.u32 %v1191_v0, 7 }
   0xf   : > { %s1534_s12 = sshll.u32 %s2048_s26, 3  ;;  %v1628_v26 = vld [vmem:[%s2040_s1 + $0xc4] ss:$8 sps:$4 sm:$0xff]   ;;  %v1630_v27 = vld [vmem:[%s2040_s1 + $0xc0] ss:$8 sps:$4 sm:$0xff]   ;;  %s1535_s18 = sshll.u32 %s2048_s26, 4 }
  0x10   : > { %806 = vmatpush1.bf16.msra.mxu0 %v1600_v5  ;;  %1554 = vmatpush1.bf16.msra.mxu1 %v1600_v5  ;;  %s1795_s20 = scalar_lea.vmem %s2039_s0, %s1534_s12  ;;  %v1631_v28 = vld [vmem:[%s2040_s1 + $0xd4] ss:$8 sps:$4 sm:$0xff]   ;;  %v1633_v29 = vld [vmem:[%s2040_s1 + $0xd0] ss:$8 sps:$4 sm:$0xff]   ;;  %v1634_v30 = vld [vmem:[%s2040_s1 + $0xe4] ss:$8 sps:$4 sm:$0xff]   ;;  %s1900_s22 = scalar_lea.vmem %s2042_s3, %s1535_s18 }
  0x11   : > { %807 = vmatprep.subr.bf16.mxu0 %v1601_v6  ;;  %1539 = vmatprep.subr.bf16.mxu1 %v1601_v6  ;;  %v1642_v13 = vld [vmem:[%s1795_s20 + $0x4] ss:$8 sps:$4 sm:$0xff]   ;;  %v1636_v31 = vld [vmem:[%s2040_s1 + $0xe0] ss:$8 sps:$4 sm:$0xff]   ;;  %v1637_v32 = vld [vmem:[%s2040_s1 + $0xf4] ss:$8 sps:$4 sm:$0xff]  }
  0x12   : > { %v1645_v15 = vld [vmem:[%s1795_s20 + $0x84] ss:$8 sps:$4 sm:$0xff]   ;;  %833 = vmatprep.mubr.bf16.mxu0 %v1642_v13  ;;  %v1639_v33 = vld [vmem:[%s2040_s1 + $0xf0] ss:$8 sps:$4 sm:$0xff]   ;;  %v1640_v34 = vld [vmem:[%s1795_s20] ss:$8 sps:$4 sm:$0xff]  }
  0x13   : > { %913 = vmatprep.mubr.bf16.mxu1 %v1645_v15  ;;  %v1643_v35 = vld [vmem:[%s1795_s20 + $0x80] ss:$8 sps:$4 sm:$0xff]   ;;  %v1646_v36 = vld [vmem:[%s1795_s20 + $0x14] ss:$8 sps:$4 sm:$0xff]   ;;  %v1650_v38 = vld [vmem:[%s1795_s20 + $0x10] ss:$8 sps:$4 sm:$0xff]  }
  0x14   : > { %808 = vmatpush1.bf16.msra.mxu0 %v1603_v7  ;;  %1555 = vmatpush1.bf16.msra.mxu1 %v1603_v7  ;;  %v1648_v37 = vld [vmem:[%s1795_s20 + $0x94] ss:$8 sps:$4 sm:$0xff]   ;;  %v1651_v39 = vld [vmem:[%s1795_s20 + $0x90] ss:$8 sps:$4 sm:$0xff]   ;;  %v1652_v40 = vld [vmem:[%s1795_s20 + $0x24] ss:$8 sps:$4 sm:$0xff]  }
  0x15   : > { %809 = vmatprep.subr.bf16.mxu0 %v1604_v8  ;;  %1540 = vmatprep.subr.bf16.mxu1 %v1604_v8  ;;  %v1654_v41 = vld [vmem:[%s1795_s20 + $0xa4] ss:$8 sps:$4 sm:$0xff]   ;;  %v1656_v42 = vld [vmem:[%s1795_s20 + $0x20] ss:$8 sps:$4 sm:$0xff]   ;;  %v1658_v44 = vld [vmem:[%s1795_s20 + $0x34] ss:$8 sps:$4 sm:$0xff]  }
  0x16   : > { %v1657_v43 = vld [vmem:[%s1795_s20 + $0xa0] ss:$8 sps:$4 sm:$0xff]   ;;  %v1660_v45 = vld [vmem:[%s1795_s20 + $0xb4] ss:$8 sps:$4 sm:$0xff]   ;;  %v1662_v46 = vld [vmem:[%s1795_s20 + $0x30] ss:$8 sps:$4 sm:$0xff]  }
  0x17   : > { %v1663_v47 = vld [vmem:[%s1795_s20 + $0xb0] ss:$8 sps:$4 sm:$0xff]   ;;  %v1664_v48 = vld [vmem:[%s1795_s20 + $0x44] ss:$8 sps:$4 sm:$0xff]   ;;  %v1668_v50 = vld [vmem:[%s1795_s20 + $0x40] ss:$8 sps:$4 sm:$0xff]  }
  0x18   : > { %810 = vmatpush1.bf16.msra.mxu0 %v1606_v9  ;;  %1556 = vmatpush1.bf16.msra.mxu1 %v1606_v9  ;;  %v1666_v49 = vld [vmem:[%s1795_s20 + $0xc4] ss:$8 sps:$4 sm:$0xff]   ;;  %v1669_v51 = vld [vmem:[%s1795_s20 + $0xc0] ss:$8 sps:$4 sm:$0xff]   ;;  %v1670_v52 = vld [vmem:[%s1795_s20 + $0x54] ss:$8 sps:$4 sm:$0xff]  }
  0x19   : > { %811 = vmatprep.subr.bf16.mxu0 %v1607_v10  ;;  %1541 = vmatprep.subr.bf16.mxu1 %v1607_v10  ;;  %v1672_v53 = vld [vmem:[%s1795_s20 + $0xd4] ss:$8 sps:$4 sm:$0xff]   ;;  %v1674_v54 = vld [vmem:[%s1795_s20 + $0x50] ss:$8 sps:$4 sm:$0xff]   ;;  %v1676_v56 = vld [vmem:[%s1795_s20 + $0x64] ss:$8 sps:$4 sm:$0xff]  }
  0x1a   : > { %v1675_v55 = vld [vmem:[%s1795_s20 + $0xd0] ss:$8 sps:$4 sm:$0xff]   ;;  %v1678_v57 = vld [vmem:[%s1795_s20 + $0xe4] ss:$8 sps:$4 sm:$0xff]   ;;  %v1680_v58 = vld [vmem:[%s1795_s20 + $0x60] ss:$8 sps:$4 sm:$0xff]  }
  0x1b   : > { %v1681_v59 = vld [vmem:[%s1795_s20 + $0xe0] ss:$8 sps:$4 sm:$0xff]   ;;  %v1682_v60 = vld [vmem:[%s1795_s20 + $0x74] ss:$8 sps:$4 sm:$0xff]   ;;  %v1686_v62 = vld [vmem:[%s1795_s20 + $0x70] ss:$8 sps:$4 sm:$0xff]  }
  0x1c   : > { %812 = vmatpush1.bf16.msra.mxu0 %v1609_v11  ;;  %1557 = vmatpush1.bf16.msra.mxu1 %v1609_v11  ;;  %v1684_v61 = vld [vmem:[%s1795_s20 + $0xf4] ss:$8 sps:$4 sm:$0xff]   ;;  %v1687_v63 = vld [vmem:[%s1795_s20 + $0xf0] ss:$8 sps:$4 sm:$0xff]   ;;  %v1193_v2 = vsub.s32 0, %v1192_v1  ;;  %v1197_v4 = vsub.s32 1, %v1192_v1 }
  0x1d   : > { %813 = vmatprep.subr.bf16.mxu0 %v1610_v12  ;;  %1542 = vmatprep.subr.bf16.mxu1 %v1610_v12  ;;  %v1189_v3 = vld [vmem:[%s2041_s2] sm:$0x3] }
  0x1e   : > { %v1893_v5 = vrot.slane %v1189_v3, %v1193_v2  ;;  %v1895_v6 = vrot.slane %v1189_v3, %v1197_v4 }
  0x20   : > { %814 = vmatpush1.bf16.msra.mxu0 %v1612_v14  ;;  %1558 = vmatpush1.bf16.msra.mxu1 %v1612_v14 }
  0x21   : > { %815 = vmatprep.subr.bf16.mxu0 %v1613_v16  ;;  %1543 = vmatprep.subr.bf16.mxu1 %v1613_v16 }
  0x24   : > { %816 = vmatpush1.bf16.msra.mxu0 %v1615_v17  ;;  %1559 = vmatpush1.bf16.msra.mxu1 %v1615_v17 }
  0x25   : > { %817 = vmatprep.subr.bf16.mxu0 %v1616_v18  ;;  %1544 = vmatprep.subr.bf16.mxu1 %v1616_v18 }
  0x28   : > { %818 = vmatpush1.bf16.msra.mxu0 %v1618_v19  ;;  %1560 = vmatpush1.bf16.msra.mxu1 %v1618_v19 }
  0x29   : > { %819 = vmatprep.subr.bf16.mxu0 %v1619_v20  ;;  %1545 = vmatprep.subr.bf16.mxu1 %v1619_v20 }
  0x2c   : > { %820 = vmatpush1.bf16.msra.mxu0 %v1621_v21  ;;  %1561 = vmatpush1.bf16.msra.mxu1 %v1621_v21 }
  0x2d   : > { %821 = vmatprep.subr.bf16.mxu0 %v1622_v22  ;;  %1546 = vmatprep.subr.bf16.mxu1 %v1622_v22 }
  0x30   : > { %822 = vmatpush1.bf16.msra.mxu0 %v1624_v23  ;;  %1562 = vmatpush1.bf16.msra.mxu1 %v1624_v23 }
  0x31   : > { %823 = vmatprep.subr.bf16.mxu0 %v1625_v24  ;;  %1547 = vmatprep.subr.bf16.mxu1 %v1625_v24 }
  0x34   : > { %824 = vmatpush1.bf16.msra.mxu0 %v1627_v25  ;;  %1563 = vmatpush1.bf16.msra.mxu1 %v1627_v25 }
  0x35   : > { %825 = vmatprep.subr.bf16.mxu0 %v1628_v26  ;;  %1548 = vmatprep.subr.bf16.mxu1 %v1628_v26 }
  0x38   : > { %826 = vmatpush1.bf16.msra.mxu0 %v1630_v27  ;;  %1564 = vmatpush1.bf16.msra.mxu1 %v1630_v27 }
  0x39   : > { %827 = vmatprep.subr.bf16.mxu0 %v1631_v28  ;;  %1549 = vmatprep.subr.bf16.mxu1 %v1631_v28 }
  0x3c   : > { %828 = vmatpush1.bf16.msra.mxu0 %v1633_v29  ;;  %1565 = vmatpush1.bf16.msra.mxu1 %v1633_v29 }
  0x3d   : > { %829 = vmatprep.subr.bf16.mxu0 %v1634_v30  ;;  %1550 = vmatprep.subr.bf16.mxu1 %v1634_v30 }
  0x40   : > { %830 = vmatpush1.bf16.msra.mxu0 %v1636_v31  ;;  %1566 = vmatpush1.bf16.msra.mxu1 %v1636_v31 }
  0x41   : > { %831 = vmatprep.subr.bf16.mxu0 %v1637_v32  ;;  %1551 = vmatprep.subr.bf16.mxu1 %v1637_v32 }
  0x44   : > { %832 = vmatpush1.bf16.msra.mxu0 %v1639_v33  ;;  %1567 = vmatpush1.bf16.msra.mxu1 %v1639_v33 }
  0x47   : > { %834 = vmatmul.mubr.bf16.vlgmr.msra.gmra.mrb[0].mxu0 %v1640_v34  ;;  %914 = vmatmul.mubr.bf16.vlgmr.msra.gmra.mrb[0].mxu1 %v1643_v35 }
  0x48   : > { %843 = vmatprep.mubr.bf16.mxu0 %v1646_v36  ;;  %923 = vmatprep.mubr.bf16.mxu1 %v1648_v37 }
  0x4f   : > { %844 = vmatmul.mubr.bf16.gmra.mrb[4].mxu0 %v1650_v38  ;;  %924 = vmatmul.mubr.bf16.gmra.mrb[4].mxu1 %v1651_v39 }
  0x50   : > { %853 = vmatprep.mubr.bf16.mxu0 %v1652_v40  ;;  %933 = vmatprep.mubr.bf16.mxu1 %v1654_v41 }
  0x57   : > { %854 = vmatmul.mubr.bf16.gmra.mrb[8].mxu0 %v1656_v42  ;;  %934 = vmatmul.mubr.bf16.gmra.mrb[8].mxu1 %v1657_v43 }
  0x58   : > { %863 = vmatprep.mubr.bf16.mxu0 %v1658_v44  ;;  %943 = vmatprep.mubr.bf16.mxu1 %v1660_v45 }
  0x5f   : > { %864 = vmatmul.mubr.bf16.gmra.mrb[12].mxu0 %v1662_v46  ;;  %944 = vmatmul.mubr.bf16.gmra.mrb[12].mxu1 %v1663_v47 }
  0x60   : > { %873 = vmatprep.mubr.bf16.mxu0 %v1664_v48  ;;  %953 = vmatprep.mubr.bf16.mxu1 %v1666_v49 }
  0x67   : > { %874 = vmatmul.mubr.bf16.gmra.mrb[16].mxu0 %v1668_v50  ;;  %954 = vmatmul.mubr.bf16.gmra.mrb[16].mxu1 %v1669_v51 }
  0x68   : > { %883 = vmatprep.mubr.bf16.mxu0 %v1670_v52  ;;  %963 = vmatprep.mubr.bf16.mxu1 %v1672_v53 }
  0x6f   : > { %884 = vmatmul.mubr.bf16.gmra.mrb[20].mxu0 %v1674_v54  ;;  %964 = vmatmul.mubr.bf16.gmra.mrb[20].mxu1 %v1675_v55 }
  0x70   : > { %893 = vmatprep.mubr.bf16.mxu0 %v1676_v56  ;;  %973 = vmatprep.mubr.bf16.mxu1 %v1678_v57 }
  0x77   : > { %894 = vmatmul.mubr.bf16.gmra.mrb[24].mxu0 %v1680_v58  ;;  %974 = vmatmul.mubr.bf16.gmra.mrb[24].mxu1 %v1681_v59 }
  0x78   : > { %903 = vmatprep.mubr.bf16.mxu0 %v1682_v60  ;;  %983 = vmatprep.mubr.bf16.mxu1 %v1684_v61 }
  0x7f   : > { %904 = vmatmul.mubr.bf16.gmra.mrb[28].mxu0 %v1686_v62  ;;  %984 = vmatmul.mubr.bf16.gmra.mrb[28].mxu1 %v1687_v63 }
 0x11a   : > { %v835_v7 = vpop.f32.mrb[0].mxu0  ;;  %v915_v8 = vpop.f32.mrb[0].mxu1 }
 0x11b   : > { %v1201_v9 = vadd.f32 %v1893_v5, %v835_v7  ;;  %v1233_v10 = vadd.f32 %v1893_v5, %v915_v8  ;;  %v837_v11 = vpop.f32.mrb[1].mxu0  ;;  %v917_v12 = vpop.f32.mrb[1].mxu1 }
 0x11c   : > { %v1202_v13 = vadd.f32 %v1895_v6, %v837_v11  ;;  %v1234_v14 = vadd.f32 %v1895_v6, %v917_v12  ;;  %v839_v15 = vpop.f32.mrb[2].mxu0  ;;  %v919_v16 = vpop.f32.mrb[2].mxu1 }
 0x11d   : > { %1265 = vst [vmem:[%s1900_s22] sm:$0xff] %v1201_v9  ;;  %1297 = vst [vmem:[%s1900_s22 + $0x100] sm:$0xff] %v1233_v10  ;;  %v1203_v17 = vadd.f32 %v1893_v5, %v839_v15  ;;  %v1235_v18 = vadd.f32 %v1893_v5, %v919_v16  ;;  %v841_v19 = vpop.f32.mrb[3].mxu0  ;;  %v921_v20 = vpop.f32.mrb[3].mxu1 }
 0x11e   : > { %1266 = vst [vmem:[%s1900_s22 + $0x8] sm:$0xff] %v1202_v13  ;;  %1298 = vst [vmem:[%s1900_s22 + $0x108] sm:$0xff] %v1234_v14  ;;  %v1204_v21 = vadd.f32 %v1895_v6, %v841_v19  ;;  %v1236_v22 = vadd.f32 %v1895_v6, %v921_v20 }
 0x11f   : > { %1267 = vst [vmem:[%s1900_s22 + $0x10] sm:$0xff] %v1203_v17  ;;  %1299 = vst [vmem:[%s1900_s22 + $0x110] sm:$0xff] %v1235_v18 }
 0x120   : > { %1268 = vst [vmem:[%s1900_s22 + $0x18] sm:$0xff] %v1204_v21  ;;  %1300 = vst [vmem:[%s1900_s22 + $0x118] sm:$0xff] %v1236_v22 }
 0x122   : > { %v845_v23 = vpop.f32.mrb[4].mxu0  ;;  %v925_v24 = vpop.f32.mrb[4].mxu1 }
 0x123   : > { %v1205_v25 = vadd.f32 %v1893_v5, %v845_v23  ;;  %v1237_v26 = vadd.f32 %v1893_v5, %v925_v24  ;;  %v847_v27 = vpop.f32.mrb[5].mxu0  ;;  %v927_v28 = vpop.f32.mrb[5].mxu1 }
 0x124   : > { %v1206_v29 = vadd.f32 %v1895_v6, %v847_v27  ;;  %v1238_v30 = vadd.f32 %v1895_v6, %v927_v28  ;;  %v849_v31 = vpop.f32.mrb[6].mxu0  ;;  %v929_v32 = vpop.f32.mrb[6].mxu1 }
 0x125   : > { %1269 = vst [vmem:[%s1900_s22 + $0x20] sm:$0xff] %v1205_v25  ;;  %1301 = vst [vmem:[%s1900_s22 + $0x120] sm:$0xff] %v1237_v26  ;;  %v1207_v33 = vadd.f32 %v1893_v5, %v849_v31  ;;  %v1239_v34 = vadd.f32 %v1893_v5, %v929_v32  ;;  %v851_v35 = vpop.f32.mrb[7].mxu0  ;;  %v931_v36 = vpop.f32.mrb[7].mxu1 }
 0x126   : > { %1270 = vst [vmem:[%s1900_s22 + $0x28] sm:$0xff] %v1206_v29  ;;  %1302 = vst [vmem:[%s1900_s22 + $0x128] sm:$0xff] %v1238_v30  ;;  %v1208_v37 = vadd.f32 %v1895_v6, %v851_v35  ;;  %v1240_v38 = vadd.f32 %v1895_v6, %v931_v36 }
 0x127   : > { %1271 = vst [vmem:[%s1900_s22 + $0x30] sm:$0xff] %v1207_v33  ;;  %1303 = vst [vmem:[%s1900_s22 + $0x130] sm:$0xff] %v1239_v34 }
 0x128   : > { %1272 = vst [vmem:[%s1900_s22 + $0x38] sm:$0xff] %v1208_v37  ;;  %1304 = vst [vmem:[%s1900_s22 + $0x138] sm:$0xff] %v1240_v38 }
 0x12a   : > { %v855_v39 = vpop.f32.mrb[8].mxu0  ;;  %v935_v40 = vpop.f32.mrb[8].mxu1 }
 0x12b   : > { %v1209_v41 = vadd.f32 %v1893_v5, %v855_v39  ;;  %v1241_v42 = vadd.f32 %v1893_v5, %v935_v40  ;;  %v857_v43 = vpop.f32.mrb[9].mxu0  ;;  %v937_v44 = vpop.f32.mrb[9].mxu1 }
 0x12c   : > { %v1210_v45 = vadd.f32 %v1895_v6, %v857_v43  ;;  %v1242_v46 = vadd.f32 %v1895_v6, %v937_v44  ;;  %v859_v47 = vpop.f32.mrb[10].mxu0  ;;  %v939_v48 = vpop.f32.mrb[10].mxu1 }
 0x12d   : > { %1273 = vst [vmem:[%s1900_s22 + $0x40] sm:$0xff] %v1209_v41  ;;  %1305 = vst [vmem:[%s1900_s22 + $0x140] sm:$0xff] %v1241_v42  ;;  %v1211_v49 = vadd.f32 %v1893_v5, %v859_v47  ;;  %v1243_v50 = vadd.f32 %v1893_v5, %v939_v48  ;;  %v861_v51 = vpop.f32.mrb[11].mxu0  ;;  %v941_v52 = vpop.f32.mrb[11].mxu1 }
 0x12e   : > { %1274 = vst [vmem:[%s1900_s22 + $0x48] sm:$0xff] %v1210_v45  ;;  %1306 = vst [vmem:[%s1900_s22 + $0x148] sm:$0xff] %v1242_v46  ;;  %v1212_v53 = vadd.f32 %v1895_v6, %v861_v51  ;;  %v1244_v54 = vadd.f32 %v1895_v6, %v941_v52 }
 0x12f   : > { %1275 = vst [vmem:[%s1900_s22 + $0x50] sm:$0xff] %v1211_v49  ;;  %1307 = vst [vmem:[%s1900_s22 + $0x150] sm:$0xff] %v1243_v50 }
 0x130   : > { %1276 = vst [vmem:[%s1900_s22 + $0x58] sm:$0xff] %v1212_v53  ;;  %1308 = vst [vmem:[%s1900_s22 + $0x158] sm:$0xff] %v1244_v54 }
 0x132   : > { %v865_v55 = vpop.f32.mrb[12].mxu0  ;;  %v945_v56 = vpop.f32.mrb[12].mxu1 }
 0x133   : > { %v1213_v57 = vadd.f32 %v1893_v5, %v865_v55  ;;  %v1245_v58 = vadd.f32 %v1893_v5, %v945_v56  ;;  %v867_v59 = vpop.f32.mrb[13].mxu0  ;;  %v947_v60 = vpop.f32.mrb[13].mxu1 }
 0x134   : > { %v1214_v61 = vadd.f32 %v1895_v6, %v867_v59  ;;  %v1246_v62 = vadd.f32 %v1895_v6, %v947_v60  ;;  %v869_v63 = vpop.f32.mrb[14].mxu0  ;;  %v949_v0 = vpop.f32.mrb[14].mxu1 }
 0x135   : > { %1277 = vst [vmem:[%s1900_s22 + $0x60] sm:$0xff] %v1213_v57  ;;  %1309 = vst [vmem:[%s1900_s22 + $0x160] sm:$0xff] %v1245_v58  ;;  %v1215_v1 = vadd.f32 %v1893_v5, %v869_v63  ;;  %v1247_v2 = vadd.f32 %v1893_v5, %v949_v0  ;;  %v871_v3 = vpop.f32.mrb[15].mxu0  ;;  %v951_v4 = vpop.f32.mrb[15].mxu1 }
 0x136   : > { %1278 = vst [vmem:[%s1900_s22 + $0x68] sm:$0xff] %v1214_v61  ;;  %1310 = vst [vmem:[%s1900_s22 + $0x168] sm:$0xff] %v1246_v62  ;;  %v1216_v7 = vadd.f32 %v1895_v6, %v871_v3  ;;  %v1248_v8 = vadd.f32 %v1895_v6, %v951_v4 }
 0x137   : > { %1279 = vst [vmem:[%s1900_s22 + $0x70] sm:$0xff] %v1215_v1  ;;  %1311 = vst [vmem:[%s1900_s22 + $0x170] sm:$0xff] %v1247_v2 }
 0x138   : > { %1280 = vst [vmem:[%s1900_s22 + $0x78] sm:$0xff] %v1216_v7  ;;  %1312 = vst [vmem:[%s1900_s22 + $0x178] sm:$0xff] %v1248_v8 }
 0x13a   : > { %v875_v9 = vpop.f32.mrb[16].mxu0  ;;  %v955_v10 = vpop.f32.mrb[16].mxu1 }
 0x13b   : > { %v1217_v11 = vadd.f32 %v1893_v5, %v875_v9  ;;  %v1249_v12 = vadd.f32 %v1893_v5, %v955_v10  ;;  %v877_v13 = vpop.f32.mrb[17].mxu0  ;;  %v957_v14 = vpop.f32.mrb[17].mxu1 }
 0x13c   : > { %v1218_v15 = vadd.f32 %v1895_v6, %v877_v13  ;;  %v1250_v16 = vadd.f32 %v1895_v6, %v957_v14  ;;  %v879_v17 = vpop.f32.mrb[18].mxu0  ;;  %v959_v18 = vpop.f32.mrb[18].mxu1 }
 0x13d   : > { %1281 = vst [vmem:[%s1900_s22 + $0x80] sm:$0xff] %v1217_v11  ;;  %1313 = vst [vmem:[%s1900_s22 + $0x180] sm:$0xff] %v1249_v12  ;;  %v1219_v19 = vadd.f32 %v1893_v5, %v879_v17  ;;  %v1251_v20 = vadd.f32 %v1893_v5, %v959_v18  ;;  %v881_v21 = vpop.f32.mrb[19].mxu0  ;;  %v961_v22 = vpop.f32.mrb[19].mxu1 }
 0x13e   : > { %1282 = vst [vmem:[%s1900_s22 + $0x88] sm:$0xff] %v1218_v15  ;;  %1314 = vst [vmem:[%s1900_s22 + $0x188] sm:$0xff] %v1250_v16  ;;  %v1220_v23 = vadd.f32 %v1895_v6, %v881_v21  ;;  %v1252_v24 = vadd.f32 %v1895_v6, %v961_v22 }
 0x13f   : > { %1283 = vst [vmem:[%s1900_s22 + $0x90] sm:$0xff] %v1219_v19  ;;  %1315 = vst [vmem:[%s1900_s22 + $0x190] sm:$0xff] %v1251_v20 }
 0x140   : > { %1284 = vst [vmem:[%s1900_s22 + $0x98] sm:$0xff] %v1220_v23  ;;  %1316 = vst [vmem:[%s1900_s22 + $0x198] sm:$0xff] %v1252_v24 }
 0x142   : > { %v885_v25 = vpop.f32.mrb[20].mxu0  ;;  %v965_v26 = vpop.f32.mrb[20].mxu1 }
 0x143   : > { %v1221_v27 = vadd.f32 %v1893_v5, %v885_v25  ;;  %v1253_v28 = vadd.f32 %v1893_v5, %v965_v26  ;;  %v887_v29 = vpop.f32.mrb[21].mxu0  ;;  %v967_v30 = vpop.f32.mrb[21].mxu1 }
 0x144   : > { %v1222_v31 = vadd.f32 %v1895_v6, %v887_v29  ;;  %v1254_v32 = vadd.f32 %v1895_v6, %v967_v30  ;;  %v889_v33 = vpop.f32.mrb[22].mxu0  ;;  %v969_v34 = vpop.f32.mrb[22].mxu1 }
 0x145   : > { %1285 = vst [vmem:[%s1900_s22 + $0xa0] sm:$0xff] %v1221_v27  ;;  %1317 = vst [vmem:[%s1900_s22 + $0x1a0] sm:$0xff] %v1253_v28  ;;  %v1223_v35 = vadd.f32 %v1893_v5, %v889_v33  ;;  %v1255_v36 = vadd.f32 %v1893_v5, %v969_v34  ;;  %v891_v37 = vpop.f32.mrb[23].mxu0  ;;  %v971_v38 = vpop.f32.mrb[23].mxu1 }
 0x146   : > { %1286 = vst [vmem:[%s1900_s22 + $0xa8] sm:$0xff] %v1222_v31  ;;  %1318 = vst [vmem:[%s1900_s22 + $0x1a8] sm:$0xff] %v1254_v32  ;;  %v1224_v39 = vadd.f32 %v1895_v6, %v891_v37  ;;  %v1256_v40 = vadd.f32 %v1895_v6, %v971_v38 }
 0x147   : > { %1287 = vst [vmem:[%s1900_s22 + $0xb0] sm:$0xff] %v1223_v35  ;;  %1319 = vst [vmem:[%s1900_s22 + $0x1b0] sm:$0xff] %v1255_v36 }
 0x148   : > { %1288 = vst [vmem:[%s1900_s22 + $0xb8] sm:$0xff] %v1224_v39  ;;  %1320 = vst [vmem:[%s1900_s22 + $0x1b8] sm:$0xff] %v1256_v40 }
 0x14a   : > { %v895_v41 = vpop.f32.mrb[24].mxu0  ;;  %v975_v42 = vpop.f32.mrb[24].mxu1 }
 0x14b   : > { %v1225_v43 = vadd.f32 %v1893_v5, %v895_v41  ;;  %v1257_v44 = vadd.f32 %v1893_v5, %v975_v42  ;;  %v897_v45 = vpop.f32.mrb[25].mxu0  ;;  %v977_v46 = vpop.f32.mrb[25].mxu1 }
 0x14c   : > { %v1226_v47 = vadd.f32 %v1895_v6, %v897_v45  ;;  %v1258_v48 = vadd.f32 %v1895_v6, %v977_v46  ;;  %v899_v49 = vpop.f32.mrb[26].mxu0  ;;  %v979_v50 = vpop.f32.mrb[26].mxu1 }
 0x14d   : > { %1289 = vst [vmem:[%s1900_s22 + $0xc0] sm:$0xff] %v1225_v43  ;;  %1321 = vst [vmem:[%s1900_s22 + $0x1c0] sm:$0xff] %v1257_v44  ;;  %v1227_v51 = vadd.f32 %v1893_v5, %v899_v49  ;;  %v1259_v52 = vadd.f32 %v1893_v5, %v979_v50  ;;  %v901_v53 = vpop.f32.mrb[27].mxu0  ;;  %v981_v54 = vpop.f32.mrb[27].mxu1 }
 0x14e   : > { %1290 = vst [vmem:[%s1900_s22 + $0xc8] sm:$0xff] %v1226_v47  ;;  %1322 = vst [vmem:[%s1900_s22 + $0x1c8] sm:$0xff] %v1258_v48  ;;  %v1228_v55 = vadd.f32 %v1895_v6, %v901_v53  ;;  %v1260_v56 = vadd.f32 %v1895_v6, %v981_v54 }
 0x14f   : > { %1291 = vst [vmem:[%s1900_s22 + $0xd0] sm:$0xff] %v1227_v51  ;;  %1323 = vst [vmem:[%s1900_s22 + $0x1d0] sm:$0xff] %v1259_v52 }
 0x150   : > { %1292 = vst [vmem:[%s1900_s22 + $0xd8] sm:$0xff] %v1228_v55  ;;  %1324 = vst [vmem:[%s1900_s22 + $0x1d8] sm:$0xff] %v1260_v56 }
 0x152   : > { %v905_v57 = vpop.f32.mrb[28].mxu0  ;;  %v985_v58 = vpop.f32.mrb[28].mxu1 }
 0x153   : > { %v1229_v59 = vadd.f32 %v1893_v5, %v905_v57  ;;  %v1261_v60 = vadd.f32 %v1893_v5, %v985_v58  ;;  %v907_v61 = vpop.f32.mrb[29].mxu0  ;;  %v987_v62 = vpop.f32.mrb[29].mxu1 }
 0x154   : > { %v1230_v63 = vadd.f32 %v1895_v6, %v907_v61  ;;  %v1262_v0 = vadd.f32 %v1895_v6, %v987_v62  ;;  %v909_v1 = vpop.f32.mrb[30].mxu0  ;;  %v989_v2 = vpop.f32.mrb[30].mxu1 }
 0x155   : > { %1293 = vst [vmem:[%s1900_s22 + $0xe0] sm:$0xff] %v1229_v59  ;;  %1325 = vst [vmem:[%s1900_s22 + $0x1e0] sm:$0xff] %v1261_v60  ;;  %v1231_v3 = vadd.f32 %v1893_v5, %v909_v1  ;;  %v1263_v4 = vadd.f32 %v1893_v5, %v989_v2  ;;  %v911_v7 = vpop.f32.mrb[31].mxu0  ;;  %v991_v8 = vpop.f32.mrb[31].mxu1 }
 0x156   : > { %1294 = vst [vmem:[%s1900_s22 + $0xe8] sm:$0xff] %v1230_v63  ;;  %1326 = vst [vmem:[%s1900_s22 + $0x1e8] sm:$0xff] %v1262_v0  ;;  %v1232_v9 = vadd.f32 %v1895_v6, %v911_v7  ;;  %v1264_v10 = vadd.f32 %v1895_v6, %v991_v8 }
 0x157   : > { %1295 = vst [vmem:[%s1900_s22 + $0xf0] sm:$0xff] %v1231_v3  ;;  %1327 = vst [vmem:[%s1900_s22 + $0x1f0] sm:$0xff] %v1263_v4 }
 0x158   : > { %1296 = vst [vmem:[%s1900_s22 + $0xf8] sm:$0xff] %v1232_v9  ;;  %1328 = vst [vmem:[%s1900_s22 + $0x1f8] sm:$0xff] %v1264_v10 }
 0x159 PF: > { %s13_s14 = sadd.s32 1, %s1710_s14   ;;  %s2043_s12 = smov %s1706_s13 }
 0x15a   : > { %p10_p5 = scmp.ge.s32.totalorder %s13_s14, 5   ;;  %s2044_s13 = smov %s2046_s15 }
 0x15c   :  { %12 = sbr.rel (!%p10_p5) target bundleno = 2 (0x2), region = 76 }

// kernel: video_camera_attention_forward.5
= control target key start
LH: loop header
LB: loop body
LE: loop exit
PB: predicated region body
PF: predicated region fallthrough
CT: control target
= control target key end

     0   :  { %s8708_s0 = inlined_call_operand.vmem [shape: f32[2,256,768], index: 0, kind: input, shape index: {}, may-alias: {0,1,2}]   ;;  %s8709_s1 = inlined_call_operand.vmem [shape: f32[2,256,768], index: 1, kind: input, shape index: {}, may-alias: {0,1,2}]   ;;  %s8710_s2 = inlined_call_operand.vmem [shape: f32[2,256,768], index: 2, kind: input, shape index: {}, may-alias: {0,1,2}]   ;;  %s8711_s3 = inlined_call_operand.vmem [shape: f32[2,4,768], index: 3, kind: input, shape index: {}, may-alias: {3,4}]   ;;  %s8712_s4 = inlined_call_operand.vmem [shape: f32[2,4,768], index: 4, kind: input, shape index: {}, may-alias: {3,4}]   ;;  %s8713_s5 = inlined_call_operand.vmem [shape: f32[256,256], index: 5, kind: input, shape index: {}, may-alias: {5,7}]   ;;  %s8714_s6 = inlined_call_operand.vmem [shape: f32[256,256], index: 6, kind: input, shape index: {}, may-alias: {6,8}]   ;;  %s8715_s7 = inlined_call_operand.vmem [shape: f32[256,256], index: 7, kind: input, shape index: {}, may-alias: {5,7}]   ;;  %s8716_s8 = inlined_call_operand.vmem [shape: f32[256,256], index: 8, kind: input, shape index: {}, may-alias: {6,8}]   ;;  %s8717_s9 = inlined_call_operand.vmem [shape: f32[4,256], index: 9, kind: input, shape index: {}]   ;;  %s8718_s10 = inlined_call_operand.vmem [shape: f32[4,256], index: 10, kind: input, shape index: {}]   ;;  %s8719_s11 = inlined_call_operand.vmem [shape: f32[2,256,256], index: 11, kind: output, shape index: {}]  }
   0x1   :  { %8776 = sst [smem:[#allocation75_spill]] %s8708_s0 }
   0x2   :  { %8777 = sst [smem:[#allocation76_spill]] %s8709_s1 }
   0x3   :  { %8778 = sst [smem:[#allocation77_spill]] %s8710_s2 }
   0x4   :  { %8779 = sst [smem:[#allocation78_spill]] %s8711_s3 }
   0x5   :  { %8780 = sst [smem:[#allocation79_spill]] %s8712_s4 }
   0x6   :  { %8781 = sst [smem:[#allocation80_spill]] %s8713_s5 }
   0x7   :  { %8782 = sst [smem:[#allocation81_spill]] %s8714_s6 }
   0x8   :  { %8783 = sst [smem:[#allocation82_spill]] %s8715_s7 }
   0x9   :  { %8784 = sst [smem:[#allocation83_spill]] %s8716_s8 }
   0xa   :  { %8785 = sst [smem:[#allocation84_spill]] %s8717_s9 }
   0xb   :  { %8786 = sst [smem:[#allocation85_spill]] %s8718_s10 }
   0xc   :  { %8787 = sst [smem:[#allocation86_spill]] %s8719_s11 }
   0xd   :  { %s5834_s17 = smov 0   ;;  %s5836_s18 = smov 0  }
   0xe   :  { %s5838_s19 = smov 0   ;;  %s5840_s20 = smov 0  }
   0xf   :  { %s5842_s21 = smov 0   ;;  %s5844_s22 = smov 0  }
  0x10   :  { %s5846_s23 = smov 0   ;;  %s5848_s24 = smov 0  }
  0x11   :  { %s5850_s25 = smov 0   ;;  %s5852_s26 = smov 0  }
  0x12   :  { %s5854_s27 = smov 0  }
  0x13 LB: > { %8788 = sst [smem:[#allocation9_spill]] %s5738_s20  ;;  %s33_s28 = sadd.s32 1, %s5754_s24  ;;  %s5766_s27 = sphi %s5854_s27, %s21_s27   ;;  %s5762_s26 = sphi %s5852_s26, %s8987_s26   ;;  %s5758_s25 = sphi %s5850_s25, %s8986_s25   ;;  %s5754_s24 = sphi %s5848_s24, %s8985_s24   ;;  %s5750_s23 = sphi %s5846_s23, %s8984_s23   ;;  %s5746_s22 = sphi %s5844_s22, %s8983_s22   ;;  %s5742_s21 = sphi %s5842_s21, %s8982_s21   ;;  %s5738_s20 = sphi %s5840_s20, %s8981_s20   ;;  %s5734_s19 = sphi %s5838_s19, %s8980_s19   ;;  %s5730_s18 = sphi %s5836_s18, %s8989_s18   ;;  %s5726_s17 = sphi %s5834_s17, %s8988_s17  }
  0x14   : > { %8789 = sst [smem:[#allocation10_spill]] %s5754_s24  ;;  %p34_p0 = scmp.ge.s32.totalorder %s33_s28, 2 }
  0x15   : > { %8790 = sst [smem:[#allocation11_spill]] %s5758_s25  ;;  %s36_s29 = sadd.s32 1, %s5758_s25 }
  0x16   : > { %8791 = sst [smem:[#allocation12_spill]] %s5762_s26  ;;  %p56_p1 = scmp.ne.s32.totalorder %s5738_s20, %s5734_s19 }
  0x17   : > { %s8991_s28 = smov (%p34_p0, %s33_s28), 0  ;;  %s8993_s29 = smov (!%p34_p0, %s36_s29), %s5758_s25 }
  0x18   : > { %8792 = sst [smem:[#allocation13_spill]] %s8991_s28  ;;  %p57_p2 = scmp.eq.s32.totalorder %s5766_s27, 0 }
  0x19   : > { %p38_p3 = scmp.ge.s32.totalorder %s8993_s29, 2  ;;  %s40_s30 = sadd.s32 1, %s5762_s26 }
  0x1a   : > { %p5898_p4 = por %p57_p2, %p56_p1  ;;  %p84_p5 = scmp.ne.s32.totalorder %s5730_s18, %s5726_s17 }
  0x1b   : > { %s8995_s29 = smov (%p38_p3, %s8993_s29), 0  ;;  %s8997_s30 = smov (!%p38_p3, %s40_s30), %s5762_s26 }
  0x1c   : > { %8794 = sst [smem:[#allocation14_spill]] %s8995_s29  ;;  %p5907_p6 = por %p84_p5, %p57_p2 }
  0x1d   : > { %p42_p7 = scmp.ge.s32.totalorder %s8997_s30, 2  ;;  %s45_s14 = ssub.s32 %s5758_s25, %s8995_s29 }
  0x1e   : > { %s73_s15 = ssub.s32 %s5754_s24, %s8991_s28  ;;  %s49_s16 = sadd.s32 1, %s5738_s20 }
  0x1f   : > { %s8999_s30 = smov (%p42_p7, %s8997_s30), 0  ;;  %s77_s10 = sadd.s32 1, %s5730_s18 }
  0x20   : > { %8796 = sst [smem:[#allocation15_spill]] %s8999_s30  ;;  %s44_s9 = ssub.s32 %s5762_s26, %s8999_s30 }
  0x21   : > { %s46_s11 = sor.u32 %s45_s14, %s44_s9  ;;  %s74_s8 = sor.u32 %s73_s15, %s44_s9 }
  0x22   : > { %p47_p8 = scmp.eq.s32.totalorder %s46_s11, 0  ;;  %p75_p9 = scmp.eq.s32.totalorder %s74_s8, 0 }
  0x23   : > { %p4892_p10 = scmp.ge.s32.totalorder %s5766_s27, 8 }
  0x24   : > { %s5922_s7 = scalar_select %p47_p8, %s5738_s20, %s49_s16  }
  0x25   : > { %s5925_s6 = scalar_select %p75_p9, %s5730_s18, %s77_s10  }
  0x26   : > { %8797 = sst [smem:[#allocation16_spill]] %s5922_s7  ;;  %370 = sbr.rel (%p4892_p10) target bundleno = 123 (0x7b), region = 24 }
  0x2d   : > { %373 = sbr.rel (!%p5898_p4) target bundleno = 71 (0x47), region = 28  ;;  %s375_s29 = sand.u32 (%p5898_p4), 1, %s5738_s20  }
  0x2e   : > { %s5315_s30 = smul.u32 (%p5898_p4), 96, %s5758_s25  ;;  %s4893_s28 = sshll.u32 (%p5898_p4), %s375_s29, 8 }
  0x2f   : > { %s5316_s14 = smul.u32 (%p5898_p4), 192, %s5762_s26  ;;  %s8798_s0 = sld [smem:[#allocation75_spill]] (%p5898_p4) }
  0x30   : > { %s5941_s29 = scalar_lea.vmem (%p5898_p4), [#allocation6], %s4893_s28 }
  0x31   : > { %s381_s9 = sadd.s32 (%p5898_p4), %s5316_s14, %s5315_s30 }
  0x32   : > { %s4896_s11 = sshll.u32 (%p5898_p4), %s381_s9, 3 }
  0x35   : > { %s5936_s10 = scalar_lea.vmem %s8798_s0, %s4896_s11 }
  0x36   : > { %v396_v0 = vld [vmem:[%s5936_s10] sm:$0xff]  ;;  %v398_v1 = vld [vmem:[%s5936_s10 + $0x8] sm:$0xff]  ;;  %v400_v2 = vld [vmem:[%s5936_s10 + $0x30] sm:$0xff] }
  0x37   : > { %397 = vst [vmem:[%s5941_s29] sm:$0xff] %v396_v0  ;;  %399 = vst [vmem:[%s5941_s29 + $0x8] sm:$0xff] %v398_v1  ;;  %v402_v3 = vld [vmem:[%s5936_s10 + $0x38] sm:$0xff]  ;;  %v404_v4 = vld [vmem:[%s5936_s10 + $0x60] sm:$0xff] }
  0x38   : > { %401 = vst [vmem:[%s5941_s29 + $0x10] sm:$0xff] %v400_v2  ;;  %v406_v5 = vld [vmem:[%s5936_s10 + $0x68] sm:$0xff]  ;;  %403 = vst [vmem:[%s5941_s29 + $0x18] sm:$0xff] %v402_v3  ;;  %v408_v6 = vld [vmem:[%s5936_s10 + $0x90] sm:$0xff] }
  0x39   : > { %405 = vst [vmem:[%s5941_s29 + $0x20] sm:$0xff] %v404_v4  ;;  %407 = vst [vmem:[%s5941_s29 + $0x28] sm:$0xff] %v406_v5  ;;  %v410_v7 = vld [vmem:[%s5936_s10 + $0x98] sm:$0xff]  ;;  %v412_v8 = vld [vmem:[%s5936_s10 + $0xc0] sm:$0xff] }
  0x3a   : > { %409 = vst [vmem:[%s5941_s29 + $0x30] sm:$0xff] %v408_v6  ;;  %411 = vst [vmem:[%s5941_s29 + $0x38] sm:$0xff] %v410_v7  ;;  %v414_v9 = vld [vmem:[%s5936_s10 + $0xc8] sm:$0xff]  ;;  %v416_v10 = vld [vmem:[%s5936_s10 + $0xf0] sm:$0xff] }
  0x3b   : > { %413 = vst [vmem:[%s5941_s29 + $0x40] sm:$0xff] %v412_v8  ;;  %v418_v11 = vld [vmem:[%s5936_s10 + $0xf8] sm:$0xff]  ;;  %415 = vst [vmem:[%s5941_s29 + $0x48] sm:$0xff] %v414_v9  ;;  %v420_v12 = vld [vmem:[%s5936_s10 + $0x120] sm:$0xff] }
  0x3c   : > { %417 = vst [vmem:[%s5941_s29 + $0x50] sm:$0xff] %v416_v10  ;;  %419 = vst [vmem:[%s5941_s29 + $0x58] sm:$0xff] %v418_v11  ;;  %v422_v13 = vld [vmem:[%s5936_s10 + $0x128] sm:$0xff]  ;;  %v424_v14 = vld [vmem:[%s5936_s10 + $0x150] sm:$0xff] }
  0x3d   : > { %421 = vst [vmem:[%s5941_s29 + $0x60] sm:$0xff] %v420_v12  ;;  %423 = vst [vmem:[%s5941_s29 + $0x68] sm:$0xff] %v422_v13  ;;  %v426_v15 = vld [vmem:[%s5936_s10 + $0x158] sm:$0xff]  ;;  %v428_v16 = vld [vmem:[%s5936_s10 + $0x180] sm:$0xff] }
  0x3e   : > { %425 = vst [vmem:[%s5941_s29 + $0x70] sm:$0xff] %v424_v14  ;;  %v430_v17 = vld [vmem:[%s5936_s10 + $0x188] sm:$0xff]  ;;  %427 = vst [vmem:[%s5941_s29 + $0x78] sm:$0xff] %v426_v15  ;;  %v432_v18 = vld [vmem:[%s5936_s10 + $0x1b0] sm:$0xff] }
  0x3f   : > { %429 = vst [vmem:[%s5941_s29 + $0x80] sm:$0xff] %v428_v16  ;;  %431 = vst [vmem:[%s5941_s29 + $0x88] sm:$0xff] %v430_v17  ;;  %v434_v19 = vld [vmem:[%s5936_s10 + $0x1b8] sm:$0xff]  ;;  %v436_v20 = vld [vmem:[%s5936_s10 + $0x1e0] sm:$0xff] }
  0x40   : > { %433 = vst [vmem:[%s5941_s29 + $0x90] sm:$0xff] %v432_v18  ;;  %435 = vst [vmem:[%s5941_s29 + $0x98] sm:$0xff] %v434_v19  ;;  %v438_v21 = vld [vmem:[%s5936_s10 + $0x1e8] sm:$0xff]  ;;  %v440_v22 = vld [vmem:[%s5936_s10 + $0x210] sm:$0xff] }
  0x41   : > { %437 = vst [vmem:[%s5941_s29 + $0xa0] sm:$0xff] %v436_v20  ;;  %v442_v23 = vld [vmem:[%s5936_s10 + $0x218] sm:$0xff]  ;;  %439 = vst [vmem:[%s5941_s29 + $0xa8] sm:$0xff] %v438_v21  ;;  %v444_v24 = vld [vmem:[%s5936_s10 + $0x240] sm:$0xff] }
  0x42   : > { %441 = vst [vmem:[%s5941_s29 + $0xb0] sm:$0xff] %v440_v22  ;;  %443 = vst [vmem:[%s5941_s29 + $0xb8] sm:$0xff] %v442_v23  ;;  %v446_v25 = vld [vmem:[%s5936_s10 + $0x248] sm:$0xff]  ;;  %v448_v26 = vld [vmem:[%s5936_s10 + $0x270] sm:$0xff] }
  0x43   : > { %445 = vst [vmem:[%s5941_s29 + $0xc0] sm:$0xff] %v444_v24  ;;  %447 = vst [vmem:[%s5941_s29 + $0xc8] sm:$0xff] %v446_v25  ;;  %v450_v27 = vld [vmem:[%s5936_s10 + $0x278] sm:$0xff]  ;;  %v452_v28 = vld [vmem:[%s5936_s10 + $0x2a0] sm:$0xff] }
  0x44   : > { %449 = vst [vmem:[%s5941_s29 + $0xd0] sm:$0xff] %v448_v26  ;;  %v454_v29 = vld [vmem:[%s5936_s10 + $0x2a8] sm:$0xff]  ;;  %451 = vst [vmem:[%s5941_s29 + $0xd8] sm:$0xff] %v450_v27  ;;  %v456_v30 = vld [vmem:[%s5936_s10 + $0x2d0] sm:$0xff] }
  0x45   : > { %453 = vst [vmem:[%s5941_s29 + $0xe0] sm:$0xff] %v452_v28  ;;  %455 = vst [vmem:[%s5941_s29 + $0xe8] sm:$0xff] %v454_v29  ;;  %v458_v31 = vld [vmem:[%s5936_s10 + $0x2d8] sm:$0xff] }
  0x46   : > { %457 = vst [vmem:[%s5941_s29 + $0xf0] sm:$0xff] %v456_v30  ;;  %459 = vst [vmem:[%s5941_s29 + $0xf8] sm:$0xff] %v458_v31 }
  0x47 PF: > { %465 = sbr.rel (!%p5907_p6) target bundleno = 97 (0x61), region = 51  ;;  %s467_s28 = sand.u32 (%p5907_p6), 1, %s5730_s18  }
  0x48   : > { %s4697_s30 = smul.u32 (%p5907_p6), 96, %s5754_s24  ;;  %s4897_s12 = sshll.u32 (%p5907_p6), %s467_s28, 8 }
  0x49   : > { %s4698_s16 = smul.u32 (%p5907_p6), 192, %s5762_s26  ;;  %s8799_s1 = sld [smem:[#allocation76_spill]] (%p5907_p6) }
  0x4a   : > { %s6017_s10 = scalar_lea.vmem (%p5907_p6), [#allocation7], %s4897_s12 }
  0x4b   : > { %s4699_s14 = sadd.s32 (%p5907_p6), %s4698_s16, %s4697_s30 }
  0x4c   : > { %s4898_s9 = sshll.u32 (%p5907_p6), %s4699_s14, 3 }
  0x4f   : > { %s6012_s15 = scalar_lea.vmem %s8799_s1, %s4898_s9 }
  0x50   : > { %v4899_v32 = vld [vmem:[%s6012_s15 + $0x10] sm:$0xff]  ;;  %v4900_v33 = vld [vmem:[%s6012_s15 + $0x18] sm:$0xff]  ;;  %v4901_v34 = vld [vmem:[%s6012_s15 + $0x40] sm:$0xff] }
  0x51   : > { %490 = vst [vmem:[%s6017_s10] sm:$0xff] %v4899_v32  ;;  %492 = vst [vmem:[%s6017_s10 + $0x8] sm:$0xff] %v4900_v33  ;;  %v4902_v35 = vld [vmem:[%s6012_s15 + $0x48] sm:$0xff]  ;;  %v4903_v36 = vld [vmem:[%s6012_s15 + $0x70] sm:$0xff] }
  0x52   : > { %494 = vst [vmem:[%s6017_s10 + $0x10] sm:$0xff] %v4901_v34  ;;  %v4904_v37 = vld [vmem:[%s6012_s15 + $0x78] sm:$0xff]  ;;  %496 = vst [vmem:[%s6017_s10 + $0x18] sm:$0xff] %v4902_v35  ;;  %v4905_v38 = vld [vmem:[%s6012_s15 + $0xa0] sm:$0xff] }
  0x53   : > { %498 = vst [vmem:[%s6017_s10 + $0x20] sm:$0xff] %v4903_v36  ;;  %500 = vst [vmem:[%s6017_s10 + $0x28] sm:$0xff] %v4904_v37  ;;  %v4906_v39 = vld [vmem:[%s6012_s15 + $0xa8] sm:$0xff]  ;;  %v4907_v40 = vld [vmem:[%s6012_s15 + $0xd0] sm:$0xff] }
  0x54   : > { %502 = vst [vmem:[%s6017_s10 + $0x30] sm:$0xff] %v4905_v38  ;;  %504 = vst [vmem:[%s6017_s10 + $0x38] sm:$0xff] %v4906_v39  ;;  %v4908_v41 = vld [vmem:[%s6012_s15 + $0xd8] sm:$0xff]  ;;  %v4909_v42 = vld [vmem:[%s6012_s15 + $0x100] sm:$0xff] }
  0x55   : > { %506 = vst [vmem:[%s6017_s10 + $0x40] sm:$0xff] %v4907_v40  ;;  %v4910_v43 = vld [vmem:[%s6012_s15 + $0x108] sm:$0xff]  ;;  %508 = vst [vmem:[%s6017_s10 + $0x48] sm:$0xff] %v4908_v41  ;;  %v4911_v44 = vld [vmem:[%s6012_s15 + $0x130] sm:$0xff] }
  0x56   : > { %510 = vst [vmem:[%s6017_s10 + $0x50] sm:$0xff] %v4909_v42  ;;  %512 = vst [vmem:[%s6017_s10 + $0x58] sm:$0xff] %v4910_v43  ;;  %v4912_v45 = vld [vmem:[%s6012_s15 + $0x138] sm:$0xff]  ;;  %v4913_v46 = vld [vmem:[%s6012_s15 + $0x160] sm:$0xff] }
  0x57   : > { %514 = vst [vmem:[%s6017_s10 + $0x60] sm:$0xff] %v4911_v44  ;;  %516 = vst [vmem:[%s6017_s10 + $0x68] sm:$0xff] %v4912_v45  ;;  %v4914_v47 = vld [vmem:[%s6012_s15 + $0x168] sm:$0xff]  ;;  %v4915_v48 = vld [vmem:[%s6012_s15 + $0x190] sm:$0xff] }
  0x58   : > { %518 = vst [vmem:[%s6017_s10 + $0x70] sm:$0xff] %v4913_v46  ;;  %v4916_v49 = vld [vmem:[%s6012_s15 + $0x198] sm:$0xff]  ;;  %520 = vst [vmem:[%s6017_s10 + $0x78] sm:$0xff] %v4914_v47  ;;  %v4917_v50 = vld [vmem:[%s6012_s15 + $0x1c0] sm:$0xff] }
  0x59   : > { %522 = vst [vmem:[%s6017_s10 + $0x80] sm:$0xff] %v4915_v48  ;;  %524 = vst [vmem:[%s6017_s10 + $0x88] sm:$0xff] %v4916_v49  ;;  %v4918_v51 = vld [vmem:[%s6012_s15 + $0x1c8] sm:$0xff]  ;;  %v4919_v52 = vld [vmem:[%s6012_s15 + $0x1f0] sm:$0xff] }
  0x5a   : > { %526 = vst [vmem:[%s6017_s10 + $0x90] sm:$0xff] %v4917_v50  ;;  %528 = vst [vmem:[%s6017_s10 + $0x98] sm:$0xff] %v4918_v51  ;;  %v4920_v53 = vld [vmem:[%s6012_s15 + $0x1f8] sm:$0xff]  ;;  %v4921_v54 = vld [vmem:[%s6012_s15 + $0x220] sm:$0xff] }
  0x5b   : > { %530 = vst [vmem:[%s6017_s10 + $0xa0] sm:$0xff] %v4919_v52  ;;  %v4922_v55 = vld [vmem:[%s6012_s15 + $0x228] sm:$0xff]  ;;  %532 = vst [vmem:[%s6017_s10 + $0xa8] sm:$0xff] %v4920_v53  ;;  %v4923_v56 = vld [vmem:[%s6012_s15 + $0x250] sm:$0xff] }
  0x5c   : > { %534 = vst [vmem:[%s6017_s10 + $0xb0] sm:$0xff] %v4921_v54  ;;  %536 = vst [vmem:[%s6017_s10 + $0xb8] sm:$0xff] %v4922_v55  ;;  %v4924_v57 = vld [vmem:[%s6012_s15 + $0x258] sm:$0xff]  ;;  %v4925_v58 = vld [vmem:[%s6012_s15 + $0x280] sm:$0xff] }
  0x5d   : > { %538 = vst [vmem:[%s6017_s10 + $0xc0] sm:$0xff] %v4923_v56  ;;  %540 = vst [vmem:[%s6017_s10 + $0xc8] sm:$0xff] %v4924_v57  ;;  %v4926_v59 = vld [vmem:[%s6012_s15 + $0x288] sm:$0xff]  ;;  %v4927_v60 = vld [vmem:[%s6012_s15 + $0x2b0] sm:$0xff] }
  0x5e   : > { %542 = vst [vmem:[%s6017_s10 + $0xd0] sm:$0xff] %v4925_v58  ;;  %v4928_v61 = vld [vmem:[%s6012_s15 + $0x2b8] sm:$0xff]  ;;  %544 = vst [vmem:[%s6017_s10 + $0xd8] sm:$0xff] %v4926_v59  ;;  %v4929_v62 = vld [vmem:[%s6012_s15 + $0x2e0] sm:$0xff] }
  0x5f   : > { %546 = vst [vmem:[%s6017_s10 + $0xe0] sm:$0xff] %v4927_v60  ;;  %548 = vst [vmem:[%s6017_s10 + $0xe8] sm:$0xff] %v4928_v61  ;;  %v4930_v63 = vld [vmem:[%s6012_s15 + $0x2e8] sm:$0xff] }
  0x60   : > { %550 = vst [vmem:[%s6017_s10 + $0xf0] sm:$0xff] %v4929_v62  ;;  %552 = vst [vmem:[%s6017_s10 + $0xf8] sm:$0xff] %v4930_v63 }
  0x61 PF: > { %558 = sbr.rel (!%p5907_p6) target bundleno = 123 (0x7b), region = 74  ;;  %s560_s29 = sand.u32 (%p5907_p6), 1, %s5730_s18  }
  0x62   : > { %s4705_s28 = smul.u32 (%p5907_p6), 96, %s5754_s24  ;;  %s4931_s30 = sshll.u32 (%p5907_p6), %s560_s29, 8 }
  0x63   : > { %s4706_s12 = smul.u32 (%p5907_p6), 192, %s5762_s26  ;;  %s8800_s2 = sld [smem:[#allocation77_spill]] (%p5907_p6) }
  0x64   : > { %s6093_s13 = scalar_lea.vmem (%p5907_p6), [#allocation8], %s4931_s30 }
  0x65   : > { %s4707_s16 = sadd.s32 (%p5907_p6), %s4706_s12, %s4705_s28 }
  0x66   : > { %s4932_s14 = sshll.u32 (%p5907_p6), %s4707_s16, 3 }
  0x69   : > { %s6088_s8 = scalar_lea.vmem %s8800_s2, %s4932_s14 }
  0x6a   : > { %v4933_v0 = vld [vmem:[%s6088_s8 + $0x20] sm:$0xff]  ;;  %v4934_v1 = vld [vmem:[%s6088_s8 + $0x28] sm:$0xff]  ;;  %v4935_v2 = vld [vmem:[%s6088_s8 + $0x50] sm:$0xff] }
  0x6b   : > { %583 = vst [vmem:[%s6093_s13] sm:$0xff] %v4933_v0  ;;  %585 = vst [vmem:[%s6093_s13 + $0x8] sm:$0xff] %v4934_v1  ;;  %v4936_v3 = vld [vmem:[%s6088_s8 + $0x58] sm:$0xff]  ;;  %v4937_v4 = vld [vmem:[%s6088_s8 + $0x80] sm:$0xff] }
  0x6c   : > { %587 = vst [vmem:[%s6093_s13 + $0x10] sm:$0xff] %v4935_v2  ;;  %v4938_v5 = vld [vmem:[%s6088_s8 + $0x88] sm:$0xff]  ;;  %589 = vst [vmem:[%s6093_s13 + $0x18] sm:$0xff] %v4936_v3  ;;  %v4939_v6 = vld [vmem:[%s6088_s8 + $0xb0] sm:$0xff] }
  0x6d   : > { %591 = vst [vmem:[%s6093_s13 + $0x20] sm:$0xff] %v4937_v4  ;;  %593 = vst [vmem:[%s6093_s13 + $0x28] sm:$0xff] %v4938_v5  ;;  %v4940_v7 = vld [vmem:[%s6088_s8 + $0xb8] sm:$0xff]  ;;  %v4941_v8 = vld [vmem:[%s6088_s8 + $0xe0] sm:$0xff] }
  0x6e   : > { %595 = vst [vmem:[%s6093_s13 + $0x30] sm:$0xff] %v4939_v6  ;;  %597 = vst [vmem:[%s6093_s13 + $0x38] sm:$0xff] %v4940_v7  ;;  %v4942_v9 = vld [vmem:[%s6088_s8 + $0xe8] sm:$0xff]  ;;  %v4943_v10 = vld [vmem:[%s6088_s8 + $0x110] sm:$0xff] }
  0x6f   : > { %599 = vst [vmem:[%s6093_s13 + $0x40] sm:$0xff] %v4941_v8  ;;  %v4944_v11 = vld [vmem:[%s6088_s8 + $0x118] sm:$0xff]  ;;  %601 = vst [vmem:[%s6093_s13 + $0x48] sm:$0xff] %v4942_v9  ;;  %v4945_v12 = vld [vmem:[%s6088_s8 + $0x140] sm:$0xff] }
  0x70   : > { %603 = vst [vmem:[%s6093_s13 + $0x50] sm:$0xff] %v4943_v10  ;;  %605 = vst [vmem:[%s6093_s13 + $0x58] sm:$0xff] %v4944_v11  ;;  %v4946_v13 = vld [vmem:[%s6088_s8 + $0x148] sm:$0xff]  ;;  %v4947_v14 = vld [vmem:[%s6088_s8 + $0x170] sm:$0xff] }
  0x71   : > { %607 = vst [vmem:[%s6093_s13 + $0x60] sm:$0xff] %v4945_v12  ;;  %609 = vst [vmem:[%s6093_s13 + $0x68] sm:$0xff] %v4946_v13  ;;  %v4948_v15 = vld [vmem:[%s6088_s8 + $0x178] sm:$0xff]  ;;  %v4949_v16 = vld [vmem:[%s6088_s8 + $0x1a0] sm:$0xff] }
  0x72   : > { %611 = vst [vmem:[%s6093_s13 + $0x70] sm:$0xff] %v4947_v14  ;;  %v4950_v17 = vld [vmem:[%s6088_s8 + $0x1a8] sm:$0xff]  ;;  %613 = vst [vmem:[%s6093_s13 + $0x78] sm:$0xff] %v4948_v15  ;;  %v4951_v18 = vld [vmem:[%s6088_s8 + $0x1d0] sm:$0xff] }
  0x73   : > { %615 = vst [vmem:[%s6093_s13 + $0x80] sm:$0xff] %v4949_v16  ;;  %617 = vst [vmem:[%s6093_s13 + $0x88] sm:$0xff] %v4950_v17  ;;  %v4952_v19 = vld [vmem:[%s6088_s8 + $0x1d8] sm:$0xff]  ;;  %v4953_v20 = vld [vmem:[%s6088_s8 + $0x200] sm:$0xff] }
  0x74   : > { %619 = vst [vmem:[%s6093_s13 + $0x90] sm:$0xff] %v4951_v18  ;;  %621 = vst [vmem:[%s6093_s13 + $0x98] sm:$0xff] %v4952_v19  ;;  %v4954_v21 = vld [vmem:[%s6088_s8 + $0x208] sm:$0xff]  ;;  %v4955_v22 = vld [vmem:[%s6088_s8 + $0x230] sm:$0xff] }
  0x75   : > { %623 = vst [vmem:[%s6093_s13 + $0xa0] sm:$0xff] %v4953_v20  ;;  %v4956_v23 = vld [vmem:[%s6088_s8 + $0x238] sm:$0xff]  ;;  %625 = vst [vmem:[%s6093_s13 + $0xa8] sm:$0xff] %v4954_v21  ;;  %v4957_v24 = vld [vmem:[%s6088_s8 + $0x260] sm:$0xff] }
  0x76   : > { %627 = vst [vmem:[%s6093_s13 + $0xb0] sm:$0xff] %v4955_v22  ;;  %629 = vst [vmem:[%s6093_s13 + $0xb8] sm:$0xff] %v4956_v23  ;;  %v4958_v25 = vld [vmem:[%s6088_s8 + $0x268] sm:$0xff]  ;;  %v4959_v26 = vld [vmem:[%s6088_s8 + $0x290] sm:$0xff] }
  0x77   : > { %631 = vst [vmem:[%s6093_s13 + $0xc0] sm:$0xff] %v4957_v24  ;;  %633 = vst [vmem:[%s6093_s13 + $0xc8] sm:$0xff] %v4958_v25  ;;  %v4960_v27 = vld [vmem:[%s6088_s8 + $0x298] sm:$0xff]  ;;  %v4961_v28 = vld [vmem:[%s6088_s8 + $0x2c0] sm:$0xff] }
  0x78   : > { %635 = vst [vmem:[%s6093_s13 + $0xd0] sm:$0xff] %v4959_v26  ;;  %v4962_v29 = vld [vmem:[%s6088_s8 + $0x2c8] sm:$0xff]  ;;  %637 = vst [vmem:[%s6093_s13 + $0xd8] sm:$0xff] %v4960_v27  ;;  %v4963_v30 = vld [vmem:[%s6088_s8 + $0x2f0] sm:$0xff] }
  0x79   : > { %639 = vst [vmem:[%s6093_s13 + $0xe0] sm:$0xff] %v4961_v28  ;;  %641 = vst [vmem:[%s6093_s13 + $0xe8] sm:$0xff] %v4962_v29  ;;  %v4964_v31 = vld [vmem:[%s6088_s8 + $0x2f8] sm:$0xff] }
  0x7a   : > { %643 = vst [vmem:[%s6093_s13 + $0xf0] sm:$0xff] %v4963_v30  ;;  %645 = vst [vmem:[%s6093_s13 + $0xf8] sm:$0xff] %v4964_v31 }
  0x7b PF: > { %p4965_p11 = scmp.ge.s32.totalorder %s5766_s27, 1  ;;  %p708_p12 = scmp.lt.s32.totalorder %s5766_s27, 9 }
  0x7d   : > { %p709_p13 = pnand %p4965_p11, %p708_p12 }
  0x7f   : > { %712 = sbr.rel (%p709_p13) target bundleno = 3178 (0xc6a), region = 121 }
  0x86   : > { %s715_s15 = sand.u32 1, %s5734_s19   ;;  %s722_s10 = sand.u32 1, %s5726_s17  }
  0x87   : > { %s4966_s29 = sshll.u32 %s715_s15, 8  ;;  %s4967_s28 = sshll.u32 %s722_s10, 8 }
  0x88   : > { %p820_p0 = scmp.lt.s32.totalorder %s5750_s23, 1  ;;  %s4971_s30 = sshll.u32 %s5746_s22, 4 }
  0x89   : > { %s4977_s12 = sshll.u32 %s5742_s21, 4  ;;  %p833_p1 = scmp.lt.s32.totalorder %s4971_s30, 31 }
  0x8a   : > { %s9001_s23 = smov (!%p820_p0, %s5750_s23), 1  ;;  %p847_p2 = scmp.lt.s32.totalorder %s4977_s12, 31 }
  0x8b   : > { %s4969_s16 = smul.u32 24, %s9001_s23  ;;  %s4985_s14 = sshll.u32 %s9001_s23, 6 }
  0x8c   : > { %s9003_s30 = smov (!%p833_p1, %s4971_s30), 31  ;;  %s8801_s3 = sld [smem:[#allocation78_spill]] }
  0x8d   : > { %s8802_s4 = sld [smem:[#allocation79_spill]]  ;;  %s5009_s17 = sshll.u32 %s9003_s30, 4 }
  0x8e   : > { %s4984_s15 = sshll.u32 %s9003_s30, 1  ;;  %s8803_s5 = sld [smem:[#allocation80_spill]] }
  0x8f   : > { %s8804_s23 = sld [smem:[#allocation81_spill]]  ;;  %s9005_s12 = smov (!%p847_p2, %s4977_s12), 31 }
  0x90   : > { %s867_s9 = sadd.s32 %s4985_s14, %s4984_s15  ;;  %s5011_s11 = sshll.u32 %s9005_s12, 4 }
  0x91   : > { %s8806_s7 = sld [smem:[#allocation83_spill]]  ;;  %s8807_s20 = sld [smem:[#allocation86_spill]] }
  0x92   : > { %s4762_s8 = scalar_lea.vmem %s8801_s3, %s4969_s16  ;;  %s4986_s3 = sshll.u32 %s867_s9, 3 }
  0x93   : > { %s6170_s19 = scalar_lea.vmem %s8802_s4, %s4969_s16  ;;  %s8805_s16 = sld [smem:[#allocation82_spill]] }
  0x94   : > { %s6175_s1 = scalar_lea.vmem %s8803_s5, %s5009_s17  ;;  %s6197_s26 = scalar_lea.vmem [#allocation6], %s4966_s29 }
  0x95   : > { %s6180_s25 = scalar_lea.vmem %s8804_s23, %s5009_s17  ;;  %s6199_s14 = scalar_lea.vmem [#allocation7], %s4967_s28 }
  0x96   : > { %s6201_s12 = scalar_lea.vmem [#allocation8], %s4967_s28  ;;  %p4987_p3 = scmp.ne.s32.totalorder %s5742_s21, 0 }
  0x97   : > { %s6190_s10 = scalar_lea.vmem %s8806_s7, %s5011_s11  ;;  %s6195_s2 = scalar_lea.vmem %s8807_s20, %s4986_s3 }
  0x98   : > { %875 = sbr.rel (%p4987_p3) target bundleno = 1423 (0x58f), region = 137 }
  0x99   : > { %s6185_s13 = scalar_lea.vmem %s8805_s16, %s5011_s11 }
  0x9f   : > { %v6204_v32 = vld [vmem:[%s4762_s8 + $0x8] sm:$0xff]  ;;  %s5768_s4 = smov 1   ;;  %s5769_s3 = smov 127   ;;  %v6215_v34 = vld [vmem:[%s6197_s26 + $0x10] sm:$0xff]  ;;  %v6218_v35 = vld [vmem:[%s6197_s26] sm:$0xff]  ;;  %vm1770_vm0 = vcmask 1041408   ;;  %v1068_v63 = vlaneseq }
  0xa0   : > { %1432 = vrot.lane.b32.xlu1 %v6204_v32, %s5768_s4  ;;  %1426 = vrot.lane.b32.xlu0 %v6204_v32, %s5769_s3  ;;  %v1424_v33 = vcombine.high %v6204_v32, %v6204_v32  ;;  %v6225_v36 = vld [vmem:[%s6197_s26 + $0x18] sm:$0xff]  ;;  %v6228_v37 = vld [vmem:[%s6197_s26 + $0x8] sm:$0xff]  ;;  %s8809_s20 = sld [smem:[#allocation85_spill]]  ;;  %s8814_s28 = sld [smem:[#allocation84_spill]]  ;;  %vm1560_vm5 = vcmask 31744   ;;  %vm1657_vm6 = vcmask 7168  }
  0xa1   : > { %v6235_v38 = vld [vmem:[%s6197_s26 + $0x30] sm:$0xff]  ;;  %v6238_v39 = vld [vmem:[%s6197_s26 + $0x20] sm:$0xff]  ;;  %v6245_v40 = vld [vmem:[%s6197_s26 + $0x38] sm:$0xff]  ;;  %v6405_v2 = vand.u32 127, %v1068_v63 }
  0xa2   : > { %v6248_v41 = vld [vmem:[%s6197_s26 + $0x28] sm:$0xff]  ;;  %v6255_v42 = vld [vmem:[%s6170_s19 + $0x10] sm:$0xff]  ;;  %v6281_v46 = vld [vmem:[%s6197_s26 + $0x40] sm:$0xff] }
  0xa3   : > { %v1461_v43 = vpack.c.bf16 %v6255_v42, %v6255_v42  ;;  %v6278_v45 = vld [vmem:[%s6197_s26 + $0x50] sm:$0xff]  ;;  %v6288_v47 = vld [vmem:[%s6197_s26 + $0x58] sm:$0xff]  ;;  %v6291_v48 = vld [vmem:[%s6197_s26 + $0x48] sm:$0xff]  ;;  %v1200_v5 = vadd.s32 128, %v6405_v2  ;;  %v1205_v10 = vand.u32 1, %v6405_v2  ;;  %vm1070_vm1 = vcmp.lt.s32.totalorder %v6405_v2, 127 }
  0xa4   : > { %1434 = vrot.lane.b32.xlu1 %v1424_v33, %s5768_s4  ;;  %1428 = vrot.lane.b32.xlu0 %v1424_v33, %s5769_s3  ;;  %v6298_v49 = vld [vmem:[%s6197_s26 + $0x70] sm:$0xff]  ;;  %v6301_v50 = vld [vmem:[%s6197_s26 + $0x60] sm:$0xff]  ;;  %vm1167_vm2 = vcmp.lt.s32.totalorder %v6405_v2, 1  ;;  %v1459_v63 = vcombine.high %v6255_v42, %v6255_v42 }
  0xa5   : > { %5313 = vmatprep.subr.msk.bf16.mxu1 %vm1770_vm0, %v1461_v43  ;;  %v1772_v44 = vsel %vm1770_vm0, %v1461_v43, 0  ;;  %v6308_v51 = vld [vmem:[%s6197_s26 + $0x78] sm:$0xff]  ;;  %v6311_v52 = vld [vmem:[%s6197_s26 + $0x68] sm:$0xff]  ;;  %v6334_v53 = vld [vmem:[%s6197_s26 + $0x90] sm:$0xff]  ;;  %v1212_v11 = vand.u32 1, %v1200_v5  ;;  %vm6438_vm3 = vcmp.eq.s32.totalorder %v1205_v10, 0 }
  0xa6   : > { %5132 = vmatpush3.bf16.msra.mxu1 %v1772_v44  ;;  %v6337_v54 = vld [vmem:[%s6197_s26 + $0x80] sm:$0xff]  ;;  %v6344_v55 = vld [vmem:[%s6197_s26 + $0x98] sm:$0xff]  ;;  %v6347_v56 = vld [vmem:[%s6197_s26 + $0x88] sm:$0xff] }
  0xa7   : > { %v6354_v57 = vld [vmem:[%s6197_s26 + $0xb0] sm:$0xff]  ;;  %v6357_v58 = vld [vmem:[%s6197_s26 + $0xa0] sm:$0xff]  ;;  %v6364_v59 = vld [vmem:[%s6197_s26 + $0xb8] sm:$0xff]  ;;  %vm6442_vm4 = vcmp.eq.s32.totalorder %v1212_v11, 0  ;;  %v6476_v11 = vpack.c.bf16 %v1459_v63, %v1459_v63 }
  0xa8   : > { %1006 = vrot.lane.b32.xlu1 %v6215_v34, %s5769_s3  ;;  %1004 = vrot.lane.b32.xlu0 %v6218_v35, %s5769_s3  ;;  %v6367_v60 = vld [vmem:[%s6197_s26 + $0xa8] sm:$0xff]  ;;  %v6390_v61 = vld [vmem:[%s6197_s26 + $0xd0] sm:$0xff] }
  0xa9   : > { %v6393_v62 = vld [vmem:[%s6197_s26 + $0xc0] sm:$0xff]  ;;  %v6400_v0 = vld [vmem:[%s6197_s26 + $0xd8] sm:$0xff]  ;;  %v6403_v1 = vld [vmem:[%s6197_s26 + $0xc8] sm:$0xff]  ;;  %8815 = vst [vmem:[#allocation18_spill] sm:$0xff] %v6476_v11 }
  0xaa   : > { %v6412_v3 = vld [vmem:[%s6197_s26 + $0xf0] sm:$0xff]  ;;  %v6415_v4 = vld [vmem:[%s6197_s26 + $0xe0] sm:$0xff]  ;;  %v6423_v6 = vld [vmem:[%s6197_s26 + $0xf8] sm:$0xff] }
  0xab   : > { %v6426_v7 = vld [vmem:[%s6197_s26 + $0xe8] sm:$0xff]  ;;  %v1421_v12 = vld [vmem:[%s8809_s20] sm:$0xff]  ;;  %v943_v63 = vld [vmem:[%s6180_s25 + $0x18] sm:$0xff] }
  0xac   : > { %1038 = vrot.lane.b32.xlu1 %v6225_v36, %s5769_s3  ;;  %1036 = vrot.lane.b32.xlu0 %v6228_v37, %s5769_s3  ;;  %8808 = vst [vmem:[#allocation17_spill] sm:$0xff] %v6426_v7  ;;  %v1443_v19 = vcombine.high %v1421_v12, %v1421_v12  ;;  %v1420_v28 = vld [vmem:[%s8814_s28] sm:$0xff] }
  0xad   : > { %v1422_v31 = vmul.f32 %v6204_v32, %v1420_v28 }
  0xb0   : > { %1010 = vrot.lane.b32.xlu1 %v6235_v38, %s5769_s3  ;;  %1008 = vrot.lane.b32.xlu0 %v6238_v39, %s5769_s3 }
  0xb4   : > { %1042 = vrot.lane.b32.xlu1 %v6245_v40, %s5769_s3  ;;  %1040 = vrot.lane.b32.xlu0 %v6248_v41, %s5769_s3 }
  0xb8   : > { %1105 = vrot.lane.b32.xlu1 %v6215_v34, %s5768_s4  ;;  %1103 = vrot.lane.b32.xlu0 %v6218_v35, %s5768_s4 }
  0xbc   : > { %1137 = vrot.lane.b32.xlu1 %v6225_v36, %s5768_s4  ;;  %1135 = vrot.lane.b32.xlu0 %v6228_v37, %s5768_s4 }
  0xc0   : > { %1109 = vrot.lane.b32.xlu1 %v6235_v38, %s5768_s4  ;;  %1107 = vrot.lane.b32.xlu0 %v6238_v39, %s5768_s4 }
  0xc4   : > { %1141 = vrot.lane.b32.xlu1 %v6245_v40, %s5768_s4  ;;  %1139 = vrot.lane.b32.xlu0 %v6248_v41, %s5768_s4 }
  0xc8   : > { %1014 = vrot.lane.b32.xlu1 %v6278_v45, %s5769_s3  ;;  %1012 = vrot.lane.b32.xlu0 %v6281_v46, %s5769_s3 }
  0xcc   : > { %1046 = vrot.lane.b32.xlu1 %v6288_v47, %s5769_s3  ;;  %1044 = vrot.lane.b32.xlu0 %v6291_v48, %s5769_s3 }
  0xd0   : > { %1018 = vrot.lane.b32.xlu1 %v6298_v49, %s5769_s3  ;;  %1016 = vrot.lane.b32.xlu0 %v6301_v50, %s5769_s3 }
  0xd4   : > { %1050 = vrot.lane.b32.xlu1 %v6308_v51, %s5769_s3  ;;  %1048 = vrot.lane.b32.xlu0 %v6311_v52, %s5769_s3 }
  0xd8   : > { %1113 = vrot.lane.b32.xlu1 %v6278_v45, %s5768_s4  ;;  %1111 = vrot.lane.b32.xlu0 %v6281_v46, %s5768_s4 }
  0xdc   : > { %1145 = vrot.lane.b32.xlu1 %v6288_v47, %s5768_s4  ;;  %1143 = vrot.lane.b32.xlu0 %v6291_v48, %s5768_s4 }
  0xe0   : > { %1117 = vrot.lane.b32.xlu1 %v6298_v49, %s5768_s4  ;;  %1115 = vrot.lane.b32.xlu0 %v6301_v50, %s5768_s4 }
  0xe4   : > { %1149 = vrot.lane.b32.xlu1 %v6308_v51, %s5768_s4  ;;  %1147 = vrot.lane.b32.xlu0 %v6311_v52, %s5768_s4 }
  0xe8   : > { %1022 = vrot.lane.b32.xlu1 %v6334_v53, %s5769_s3  ;;  %1020 = vrot.lane.b32.xlu0 %v6337_v54, %s5769_s3 }
  0xec   : > { %1054 = vrot.lane.b32.xlu1 %v6344_v55, %s5769_s3  ;;  %1052 = vrot.lane.b32.xlu0 %v6347_v56, %s5769_s3 }
  0xf0   : > { %1026 = vrot.lane.b32.xlu1 %v6354_v57, %s5769_s3  ;;  %1024 = vrot.lane.b32.xlu0 %v6357_v58, %s5769_s3 }
  0xf4   : > { %1058 = vrot.lane.b32.xlu1 %v6364_v59, %s5769_s3  ;;  %1056 = vrot.lane.b32.xlu0 %v6367_v60, %s5769_s3 }
  0xf8   : > { %1121 = vrot.lane.b32.xlu1 %v6334_v53, %s5768_s4  ;;  %1119 = vrot.lane.b32.xlu0 %v6337_v54, %s5768_s4 }
  0xfc   : > { %1153 = vrot.lane.b32.xlu1 %v6344_v55, %s5768_s4  ;;  %1151 = vrot.lane.b32.xlu0 %v6347_v56, %s5768_s4 }
 0x100   : > { %1125 = vrot.lane.b32.xlu1 %v6354_v57, %s5768_s4  ;;  %1123 = vrot.lane.b32.xlu0 %v6357_v58, %s5768_s4 }
 0x104   : > { %1157 = vrot.lane.b32.xlu1 %v6364_v59, %s5768_s4  ;;  %1155 = vrot.lane.b32.xlu0 %v6367_v60, %s5768_s4 }
 0x108   : > { %1030 = vrot.lane.b32.xlu1 %v6390_v61, %s5769_s3  ;;  %1028 = vrot.lane.b32.xlu0 %v6393_v62, %s5769_s3 }
 0x10c   : > { %1062 = vrot.lane.b32.xlu1 %v6400_v0, %s5769_s3  ;;  %1060 = vrot.lane.b32.xlu0 %v6403_v1, %s5769_s3 }
 0x110   : > { %1034 = vrot.lane.b32.xlu1 %v6412_v3, %s5769_s3  ;;  %1032 = vrot.lane.b32.xlu0 %v6415_v4, %s5769_s3 }
 0x112   : > { %v1433_v8 = vpop.permute.xlu1 %1432  ;;  %v1427_v9 = vpop.permute.xlu0 %1426 }
 0x114   : > { %1066 = vrot.lane.b32.xlu1 %v6423_v6, %s5769_s3  ;;  %1064 = vrot.lane.b32.xlu0 %v6426_v7, %s5769_s3 }
 0x116   : > { %v1435_v13 = vpop.permute.xlu1 %1434  ;;  %v1429_v15 = vpop.permute.xlu0 %1428 }
 0x117   : > { %v1430_v17 = vsel %vm1070_vm1, %v1427_v9, %v1429_v15  ;;  %v1431_v18 = vsel %vm1070_vm1, %v1429_v15, %v1427_v9  ;;  %v1436_v22 = vsel %vm1167_vm2, %v1433_v8, %v1435_v13  ;;  %v1437_v23 = vsel %vm1167_vm2, %v1435_v13, %v1433_v8  ;;  %v910_v15 = vld [vmem:[%s6175_s1 + $0x10] sm:$0xff] }
 0x118   : > { %v1438_v20 = vsub.f32 0.0, %v1430_v17  ;;  %v1439_v21 = vsub.f32 0.0, %v1431_v18  ;;  %1129 = vrot.lane.b32.xlu1 %v6390_v61, %s5768_s4  ;;  %1127 = vrot.lane.b32.xlu0 %v6393_v62, %s5768_s4  ;;  %v908_v17 = vld [vmem:[%s6175_s1] sm:$0xff]  ;;  %v911_v18 = vld [vmem:[%s6175_s1 + $0x18] sm:$0xff]  ;;  %v974_v28 = vmul.f32 %v910_v15, %v6215_v34 }
 0x11a   : > { %v1440_v24 = vsel %vm6438_vm3, %v1438_v20, %v1437_v23  ;;  %v1441_v25 = vsel %vm6442_vm4, %v1439_v21, %v1436_v22  ;;  %v1007_v26 = vpop.permute.xlu1 %1006  ;;  %v1005_v27 = vpop.permute.xlu0 %1004 }
 0x11b   : > { %v1445_v29 = vmul.f32 %v1440_v24, %v1421_v12  ;;  %v1446_v30 = vmul.f32 %v1443_v19, %v1441_v25  ;;  %v909_v19 = vld [vmem:[%s6175_s1 + $0x8] sm:$0xff] }
 0x11c   : > { %1161 = vrot.lane.b32.xlu1 %v6400_v0, %s5768_s4  ;;  %1159 = vrot.lane.b32.xlu0 %v6403_v1, %s5768_s4 }
 0x11d   : > { %v1449_v33 = vcombine.low %v1445_v29, %v1446_v30  ;;  %v972_v29 = vmul.f32 %v908_v17, %v6218_v35  ;;  %v975_v30 = vmul.f32 %v911_v18, %v6225_v36  ;;  %v942_v35 = vld [vmem:[%s6180_s25 + $0x10] sm:$0xff] }
 0x11e   : > { %v1039_v43 = vpop.permute.xlu1 %1038  ;;  %v1037_v44 = vpop.permute.xlu0 %1036 }
 0x11f   : > { %v1451_v5 = vadd.f32 %v1449_v33, %v1422_v31  ;;  %v1072_v20 = vsel %vm1070_vm1, %v1007_v26, %v1039_v43  ;;  %v1088_v23 = vsel %vm1070_vm1, %v1039_v43, %v1007_v26  ;;  %v1071_v24 = vsel %vm1070_vm1, %v1005_v27, %v1037_v44 }
 0x120   : > { %1133 = vrot.lane.b32.xlu1 %v6412_v3, %s5768_s4  ;;  %1131 = vrot.lane.b32.xlu0 %v6415_v4, %s5768_s4  ;;  %v1087_v25 = vsel %vm1070_vm1, %v1037_v44, %v1005_v27  ;;  %v973_v31 = vmul.f32 %v909_v19, %v6228_v37  ;;  %v1229_v33 = vsub.f32 0.0, %v1072_v20  ;;  %v1227_v26 = vsub.f32 0.0, %v1071_v24  ;;  %v941_v44 = vld [vmem:[%s6180_s25 + $0x8] sm:$0xff]  ;;  %v912_v24 = vld [vmem:[%s6175_s1 + $0x20] sm:$0xff] }
 0x121   : > { %v1455_v32 = vpack.c.bf16 %v1451_v5, %v1451_v5  ;;  %v1453_v10 = vcombine.high %v1451_v5, %v1451_v5  ;;  %v1230_v5 = vsub.f32 0.0, %v1088_v23  ;;  %v1228_v43 = vsub.f32 0.0, %v1087_v25  ;;  %v915_v25 = vld [vmem:[%s6175_s1 + $0x38] sm:$0xff] }
 0x122   : > { %v1011_v8 = vpop.permute.xlu1 %1010  ;;  %v1009_v9 = vpop.permute.xlu0 %1008 }
 0x123   : > { %5113 = vmatprep.subr.bf16.mxu0 %v1455_v32  ;;  %v6482_v12 = vpack.c.bf16 %v1453_v10, %v1453_v10  ;;  %v940_v10 = vld [vmem:[%s6180_s25] sm:$0xff] }
 0x124   : > { %1165 = vrot.lane.b32.xlu1 %v6423_v6, %s5768_s4  ;;  %1163 = vrot.lane.b32.xlu0 %v6426_v7, %s5768_s4 }
 0x125   : > { %8816 = vst [vmem:[#allocation19_spill] sm:$0xff] %v6482_v12  ;;  %5114 = vmatpush3.bf16.xpose.msra.mxu0 %v1455_v32  ;;  %5149 = vmatprep.subr.bf16.mxu1 %v6482_v12 }
 0x126   : > { %v1043_v42 = vpop.permute.xlu1 %1042  ;;  %v1041_v13 = vpop.permute.xlu0 %1040  ;;  %5314 = vmatprep.subr.msk.bf16.mxu0 %vm1770_vm0, %v6476_v11 }
 0x127   : > { %v1074_v32 = vsel %vm1070_vm1, %v1011_v8, %v1043_v42 }
 0x12a   : > { %v1106_v21 = vpop.permute.xlu1 %1105  ;;  %v1104_v22 = vpop.permute.xlu0 %1103 }
 0x12e   : > { %v1138_v27 = vpop.permute.xlu1 %1137  ;;  %v1136_v34 = vpop.permute.xlu0 %1135 }
 0x12f   : > { %v1169_v36 = vsel %vm1167_vm2, %v1106_v21, %v1138_v27  ;;  %v1185_v37 = vsel %vm1167_vm2, %v1138_v27, %v1106_v21  ;;  %v1168_v15 = vsel %vm1167_vm2, %v1104_v22, %v1136_v34  ;;  %v1184_v17 = vsel %vm1167_vm2, %v1136_v34, %v1104_v22  ;;  %v914_v21 = vld [vmem:[%s6175_s1 + $0x30] sm:$0xff] }
 0x130   : > { %v1261_v18 = vsel %vm6438_vm3, %v1229_v33, %v1185_v37  ;;  %v1262_v19 = vsel %vm6442_vm4, %v1230_v5, %v1169_v36  ;;  %v1259_v20 = vsel %vm6438_vm3, %v1227_v26, %v1184_v17  ;;  %v1260_v23 = vsel %vm6442_vm4, %v1228_v43, %v1168_v15  ;;  %v913_v36 = vld [vmem:[%s6175_s1 + $0x28] sm:$0xff]  ;;  %v946_v17 = vld [vmem:[%s6180_s25 + $0x30] sm:$0xff] }
 0x131   : > { %v1294_v27 = vmul.f32 %v1262_v19, %v943_v63  ;;  %v1292_v11 = vmul.f32 %v1260_v23, %v941_v44  ;;  %v1291_v12 = vmul.f32 %v1259_v20, %v940_v10  ;;  %v1293_v22 = vmul.f32 %v1261_v18, %v942_v35  ;;  %v947_v18 = vld [vmem:[%s6180_s25 + $0x38] sm:$0xff]  ;;  %v944_v19 = vld [vmem:[%s6180_s25 + $0x20] sm:$0xff]  ;;  %v945_v23 = vld [vmem:[%s6180_s25 + $0x28] sm:$0xff] }
 0x132   : > { %v1090_v33 = vsel %vm1070_vm1, %v1043_v42, %v1011_v8  ;;  %v1073_v5 = vsel %vm1070_vm1, %v1009_v9, %v1041_v13  ;;  %v1089_v26 = vsel %vm1070_vm1, %v1041_v13, %v1009_v9  ;;  %v1110_v43 = vpop.permute.xlu1 %1109  ;;  %v1108_v34 = vpop.permute.xlu0 %1107  ;;  %v978_v35 = vmul.f32 %v914_v21, %v6235_v38 }
 0x133   : > { %v1323_v63 = vadd.f32 %v1291_v12, %v972_v29  ;;  %v1325_v44 = vadd.f32 %v1293_v22, %v974_v28  ;;  %v1324_v10 = vadd.f32 %v1292_v11, %v973_v31  ;;  %v1326_v37 = vadd.f32 %v1294_v27, %v975_v30 }
 0x134   : > { %v976_v15 = vmul.f32 %v912_v24, %v6238_v39  ;;  %v979_v8 = vmul.f32 %v915_v25, %v6245_v40  ;;  %v1233_v42 = vsub.f32 0.0, %v1074_v32  ;;  %v1234_v20 = vsub.f32 0.0, %v1090_v33 }
 0x135   : > { %v1231_v9 = vsub.f32 0.0, %v1073_v5  ;;  %v1232_v13 = vsub.f32 0.0, %v1089_v26  ;;  %v1355_v7 = vmul.f32 0.088388346, %v1323_v63  ;;  %v977_v12 = vmul.f32 %v913_v36, %v6248_v41 }
 0x136   : > { %v1142_v28 = vpop.permute.xlu1 %1141  ;;  %v1140_v11 = vpop.permute.xlu0 %1139  ;;  %v1357_v29 = vmul.f32 0.088388346, %v1325_v44  ;;  %v1356_v30 = vmul.f32 0.088388346, %v1324_v10  ;;  %v1358_v38 = vmul.f32 0.088388346, %v1326_v37 }
 0x137   : > { %v1171_v39 = vsel %vm1167_vm2, %v1110_v43, %v1142_v28  ;;  %v1187_v40 = vsel %vm1167_vm2, %v1142_v28, %v1110_v43  ;;  %v1170_v31 = vsel %vm1167_vm2, %v1108_v34, %v1140_v11  ;;  %v1186_v32 = vsel %vm1167_vm2, %v1140_v11, %v1108_v34  ;;  %v916_v28 = vld [vmem:[%s6175_s1 + $0x40] sm:$0xff]  ;;  %v919_v11 = vld [vmem:[%s6175_s1 + $0x58] sm:$0xff] }
 0x138   : > { %v1265_v41 = vsel %vm6438_vm3, %v1233_v42, %v1187_v40  ;;  %v1266_v21 = vsel %vm6442_vm4, %v1234_v20, %v1171_v39  ;;  %v1263_v24 = vsel %vm6438_vm3, %v1231_v9, %v1186_v32  ;;  %v1264_v25 = vsel %vm6442_vm4, %v1232_v13, %v1170_v31 }
 0x139   : > { %v1297_v27 = vmul.f32 %v1265_v41, %v946_v17  ;;  %v1298_v22 = vmul.f32 %v1266_v21, %v947_v18  ;;  %v1295_v33 = vmul.f32 %v1263_v24, %v944_v19  ;;  %v1296_v5 = vmul.f32 %v1264_v25, %v945_v23 }
 0x13a   : > { %v1387_v26 = vpack.c.bf16 %v1357_v29, %v1355_v7  ;;  %v1015_v43 = vpop.permute.xlu1 %1014  ;;  %v1013_v36 = vpop.permute.xlu0 %1012  ;;  %v6559_v34 = vpack.c.bf16 %v1358_v38, %v1356_v30  ;;  %v917_v29 = vld [vmem:[%s6175_s1 + $0x48] sm:$0xff]  ;;  %v980_v21 = vmul.f32 %v916_v28, %v6281_v46  ;;  %v983_v24 = vmul.f32 %v919_v11, %v6288_v47 }
 0x13b   : > { %v1330_v63 = vadd.f32 %v1298_v22, %v979_v8  ;;  %v1328_v44 = vadd.f32 %v1296_v5, %v977_v12  ;;  %v1327_v10 = vadd.f32 %v1295_v33, %v976_v15  ;;  %v1329_v37 = vadd.f32 %v1297_v27, %v978_v35  ;;  %v918_v12 = vld [vmem:[%s6175_s1 + $0x50] sm:$0xff] }
 0x13c   : > { %1403 = vst [vmem:[#allocation2] sm:$0xff] %v1387_v26  ;;  %5115 = vmatprep.mubr.bf16.mxu0 %v1387_v26  ;;  %1404 = vst [vmem:[#allocation2 + $0x8] sm:$0xff] %v6559_v34  ;;  %v982_v41 = vmul.f32 %v918_v12, %v6278_v45  ;;  %v981_v25 = vmul.f32 %v917_v29, %v6291_v48  ;;  %v950_v22 = vld [vmem:[%s6180_s25 + $0x50] sm:$0xff]  ;;  %v948_v45 = vld [vmem:[%s6180_s25 + $0x40] sm:$0xff] }
 0x13d   : > { %v1362_v42 = vmul.f32 0.088388346, %v1330_v63  ;;  %v1360_v17 = vmul.f32 0.088388346, %v1328_v44  ;;  %v1359_v18 = vmul.f32 0.088388346, %v1327_v10 }
 0x13e   : > { %v1047_v7 = vpop.permute.xlu1 %1046  ;;  %v1045_v19 = vpop.permute.xlu0 %1044  ;;  %v1361_v20 = vmul.f32 0.088388346, %v1329_v37  ;;  %v949_v44 = vld [vmem:[%s6180_s25 + $0x48] sm:$0xff] }
 0x13f   : > { %v6562_v9 = vpack.c.bf16 %v1362_v42, %v1360_v17  ;;  %v1076_v30 = vsel %vm1070_vm1, %v1015_v43, %v1047_v7  ;;  %v1092_v40 = vsel %vm1070_vm1, %v1047_v7, %v1015_v43  ;;  %v1075_v31 = vsel %vm1070_vm1, %v1013_v36, %v1045_v19 }
 0x140   : > { %v1389_v15 = vpack.c.bf16 %v1361_v20, %v1359_v18  ;;  %v1091_v32 = vsel %vm1070_vm1, %v1045_v19, %v1013_v36  ;;  %v1237_v27 = vsub.f32 0.0, %v1076_v30  ;;  %v1238_v33 = vsub.f32 0.0, %v1092_v40  ;;  %v951_v36 = vld [vmem:[%s6180_s25 + $0x58] sm:$0xff]  ;;  %v922_v19 = vld [vmem:[%s6175_s1 + $0x70] sm:$0xff]  ;;  %v920_v20 = vld [vmem:[%s6175_s1 + $0x60] sm:$0xff] }
 0x141   : > { %1406 = vst [vmem:[#allocation2 + $0x18] sm:$0xff] %v6562_v9  ;;  %v1235_v5 = vsub.f32 0.0, %v1075_v31  ;;  %v1236_v26 = vsub.f32 0.0, %v1091_v32  ;;  %v921_v32 = vld [vmem:[%s6175_s1 + $0x68] sm:$0xff] }
 0x142   : > { %v1019_v35 = vpop.permute.xlu1 %1018  ;;  %v1017_v8 = vpop.permute.xlu0 %1016  ;;  %1405 = vst [vmem:[#allocation2 + $0x10] sm:$0xff] %v1389_v15  ;;  %5116 = vmatmul.mubr.bf16.vlgmr.msra.gmra.mrb[0].mxu0 %v1389_v15  ;;  %v923_v15 = vld [vmem:[%s6175_s1 + $0x78] sm:$0xff] }
 0x146   : > { %v1051_v13 = vpop.permute.xlu1 %1050  ;;  %v1049_v23 = vpop.permute.xlu0 %1048 }
 0x147   : > { %v1078_v43 = vsel %vm1070_vm1, %v1019_v35, %v1051_v13  ;;  %v1094_v30 = vsel %vm1070_vm1, %v1051_v13, %v1019_v35  ;;  %v987_v35 = vmul.f32 %v923_v15, %v6308_v51 }
 0x148   : > { %v1241_v13 = vsub.f32 0.0, %v1078_v43 }
 0x14a   : > { %v1114_v38 = vpop.permute.xlu1 %1113  ;;  %v1112_v39 = vpop.permute.xlu0 %1111 }
 0x14e   : > { %v1146_v63 = vpop.permute.xlu1 %1145  ;;  %v1144_v46 = vpop.permute.xlu0 %1143 }
 0x14f   : > { %v1173_v47 = vsel %vm1167_vm2, %v1114_v38, %v1146_v63  ;;  %v1189_v48 = vsel %vm1167_vm2, %v1146_v63, %v1114_v38  ;;  %v1172_v10 = vsel %vm1167_vm2, %v1112_v39, %v1144_v46  ;;  %v1188_v37 = vsel %vm1167_vm2, %v1144_v46, %v1112_v39  ;;  %v954_v63 = vld [vmem:[%s6180_s25 + $0x70] sm:$0xff] }
 0x150   : > { %v1269_v42 = vsel %vm6438_vm3, %v1237_v27, %v1189_v48  ;;  %v1270_v17 = vsel %vm6442_vm4, %v1238_v33, %v1173_v47  ;;  %v1267_v18 = vsel %vm6438_vm3, %v1235_v5, %v1188_v37  ;;  %v1268_v7 = vsel %vm6442_vm4, %v1236_v26, %v1172_v10  ;;  %v953_v47 = vld [vmem:[%s6180_s25 + $0x68] sm:$0xff] }
 0x151   : > { %v1301_v12 = vmul.f32 %v1269_v42, %v950_v22  ;;  %v1302_v28 = vmul.f32 %v1270_v17, %v951_v36  ;;  %v1299_v11 = vmul.f32 %v1267_v18, %v948_v45  ;;  %v1300_v29 = vmul.f32 %v1268_v7, %v949_v44  ;;  %v955_v45 = vld [vmem:[%s6180_s25 + $0x78] sm:$0xff]  ;;  %v952_v44 = vld [vmem:[%s6180_s25 + $0x60] sm:$0xff] }
 0x152   : > { %v1077_v38 = vsel %vm1070_vm1, %v1017_v8, %v1049_v23  ;;  %v1093_v39 = vsel %vm1070_vm1, %v1049_v23, %v1017_v8  ;;  %v1118_v40 = vpop.permute.xlu1 %1117  ;;  %v1116_v31 = vpop.permute.xlu0 %1115  ;;  %v986_v26 = vmul.f32 %v922_v19, %v6298_v49  ;;  %v984_v36 = vmul.f32 %v920_v20, %v6301_v50 }
 0x153   : > { %v1331_v27 = vadd.f32 %v1299_v11, %v980_v21  ;;  %v1333_v22 = vadd.f32 %v1301_v12, %v982_v41  ;;  %v1332_v33 = vadd.f32 %v1300_v29, %v981_v25  ;;  %v1334_v5 = vadd.f32 %v1302_v28, %v983_v24 }
 0x154   : > { %v1242_v46 = vsub.f32 0.0, %v1094_v30  ;;  %v1239_v8 = vsub.f32 0.0, %v1077_v38  ;;  %v1240_v23 = vsub.f32 0.0, %v1093_v39  ;;  %v985_v21 = vmul.f32 %v921_v32, %v6311_v52 }
 0x155   : > { %v1363_v48 = vmul.f32 0.088388346, %v1331_v27  ;;  %v1365_v24 = vmul.f32 0.088388346, %v1333_v22  ;;  %v1364_v10 = vmul.f32 0.088388346, %v1332_v33 }
 0x156   : > { %v1150_v41 = vpop.permute.xlu1 %1149  ;;  %v1148_v25 = vpop.permute.xlu0 %1147  ;;  %v1366_v49 = vmul.f32 0.088388346, %v1334_v5 }
 0x157   : > { %v1175_v50 = vsel %vm1167_vm2, %v1118_v40, %v1150_v41  ;;  %v1191_v51 = vsel %vm1167_vm2, %v1150_v41, %v1118_v40  ;;  %v1174_v43 = vsel %vm1167_vm2, %v1116_v31, %v1148_v25  ;;  %v1190_v37 = vsel %vm1167_vm2, %v1148_v25, %v1116_v31 }
 0x158   : > { %v1273_v52 = vsel %vm6438_vm3, %v1241_v13, %v1191_v51  ;;  %v1274_v42 = vsel %vm6442_vm4, %v1242_v46, %v1175_v50  ;;  %v1271_v17 = vsel %vm6438_vm3, %v1239_v8, %v1190_v37  ;;  %v1272_v18 = vsel %vm6442_vm4, %v1240_v23, %v1174_v43  ;;  %v924_v46 = vld [vmem:[%s6175_s1 + $0x80] sm:$0xff]  ;;  %v927_v8 = vld [vmem:[%s6175_s1 + $0x98] sm:$0xff]  ;;  %v925_v23 = vld [vmem:[%s6175_s1 + $0x88] sm:$0xff] }
 0x159   : > { %v1305_v7 = vmul.f32 %v1273_v52, %v954_v63  ;;  %v1306_v19 = vmul.f32 %v1274_v42, %v955_v45  ;;  %v1303_v20 = vmul.f32 %v1271_v17, %v952_v44  ;;  %v1304_v15 = vmul.f32 %v1272_v18, %v953_v47  ;;  %v926_v44 = vld [vmem:[%s6175_s1 + $0x90] sm:$0xff] }
 0x15a   : > { %v1391_v12 = vpack.c.bf16 %v1365_v24, %v1363_v48  ;;  %v1023_v28 = vpop.permute.xlu1 %1022  ;;  %v1021_v11 = vpop.permute.xlu0 %1020  ;;  %v6637_v29 = vpack.c.bf16 %v1366_v49, %v1364_v10  ;;  %v990_v10 = vmul.f32 %v926_v44, %v6334_v53  ;;  %v988_v49 = vmul.f32 %v924_v46, %v6337_v54  ;;  %v958_v37 = vld [vmem:[%s6180_s25 + $0x90] sm:$0xff]  ;;  %v956_v53 = vld [vmem:[%s6180_s25 + $0x80] sm:$0xff] }
 0x15b   : > { %v1335_v30 = vadd.f32 %v1303_v20, %v984_v36  ;;  %v1337_v38 = vadd.f32 %v1305_v7, %v986_v26  ;;  %v1336_v39 = vadd.f32 %v1304_v15, %v985_v21  ;;  %v1338_v40 = vadd.f32 %v1306_v19, %v987_v35  ;;  %v959_v7 = vld [vmem:[%s6180_s25 + $0x98] sm:$0xff]  ;;  %v957_v20 = vld [vmem:[%s6180_s25 + $0x88] sm:$0xff] }
 0x15c   : > { %1407 = vst [vmem:[#allocation2 + $0x20] sm:$0xff] %v1391_v12  ;;  %5119 = vmatprep.mubr.bf16.mxu0 %v1391_v12  ;;  %1408 = vst [vmem:[#allocation2 + $0x28] sm:$0xff] %v6637_v29  ;;  %v991_v50 = vmul.f32 %v927_v8, %v6344_v55  ;;  %v989_v51 = vmul.f32 %v925_v23, %v6347_v56  ;;  %v929_v23 = vld [vmem:[%s6175_s1 + $0xa8] sm:$0xff] }
 0x15d   : > { %v1367_v31 = vmul.f32 0.088388346, %v1335_v30  ;;  %v1369_v32 = vmul.f32 0.088388346, %v1337_v38  ;;  %v1368_v27 = vmul.f32 0.088388346, %v1336_v39 }
 0x15e   : > { %v1055_v22 = vpop.permute.xlu1 %1054  ;;  %v1053_v33 = vpop.permute.xlu0 %1052  ;;  %v1370_v5 = vmul.f32 0.088388346, %v1338_v40  ;;  %v930_v39 = vld [vmem:[%s6175_s1 + $0xb0] sm:$0xff]  ;;  %v928_v40 = vld [vmem:[%s6175_s1 + $0xa0] sm:$0xff] }
 0x15f   : > { %v1393_v13 = vpack.c.bf16 %v1369_v32, %v1367_v31  ;;  %v1080_v47 = vsel %vm1070_vm1, %v1023_v28, %v1055_v22  ;;  %v1096_v41 = vsel %vm1070_vm1, %v1055_v22, %v1023_v28  ;;  %v1079_v25 = vsel %vm1070_vm1, %v1021_v11, %v1053_v33  ;;  %v931_v31 = vld [vmem:[%s6175_s1 + $0xb8] sm:$0xff] }
 0x160   : > { %v6640_v63 = vpack.c.bf16 %v1370_v5, %v1368_v27  ;;  %v1095_v24 = vsel %vm1070_vm1, %v1053_v33, %v1021_v11  ;;  %v1245_v43 = vsub.f32 0.0, %v1080_v47  ;;  %v1246_v52 = vsub.f32 0.0, %v1096_v41 }
 0x161   : > { %1409 = vst [vmem:[#allocation2 + $0x30] sm:$0xff] %v1393_v13  ;;  %5120 = vmatmul.mubr.bf16.gmra.mrb[4].mxu0 %v1393_v13  ;;  %v1243_v42 = vsub.f32 0.0, %v1079_v25  ;;  %v1244_v17 = vsub.f32 0.0, %v1095_v24  ;;  %v994_v25 = vmul.f32 %v930_v39, %v6354_v57  ;;  %v992_v24 = vmul.f32 %v928_v40, %v6357_v58 }
 0x162   : > { %v1027_v26 = vpop.permute.xlu1 %1026  ;;  %v1025_v36 = vpop.permute.xlu0 %1024  ;;  %1410 = vst [vmem:[#allocation2 + $0x38] sm:$0xff] %v6640_v63 }
 0x166   : > { %v1059_v35 = vpop.permute.xlu1 %1058  ;;  %v1057_v45 = vpop.permute.xlu0 %1056 }
 0x167   : > { %v1082_v18 = vsel %vm1070_vm1, %v1027_v26, %v1059_v35  ;;  %v1098_v5 = vsel %vm1070_vm1, %v1059_v35, %v1027_v26  ;;  %v1081_v13 = vsel %vm1070_vm1, %v1025_v36, %v1057_v45  ;;  %v1097_v44 = vsel %vm1070_vm1, %v1057_v45, %v1025_v36 }
 0x168   : > { %v995_v26 = vmul.f32 %v931_v31, %v6364_v59  ;;  %v1249_v35 = vsub.f32 0.0, %v1082_v18  ;;  %v1247_v36 = vsub.f32 0.0, %v1081_v13  ;;  %v1248_v45 = vsub.f32 0.0, %v1097_v44 }
 0x16a   : > { %v1122_v48 = vpop.permute.xlu1 %1121  ;;  %v1120_v21 = vpop.permute.xlu0 %1119 }
 0x16e   : > { %v1154_v19 = vpop.permute.xlu1 %1153  ;;  %v1152_v54 = vpop.permute.xlu0 %1151 }
 0x16f   : > { %v1177_v55 = vsel %vm1167_vm2, %v1122_v48, %v1154_v19  ;;  %v1193_v56 = vsel %vm1167_vm2, %v1154_v19, %v1122_v48  ;;  %v1176_v15 = vsel %vm1167_vm2, %v1120_v21, %v1152_v54  ;;  %v1192_v12 = vsel %vm1167_vm2, %v1152_v54, %v1120_v21 }
 0x170   : > { %v1277_v28 = vsel %vm6438_vm3, %v1245_v43, %v1193_v56  ;;  %v1278_v11 = vsel %vm6442_vm4, %v1246_v52, %v1177_v55  ;;  %v1275_v30 = vsel %vm6438_vm3, %v1243_v42, %v1192_v12  ;;  %v1276_v38 = vsel %vm6442_vm4, %v1244_v17, %v1176_v15  ;;  %v962_v43 = vld [vmem:[%s6180_s25 + $0xb0] sm:$0xff]  ;;  %v960_v52 = vld [vmem:[%s6180_s25 + $0xa0] sm:$0xff]  ;;  %v961_v17 = vld [vmem:[%s6180_s25 + $0xa8] sm:$0xff] }
 0x171   : > { %v1309_v32 = vmul.f32 %v1277_v28, %v958_v37  ;;  %v1310_v27 = vmul.f32 %v1278_v11, %v959_v7  ;;  %v1307_v22 = vmul.f32 %v1275_v30, %v956_v53  ;;  %v1308_v33 = vmul.f32 %v1276_v38, %v957_v20  ;;  %v963_v37 = vld [vmem:[%s6180_s25 + $0xb8] sm:$0xff] }
 0x172   : > { %v1126_v46 = vpop.permute.xlu1 %1125  ;;  %v1124_v8 = vpop.permute.xlu0 %1123  ;;  %v1250_v42 = vsub.f32 0.0, %v1098_v5 }
 0x173   : > { %v1339_v47 = vadd.f32 %v1307_v22, %v988_v49  ;;  %v1341_v48 = vadd.f32 %v1309_v32, %v990_v10  ;;  %v1340_v21 = vadd.f32 %v1308_v33, %v989_v51  ;;  %v1342_v41 = vadd.f32 %v1310_v27, %v991_v50 }
 0x174   : > { %v993_v49 = vmul.f32 %v929_v23, %v6367_v60 }
 0x175   : > { %v1371_v7 = vmul.f32 0.088388346, %v1339_v47  ;;  %v1373_v50 = vmul.f32 0.088388346, %v1341_v48  ;;  %v1372_v19 = vmul.f32 0.088388346, %v1340_v21 }
 0x176   : > { %v1158_v10 = vpop.permute.xlu1 %1157  ;;  %v1156_v51 = vpop.permute.xlu0 %1155  ;;  %v1374_v57 = vmul.f32 0.088388346, %v1342_v41 }
 0x177   : > { %v1179_v58 = vsel %vm1167_vm2, %v1126_v46, %v1158_v10  ;;  %v1195_v59 = vsel %vm1167_vm2, %v1158_v10, %v1126_v46  ;;  %v1178_v18 = vsel %vm1167_vm2, %v1124_v8, %v1156_v51  ;;  %v1194_v53 = vsel %vm1167_vm2, %v1156_v51, %v1124_v8 }
 0x178   : > { %v1281_v60 = vsel %vm6438_vm3, %v1249_v35, %v1195_v59  ;;  %v1282_v20 = vsel %vm6442_vm4, %v1250_v42, %v1179_v58  ;;  %v1279_v54 = vsel %vm6438_vm3, %v1247_v36, %v1194_v53  ;;  %v1280_v55 = vsel %vm6442_vm4, %v1248_v45, %v1178_v18  ;;  %v933_v35 = vld [vmem:[%s6175_s1 + $0xc8] sm:$0xff]  ;;  %v967_v18 = vld [vmem:[%s6180_s25 + $0xd8] sm:$0xff] }
 0x179   : > { %v1313_v56 = vmul.f32 %v1281_v60, %v962_v43  ;;  %v1314_v15 = vmul.f32 %v1282_v20, %v963_v37  ;;  %v1311_v12 = vmul.f32 %v1279_v54, %v960_v52  ;;  %v1312_v28 = vmul.f32 %v1280_v55, %v961_v17  ;;  %v965_v60 = vld [vmem:[%s6180_s25 + $0xc8] sm:$0xff] }
 0x17a   : > { %v1395_v11 = vpack.c.bf16 %v1373_v50, %v1371_v7  ;;  %v1031_v30 = vpop.permute.xlu1 %1030  ;;  %v1029_v38 = vpop.permute.xlu0 %1028  ;;  %v6715_v39 = vpack.c.bf16 %v1374_v57, %v1372_v19  ;;  %v997_v10 = vmul.f32 %v933_v35, %v6403_v1  ;;  %v966_v50 = vld [vmem:[%s6180_s25 + $0xd0] sm:$0xff] }
 0x17b   : > { %v1343_v40 = vadd.f32 %v1311_v12, %v992_v24  ;;  %v1345_v31 = vadd.f32 %v1313_v56, %v994_v25  ;;  %v1344_v32 = vadd.f32 %v1312_v28, %v993_v49  ;;  %v1346_v27 = vadd.f32 %v1314_v15, %v995_v26  ;;  %v934_v25 = vld [vmem:[%s6175_s1 + $0xd0] sm:$0xff]  ;;  %v932_v24 = vld [vmem:[%s6175_s1 + $0xc0] sm:$0xff]  ;;  %v935_v26 = vld [vmem:[%s6175_s1 + $0xd8] sm:$0xff] }
 0x17c   : > { %1411 = vst [vmem:[#allocation2 + $0x40] sm:$0xff] %v1395_v11  ;;  %5123 = vmatprep.mubr.bf16.mxu0 %v1395_v11  ;;  %1412 = vst [vmem:[#allocation2 + $0x48] sm:$0xff] %v6715_v39  ;;  %v998_v17 = vmul.f32 %v934_v25, %v6390_v61  ;;  %v996_v7 = vmul.f32 %v932_v24, %v6393_v62  ;;  %v999_v49 = vmul.f32 %v935_v26, %v6400_v0  ;;  %v964_v61 = vld [vmem:[%s6180_s25 + $0xc0] sm:$0xff]  ;;  %v938_v28 = vld [vmem:[%s6175_s1 + $0xf0] sm:$0xff] }
 0x17d   : > { %v1375_v22 = vmul.f32 0.088388346, %v1343_v40  ;;  %v1377_v33 = vmul.f32 0.088388346, %v1345_v31  ;;  %v1376_v5 = vmul.f32 0.088388346, %v1344_v32  ;;  %v1002_v26 = vmul.f32 %v938_v28, %v6412_v3 }
 0x17e   : > { %v1063_v13 = vpop.permute.xlu1 %1062  ;;  %v1061_v44 = vpop.permute.xlu0 %1060  ;;  %v1378_v46 = vmul.f32 0.088388346, %v1346_v27  ;;  %v936_v11 = vld [vmem:[%s6175_s1 + $0xe0] sm:$0xff] }
 0x17f   : > { %v1397_v8 = vpack.c.bf16 %v1377_v33, %v1375_v22  ;;  %v1084_v43 = vsel %vm1070_vm1, %v1031_v30, %v1063_v13  ;;  %v1100_v42 = vsel %vm1070_vm1, %v1063_v13, %v1031_v30  ;;  %v1083_v36 = vsel %vm1070_vm1, %v1029_v38, %v1061_v44  ;;  %v939_v30 = vld [vmem:[%s6175_s1 + $0xf8] sm:$0xff] }
 0x180   : > { %v6718_v23 = vpack.c.bf16 %v1378_v46, %v1376_v5  ;;  %v1099_v45 = vsel %vm1070_vm1, %v1061_v44, %v1029_v38  ;;  %v1253_v51 = vsub.f32 0.0, %v1084_v43  ;;  %v1254_v19 = vsub.f32 0.0, %v1100_v42  ;;  %v937_v44 = vld [vmem:[%s6175_s1 + $0xe8] sm:$0xff]  ;;  %v970_v43 = vld [vmem:[%s6180_s25 + $0xf0] sm:$0xff] }
 0x181   : > { %1413 = vst [vmem:[#allocation2 + $0x50] sm:$0xff] %v1397_v8  ;;  %5124 = vmatmul.mubr.bf16.gmra.mrb[8].mxu0 %v1397_v8  ;;  %v1251_v57 = vsub.f32 0.0, %v1083_v36  ;;  %v1252_v58 = vsub.f32 0.0, %v1099_v45  ;;  %v1000_v35 = vmul.f32 %v936_v11, %v6415_v4  ;;  %v969_v36 = vld [vmem:[%s6180_s25 + $0xe8] sm:$0xff] }
 0x182   : > { %v1035_v47 = vpop.permute.xlu1 %1034  ;;  %v1033_v48 = vpop.permute.xlu0 %1032  ;;  %1414 = vst [vmem:[#allocation2 + $0x58] sm:$0xff] %v6718_v23 }
 0x186   : > { %v1067_v21 = vpop.permute.xlu1 %1066  ;;  %v1065_v41 = vpop.permute.xlu0 %1064 }
 0x187   : > { %v1086_v59 = vsel %vm1070_vm1, %v1035_v47, %v1067_v21  ;;  %v1102_v27 = vsel %vm1070_vm1, %v1067_v21, %v1035_v47  ;;  %v1085_v22 = vsel %vm1070_vm1, %v1033_v48, %v1065_v41  ;;  %v1101_v33 = vsel %vm1070_vm1, %v1065_v41, %v1033_v48 }
 0x188   : > { %v1003_v47 = vmul.f32 %v939_v30, %v6423_v6  ;;  %v1257_v21 = vsub.f32 0.0, %v1086_v59  ;;  %v1258_v42 = vsub.f32 0.0, %v1102_v27  ;;  %v1255_v48 = vsub.f32 0.0, %v1085_v22 }
 0x189   : > { %v1256_v41 = vsub.f32 0.0, %v1101_v33 }
 0x18a   : > { %v1130_v37 = vpop.permute.xlu1 %1129  ;;  %v1128_v52 = vpop.permute.xlu0 %1127 }
 0x18e   : > { %v1162_v53 = vpop.permute.xlu1 %1161  ;;  %v1160_v62 = vpop.permute.xlu0 %1159 }
 0x18f   : > { %v1181_v0 = vsel %vm1167_vm2, %v1130_v37, %v1162_v53  ;;  %v1197_v1 = vsel %vm1167_vm2, %v1162_v53, %v1130_v37  ;;  %v1180_v20 = vsel %vm1167_vm2, %v1128_v52, %v1160_v62  ;;  %v1196_v54 = vsel %vm1167_vm2, %v1160_v62, %v1128_v52  ;;  %v971_v37 = vld [vmem:[%s6180_s25 + $0xf8] sm:$0xff]  ;;  %v968_v52 = vld [vmem:[%s6180_s25 + $0xe0] sm:$0xff] }
 0x190   : > { %v1285_v55 = vsel %vm6438_vm3, %v1253_v51, %v1197_v1  ;;  %v1286_v56 = vsel %vm6442_vm4, %v1254_v19, %v1181_v0  ;;  %v1283_v15 = vsel %vm6438_vm3, %v1251_v57, %v1196_v54  ;;  %v1284_v12 = vsel %vm6442_vm4, %v1252_v58, %v1180_v20  ;;  %v8817_v51 = vld [vmem:[#allocation17_spill] sm:$0xff] }
 0x191   : > { %v1317_v38 = vmul.f32 %v1285_v55, %v966_v50  ;;  %v1318_v40 = vmul.f32 %v1286_v56, %v967_v18  ;;  %v1315_v31 = vmul.f32 %v1283_v15, %v964_v61  ;;  %v1316_v32 = vmul.f32 %v1284_v12, %v965_v60 }
 0x192   : > { %v1134_v5 = vpop.permute.xlu1 %1133  ;;  %v1132_v13 = vpop.permute.xlu0 %1131 }
 0x193   : > { %v1347_v46 = vadd.f32 %v1315_v31, %v996_v7  ;;  %v1349_v8 = vadd.f32 %v1317_v38, %v998_v17  ;;  %v1348_v25 = vadd.f32 %v1316_v32, %v997_v10  ;;  %v1350_v24 = vadd.f32 %v1318_v40, %v999_v49 }
 0x194   : > { %v1001_v7 = vmul.f32 %v937_v44, %v8817_v51 }
 0x195   : > { %v1379_v45 = vmul.f32 0.088388346, %v1347_v46  ;;  %v1381_v49 = vmul.f32 0.088388346, %v1349_v8  ;;  %v1380_v50 = vmul.f32 0.088388346, %v1348_v25 }
 0x196   : > { %v1166_v17 = vpop.permute.xlu1 %1165  ;;  %v1164_v10 = vpop.permute.xlu0 %1163  ;;  %v1382_v3 = vmul.f32 0.088388346, %v1350_v24 }
 0x197   : > { %v1183_v4 = vsel %vm1167_vm2, %v1134_v5, %v1166_v17  ;;  %v1199_v6 = vsel %vm1167_vm2, %v1166_v17, %v1134_v5  ;;  %v1182_v19 = vsel %vm1167_vm2, %v1132_v13, %v1164_v10  ;;  %v1198_v57 = vsel %vm1167_vm2, %v1164_v10, %v1132_v13 }
 0x198   : > { %v1289_v58 = vsel %vm6438_vm3, %v1257_v21, %v1199_v6  ;;  %v1290_v59 = vsel %vm6442_vm4, %v1258_v42, %v1183_v4  ;;  %v1287_v18 = vsel %vm6438_vm3, %v1255_v48, %v1198_v57  ;;  %v1288_v53 = vsel %vm6442_vm4, %v1256_v41, %v1182_v19 }
 0x199   : > { %v1321_v61 = vmul.f32 %v1289_v58, %v970_v43  ;;  %v1322_v60 = vmul.f32 %v1290_v59, %v971_v37  ;;  %v1319_v62 = vmul.f32 %v1287_v18, %v968_v52  ;;  %v1320_v0 = vmul.f32 %v1288_v53, %v969_v36 }
 0x19a   : > { %v1399_v1 = vpack.c.bf16 %v1381_v49, %v1379_v45  ;;  %v6793_v20 = vpack.c.bf16 %v1382_v3, %v1380_v50 }
 0x19b   : > { %v1351_v2 = vadd.f32 %v1319_v62, %v1000_v35  ;;  %v1353_v54 = vadd.f32 %v1321_v61, %v1002_v26  ;;  %v1352_v55 = vadd.f32 %v1320_v0, %v1001_v7  ;;  %v1354_v56 = vadd.f32 %v1322_v60, %v1003_v47 }
 0x19c   : > { %1415 = vst [vmem:[#allocation2 + $0x60] sm:$0xff] %v1399_v1  ;;  %5127 = vmatprep.mubr.bf16.mxu0 %v1399_v1  ;;  %1416 = vst [vmem:[#allocation2 + $0x68] sm:$0xff] %v6793_v20 }
 0x19d   : > { %v1383_v14 = vmul.f32 0.088388346, %v1351_v2  ;;  %v1385_v15 = vmul.f32 0.088388346, %v1353_v54  ;;  %v1384_v12 = vmul.f32 0.088388346, %v1352_v55 }
 0x19e   : > { %v1386_v16 = vmul.f32 0.088388346, %v1354_v56  ;;  %v8818_v56 = vld [vmem:[#allocation19_spill] sm:$0xff] }
 0x19f   : > { %v1401_v28 = vpack.c.bf16 %v1385_v15, %v1383_v14 }
 0x1a0   : > { %v6796_v11 = vpack.c.bf16 %v1386_v16, %v1384_v12 }
 0x1a1   : > { %1417 = vst [vmem:[#allocation2 + $0x70] sm:$0xff] %v1401_v28  ;;  %5128 = vmatmul.mubr.bf16.gmra.mrb[12].mxu0 %v1401_v28 }
 0x1a2   : > { %1418 = vst [vmem:[#allocation2 + $0x78] sm:$0xff] %v6796_v11 }
 0x215   : > { %v5117_v30 = vpop.f32.mrb[0].mxu0 }
 0x216   : > { %v1497_v38 = vpop.f32.mrb[1].mxu0  ;;  %v1567_v22 = vsel %vm1560_vm5, %v5117_v30, -inf }
 0x217   : > { %v6799_v40 = vpop.f32.mrb[2].mxu0  ;;  %v1561_v31 = vsel %vm1560_vm5, %v1497_v38, -inf }
 0x218   : > { %1562 = vmax.xlane.f32.xlu0 %v1561_v31  ;;  %v1500_v32 = vpop.f32.mrb[3].mxu0  ;;  %v1570_v33 = vsel %vm1560_vm5, %v6799_v40, -inf }
 0x219   : > { %v1564_v27 = vsel %vm1560_vm5, %v1500_v32, -inf }
 0x21a   : > { %1565 = vmax.xlane.f32.xlu1 %v1564_v27 }
 0x21c   : > { %1568 = vmax.xlane.f32.xlu0 %v1567_v22 }
 0x220   : > { %1571 = vmax.xlane.f32.xlu0 %v1570_v33 }
 0x234   : > { %v6806_v5 = vpop.f32.mrb[4].mxu0 }
 0x235   : > { %v6808_v13 = vpop.f32.mrb[5].mxu0  ;;  %v1579_v24 = vsel %vm1560_vm5, %v6806_v5, -inf }
 0x236   : > { %v6810_v44 = vpop.f32.mrb[6].mxu0  ;;  %v1573_v46 = vsel %vm1560_vm5, %v6808_v13, -inf }
 0x237   : > { %1574 = vmax.xlane.f32.xlu1 %v1573_v46  ;;  %v6814_v8 = vpop.f32.mrb[7].mxu0  ;;  %v1582_v26 = vsel %vm1560_vm5, %v6810_v44, -inf }
 0x238   : > { %v1576_v25 = vsel %vm1560_vm5, %v6814_v8, -inf }
 0x239   : > { %1577 = vmax.xlane.f32.xlu0 %v1576_v25 }
 0x23b   : > { %1580 = vmax.xlane.f32.xlu1 %v1579_v24 }
 0x23d   : > { %1583 = vmax.xlane.f32.xlu0 %v1582_v26 }
 0x254   : > { %v6822_v35 = vpop.f32.mrb[8].mxu0 }
 0x255   : > { %v6824_v47 = vpop.f32.mrb[9].mxu0  ;;  %v1591_v42 = vsel %vm1560_vm5, %v6822_v35, -inf }
 0x256   : > { %v6826_v21 = vpop.f32.mrb[10].mxu0  ;;  %v1585_v43 = vsel %vm1560_vm5, %v6824_v47, -inf }
 0x257   : > { %1586 = vmax.xlane.f32.xlu1 %v1585_v43  ;;  %v6830_v37 = vpop.f32.mrb[11].mxu0  ;;  %v1594_v48 = vsel %vm1560_vm5, %v6826_v21, -inf }
 0x258   : > { %v1588_v52 = vsel %vm1560_vm5, %v6830_v37, -inf }
 0x259   : > { %1589 = vmax.xlane.f32.xlu0 %v1588_v52 }
 0x25b   : > { %1592 = vmax.xlane.f32.xlu1 %v1591_v42 }
 0x25d   : > { %1595 = vmax.xlane.f32.xlu0 %v1594_v48 }
 0x274   : > { %v6838_v41 = vpop.f32.mrb[12].mxu0 }
 0x275   : > { %v6840_v36 = vpop.f32.mrb[13].mxu0  ;;  %v1603_v10 = vsel %vm1560_vm5, %v6838_v41, -inf }
 0x276   : > { %v6842_v45 = vpop.f32.mrb[14].mxu0  ;;  %v1597_v51 = vsel %vm1560_vm5, %v6840_v36, -inf }
 0x277   : > { %1598 = vmax.xlane.f32.xlu1 %v1597_v51  ;;  %v6846_v7 = vpop.f32.mrb[15].mxu0  ;;  %v1606_v49 = vsel %vm1560_vm5, %v6842_v45, -inf }
 0x278   : > { %v1600_v17 = vsel %vm1560_vm5, %v6846_v7, -inf }
 0x279   : > { %1601 = vmax.xlane.f32.xlu0 %v1600_v17 }
 0x27b   : > { %1604 = vmax.xlane.f32.xlu1 %v1603_v10 }
 0x27d   : > { %1607 = vmax.xlane.f32.xlu0 %v1606_v49 }
 0x2a5   : > { %v1563_v50 = vpop.xlane.xlu0 %1562 }
 0x2a6   : > { %v1609_v3 = vsub.f32 %v1497_v38, %v1563_v50  ;;  %1658 = vst.msk [vmem:[#allocation3] sm:$0xff] %vm1657_vm6, %v1563_v50 }
 0x2a7   : > { %v1566_v4 = vpop.xlane.xlu1 %1565 }
 0x2a8   : > { %v1625_v6 = vmul.f32 1.442695, %v1609_v3  ;;  %v1610_v19 = vsub.f32 %v1500_v32, %v1566_v4  ;;  %1659 = vst.msk [vmem:[#allocation3 + $0x8] sm:$0xff] %vm1657_vm6, %v1566_v4 }
 0x2a9   : > { %v1569_v57 = vpop.xlane.xlu0 %1568 }
 0x2aa   : > { %v1627_v58 = vmul.f32 1.442695, %v1610_v19  ;;  %v1611_v59 = vsub.f32 %v5117_v30, %v1569_v57  ;;  %1660 = vst.msk [vmem:[#allocation3 + $0x10] sm:$0xff] %vm1657_vm6, %v1569_v57  ;;  %5414 = vpow2.f32 %v1625_v6 }
 0x2ac   : > { %5416 = vpow2.f32 %v1627_v58  ;;  %v1629_v18 = vmul.f32 1.442695, %v1611_v59 }
 0x2ad   : > { %v1572_v53 = vpop.xlane.xlu0 %1571 }
 0x2ae   : > { %v1612_v61 = vsub.f32 %v6799_v40, %v1572_v53  ;;  %1661 = vst.msk [vmem:[#allocation3 + $0x18] sm:$0xff] %vm1657_vm6, %v1572_v53  ;;  %5418 = vpow2.f32 %v1629_v18 }
 0x2b0   : > { %v1631_v60 = vmul.f32 1.442695, %v1612_v61 }
 0x2b2   : > { %5420 = vpow2.f32 %v1631_v60 }
 0x2b4   : > { %v6859_v62 = vpop.eup %5414 }
 0x2b6   : > { %v6861_v0 = vpop.eup %5416 }
 0x2b7   : > { %v1738_v1 = vpack.c.bf16 %v6861_v0, %v6859_v62 }
 0x2b8   : > { %v6866_v2 = vpop.eup %5418 }
 0x2b9   : > { %5133 = vmatprep.mubr.msk.bf16.mxu1 %vm1560_vm5, %v1738_v1 }
 0x2bc   : > { %v6868_v54 = vpop.eup %5420 }
 0x2bd   : > { %v1739_v55 = vpack.c.bf16 %v6868_v54, %v6866_v2 }
 0x2bf   : > { %5134 = vmatmul.mubr.msk.bf16.vlgmr.msra.gmra.mrb[0].mxu1 %vm1560_vm5, %v1739_v55 }
 0x2c0   : > { %5150 = vmatpush3.bf16.xpose.msra.mxu1 %v8818_v56 }
 0x2c4   : > { %v1575_v14 = vpop.xlane.xlu1 %1574 }
 0x2c5   : > { %v1613_v15 = vsub.f32 %v6808_v13, %v1575_v14  ;;  %1662 = vst.msk [vmem:[#allocation3 + $0x20] sm:$0xff] %vm1657_vm6, %v1575_v14 }
 0x2c6   : > { %v1578_v12 = vpop.xlane.xlu0 %1577 }
 0x2c7   : > { %v1633_v16 = vmul.f32 1.442695, %v1613_v15  ;;  %v1614_v28 = vsub.f32 %v6814_v8, %v1578_v12  ;;  %1663 = vst.msk [vmem:[#allocation3 + $0x28] sm:$0xff] %vm1657_vm6, %v1578_v12 }
 0x2c8   : > { %v1581_v30 = vpop.xlane.xlu1 %1580 }
 0x2c9   : > { %v1635_v38 = vmul.f32 1.442695, %v1614_v28  ;;  %v1615_v40 = vsub.f32 %v6806_v5, %v1581_v30  ;;  %1664 = vst.msk [vmem:[#allocation3 + $0x30] sm:$0xff] %vm1657_vm6, %v1581_v30  ;;  %5422 = vpow2.f32 %v1633_v16 }
 0x2ca   : > { %v1584_v31 = vpop.xlane.xlu0 %1583 }
 0x2cb   : > { %5424 = vpow2.f32 %v1635_v38  ;;  %v1637_v32 = vmul.f32 1.442695, %v1615_v40  ;;  %v1616_v27 = vsub.f32 %v6810_v44, %v1584_v31  ;;  %1665 = vst.msk [vmem:[#allocation3 + $0x38] sm:$0xff] %vm1657_vm6, %v1584_v31 }
 0x2cd   : > { %v1639_v22 = vmul.f32 1.442695, %v1616_v27  ;;  %5426 = vpow2.f32 %v1637_v32 }
 0x2cf   : > { %5428 = vpow2.f32 %v1639_v22 }
 0x2d3   : > { %v6882_v33 = vpop.eup %5422 }
 0x2d5   : > { %v6884_v13 = vpop.eup %5424 }
 0x2d6   : > { %v1740_v5 = vpack.c.bf16 %v6884_v13, %v6882_v33 }
 0x2d7   : > { %v6888_v46 = vpop.eup %5426 }
 0x2d8   : > { %5137 = vmatprep.mubr.msk.bf16.mxu1 %vm1560_vm5, %v1740_v5 }
 0x2d9   : > { %v6891_v8 = vpop.eup %5428 }
 0x2da   : > { %v1741_v44 = vpack.c.bf16 %v6891_v8, %v6888_v46 }
 0x2dc   : > { %5138 = vmatmul.mubr.msk.bf16.gmra.mrb[4].mxu1 %vm1560_vm5, %v1741_v44 }
 0x2e4   : > { %v1587_v25 = vpop.xlane.xlu1 %1586 }
 0x2e5   : > { %v1617_v24 = vsub.f32 %v6824_v47, %v1587_v25  ;;  %1666 = vst.msk [vmem:[#allocation3 + $0x40] sm:$0xff] %vm1657_vm6, %v1587_v25 }
 0x2e6   : > { %v1590_v26 = vpop.xlane.xlu0 %1589 }
 0x2e7   : > { %v1641_v43 = vmul.f32 1.442695, %v1617_v24  ;;  %v1618_v52 = vsub.f32 %v6830_v37, %v1590_v26  ;;  %1667 = vst.msk [vmem:[#allocation3 + $0x48] sm:$0xff] %vm1657_vm6, %v1590_v26 }
 0x2e8   : > { %v1593_v42 = vpop.xlane.xlu1 %1592 }
 0x2e9   : > { %v1643_v48 = vmul.f32 1.442695, %v1618_v52  ;;  %v1619_v51 = vsub.f32 %v6822_v35, %v1593_v42  ;;  %1668 = vst.msk [vmem:[#allocation3 + $0x50] sm:$0xff] %vm1657_vm6, %v1593_v42  ;;  %5430 = vpow2.f32 %v1641_v43 }
 0x2ea   : > { %v1596_v17 = vpop.xlane.xlu0 %1595 }
 0x2eb   : > { %5432 = vpow2.f32 %v1643_v48  ;;  %v1645_v10 = vmul.f32 1.442695, %v1619_v51  ;;  %v1620_v47 = vsub.f32 %v6826_v21, %v1596_v17  ;;  %1669 = vst.msk [vmem:[#allocation3 + $0x58] sm:$0xff] %vm1657_vm6, %v1596_v17 }
 0x2ed   : > { %v1647_v49 = vmul.f32 1.442695, %v1620_v47  ;;  %5434 = vpow2.f32 %v1645_v10 }
 0x2ef   : > { %5436 = vpow2.f32 %v1647_v49 }
 0x2f3   : > { %v6904_v37 = vpop.eup %5430 }
 0x2f5   : > { %v6906_v50 = vpop.eup %5432 }
 0x2f6   : > { %v1742_v35 = vpack.c.bf16 %v6906_v50, %v6904_v37 }
 0x2f7   : > { %v6910_v3 = vpop.eup %5434 }
 0x2f8   : > { %5141 = vmatprep.mubr.msk.bf16.mxu1 %vm1560_vm5, %v1742_v35 }
 0x2f9   : > { %v6913_v4 = vpop.eup %5436 }
 0x2fa   : > { %v1743_v21 = vpack.c.bf16 %v6913_v4, %v6910_v3 }
 0x2fc   : > { %5142 = vmatmul.mubr.msk.bf16.gmra.mrb[8].mxu1 %vm1560_vm5, %v1743_v21 }
 0x304   : > { %v1599_v6 = vpop.xlane.xlu1 %1598 }
 0x305   : > { %v1621_v19 = vsub.f32 %v6840_v36, %v1599_v6  ;;  %1670 = vst.msk [vmem:[#allocation3 + $0x60] sm:$0xff] %vm1657_vm6, %v1599_v6 }
 0x306   : > { %v1602_v57 = vpop.xlane.xlu0 %1601 }
 0x307   : > { %v1649_v58 = vmul.f32 1.442695, %v1621_v19  ;;  %v1622_v59 = vsub.f32 %v6846_v7, %v1602_v57  ;;  %1671 = vst.msk [vmem:[#allocation3 + $0x68] sm:$0xff] %vm1657_vm6, %v1602_v57 }
 0x308   : > { %v1605_v18 = vpop.xlane.xlu1 %1604 }
 0x309   : > { %v1651_v53 = vmul.f32 1.442695, %v1622_v59  ;;  %v1623_v61 = vsub.f32 %v6838_v41, %v1605_v18  ;;  %1672 = vst.msk [vmem:[#allocation3 + $0x70] sm:$0xff] %vm1657_vm6, %v1605_v18  ;;  %5438 = vpow2.f32 %v1649_v58 }
 0x30a   : > { %v1608_v60 = vpop.xlane.xlu0 %1607 }
 0x30b   : > { %5440 = vpow2.f32 %v1651_v53  ;;  %v1653_v1 = vmul.f32 1.442695, %v1623_v61  ;;  %v1624_v36 = vsub.f32 %v6842_v45, %v1608_v60  ;;  %1673 = vst.msk [vmem:[#allocation3 + $0x78] sm:$0xff] %vm1657_vm6, %v1608_v60 }
 0x30d   : > { %v1655_v55 = vmul.f32 1.442695, %v1624_v36  ;;  %5442 = vpow2.f32 %v1653_v1 }
 0x30f   : > { %5444 = vpow2.f32 %v1655_v55 }
 0x313   : > { %v6926_v7 = vpop.eup %5438 }
 0x315   : > { %v6928_v56 = vpop.eup %5440 }
 0x316   : > { %v1744_v41 = vpack.c.bf16 %v6928_v56, %v6926_v7 }
 0x317   : > { %v6932_v14 = vpop.eup %5442 }
 0x318   : > { %5145 = vmatprep.mubr.msk.bf16.mxu1 %vm1560_vm5, %v1744_v41 }
 0x319   : > { %v6935_v15 = vpop.eup %5444 }
 0x31a   : > { %v1745_v45 = vpack.c.bf16 %v6935_v15, %v6932_v14 }
 0x31c   : > { %5146 = vmatmul.mubr.msk.bf16.gmra.mrb[12].mxu1 %vm1560_vm5, %v1745_v45 }
 0x31d   : > { %5151 = vmatprep.mubr.bf16.mxu1 %v6559_v34 }
 0x324   : > { %5152 = vmatmul.mubr.bf16.vlgmr.msra.gmra.mrb[16].mxu1 %v6562_v9 }
 0x325   : > { %5155 = vmatprep.mubr.bf16.mxu1 %v6637_v29 }
 0x32c   : > { %5156 = vmatmul.mubr.bf16.gmra.mrb[20].mxu1 %v6640_v63 }
 0x32d   : > { %5159 = vmatprep.mubr.bf16.mxu1 %v6715_v39 }
 0x334   : > { %5160 = vmatmul.mubr.bf16.gmra.mrb[24].mxu1 %v6718_v23  ;;  %v8819_v23 = vld [vmem:[#allocation18_spill] sm:$0xff] }
 0x335   : > { %5163 = vmatprep.mubr.bf16.mxu1 %v6793_v20  ;;  %v2195_v20 = vsel %vm1770_vm0, %v8819_v23, 0 }
 0x336   : > { %5168 = vmatpush3.bf16.msra.mxu0 %v2195_v20 }
 0x33c   : > { %5164 = vmatmul.mubr.bf16.gmra.mrb[28].mxu1 %v6796_v11 }
 0x392   : > { %v5135_v12 = vpop.f32.mrb[0].mxu1 }
 0x393   : > { %1873 = vst [vmem:[#allocation5 + $0x20] sm:$0xff] %v5135_v12  ;;  %v1808_v16 = vpop.f32.mrb[1].mxu1 }
 0x394   : > { %1871 = vst [vmem:[#allocation5] sm:$0xff] %v1808_v16  ;;  %v5136_v28 = vpop.f32.mrb[2].mxu1 }
 0x395   : > { %1874 = vst [vmem:[#allocation5 + $0x30] sm:$0xff] %v5136_v28  ;;  %v1811_v34 = vpop.f32.mrb[3].mxu1  ;;  %v1674_v28 = vsel %vm1560_vm5, %v6859_v62, 0.0  ;;  %v1689_v62 = vsel %vm1560_vm5, %v6884_v13, 0.0  ;;  %v1704_v13 = vsel %vm1560_vm5, %v6910_v3, 0.0  ;;  %v1719_v3 = vsel %vm1560_vm5, %v6935_v15, 0.0 }
 0x396   : > { %1872 = vst [vmem:[#allocation5 + $0x10] sm:$0xff] %v1811_v34  ;;  %v1677_v34 = vsel %vm1560_vm5, %v6861_v0, 0.0  ;;  %v1692_v0 = vsel %vm1560_vm5, %v6888_v46, 0.0  ;;  %v1707_v46 = vsel %vm1560_vm5, %v6913_v4, 0.0 }
 0x3af   : > { %v5139_v9 = vpop.f32.mrb[4].mxu1 }
 0x3b0   : > { %1877 = vst [vmem:[#allocation5 + $0x60] sm:$0xff] %v5139_v9  ;;  %v1824_v29 = vpop.f32.mrb[5].mxu1  ;;  %v1680_v9 = vsel %vm1560_vm5, %v6866_v2, 0.0  ;;  %v1695_v2 = vsel %vm1560_vm5, %v6891_v8, 0.0  ;;  %v1710_v8 = vsel %vm1560_vm5, %v6926_v7, 0.0 }
 0x3b1   : > { %1875 = vst [vmem:[#allocation5 + $0x40] sm:$0xff] %v1824_v29  ;;  %v5140_v63 = vpop.f32.mrb[6].mxu1  ;;  %v1683_v29 = vsel %vm1560_vm5, %v6868_v54, 0.0  ;;  %v1698_v54 = vsel %vm1560_vm5, %v6904_v37, 0.0  ;;  %v1713_v37 = vsel %vm1560_vm5, %v6928_v56, 0.0 }
 0x3b2   : > { %1878 = vst [vmem:[#allocation5 + $0x70] sm:$0xff] %v5140_v63  ;;  %v1827_v39 = vpop.f32.mrb[7].mxu1  ;;  %v1686_v63 = vsel %vm1560_vm5, %v6882_v33, 0.0  ;;  %v1701_v33 = vsel %vm1560_vm5, %v6906_v50, 0.0  ;;  %v1716_v50 = vsel %vm1560_vm5, %v6932_v14, 0.0 }
 0x3b3   : > { %1876 = vst [vmem:[#allocation5 + $0x50] sm:$0xff] %v1827_v39 }
 0x3cf   : > { %v5143_v11 = vpop.f32.mrb[8].mxu1 }
 0x3d0   : > { %1881 = vst [vmem:[#allocation5 + $0xa0] sm:$0xff] %v5143_v11  ;;  %v1840_v30 = vpop.f32.mrb[9].mxu1 }
 0x3d1   : > { %1879 = vst [vmem:[#allocation5 + $0x80] sm:$0xff] %v1840_v30  ;;  %v5144_v38 = vpop.f32.mrb[10].mxu1 }
 0x3d2   : > { %1882 = vst [vmem:[#allocation5 + $0xb0] sm:$0xff] %v5144_v38  ;;  %v1843_v40 = vpop.f32.mrb[11].mxu1 }
 0x3d3   : > { %1880 = vst [vmem:[#allocation5 + $0x90] sm:$0xff] %v1843_v40 }
 0x3ef   : > { %v5147_v31 = vpop.f32.mrb[12].mxu1 }
 0x3f0   : > { %1885 = vst [vmem:[#allocation5 + $0xe0] sm:$0xff] %v5147_v31  ;;  %v1856_v32 = vpop.f32.mrb[13].mxu1 }
 0x3f1   : > { %1883 = vst [vmem:[#allocation5 + $0xc0] sm:$0xff] %v1856_v32  ;;  %v5148_v27 = vpop.f32.mrb[14].mxu1 }
 0x3f2   : > { %1886 = vst [vmem:[#allocation5 + $0xf0] sm:$0xff] %v5148_v27  ;;  %v1859_v22 = vpop.f32.mrb[15].mxu1 }
 0x3f3   : > { %1884 = vst [vmem:[#allocation5 + $0xd0] sm:$0xff] %v1859_v22 }
 0x3f7   : > { %v6950_v5 = vpop.f32.mrb[16].mxu1 }
 0x3f8   : > { %v6952_v44 = vpop.f32.mrb[17].mxu1  ;;  %v1990_v52 = vsel %vm1560_vm5, %v6950_v5, -inf }
 0x3f9   : > { %v6954_v25 = vpop.f32.mrb[18].mxu1  ;;  %v1984_v24 = vsel %vm1560_vm5, %v6952_v44, -inf }
 0x3fa   : > { %1985 = vmax.xlane.f32.xlu1 %v1984_v24  ;;  %v6958_v26 = vpop.f32.mrb[19].mxu1  ;;  %v1993_v48 = vsel %vm1560_vm5, %v6954_v25, -inf }
 0x3fb   : > { %v1987_v43 = vsel %vm1560_vm5, %v6958_v26, -inf }
 0x3fc   : > { %1988 = vmax.xlane.f32.xlu0 %v1987_v43 }
 0x3fe   : > { %1991 = vmax.xlane.f32.xlu1 %v1990_v52 }
 0x3ff   : > { %v6964_v42 = vpop.f32.mrb[20].mxu1 }
 0x400   : > { %1994 = vmax.xlane.f32.xlu0 %v1993_v48  ;;  %v6968_v51 = vpop.f32.mrb[21].mxu1  ;;  %v2002_v35 = vsel %vm1560_vm5, %v6964_v42, -inf }
 0x401   : > { %v6970_v17 = vpop.f32.mrb[22].mxu1  ;;  %v1996_v10 = vsel %vm1560_vm5, %v6968_v51, -inf }
 0x402   : > { %1997 = vmax.xlane.f32.xlu1 %v1996_v10  ;;  %v6974_v47 = vpop.f32.mrb[23].mxu1  ;;  %v2005_v6 = vsel %vm1560_vm5, %v6970_v17, -inf }
 0x403   : > { %v1999_v49 = vsel %vm1560_vm5, %v6974_v47, -inf }
 0x404   : > { %2000 = vmax.xlane.f32.xlu0 %v1999_v49 }
 0x406   : > { %2003 = vmax.xlane.f32.xlu1 %v2002_v35 }
 0x407   : > { %v6980_v21 = vpop.f32.mrb[24].mxu1 }
 0x408   : > { %2006 = vmax.xlane.f32.xlu0 %v2005_v6  ;;  %v6984_v19 = vpop.f32.mrb[25].mxu1  ;;  %v2014_v53 = vsel %vm1560_vm5, %v6980_v21, -inf }
 0x409   : > { %v6986_v57 = vpop.f32.mrb[26].mxu1  ;;  %v2008_v58 = vsel %vm1560_vm5, %v6984_v19, -inf }
 0x40a   : > { %2009 = vmax.xlane.f32.xlu1 %v2008_v58  ;;  %v6990_v59 = vpop.f32.mrb[27].mxu1  ;;  %v2017_v60 = vsel %vm1560_vm5, %v6986_v57, -inf }
 0x40b   : > { %v2011_v18 = vsel %vm1560_vm5, %v6990_v59, -inf }
 0x40c   : > { %2012 = vmax.xlane.f32.xlu0 %v2011_v18 }
 0x40e   : > { %2015 = vmax.xlane.f32.xlu1 %v2014_v53 }
 0x40f   : > { %v6996_v61 = vpop.f32.mrb[28].mxu1 }
 0x410   : > { %2018 = vmax.xlane.f32.xlu0 %v2017_v60  ;;  %v7000_v1 = vpop.f32.mrb[29].mxu1  ;;  %v2026_v12 = vsel %vm1560_vm5, %v6996_v61, -inf }
 0x411   : > { %v7002_v36 = vpop.f32.mrb[30].mxu1  ;;  %v2020_v55 = vsel %vm1560_vm5, %v7000_v1, -inf }
 0x412   : > { %2021 = vmax.xlane.f32.xlu1 %v2020_v55  ;;  %v7006_v41 = vpop.f32.mrb[31].mxu1  ;;  %v2029_v16 = vsel %vm1560_vm5, %v7002_v36, -inf }
 0x413   : > { %v2023_v45 = vsel %vm1560_vm5, %v7006_v41, -inf }
 0x414   : > { %2024 = vmax.xlane.f32.xlu0 %v2023_v45 }
 0x416   : > { %2027 = vmax.xlane.f32.xlu1 %v2026_v12 }
 0x418   : > { %2030 = vmax.xlane.f32.xlu0 %v2029_v16 }
 0x41a   : > { %1675 = vadd.xlane.f32.xlu1 %v1674_v28 }
 0x41c   : > { %1678 = vadd.xlane.f32.xlu0 %v1677_v34 }
 0x41e   : > { %1681 = vadd.xlane.f32.xlu1 %v1680_v9 }
 0x420   : > { %1684 = vadd.xlane.f32.xlu0 %v1683_v29 }
 0x422   : > { %1687 = vadd.xlane.f32.xlu1 %v1686_v63 }
 0x424   : > { %1690 = vadd.xlane.f32.xlu0 %v1689_v62 }
 0x426   : > { %1693 = vadd.xlane.f32.xlu1 %v1692_v0 }
 0x428   : > { %1696 = vadd.xlane.f32.xlu0 %v1695_v2 }
 0x42a   : > { %1699 = vadd.xlane.f32.xlu1 %v1698_v54 }
 0x42c   : > { %1702 = vadd.xlane.f32.xlu0 %v1701_v33 }
 0x42e   : > { %1705 = vadd.xlane.f32.xlu1 %v1704_v13 }
 0x430   : > { %1708 = vadd.xlane.f32.xlu0 %v1707_v46 }
 0x432   : > { %1711 = vadd.xlane.f32.xlu1 %v1710_v8 }
 0x434   : > { %1714 = vadd.xlane.f32.xlu0 %v1713_v37 }
 0x436   : > { %1717 = vadd.xlane.f32.xlu1 %v1716_v50 }
 0x438   : > { %1720 = vadd.xlane.f32.xlu0 %v1719_v3 }
 0x487   : > { %v1986_v39 = vpop.xlane.xlu1 %1985 }
 0x488   : > { %v2032_v4 = vsub.f32 %v6952_v44, %v1986_v39  ;;  %2081 = vst.msk [vmem:[#allocation3 + $0x80] sm:$0xff] %vm1657_vm6, %v1986_v39 }
 0x489   : > { %v1989_v23 = vpop.xlane.xlu0 %1988 }
 0x48a   : > { %v2048_v7 = vmul.f32 1.442695, %v2032_v4  ;;  %v2033_v20 = vsub.f32 %v6958_v26, %v1989_v23  ;;  %2082 = vst.msk [vmem:[#allocation3 + $0x88] sm:$0xff] %vm1657_vm6, %v1989_v23 }
 0x48b   : > { %v1992_v56 = vpop.xlane.xlu1 %1991 }
 0x48c   : > { %v2050_v11 = vmul.f32 1.442695, %v2033_v20  ;;  %v2034_v14 = vsub.f32 %v6950_v5, %v1992_v56  ;;  %2083 = vst.msk [vmem:[#allocation3 + $0x90] sm:$0xff] %vm1657_vm6, %v1992_v56  ;;  %5446 = vpow2.f32 %v2048_v7 }
 0x48d   : > { %v1995_v15 = vpop.xlane.xlu0 %1994 }
 0x48e   : > { %5448 = vpow2.f32 %v2050_v11  ;;  %v2052_v30 = vmul.f32 1.442695, %v2034_v14  ;;  %v2035_v38 = vsub.f32 %v6954_v25, %v1995_v15  ;;  %2084 = vst.msk [vmem:[#allocation3 + $0x98] sm:$0xff] %vm1657_vm6, %v1995_v15 }
 0x48f   : > { %v1998_v40 = vpop.xlane.xlu1 %1997 }
 0x490   : > { %5450 = vpow2.f32 %v2052_v30  ;;  %v2054_v31 = vmul.f32 1.442695, %v2035_v38  ;;  %v2036_v32 = vsub.f32 %v6968_v51, %v1998_v40  ;;  %2085 = vst.msk [vmem:[#allocation3 + $0xa0] sm:$0xff] %vm1657_vm6, %v1998_v40 }
 0x491   : > { %v2001_v27 = vpop.xlane.xlu0 %2000 }
 0x492   : > { %5452 = vpow2.f32 %v2054_v31  ;;  %v2056_v22 = vmul.f32 1.442695, %v2036_v32  ;;  %v2037_v5 = vsub.f32 %v6974_v47, %v2001_v27  ;;  %2086 = vst.msk [vmem:[#allocation3 + $0xa8] sm:$0xff] %vm1657_vm6, %v2001_v27 }
 0x493   : > { %v2004_v44 = vpop.xlane.xlu1 %2003 }
 0x494   : > { %v2058_v24 = vmul.f32 1.442695, %v2037_v5  ;;  %v2038_v25 = vsub.f32 %v6964_v42, %v2004_v44  ;;  %2087 = vst.msk [vmem:[#allocation3 + $0xb0] sm:$0xff] %vm1657_vm6, %v2004_v44  ;;  %5454 = vpow2.f32 %v2056_v22 }
 0x495   : > { %v2007_v26 = vpop.xlane.xlu0 %2006 }
 0x496   : > { %5456 = vpow2.f32 %v2058_v24  ;;  %v2060_v43 = vmul.f32 1.442695, %v2038_v25  ;;  %v2039_v52 = vsub.f32 %v6970_v17, %v2007_v26  ;;  %2088 = vst.msk [vmem:[#allocation3 + $0xb8] sm:$0xff] %vm1657_vm6, %v2007_v26  ;;  %v5447_v48 = vpop.eup %5446 }
 0x497   : > { %v2010_v51 = vpop.xlane.xlu1 %2009 }
 0x498   : > { %v5449_v10 = vpop.eup %5448  ;;  %5458 = vpow2.f32 %v2060_v43  ;;  %v2062_v47 = vmul.f32 1.442695, %v2039_v52  ;;  %v2040_v49 = vsub.f32 %v6984_v19, %v2010_v51  ;;  %2089 = vst.msk [vmem:[#allocation3 + $0xc0] sm:$0xff] %vm1657_vm6, %v2010_v51 }
 0x499   : > { %v2013_v42 = vpop.xlane.xlu0 %2012  ;;  %v2162_v35 = vpack.c.bf16 %v5449_v10, %v5447_v48 }
 0x49a   : > { %v5451_v6 = vpop.eup %5450  ;;  %5460 = vpow2.f32 %v2062_v47  ;;  %v2064_v58 = vmul.f32 1.442695, %v2040_v49  ;;  %v2041_v18 = vsub.f32 %v6990_v59, %v2013_v42  ;;  %2090 = vst.msk [vmem:[#allocation3 + $0xc8] sm:$0xff] %vm1657_vm6, %v2013_v42 }
 0x49b   : > { %5169 = vmatprep.mubr.msk.bf16.mxu0 %vm1560_vm5, %v2162_v35  ;;  %v2016_v17 = vpop.xlane.xlu1 %2015  ;;  %v2103_v53 = vsel %vm1560_vm5, %v5451_v6, 0.0 }
 0x49c   : > { %v5453_v60 = vpop.eup %5452  ;;  %v2066_v55 = vmul.f32 1.442695, %v2041_v18  ;;  %v2042_v19 = vsub.f32 %v6980_v21, %v2016_v17  ;;  %2091 = vst.msk [vmem:[#allocation3 + $0xd0] sm:$0xff] %vm1657_vm6, %v2016_v17  ;;  %2104 = vadd.xlane.f32.xlu1 %v2103_v53  ;;  %5462 = vpow2.f32 %v2064_v58  ;;  %v2097_v21 = vsel %vm1560_vm5, %v5447_v48, 0.0 }
 0x49d   : > { %v2163_v45 = vpack.c.bf16 %v5453_v60, %v5451_v6  ;;  %v2019_v12 = vpop.xlane.xlu0 %2018  ;;  %v2106_v16 = vsel %vm1560_vm5, %v5453_v60, 0.0 }
 0x49e   : > { %5464 = vpow2.f32 %v2066_v55  ;;  %v2068_v59 = vmul.f32 1.442695, %v2042_v19  ;;  %v2043_v28 = vsub.f32 %v6986_v57, %v2019_v12  ;;  %2092 = vst.msk [vmem:[#allocation3 + $0xd8] sm:$0xff] %vm1657_vm6, %v2019_v12  ;;  %2107 = vadd.xlane.f32.xlu0 %v2106_v16  ;;  %v5455_v34 = vpop.eup %5454  ;;  %v2100_v57 = vsel %vm1560_vm5, %v5449_v10, 0.0 }
 0x49f   : > { %5170 = vmatmul.mubr.msk.bf16.vlgmr.msra.gmra.mrb[16].mxu0 %vm1560_vm5, %v2163_v45  ;;  %v2022_v9 = vpop.xlane.xlu1 %2021 }
 0x4a0   : > { %v5457_v29 = vpop.eup %5456  ;;  %5466 = vpow2.f32 %v2068_v59  ;;  %v2070_v63 = vmul.f32 1.442695, %v2043_v28  ;;  %v2044_v62 = vsub.f32 %v7000_v1, %v2022_v9  ;;  %2093 = vst.msk [vmem:[#allocation3 + $0xe0] sm:$0xff] %vm1657_vm6, %v2022_v9  ;;  %2098 = vadd.xlane.f32.xlu1 %v2097_v21 }
 0x4a1   : > { %v2025_v0 = vpop.xlane.xlu0 %2024  ;;  %v2164_v2 = vpack.c.bf16 %v5457_v29, %v5455_v34  ;;  %v2112_v15 = vsel %vm1560_vm5, %v5457_v29, 0.0 }
 0x4a2   : > { %v5459_v54 = vpop.eup %5458  ;;  %5468 = vpow2.f32 %v2070_v63  ;;  %v2072_v33 = vmul.f32 1.442695, %v2044_v62  ;;  %v2045_v13 = vsub.f32 %v7006_v41, %v2025_v0  ;;  %2094 = vst.msk [vmem:[#allocation3 + $0xe8] sm:$0xff] %vm1657_vm6, %v2025_v0  ;;  %2101 = vadd.xlane.f32.xlu0 %v2100_v57 }
 0x4a3   : > { %5173 = vmatprep.mubr.msk.bf16.mxu0 %vm1560_vm5, %v2164_v2  ;;  %v2028_v46 = vpop.xlane.xlu1 %2027  ;;  %v2115_v1 = vsel %vm1560_vm5, %v5459_v54, 0.0 }
 0x4a4   : > { %v5461_v8 = vpop.eup %5460  ;;  %v2074_v37 = vmul.f32 1.442695, %v2045_v13  ;;  %v2046_v50 = vsub.f32 %v6996_v61, %v2028_v46  ;;  %2095 = vst.msk [vmem:[#allocation3 + $0xf0] sm:$0xff] %vm1657_vm6, %v2028_v46  ;;  %2116 = vadd.xlane.f32.xlu1 %v2115_v1  ;;  %5470 = vpow2.f32 %v2072_v33  ;;  %v2109_v61 = vsel %vm1560_vm5, %v5455_v34, 0.0 }
 0x4a5   : > { %v2031_v3 = vpop.xlane.xlu0 %2030  ;;  %v2118_v39 = vsel %vm1560_vm5, %v5461_v8, 0.0  ;;  %v2165_v41 = vpack.c.bf16 %v5461_v8, %v5459_v54 }
 0x4a6   : > { %5472 = vpow2.f32 %v2074_v37  ;;  %v2076_v4 = vmul.f32 1.442695, %v2046_v50  ;;  %v2047_v23 = vsub.f32 %v7002_v36, %v2031_v3  ;;  %2096 = vst.msk [vmem:[#allocation3 + $0xf8] sm:$0xff] %vm1657_vm6, %v2031_v3  ;;  %2119 = vadd.xlane.f32.xlu0 %v2118_v39  ;;  %v5463_v7 = vpop.eup %5462 }
 0x4a7   : > { %5174 = vmatmul.mubr.msk.bf16.gmra.mrb[20].mxu0 %vm1560_vm5, %v2165_v41  ;;  %v1676_v20 = vpop.xlane.xlu1 %1675  ;;  %v2121_v24 = vsel %vm1560_vm5, %v5463_v7, 0.0 }
 0x4a8   : > { %v5465_v56 = vpop.eup %5464  ;;  %v2078_v11 = vmul.f32 1.442695, %v2047_v23  ;;  %1722 = vst.msk [vmem:[#allocation4] sm:$0xff] %vm1657_vm6, %v1676_v20  ;;  %2110 = vadd.xlane.f32.xlu1 %v2109_v61  ;;  %5474 = vpow2.f32 %v2076_v4 }
 0x4a9   : > { %v1679_v14 = vpop.xlane.xlu0 %1678  ;;  %v2166_v30 = vpack.c.bf16 %v5465_v56, %v5463_v7  ;;  %v2124_v43 = vsel %vm1560_vm5, %v5465_v56, 0.0 }
 0x4aa   : > { %v5467_v36 = vpop.eup %5466  ;;  %5476 = vpow2.f32 %v2078_v11  ;;  %1723 = vst.msk [vmem:[#allocation4 + $0x8] sm:$0xff] %vm1657_vm6, %v1679_v14  ;;  %2113 = vadd.xlane.f32.xlu0 %v2112_v15 }
 0x4ab   : > { %5177 = vmatprep.mubr.msk.bf16.mxu0 %vm1560_vm5, %v2166_v30  ;;  %v1682_v38 = vpop.xlane.xlu1 %1681  ;;  %v2127_v40 = vsel %vm1560_vm5, %v5467_v36, 0.0 }
 0x4ac   : > { %v5469_v31 = vpop.eup %5468  ;;  %1724 = vst.msk [vmem:[#allocation4 + $0x10] sm:$0xff] %vm1657_vm6, %v1682_v38  ;;  %2128 = vadd.xlane.f32.xlu1 %v2127_v40 }
 0x4ad   : > { %v1685_v32 = vpop.xlane.xlu0 %1684  ;;  %v2130_v27 = vsel %vm1560_vm5, %v5469_v31, 0.0  ;;  %v2167_v22 = vpack.c.bf16 %v5469_v31, %v5467_v36 }
 0x4ae   : > { %1725 = vst.msk [vmem:[#allocation4 + $0x18] sm:$0xff] %vm1657_vm6, %v1685_v32  ;;  %2131 = vadd.xlane.f32.xlu0 %v2130_v27  ;;  %v5471_v5 = vpop.eup %5470 }
 0x4af   : > { %5178 = vmatmul.mubr.msk.bf16.gmra.mrb[24].mxu0 %vm1560_vm5, %v2167_v22  ;;  %v1688_v44 = vpop.xlane.xlu1 %1687  ;;  %v2133_v10 = vsel %vm1560_vm5, %v5471_v5, 0.0 }
 0x4b0   : > { %v5473_v25 = vpop.eup %5472  ;;  %1726 = vst.msk [vmem:[#allocation4 + $0x20] sm:$0xff] %vm1657_vm6, %v1688_v44  ;;  %2122 = vadd.xlane.f32.xlu1 %v2121_v24 }
 0x4b1   : > { %v1691_v26 = vpop.xlane.xlu0 %1690  ;;  %v2168_v52 = vpack.c.bf16 %v5473_v25, %v5471_v5  ;;  %v2136_v42 = vsel %vm1560_vm5, %v5473_v25, 0.0 }
 0x4b2   : > { %1727 = vst.msk [vmem:[#allocation4 + $0x28] sm:$0xff] %vm1657_vm6, %v1691_v26  ;;  %2125 = vadd.xlane.f32.xlu0 %v2124_v43  ;;  %v5475_v48 = vpop.eup %5474 }
 0x4b3   : > { %v1694_v51 = vpop.xlane.xlu1 %1693  ;;  %5181 = vmatprep.mubr.msk.bf16.mxu0 %vm1560_vm5, %v2168_v52  ;;  %v2139_v58 = vsel %vm1560_vm5, %v5475_v48, 0.0 }
 0x4b4   : > { %v5477_v47 = vpop.eup %5476  ;;  %1728 = vst.msk [vmem:[#allocation4 + $0x30] sm:$0xff] %vm1657_vm6, %v1694_v51  ;;  %2134 = vadd.xlane.f32.xlu1 %v2133_v10 }
 0x4b5   : > { %v1697_v49 = vpop.xlane.xlu0 %1696  ;;  %v2169_v35 = vpack.c.bf16 %v5477_v47, %v5475_v48  ;;  %v2142_v17 = vsel %vm1560_vm5, %v5477_v47, 0.0 }
 0x4b6   : > { %1729 = vst.msk [vmem:[#allocation4 + $0x38] sm:$0xff] %vm1657_vm6, %v1697_v49  ;;  %2137 = vadd.xlane.f32.xlu0 %v2136_v42 }
 0x4b7   : > { %v1700_v6 = vpop.xlane.xlu1 %1699  ;;  %5182 = vmatmul.mubr.msk.bf16.gmra.mrb[28].mxu0 %vm1560_vm5, %v2169_v35 }
 0x4b8   : > { %1730 = vst.msk [vmem:[#allocation4 + $0x40] sm:$0xff] %vm1657_vm6, %v1700_v6  ;;  %2140 = vadd.xlane.f32.xlu1 %v2139_v58 }
 0x4b9   : > { %v1703_v18 = vpop.xlane.xlu0 %1702 }
 0x4ba   : > { %1731 = vst.msk [vmem:[#allocation4 + $0x48] sm:$0xff] %vm1657_vm6, %v1703_v18  ;;  %2143 = vadd.xlane.f32.xlu0 %v2142_v17 }
 0x4bb   : > { %v1706_v53 = vpop.xlane.xlu1 %1705 }
 0x4bc   : > { %1732 = vst.msk [vmem:[#allocation4 + $0x50] sm:$0xff] %vm1657_vm6, %v1706_v53 }
 0x4bd   : > { %v1709_v60 = vpop.xlane.xlu0 %1708 }
 0x4be   : > { %1733 = vst.msk [vmem:[#allocation4 + $0x58] sm:$0xff] %vm1657_vm6, %v1709_v60 }
 0x4bf   : > { %v1712_v55 = vpop.xlane.xlu1 %1711 }
 0x4c0   : > { %1734 = vst.msk [vmem:[#allocation4 + $0x60] sm:$0xff] %vm1657_vm6, %v1712_v55 }
 0x4c1   : > { %v1715_v19 = vpop.xlane.xlu0 %1714 }
 0x4c2   : > { %1735 = vst.msk [vmem:[#allocation4 + $0x68] sm:$0xff] %vm1657_vm6, %v1715_v19 }
 0x4c3   : > { %v1718_v45 = vpop.xlane.xlu1 %1717 }
 0x4c4   : > { %1736 = vst.msk [vmem:[#allocation4 + $0x70] sm:$0xff] %vm1657_vm6, %v1718_v45 }
 0x4c5   : > { %v1721_v12 = vpop.xlane.xlu0 %1720 }
 0x4c6   : > { %1737 = vst.msk [vmem:[#allocation4 + $0x78] sm:$0xff] %vm1657_vm6, %v1721_v12 }
 0x529   : > { %v2105_v16 = vpop.xlane.xlu1 %2104 }
 0x52a   : > { %2148 = vst.msk [vmem:[#allocation4 + $0x90] sm:$0xff] %vm1657_vm6, %v2105_v16 }
 0x52b   : > { %v2108_v59 = vpop.xlane.xlu0 %2107 }
 0x52c   : > { %2149 = vst.msk [vmem:[#allocation4 + $0x98] sm:$0xff] %vm1657_vm6, %v2108_v59 }
 0x52d   : > { %v2099_v28 = vpop.xlane.xlu1 %2098 }
 0x52e   : > { %2146 = vst.msk [vmem:[#allocation4 + $0x80] sm:$0xff] %vm1657_vm6, %v2099_v28 }
 0x52f   : > { %v2102_v34 = vpop.xlane.xlu0 %2101 }
 0x530   : > { %2147 = vst.msk [vmem:[#allocation4 + $0x88] sm:$0xff] %vm1657_vm6, %v2102_v34 }
 0x531   : > { %v2117_v9 = vpop.xlane.xlu1 %2116 }
 0x532   : > { %2152 = vst.msk [vmem:[#allocation4 + $0xb0] sm:$0xff] %vm1657_vm6, %v2117_v9 }
 0x533   : > { %v2120_v21 = vpop.xlane.xlu0 %2119 }
 0x534   : > { %2153 = vst.msk [vmem:[#allocation4 + $0xb8] sm:$0xff] %vm1657_vm6, %v2120_v21 }
 0x535   : > { %v2111_v29 = vpop.xlane.xlu1 %2110 }
 0x536   : > { %2150 = vst.msk [vmem:[#allocation4 + $0xa0] sm:$0xff] %vm1657_vm6, %v2111_v29 }
 0x537   : > { %v2114_v63 = vpop.xlane.xlu0 %2113 }
 0x538   : > { %2151 = vst.msk [vmem:[#allocation4 + $0xa8] sm:$0xff] %vm1657_vm6, %v2114_v63 }
 0x539   : > { %v2129_v62 = vpop.xlane.xlu1 %2128 }
 0x53a   : > { %2156 = vst.msk [vmem:[#allocation4 + $0xd0] sm:$0xff] %vm1657_vm6, %v2129_v62 }
 0x53b   : > { %v2132_v0 = vpop.xlane.xlu0 %2131 }
 0x53c   : > { %2157 = vst.msk [vmem:[#allocation4 + $0xd8] sm:$0xff] %vm1657_vm6, %v2132_v0 }
 0x53d   : > { %v2123_v57 = vpop.xlane.xlu1 %2122 }
 0x53e   : > { %2154 = vst.msk [vmem:[#allocation4 + $0xc0] sm:$0xff] %vm1657_vm6, %v2123_v57 }
 0x53f   : > { %v2126_v2 = vpop.xlane.xlu0 %2125 }
 0x540   : > { %2155 = vst.msk [vmem:[#allocation4 + $0xc8] sm:$0xff] %vm1657_vm6, %v2126_v2 }
 0x541   : > { %v2135_v54 = vpop.xlane.xlu1 %2134 }
 0x542   : > { %2158 = vst.msk [vmem:[#allocation4 + $0xe0] sm:$0xff] %vm1657_vm6, %v2135_v54 }
 0x543   : > { %v2138_v33 = vpop.xlane.xlu0 %2137 }
 0x544   : > { %2159 = vst.msk [vmem:[#allocation4 + $0xe8] sm:$0xff] %vm1657_vm6, %v2138_v33 }
 0x545   : > { %v2141_v13 = vpop.xlane.xlu1 %2140 }
 0x546   : > { %2160 = vst.msk [vmem:[#allocation4 + $0xf0] sm:$0xff] %vm1657_vm6, %v2141_v13 }
 0x547   : > { %v2144_v46 = vpop.xlane.xlu0 %2143 }
 0x548   : > { %2161 = vst.msk [vmem:[#allocation4 + $0xf8] sm:$0xff] %vm1657_vm6, %v2144_v46 }
 0x572   : > { %v5171_v1 = vpop.f32.mrb[16].mxu0 }
 0x573   : > { %2296 = vst [vmem:[#allocation5 + $0x28] sm:$0xff] %v5171_v1  ;;  %v2231_v8 = vpop.f32.mrb[17].mxu0 }
 0x574   : > { %2294 = vst [vmem:[#allocation5 + $0x8] sm:$0xff] %v2231_v8  ;;  %v5172_v37 = vpop.f32.mrb[18].mxu0 }
 0x575   : > { %2297 = vst [vmem:[#allocation5 + $0x38] sm:$0xff] %v5172_v37  ;;  %v2234_v50 = vpop.f32.mrb[19].mxu0 }
 0x576   : > { %2295 = vst [vmem:[#allocation5 + $0x18] sm:$0xff] %v2234_v50 }
 0x57a   : > { %v5175_v3 = vpop.f32.mrb[20].mxu0 }
 0x57b   : > { %2300 = vst [vmem:[#allocation5 + $0x68] sm:$0xff] %v5175_v3  ;;  %v2247_v39 = vpop.f32.mrb[21].mxu0 }
 0x57c   : > { %2298 = vst [vmem:[#allocation5 + $0x48] sm:$0xff] %v2247_v39  ;;  %v5176_v41 = vpop.f32.mrb[22].mxu0 }
 0x57d   : > { %2301 = vst [vmem:[#allocation5 + $0x78] sm:$0xff] %v5176_v41  ;;  %v2250_v4 = vpop.f32.mrb[23].mxu0 }
 0x57e   : > { %2299 = vst [vmem:[#allocation5 + $0x58] sm:$0xff] %v2250_v4 }
 0x582   : > { %v5179_v23 = vpop.f32.mrb[24].mxu0 }
 0x583   : > { %2304 = vst [vmem:[#allocation5 + $0xa8] sm:$0xff] %v5179_v23  ;;  %v2263_v7 = vpop.f32.mrb[25].mxu0 }
 0x584   : > { %2302 = vst [vmem:[#allocation5 + $0x88] sm:$0xff] %v2263_v7  ;;  %v5180_v20 = vpop.f32.mrb[26].mxu0 }
 0x585   : > { %2305 = vst [vmem:[#allocation5 + $0xb8] sm:$0xff] %v5180_v20  ;;  %v2266_v61 = vpop.f32.mrb[27].mxu0 }
 0x586   : > { %2303 = vst [vmem:[#allocation5 + $0x98] sm:$0xff] %v2266_v61 }
 0x58a   : > { %v5183_v56 = vpop.f32.mrb[28].mxu0 }
 0x58b   : > { %2308 = vst [vmem:[#allocation5 + $0xe8] sm:$0xff] %v5183_v56  ;;  %v2279_v11 = vpop.f32.mrb[29].mxu0 }
 0x58c   : > { %2306 = vst [vmem:[#allocation5 + $0xc8] sm:$0xff] %v2279_v11  ;;  %v5184_v14 = vpop.f32.mrb[30].mxu0 }
 0x58d   : > { %2309 = vst [vmem:[#allocation5 + $0xf8] sm:$0xff] %v5184_v14  ;;  %v2282_v15 = vpop.f32.mrb[31].mxu0 }
 0x58e   : > { %2307 = vst [vmem:[#allocation5 + $0xd8] sm:$0xff] %v2282_v15 }
 0x58f PF: > { %v7135_v30 = vld [vmem:[%s6199_s14 + $0x8] sm:$0xff]  ;;  %v7138_v36 = vld [vmem:[%s6199_s14] sm:$0xff]  ;;  %s5770_s1 = smov 127   ;;  %v7145_v38 = vld [vmem:[%s6199_s14 + $0x18] sm:$0xff]  ;;  %s5771_s25 = smov 1   ;;  %v2502_v41 = vlaneseq  ;;  %vm3286_vm11 = vcmask 7168  }
 0x590   : > { %2470 = vrot.lane.b32.xlu1 %v7135_v30, %s5770_s1  ;;  %2438 = vrot.lane.b32.xlu0 %v7138_v36, %s5770_s1  ;;  %v7148_v40 = vld [vmem:[%s6199_s14 + $0x10] sm:$0xff]  ;;  %v7166_v32 = vld [vmem:[%s6199_s14 + $0x20] sm:$0xff]  ;;  %p5006_p4 = scmp.ne.s32.totalorder %s5742_s21, 1 }
 0x591   : > { %v7163_v31 = vld [vmem:[%s6199_s14 + $0x30] sm:$0xff]  ;;  %v7173_v27 = vld [vmem:[%s6199_s14 + $0x38] sm:$0xff]  ;;  %v7176_v22 = vld [vmem:[%s6199_s14 + $0x28] sm:$0xff]  ;;  %v7342_v61 = vand.u32 127, %v2502_v41 }
 0x592   : > { %v2805_v5 = vld [vmem:[%s6201_s12] sm:$0xff]  ;;  %v2807_v44 = vld [vmem:[%s6201_s12 + $0x10] sm:$0xff]  ;;  %v7211_v18 = vld [vmem:[%s6199_s14 + $0x58] sm:$0xff] }
 0x593   : > { %v2837_v24 = vpack.c.bf16 %v2807_v44, %v2805_v5  ;;  %v2809_v25 = vld [vmem:[%s6201_s12 + $0x20] sm:$0xff]  ;;  %v2811_v26 = vld [vmem:[%s6201_s12 + $0x30] sm:$0xff]  ;;  %v7214_v17 = vld [vmem:[%s6199_s14 + $0x48] sm:$0xff]  ;;  %v2634_v56 = vadd.s32 128, %v7342_v61  ;;  %vm2504_vm7 = vcmp.lt.s32.totalorder %v7342_v61, 127  ;;  %vm2601_vm8 = vcmp.lt.s32.totalorder %v7342_v61, 1 }
 0x594   : > { %2472 = vrot.lane.b32.xlu1 %v7145_v38, %s5770_s1  ;;  %2440 = vrot.lane.b32.xlu0 %v7148_v40, %s5770_s1  ;;  %v2839_v43 = vpack.c.bf16 %v2811_v26, %v2809_v25  ;;  %v2813_v52 = vld [vmem:[%s6201_s12 + $0x40] sm:$0xff]  ;;  %v2815_v48 = vld [vmem:[%s6201_s12 + $0x50] sm:$0xff] }
 0x595   : > { %5217 = vmatprep.subr.bf16.mxu1 %v2837_v24  ;;  %v2841_v51 = vpack.c.bf16 %v2815_v48, %v2813_v52  ;;  %v2817_v10 = vld [vmem:[%s6201_s12 + $0x60] sm:$0xff]  ;;  %v2819_v47 = vld [vmem:[%s6201_s12 + $0x70] sm:$0xff]  ;;  %v7245_v29 = vld [vmem:[%s6199_s14 + $0x78] sm:$0xff]  ;;  %v2646_v25 = vand.u32 1, %v2634_v56 }
 0x596   : > { %5218 = vmatpush3.bf16.msra.mxu1 %v2837_v24  ;;  %v7199_v49 = vld [vmem:[%s6199_s14 + $0x50] sm:$0xff]  ;;  %v7202_v42 = vld [vmem:[%s6199_s14 + $0x40] sm:$0xff]  ;;  %v2843_v35 = vpack.c.bf16 %v2819_v47, %v2817_v10  ;;  %v7248_v63 = vld [vmem:[%s6199_s14 + $0x68] sm:$0xff]  ;;  %v2639_v24 = vand.u32 1, %v7342_v61 }
 0x597   : > { %5219 = vmatprep.subr.bf16.mxu1 %v2839_v43  ;;  %v2821_v6 = vld [vmem:[%s6201_s12 + $0x80] sm:$0xff]  ;;  %v2823_v58 = vld [vmem:[%s6201_s12 + $0x90] sm:$0xff]  ;;  %v7273_v57 = vld [vmem:[%s6199_s14 + $0x98] sm:$0xff]  ;;  %vm7377_vm10 = vcmp.eq.s32.totalorder %v2646_v25, 0 }
 0x598   : > { %2539 = vrot.lane.b32.xlu1 %v7148_v40, %s5771_s25  ;;  %2537 = vrot.lane.b32.xlu0 %v7138_v36, %s5771_s25  ;;  %v2845_v53 = vpack.c.bf16 %v2823_v58, %v2821_v6  ;;  %v2825_v60 = vld [vmem:[%s6201_s12 + $0xa0] sm:$0xff]  ;;  %v2827_v55 = vld [vmem:[%s6201_s12 + $0xb0] sm:$0xff]  ;;  %vm7373_vm9 = vcmp.eq.s32.totalorder %v2639_v24, 0 }
 0x599   : > { %v2847_v19 = vpack.c.bf16 %v2827_v55, %v2825_v60  ;;  %v2829_v45 = vld [vmem:[%s6201_s12 + $0xc0] sm:$0xff]  ;;  %v2831_v12 = vld [vmem:[%s6201_s12 + $0xd0] sm:$0xff]  ;;  %v7276_v2 = vld [vmem:[%s6199_s14 + $0x88] sm:$0xff] }
 0x59a   : > { %5220 = vmatpush3.bf16.msra.mxu1 %v2839_v43  ;;  %v2849_v16 = vpack.c.bf16 %v2831_v12, %v2829_v45  ;;  %v2833_v59 = vld [vmem:[%s6201_s12 + $0xe0] sm:$0xff]  ;;  %v2835_v28 = vld [vmem:[%s6201_s12 + $0xf0] sm:$0xff]  ;;  %v2333_v13 = vld [vmem:[%s6199_s14 + $0xb8] sm:$0xff] }
 0x59b   : > { %5221 = vmatprep.subr.bf16.mxu1 %v2841_v51  ;;  %v7235_v34 = vld [vmem:[%s6199_s14 + $0x70] sm:$0xff]  ;;  %v7238_v9 = vld [vmem:[%s6199_s14 + $0x60] sm:$0xff]  ;;  %v2851_v21 = vpack.c.bf16 %v2835_v28, %v2833_v59  ;;  %v2331_v46 = vld [vmem:[%s6199_s14 + $0xa8] sm:$0xff] }
 0x59c   : > { %2571 = vrot.lane.b32.xlu1 %v7145_v38, %s5771_s25  ;;  %2569 = vrot.lane.b32.xlu0 %v7135_v30, %s5771_s25  ;;  %v7263_v62 = vld [vmem:[%s6199_s14 + $0x90] sm:$0xff]  ;;  %v7266_v0 = vld [vmem:[%s6199_s14 + $0x80] sm:$0xff] }
 0x59d   : > { %v7291_v54 = vld [vmem:[%s6199_s14 + $0xb0] sm:$0xff]  ;;  %v7294_v33 = vld [vmem:[%s6199_s14 + $0xa0] sm:$0xff]  ;;  %v2337_v37 = vld [vmem:[%s6199_s14 + $0xd8] sm:$0xff] }
 0x59e   : > { %5222 = vmatpush3.bf16.msra.mxu1 %v2841_v51  ;;  %v7311_v1 = vld [vmem:[%s6199_s14 + $0xd0] sm:$0xff]  ;;  %v7314_v8 = vld [vmem:[%s6199_s14 + $0xc0] sm:$0xff]  ;;  %v2335_v50 = vld [vmem:[%s6199_s14 + $0xc8] sm:$0xff] }
 0x59f   : > { %5223 = vmatprep.subr.bf16.mxu1 %v2843_v35  ;;  %v7331_v3 = vld [vmem:[%s6199_s14 + $0xf0] sm:$0xff]  ;;  %v7334_v39 = vld [vmem:[%s6199_s14 + $0xe0] sm:$0xff]  ;;  %v2341_v4 = vld [vmem:[%s6199_s14 + $0xf8] sm:$0xff] }
 0x5a0   : > { %2444 = vrot.lane.b32.xlu1 %v7163_v31, %s5770_s1  ;;  %2442 = vrot.lane.b32.xlu0 %v7166_v32, %s5770_s1  ;;  %v2339_v23 = vld [vmem:[%s6199_s14 + $0xe8] sm:$0xff]  ;;  %v2853_v15 = vld [vmem:[#allocation2] sm:$0xff]  ;;  %v2345_v26 = vld [vmem:[%s6185_s13 + $0x18] sm:$0xff] }
 0x5a1   : > { %v2343_v5 = vld [vmem:[%s6185_s13 + $0x8] sm:$0xff]  ;;  %v2342_v44 = vld [vmem:[%s6185_s13] sm:$0xff]  ;;  %5201 = vmatprep.mubr.bf16.mxu0 %v2853_v15  ;;  %v2344_v43 = vld [vmem:[%s6185_s13 + $0x10] sm:$0xff] }
 0x5a2   : > { %5224 = vmatpush3.bf16.msra.mxu1 %v2843_v35  ;;  %v2407_v6 = vmul.f32 %v2343_v5, %v7135_v30  ;;  %v2406_v58 = vmul.f32 %v2342_v44, %v7138_v36  ;;  %v2408_v60 = vmul.f32 %v2344_v43, %v7148_v40  ;;  %v2377_v55 = vld [vmem:[%s6190_s10 + $0x18] sm:$0xff]  ;;  %v2375_v36 = vld [vmem:[%s6190_s10 + $0x8] sm:$0xff] }
 0x5a3   : > { %5225 = vmatprep.subr.bf16.mxu1 %v2845_v53  ;;  %v2403_v61 = vld [vmem:[%s6190_s10 + $0xe8] sm:$0xff]  ;;  %v2860_v30 = vld [vmem:[#allocation2 + $0x38] sm:$0xff] }
 0x5a4   : > { %2476 = vrot.lane.b32.xlu1 %v7173_v27, %s5770_s1  ;;  %2474 = vrot.lane.b32.xlu0 %v7176_v22, %s5770_s1 }
 0x5a6   : > { %5226 = vmatpush3.bf16.msra.mxu1 %v2845_v53  ;;  %v2409_v53 = vmul.f32 %v2345_v26, %v7145_v38  ;;  %v2376_v38 = vld [vmem:[%s6190_s10 + $0x10] sm:$0xff] }
 0x5a7   : > { %5227 = vmatprep.subr.bf16.mxu1 %v2847_v19 }
 0x5a8   : > { %2543 = vrot.lane.b32.xlu1 %v7163_v31, %s5771_s25  ;;  %2541 = vrot.lane.b32.xlu0 %v7166_v32, %s5771_s25 }
 0x5aa   : > { %5228 = vmatpush3.bf16.msra.mxu1 %v2847_v19  ;;  %v2867_v19 = vld [vmem:[#allocation2 + $0x70] sm:$0xff] }
 0x5ab   : > { %5229 = vmatprep.subr.bf16.mxu1 %v2849_v16 }
 0x5ac   : > { %2575 = vrot.lane.b32.xlu1 %v7173_v27, %s5771_s25  ;;  %2573 = vrot.lane.b32.xlu0 %v7176_v22, %s5771_s25 }
 0x5ae   : > { %5230 = vmatpush3.bf16.msra.mxu1 %v2849_v16 }
 0x5af   : > { %5231 = vmatprep.subr.bf16.mxu1 %v2851_v21 }
 0x5b0   : > { %2448 = vrot.lane.b32.xlu1 %v7199_v49, %s5770_s1  ;;  %2446 = vrot.lane.b32.xlu0 %v7202_v42, %s5770_s1 }
 0x5b2   : > { %5232 = vmatpush3.bf16.msra.mxu1 %v2851_v21 }
 0x5b4   : > { %2480 = vrot.lane.b32.xlu1 %v7211_v18, %s5770_s1  ;;  %2478 = vrot.lane.b32.xlu0 %v7214_v17, %s5770_s1 }
 0x5b8   : > { %2547 = vrot.lane.b32.xlu1 %v7199_v49, %s5771_s25  ;;  %2545 = vrot.lane.b32.xlu0 %v7202_v42, %s5771_s25 }
 0x5bc   : > { %2579 = vrot.lane.b32.xlu1 %v7211_v18, %s5771_s25  ;;  %2577 = vrot.lane.b32.xlu0 %v7214_v17, %s5771_s25 }
 0x5c0   : > { %2452 = vrot.lane.b32.xlu1 %v7235_v34, %s5770_s1  ;;  %2450 = vrot.lane.b32.xlu0 %v7238_v9, %s5770_s1 }
 0x5c4   : > { %2484 = vrot.lane.b32.xlu1 %v7245_v29, %s5770_s1  ;;  %2482 = vrot.lane.b32.xlu0 %v7248_v63, %s5770_s1 }
 0x5c8   : > { %2551 = vrot.lane.b32.xlu1 %v7235_v34, %s5771_s25  ;;  %2549 = vrot.lane.b32.xlu0 %v7238_v9, %s5771_s25 }
 0x5cc   : > { %2583 = vrot.lane.b32.xlu1 %v7245_v29, %s5771_s25  ;;  %2581 = vrot.lane.b32.xlu0 %v7248_v63, %s5771_s25 }
 0x5d0   : > { %2456 = vrot.lane.b32.xlu1 %v7263_v62, %s5770_s1  ;;  %2454 = vrot.lane.b32.xlu0 %v7266_v0, %s5770_s1 }
 0x5d4   : > { %2488 = vrot.lane.b32.xlu1 %v7273_v57, %s5770_s1  ;;  %2486 = vrot.lane.b32.xlu0 %v7276_v2, %s5770_s1 }
 0x5d8   : > { %2555 = vrot.lane.b32.xlu1 %v7263_v62, %s5771_s25  ;;  %2553 = vrot.lane.b32.xlu0 %v7266_v0, %s5771_s25 }
 0x5dc   : > { %2587 = vrot.lane.b32.xlu1 %v7273_v57, %s5771_s25  ;;  %2585 = vrot.lane.b32.xlu0 %v7276_v2, %s5771_s25 }
 0x5e0   : > { %2460 = vrot.lane.b32.xlu1 %v7291_v54, %s5770_s1  ;;  %2458 = vrot.lane.b32.xlu0 %v7294_v33, %s5770_s1 }
 0x5e4   : > { %2492 = vrot.lane.b32.xlu1 %v2333_v13, %s5770_s1  ;;  %2490 = vrot.lane.b32.xlu0 %v2331_v46, %s5770_s1 }
 0x5e8   : > { %2559 = vrot.lane.b32.xlu1 %v7291_v54, %s5771_s25  ;;  %2557 = vrot.lane.b32.xlu0 %v7294_v33, %s5771_s25 }
 0x5ec   : > { %2591 = vrot.lane.b32.xlu1 %v2333_v13, %s5771_s25  ;;  %2589 = vrot.lane.b32.xlu0 %v2331_v46, %s5771_s25  ;;  %v2374_v13 = vld [vmem:[%s6190_s10] sm:$0xff] }
 0x5f0   : > { %2464 = vrot.lane.b32.xlu1 %v7311_v1, %s5770_s1  ;;  %2462 = vrot.lane.b32.xlu0 %v7314_v8, %s5770_s1 }
 0x5f4   : > { %2496 = vrot.lane.b32.xlu1 %v2337_v37, %s5770_s1  ;;  %2494 = vrot.lane.b32.xlu0 %v2335_v50, %s5770_s1 }
 0x5f8   : > { %2563 = vrot.lane.b32.xlu1 %v7311_v1, %s5771_s25  ;;  %2561 = vrot.lane.b32.xlu0 %v7314_v8, %s5771_s25 }
 0x5fc   : > { %2595 = vrot.lane.b32.xlu1 %v2337_v37, %s5771_s25  ;;  %2593 = vrot.lane.b32.xlu0 %v2335_v50, %s5771_s25 }
 0x600   : > { %2468 = vrot.lane.b32.xlu1 %v7331_v3, %s5770_s1  ;;  %2466 = vrot.lane.b32.xlu0 %v7334_v39, %s5770_s1 }
 0x602   : > { %v2471_v7 = vpop.permute.xlu1 %2470  ;;  %v2439_v20 = vpop.permute.xlu0 %2438 }
 0x603   : > { %v2505_v51 = vsel %vm2504_vm7, %v2439_v20, %v2471_v7  ;;  %v2521_v10 = vsel %vm2504_vm7, %v2471_v7, %v2439_v20 }
 0x604   : > { %2500 = vrot.lane.b32.xlu1 %v2341_v4, %s5770_s1  ;;  %2498 = vrot.lane.b32.xlu0 %v2339_v23, %s5770_s1  ;;  %v2661_v45 = vsub.f32 0.0, %v2505_v51  ;;  %v2662_v12 = vsub.f32 0.0, %v2521_v10  ;;  %v2348_v10 = vld [vmem:[%s6185_s13 + $0x30] sm:$0xff] }
 0x606   : > { %v2473_v11 = vpop.permute.xlu1 %2472  ;;  %v2441_v14 = vpop.permute.xlu0 %2440 }
 0x607   : > { %v2506_v47 = vsel %vm2504_vm7, %v2441_v14, %v2473_v11  ;;  %v2522_v35 = vsel %vm2504_vm7, %v2473_v11, %v2441_v14 }
 0x608   : > { %2567 = vrot.lane.b32.xlu1 %v7331_v3, %s5771_s25  ;;  %2565 = vrot.lane.b32.xlu0 %v7334_v39, %s5771_s25  ;;  %v2663_v16 = vsub.f32 0.0, %v2506_v47  ;;  %v2664_v59 = vsub.f32 0.0, %v2522_v35  ;;  %v2346_v47 = vld [vmem:[%s6185_s13 + $0x20] sm:$0xff]  ;;  %v2349_v35 = vld [vmem:[%s6185_s13 + $0x38] sm:$0xff] }
 0x60a   : > { %v2540_v52 = vpop.permute.xlu1 %2539  ;;  %v2538_v48 = vpop.permute.xlu0 %2537 }
 0x60c   : > { %2599 = vrot.lane.b32.xlu1 %v2341_v4, %s5771_s25  ;;  %2597 = vrot.lane.b32.xlu0 %v2339_v23, %s5771_s25 }
 0x60e   : > { %v2572_v28 = vpop.permute.xlu1 %2571  ;;  %v2570_v21 = vpop.permute.xlu0 %2569 }
 0x60f   : > { %v2603_v40 = vsel %vm2601_vm8, %v2540_v52, %v2572_v28  ;;  %v2619_v46 = vsel %vm2601_vm8, %v2572_v28, %v2540_v52  ;;  %v2602_v37 = vsel %vm2601_vm8, %v2538_v48, %v2570_v21  ;;  %v2618_v50 = vsel %vm2601_vm8, %v2570_v21, %v2538_v48  ;;  %v2380_v21 = vld [vmem:[%s6190_s10 + $0x30] sm:$0xff] }
 0x610   : > { %v2695_v41 = vsel %vm7373_vm9, %v2663_v16, %v2619_v46  ;;  %v2696_v4 = vsel %vm7377_vm10, %v2664_v59, %v2603_v40  ;;  %v2693_v23 = vsel %vm7373_vm9, %v2661_v45, %v2618_v50  ;;  %v2694_v7 = vsel %vm7377_vm10, %v2662_v12, %v2602_v37 }
 0x611   : > { %v2728_v20 = vmul.f32 %v2696_v4, %v2377_v55  ;;  %v2726_v56 = vmul.f32 %v2694_v7, %v2375_v36  ;;  %v2725_v11 = vmul.f32 %v2693_v23, %v2374_v13  ;;  %v2727_v14 = vmul.f32 %v2695_v41, %v2376_v38  ;;  %v2347_v55 = vld [vmem:[%s6185_s13 + $0x28] sm:$0xff]  ;;  %v2381_v13 = vld [vmem:[%s6190_s10 + $0x38] sm:$0xff]  ;;  %v2378_v41 = vld [vmem:[%s6190_s10 + $0x20] sm:$0xff] }
 0x612   : > { %v2445_v15 = vpop.permute.xlu1 %2444  ;;  %v2443_v5 = vpop.permute.xlu0 %2442  ;;  %v2412_v12 = vmul.f32 %v2348_v10, %v7163_v31  ;;  %v2410_v16 = vmul.f32 %v2346_v47, %v7166_v32  ;;  %v2413_v59 = vmul.f32 %v2349_v35, %v7173_v27  ;;  %v2411_v28 = vmul.f32 %v2347_v55, %v7176_v22  ;;  %v2379_v4 = vld [vmem:[%s6190_s10 + $0x28] sm:$0xff] }
 0x613   : > { %v2757_v44 = vadd.f32 %v2725_v11, %v2406_v58  ;;  %v2759_v24 = vadd.f32 %v2727_v14, %v2408_v60  ;;  %v2758_v25 = vadd.f32 %v2726_v56, %v2407_v6  ;;  %v2760_v26 = vadd.f32 %v2728_v20, %v2409_v53 }
 0x615   : > { %v2789_v43 = vpack.c.bf16 %v2759_v24, %v2757_v44  ;;  %v7400_v52 = vpack.c.bf16 %v2760_v26, %v2758_v25 }
 0x616   : > { %v2477_v48 = vpop.permute.xlu1 %2476  ;;  %v2475_v51 = vpop.permute.xlu0 %2474 }
 0x617   : > { %5185 = vmatprep.subr.bf16.mxu0 %v2789_v43  ;;  %5249 = vmatprep.subr.bf16.mxu1 %v7400_v52  ;;  %v2508_v6 = vsel %vm2504_vm7, %v2445_v15, %v2477_v48  ;;  %v2524_v53 = vsel %vm2504_vm7, %v2477_v48, %v2445_v15  ;;  %v2507_v60 = vsel %vm2504_vm7, %v2443_v5, %v2475_v51 }
 0x618   : > { %5186 = vmatpush3.bf16.xpose.msra.mxu0 %v2789_v43  ;;  %v2523_v45 = vsel %vm2504_vm7, %v2475_v51, %v2443_v5  ;;  %v2667_v38 = vsub.f32 0.0, %v2508_v6  ;;  %v2668_v40 = vsub.f32 0.0, %v2524_v53  ;;  %v2665_v46 = vsub.f32 0.0, %v2507_v60  ;;  %v2353_v6 = vld [vmem:[%s6185_s13 + $0x58] sm:$0xff]  ;;  %v2351_v53 = vld [vmem:[%s6185_s13 + $0x48] sm:$0xff] }
 0x619   : > { %v2666_v37 = vsub.f32 0.0, %v2523_v45 }
 0x61a   : > { %v2544_v36 = vpop.permute.xlu1 %2543  ;;  %v2542_v58 = vpop.permute.xlu0 %2541 }
 0x61e   : > { %v2576_v50 = vpop.permute.xlu1 %2575  ;;  %v2574_v23 = vpop.permute.xlu0 %2573 }
 0x61f   : > { %v2605_v7 = vsel %vm2601_vm8, %v2544_v36, %v2576_v50  ;;  %v2621_v31 = vsel %vm2601_vm8, %v2576_v50, %v2544_v36  ;;  %v2604_v32 = vsel %vm2601_vm8, %v2542_v58, %v2574_v23  ;;  %v2620_v27 = vsel %vm2601_vm8, %v2574_v23, %v2542_v58  ;;  %v2352_v36 = vld [vmem:[%s6185_s13 + $0x50] sm:$0xff]  ;;  %v2350_v58 = vld [vmem:[%s6185_s13 + $0x40] sm:$0xff] }
 0x620   : > { %v2699_v22 = vsel %vm7373_vm9, %v2667_v38, %v2621_v31  ;;  %v2700_v20 = vsel %vm7377_vm10, %v2668_v40, %v2605_v7  ;;  %v2697_v56 = vsel %vm7373_vm9, %v2665_v46, %v2620_v27  ;;  %v2698_v11 = vsel %vm7377_vm10, %v2666_v37, %v2604_v32  ;;  %v2384_v46 = vld [vmem:[%s6190_s10 + $0x50] sm:$0xff]  ;;  %v2385_v37 = vld [vmem:[%s6190_s10 + $0x58] sm:$0xff]  ;;  %v2382_v31 = vld [vmem:[%s6190_s10 + $0x40] sm:$0xff] }
 0x621   : > { %v2731_v14 = vmul.f32 %v2699_v22, %v2380_v21  ;;  %v2732_v15 = vmul.f32 %v2700_v20, %v2381_v13  ;;  %v2729_v5 = vmul.f32 %v2697_v56, %v2378_v41  ;;  %v2730_v44 = vmul.f32 %v2698_v11, %v2379_v4  ;;  %v2383_v32 = vld [vmem:[%s6190_s10 + $0x48] sm:$0xff] }
 0x622   : > { %v2449_v24 = vpop.permute.xlu1 %2448  ;;  %v2447_v25 = vpop.permute.xlu0 %2446  ;;  %v2416_v21 = vmul.f32 %v2352_v36, %v7199_v49  ;;  %v2414_v13 = vmul.f32 %v2350_v58, %v7202_v42  ;;  %v2417_v38 = vmul.f32 %v2353_v6, %v7211_v18  ;;  %v2415_v40 = vmul.f32 %v2351_v53, %v7214_v17  ;;  %v2356_v58 = vld [vmem:[%s6185_s13 + $0x70] sm:$0xff]  ;;  %v2354_v6 = vld [vmem:[%s6185_s13 + $0x60] sm:$0xff]  ;;  %v2357_v53 = vld [vmem:[%s6185_s13 + $0x78] sm:$0xff] }
 0x623   : > { %v2761_v26 = vadd.f32 %v2729_v5, %v2410_v16  ;;  %v2763_v43 = vadd.f32 %v2731_v14, %v2412_v12  ;;  %v2762_v48 = vadd.f32 %v2730_v44, %v2411_v28  ;;  %v2764_v51 = vadd.f32 %v2732_v15, %v2413_v59 }
 0x625   : > { %v2791_v10 = vpack.c.bf16 %v2763_v43, %v2761_v26  ;;  %v7439_v47 = vpack.c.bf16 %v2764_v51, %v2762_v48 }
 0x626   : > { %v2481_v35 = vpop.permute.xlu1 %2480  ;;  %v2479_v55 = vpop.permute.xlu0 %2478 }
 0x627   : > { %5187 = vmatprep.subr.bf16.mxu0 %v2791_v10  ;;  %v2510_v12 = vsel %vm2504_vm7, %v2449_v24, %v2481_v35  ;;  %v2526_v16 = vsel %vm2504_vm7, %v2481_v35, %v2449_v24  ;;  %v2509_v59 = vsel %vm2504_vm7, %v2447_v25, %v2479_v55  ;;  %v2525_v28 = vsel %vm2504_vm7, %v2479_v55, %v2447_v25 }
 0x628   : > { %5188 = vmatpush3.bf16.xpose.msra.mxu0 %v2791_v10  ;;  %v2671_v50 = vsub.f32 0.0, %v2510_v12  ;;  %v2672_v41 = vsub.f32 0.0, %v2526_v16  ;;  %v2669_v4 = vsub.f32 0.0, %v2509_v59  ;;  %v2670_v23 = vsub.f32 0.0, %v2525_v28 }
 0x62a   : > { %v2548_v60 = vpop.permute.xlu1 %2547  ;;  %v2546_v45 = vpop.permute.xlu0 %2545 }
 0x62e   : > { %v2580_v7 = vpop.permute.xlu1 %2579  ;;  %v2578_v27 = vpop.permute.xlu0 %2577 }
 0x62f   : > { %v2607_v22 = vsel %vm2601_vm8, %v2548_v60, %v2580_v7  ;;  %v2623_v49 = vsel %vm2601_vm8, %v2580_v7, %v2548_v60  ;;  %v2606_v42 = vsel %vm2601_vm8, %v2546_v45, %v2578_v27  ;;  %v2622_v18 = vsel %vm2601_vm8, %v2578_v27, %v2546_v45  ;;  %v2355_v60 = vld [vmem:[%s6185_s13 + $0x68] sm:$0xff] }
 0x630   : > { %v2703_v17 = vsel %vm7373_vm9, %v2671_v50, %v2623_v49  ;;  %v2704_v20 = vsel %vm7377_vm10, %v2672_v41, %v2607_v22  ;;  %v2701_v56 = vsel %vm7373_vm9, %v2669_v4, %v2622_v18  ;;  %v2702_v11 = vsel %vm7377_vm10, %v2670_v23, %v2606_v42  ;;  %v2389_v50 = vld [vmem:[%s6190_s10 + $0x78] sm:$0xff]  ;;  %v2387_v27 = vld [vmem:[%s6190_s10 + $0x68] sm:$0xff] }
 0x631   : > { %v2735_v14 = vmul.f32 %v2703_v17, %v2384_v46  ;;  %v2736_v15 = vmul.f32 %v2704_v20, %v2385_v37  ;;  %v2733_v5 = vmul.f32 %v2701_v56, %v2382_v31  ;;  %v2734_v44 = vmul.f32 %v2702_v11, %v2383_v32  ;;  %v2388_v37 = vld [vmem:[%s6190_s10 + $0x70] sm:$0xff]  ;;  %v2386_v32 = vld [vmem:[%s6190_s10 + $0x60] sm:$0xff] }
 0x632   : > { %v2453_v24 = vpop.permute.xlu1 %2452  ;;  %v2451_v25 = vpop.permute.xlu0 %2450  ;;  %v2419_v46 = vmul.f32 %v2355_v60, %v7248_v63 }
 0x633   : > { %v2765_v26 = vadd.f32 %v2733_v5, %v2414_v13  ;;  %v2767_v43 = vadd.f32 %v2735_v14, %v2416_v21  ;;  %v2766_v48 = vadd.f32 %v2734_v44, %v2415_v40  ;;  %v2768_v51 = vadd.f32 %v2736_v15, %v2417_v38 }
 0x634   : > { %v2420_v13 = vmul.f32 %v2356_v58, %v7235_v34  ;;  %v2418_v38 = vmul.f32 %v2354_v6, %v7238_v9  ;;  %v2421_v40 = vmul.f32 %v2357_v53, %v7245_v29  ;;  %v2361_v58 = vld [vmem:[%s6185_s13 + $0x98] sm:$0xff]  ;;  %v2359_v6 = vld [vmem:[%s6185_s13 + $0x88] sm:$0xff] }
 0x635   : > { %v2793_v10 = vpack.c.bf16 %v2767_v43, %v2765_v26  ;;  %v7477_v35 = vpack.c.bf16 %v2768_v51, %v2766_v48 }
 0x636   : > { %v2485_v55 = vpop.permute.xlu1 %2484  ;;  %v2483_v36 = vpop.permute.xlu0 %2482 }
 0x637   : > { %5189 = vmatprep.subr.bf16.mxu0 %v2793_v10  ;;  %v2512_v16 = vsel %vm2504_vm7, %v2453_v24, %v2485_v55  ;;  %v2528_v59 = vsel %vm2504_vm7, %v2485_v55, %v2453_v24  ;;  %v2511_v28 = vsel %vm2504_vm7, %v2451_v25, %v2483_v36  ;;  %v2527_v21 = vsel %vm2504_vm7, %v2483_v36, %v2451_v25  ;;  %v2360_v55 = vld [vmem:[%s6185_s13 + $0x90] sm:$0xff]  ;;  %v2358_v36 = vld [vmem:[%s6185_s13 + $0x80] sm:$0xff] }
 0x638   : > { %5190 = vmatpush3.bf16.xpose.msra.mxu0 %v2793_v10  ;;  %v2675_v41 = vsub.f32 0.0, %v2512_v16  ;;  %v2676_v4 = vsub.f32 0.0, %v2528_v59  ;;  %v2673_v23 = vsub.f32 0.0, %v2511_v28  ;;  %v2674_v7 = vsub.f32 0.0, %v2527_v21 }
 0x639   : > { %v2424_v28 = vmul.f32 %v2360_v55, %v7263_v62  ;;  %v2422_v21 = vmul.f32 %v2358_v36, %v7266_v0  ;;  %v2362_v55 = vld [vmem:[%s6185_s13 + $0xa0] sm:$0xff] }
 0x63a   : > { %v2552_v45 = vpop.permute.xlu1 %2551  ;;  %v2550_v12 = vpop.permute.xlu0 %2549 }
 0x63e   : > { %v2584_v31 = vpop.permute.xlu1 %2583  ;;  %v2582_v22 = vpop.permute.xlu0 %2581 }
 0x63f   : > { %v2609_v49 = vsel %vm2601_vm8, %v2552_v45, %v2584_v31  ;;  %v2625_v34 = vsel %vm2601_vm8, %v2584_v31, %v2552_v45  ;;  %v2608_v9 = vsel %vm2601_vm8, %v2550_v12, %v2582_v22  ;;  %v2624_v29 = vsel %vm2601_vm8, %v2582_v22, %v2550_v12  ;;  %v2391_v31 = vld [vmem:[%s6190_s10 + $0x88] sm:$0xff] }
 0x640   : > { %v2707_v63 = vsel %vm7373_vm9, %v2675_v41, %v2625_v34  ;;  %v2708_v42 = vsel %vm7377_vm10, %v2676_v4, %v2609_v49  ;;  %v2705_v18 = vsel %vm7373_vm9, %v2673_v23, %v2624_v29  ;;  %v2706_v17 = vsel %vm7377_vm10, %v2674_v7, %v2608_v9  ;;  %v2390_v7 = vld [vmem:[%s6190_s10 + $0x80] sm:$0xff] }
 0x641   : > { %v2739_v20 = vmul.f32 %v2707_v63, %v2388_v37  ;;  %v2740_v56 = vmul.f32 %v2708_v42, %v2389_v50  ;;  %v2737_v11 = vmul.f32 %v2705_v18, %v2386_v32  ;;  %v2738_v14 = vmul.f32 %v2706_v17, %v2387_v27 }
 0x642   : > { %v2457_v15 = vpop.permute.xlu1 %2456  ;;  %v2455_v5 = vpop.permute.xlu0 %2454 }
 0x643   : > { %v2769_v44 = vadd.f32 %v2737_v11, %v2418_v38  ;;  %v2771_v24 = vadd.f32 %v2739_v20, %v2420_v13  ;;  %v2770_v25 = vadd.f32 %v2738_v14, %v2419_v46  ;;  %v2772_v26 = vadd.f32 %v2740_v56, %v2421_v40  ;;  %v2392_v40 = vld [vmem:[%s6190_s10 + $0x90] sm:$0xff]  ;;  %v2393_v46 = vld [vmem:[%s6190_s10 + $0x98] sm:$0xff] }
 0x644   : > { %v2425_v13 = vmul.f32 %v2361_v58, %v7273_v57  ;;  %v2423_v38 = vmul.f32 %v2359_v6, %v7276_v2  ;;  %v2396_v6 = vld [vmem:[%s6190_s10 + $0xb0] sm:$0xff] }
 0x645   : > { %v2795_v43 = vpack.c.bf16 %v2771_v24, %v2769_v44  ;;  %v7515_v48 = vpack.c.bf16 %v2772_v26, %v2770_v25 }
 0x646   : > { %v2489_v51 = vpop.permute.xlu1 %2488  ;;  %v2487_v10 = vpop.permute.xlu0 %2486 }
 0x647   : > { %5191 = vmatprep.subr.bf16.mxu0 %v2795_v43  ;;  %v2514_v45 = vsel %vm2504_vm7, %v2457_v15, %v2489_v51  ;;  %v2530_v12 = vsel %vm2504_vm7, %v2489_v51, %v2457_v15  ;;  %v2513_v16 = vsel %vm2504_vm7, %v2455_v5, %v2487_v10  ;;  %v2529_v59 = vsel %vm2504_vm7, %v2487_v10, %v2455_v5  ;;  %v2364_v10 = vld [vmem:[%s6185_s13 + $0xb0] sm:$0xff] }
 0x648   : > { %5192 = vmatpush3.bf16.xpose.msra.mxu0 %v2795_v43  ;;  %v2679_v37 = vsub.f32 0.0, %v2514_v45  ;;  %v2680_v50 = vsub.f32 0.0, %v2530_v12  ;;  %v2677_v41 = vsub.f32 0.0, %v2513_v16  ;;  %v2678_v4 = vsub.f32 0.0, %v2529_v59 }
 0x649   : > { %v2428_v12 = vmul.f32 %v2364_v10, %v7291_v54  ;;  %v2426_v16 = vmul.f32 %v2362_v55, %v7294_v33 }
 0x64a   : > { %v2556_v53 = vpop.permute.xlu1 %2555  ;;  %v2554_v60 = vpop.permute.xlu0 %2553 }
 0x64e   : > { %v2588_v23 = vpop.permute.xlu1 %2587  ;;  %v2586_v32 = vpop.permute.xlu0 %2585 }
 0x64f   : > { %v2611_v27 = vsel %vm2601_vm8, %v2556_v53, %v2588_v23  ;;  %v2627_v62 = vsel %vm2601_vm8, %v2588_v23, %v2556_v53  ;;  %v2610_v0 = vsel %vm2601_vm8, %v2554_v60, %v2586_v32  ;;  %v2626_v57 = vsel %vm2601_vm8, %v2586_v32, %v2554_v60  ;;  %v2394_v60 = vld [vmem:[%s6190_s10 + $0xa0] sm:$0xff] }
 0x650   : > { %v2711_v2 = vsel %vm7373_vm9, %v2679_v37, %v2627_v62  ;;  %v2712_v22 = vsel %vm7377_vm10, %v2680_v50, %v2611_v27  ;;  %v2709_v49 = vsel %vm7373_vm9, %v2677_v41, %v2626_v57  ;;  %v2710_v34 = vsel %vm7377_vm10, %v2678_v4, %v2610_v0  ;;  %v2368_v27 = vld [vmem:[%s6185_s13 + $0xd0] sm:$0xff]  ;;  %v2366_v62 = vld [vmem:[%s6185_s13 + $0xc0] sm:$0xff] }
 0x651   : > { %v2743_v9 = vmul.f32 %v2711_v2, %v2392_v40  ;;  %v2744_v29 = vmul.f32 %v2712_v22, %v2393_v46  ;;  %v2741_v63 = vmul.f32 %v2709_v49, %v2390_v7  ;;  %v2742_v42 = vmul.f32 %v2710_v34, %v2391_v31  ;;  %v2400_v2 = vld [vmem:[%s6190_s10 + $0xd0] sm:$0xff]  ;;  %v2398_v49 = vld [vmem:[%s6190_s10 + $0xc0] sm:$0xff] }
 0x652   : > { %v7553_v18 = vpop.permute.xlu1 %2460  ;;  %v7555_v17 = vpop.permute.xlu0 %2458 }
 0x653   : > { %v2773_v20 = vadd.f32 %v2741_v63, %v2422_v21  ;;  %v2775_v56 = vadd.f32 %v2743_v9, %v2424_v28  ;;  %v2774_v11 = vadd.f32 %v2742_v42, %v2423_v38  ;;  %v2776_v14 = vadd.f32 %v2744_v29, %v2425_v13 }
 0x654   : > { %v2432_v9 = vmul.f32 %v2368_v27, %v7311_v1  ;;  %v2430_v29 = vmul.f32 %v2366_v62, %v7314_v8 }
 0x655   : > { %v2797_v15 = vpack.c.bf16 %v2775_v56, %v2773_v20  ;;  %v7557_v5 = vpack.c.bf16 %v2776_v14, %v2774_v11 }
 0x656   : > { %v7559_v44 = vpop.permute.xlu1 %2492  ;;  %v7561_v24 = vpop.permute.xlu0 %2490 }
 0x657   : > { %5193 = vmatprep.subr.bf16.mxu0 %v2797_v15  ;;  %v2516_v43 = vsel %vm2504_vm7, %v7553_v18, %v7559_v44  ;;  %v2515_v51 = vsel %vm2504_vm7, %v7555_v17, %v7561_v24 }
 0x658   : > { %5194 = vmatpush3.bf16.xpose.msra.mxu0 %v2797_v15  ;;  %v2683_v36 = vsub.f32 0.0, %v2516_v43  ;;  %v2681_v58 = vsub.f32 0.0, %v2515_v51 }
 0x65a   : > { %v7563_v25 = vpop.permute.xlu1 %2559  ;;  %v7565_v26 = vpop.permute.xlu0 %2557 }
 0x65e   : > { %v7578_v53 = vpop.permute.xlu1 %2591  ;;  %v7581_v45 = vpop.permute.xlu0 %2589 }
 0x65f   : > { %v2629_v59 = vsel %vm2601_vm8, %v7578_v53, %v7563_v25  ;;  %v2628_v28 = vsel %vm2601_vm8, %v7581_v45, %v7565_v26 }
 0x660   : > { %v2715_v21 = vsel %vm7373_vm9, %v2683_v36, %v2629_v59  ;;  %v2713_v13 = vsel %vm7373_vm9, %v2681_v58, %v2628_v28 }
 0x661   : > { %v2747_v54 = vmul.f32 %v2715_v21, %v2396_v6  ;;  %v2745_v33 = vmul.f32 %v2713_v13, %v2394_v60  ;;  %v2404_v21 = vld [vmem:[%s6190_s10 + $0xf0] sm:$0xff] }
 0x662   : > { %v7597_v38 = vpop.permute.xlu1 %2464  ;;  %v7599_v40 = vpop.permute.xlu0 %2462 }
 0x663   : > { %v2777_v46 = vadd.f32 %v2745_v33, %v2426_v16  ;;  %v2779_v37 = vadd.f32 %v2747_v54, %v2428_v12  ;;  %v2372_v12 = vld [vmem:[%s6185_s13 + $0xf0] sm:$0xff]  ;;  %v2370_v16 = vld [vmem:[%s6185_s13 + $0xe0] sm:$0xff] }
 0x664   : > { %v2402_v54 = vld [vmem:[%s6190_s10 + $0xe0] sm:$0xff] }
 0x665   : > { %v2799_v50 = vpack.c.bf16 %v2779_v37, %v2777_v46  ;;  %v2436_v46 = vmul.f32 %v2372_v12, %v7331_v3  ;;  %v2434_v37 = vmul.f32 %v2370_v16, %v7334_v39 }
 0x666   : > { %v7601_v41 = vpop.permute.xlu1 %2496  ;;  %v7603_v4 = vpop.permute.xlu0 %2494 }
 0x667   : > { %5195 = vmatprep.subr.bf16.mxu0 %v2799_v50  ;;  %v2518_v31 = vsel %vm2504_vm7, %v7597_v38, %v7601_v41  ;;  %v2517_v32 = vsel %vm2504_vm7, %v7599_v40, %v7603_v4 }
 0x668   : > { %5196 = vmatpush3.bf16.xpose.msra.mxu0 %v2799_v50  ;;  %v2687_v0 = vsub.f32 0.0, %v2518_v31  ;;  %v2685_v57 = vsub.f32 0.0, %v2517_v32 }
 0x66a   : > { %v7605_v23 = vpop.permute.xlu1 %2563  ;;  %v7607_v7 = vpop.permute.xlu0 %2561 }
 0x66e   : > { %v7620_v22 = vpop.permute.xlu1 %2595  ;;  %v7623_v34 = vpop.permute.xlu0 %2593 }
 0x66f   : > { %v2631_v63 = vsel %vm2601_vm8, %v7620_v22, %v7605_v23  ;;  %v2630_v42 = vsel %vm2601_vm8, %v7623_v34, %v7607_v7 }
 0x670   : > { %v2719_v20 = vsel %vm7373_vm9, %v2687_v0, %v2631_v63  ;;  %v2717_v56 = vsel %vm7373_vm9, %v2685_v57, %v2630_v42  ;;  %v2863_v63 = vld [vmem:[#allocation2 + $0x50] sm:$0xff]  ;;  %v2865_v42 = vld [vmem:[#allocation2 + $0x60] sm:$0xff] }
 0x671   : > { %v2751_v1 = vmul.f32 %v2719_v20, %v2400_v2  ;;  %v2749_v8 = vmul.f32 %v2717_v56, %v2398_v49  ;;  %v2855_v2 = vld [vmem:[#allocation2 + $0x10] sm:$0xff]  ;;  %v2857_v49 = vld [vmem:[#allocation2 + $0x20] sm:$0xff] }
 0x672   : > { %v7639_v11 = vpop.permute.xlu1 %2468  ;;  %v7641_v14 = vpop.permute.xlu0 %2466 }
 0x673   : > { %v2781_v15 = vadd.f32 %v2749_v8, %v2430_v29  ;;  %v2783_v43 = vadd.f32 %v2751_v1, %v2432_v9  ;;  %v2859_v9 = vld [vmem:[#allocation2 + $0x30] sm:$0xff]  ;;  %v2861_v29 = vld [vmem:[#allocation2 + $0x40] sm:$0xff] }
 0x675   : > { %v2801_v51 = vpack.c.bf16 %v2783_v43, %v2781_v15 }
 0x676   : > { %v7643_v10 = vpop.permute.xlu1 %2500  ;;  %v7645_v55 = vpop.permute.xlu0 %2498 }
 0x677   : > { %5197 = vmatprep.subr.bf16.mxu0 %v2801_v51  ;;  %v2520_v6 = vsel %vm2504_vm7, %v7639_v11, %v7643_v10  ;;  %v2519_v60 = vsel %vm2504_vm7, %v7641_v14, %v7645_v55 }
 0x678   : > { %5198 = vmatpush3.bf16.xpose.msra.mxu0 %v2801_v51  ;;  %v2691_v59 = vsub.f32 0.0, %v2520_v6  ;;  %v2689_v28 = vsub.f32 0.0, %v2519_v60 }
 0x67a   : > { %v7647_v36 = vpop.permute.xlu1 %2567  ;;  %v7649_v58 = vpop.permute.xlu0 %2565 }
 0x67e   : > { %v7662_v13 = vpop.permute.xlu1 %2599  ;;  %v7665_v33 = vpop.permute.xlu0 %2597 }
 0x67f   : > { %v2633_v50 = vsel %vm2601_vm8, %v7662_v13, %v7647_v36  ;;  %v2632_v31 = vsel %vm2601_vm8, %v7665_v33, %v7649_v58 }
 0x680   : > { %v2723_v32 = vsel %vm7373_vm9, %v2691_v59, %v2633_v50  ;;  %v2721_v27 = vsel %vm7373_vm9, %v2689_v28, %v2632_v31  ;;  %v5772_v59 = vmov 0   ;;  %v7729_v50 = vld [vmem:[#allocation3] sm:$0xff] }
 0x681   : > { %v2755_v62 = vmul.f32 %v2723_v32, %v2404_v21  ;;  %v2753_v3 = vmul.f32 %v2721_v27, %v2402_v54  ;;  %5478 = vset.pattern.permute.xlu1 %v5772_v59  ;;  %5479 = vset.pattern.permute.xlu0 %v5772_v59  ;;  %v7731_v32 = vld [vmem:[#allocation3 + $0x8] sm:$0xff] }
 0x683   : > { %v2785_v0 = vadd.f32 %v2753_v3, %v2434_v37  ;;  %v2787_v39 = vadd.f32 %v2755_v62, %v2436_v46  ;;  %v7736_v3 = vld [vmem:[#allocation3 + $0x10] sm:$0xff] }
 0x684   : > { %8824 = vst [vmem:[#allocation20_spill] sm:$0xff] %v7736_v3 }
 0x685   : > { %v2803_v57 = vpack.c.bf16 %v2787_v39, %v2785_v0 }
 0x687   : > { %5199 = vmatprep.subr.bf16.mxu0 %v2803_v57 }
 0x688   : > { %5200 = vmatpush3.bf16.xpose.msra.mxu0 %v2803_v57 }
 0x68f   : > { %5202 = vmatmul.mubr.bf16.vlgmr.msra.gmra.mrb[0].mxu0 %v2855_v2  ;;  %v7794_v2 = vld [vmem:[#allocation3 + $0x28] sm:$0xff] }
 0x690   : > { %5205 = vmatprep.mubr.bf16.mxu0 %v2857_v49  ;;  %8836 = vst [vmem:[#allocation32_spill] sm:$0xff] %v7794_v2 }
 0x697   : > { %5206 = vmatmul.mubr.bf16.gmra.mrb[4].mxu0 %v2859_v9  ;;  %v7754_v9 = vld [vmem:[#allocation3 + $0x30] sm:$0xff] }
 0x698   : > { %5209 = vmatprep.mubr.bf16.mxu0 %v2861_v29  ;;  %8827 = vst [vmem:[#allocation23_spill] sm:$0xff] %v7754_v9  ;;  %v7756_v29 = vld [vmem:[#allocation3 + $0x18] sm:$0xff] }
 0x699   : > { %8828 = vst [vmem:[#allocation24_spill] sm:$0xff] %v7756_v29 }
 0x69f   : > { %5210 = vmatmul.mubr.bf16.gmra.mrb[8].mxu0 %v2863_v63  ;;  %v7775_v63 = vld [vmem:[#allocation3 + $0x38] sm:$0xff] }
 0x6a0   : > { %5213 = vmatprep.mubr.bf16.mxu0 %v2865_v42  ;;  %8832 = vst [vmem:[#allocation28_spill] sm:$0xff] %v7775_v63 }
 0x6a7   : > { %5214 = vmatmul.mubr.bf16.gmra.mrb[12].mxu0 %v2867_v19 }
 0x762   : > { %v7681_v20 = vpop.f32.mrb[0].mxu0 }
 0x763   : > { %v7683_v56 = vpop.f32.mrb[1].mxu0 }
 0x764   : > { %2982 = vmax.xlane.f32.xlu0 %v7683_v56  ;;  %v7686_v1 = vpop.f32.mrb[2].mxu0 }
 0x765   : > { %v7688_v8 = vpop.f32.mrb[3].mxu0 }
 0x766   : > { %2984 = vmax.xlane.f32.xlu1 %v7688_v8 }
 0x768   : > { %2986 = vmax.xlane.f32.xlu0 %v7681_v20 }
 0x76a   : > { %v7692_v15 = vpop.f32.mrb[4].mxu0 }
 0x76b   : > { %2994 = vmax.xlane.f32.xlu1 %v7692_v15  ;;  %v7695_v43 = vpop.f32.mrb[5].mxu0 }
 0x76c   : > { %2988 = vmax.xlane.f32.xlu0 %v7686_v1  ;;  %v7698_v51 = vpop.f32.mrb[6].mxu0 }
 0x76d   : > { %v7700_v6 = vpop.f32.mrb[7].mxu0 }
 0x76f   : > { %2990 = vmax.xlane.f32.xlu1 %v7695_v43 }
 0x770   : > { %2996 = vmax.xlane.f32.xlu0 %v7698_v51 }
 0x772   : > { %v7704_v60 = vpop.f32.mrb[8].mxu0 }
 0x773   : > { %3002 = vmax.xlane.f32.xlu1 %v7704_v60  ;;  %v7707_v12 = vpop.f32.mrb[9].mxu0 }
 0x774   : > { %v7709_v16 = vpop.f32.mrb[10].mxu0  ;;  %2992 = vmax.xlane.f32.xlu0 %v7700_v6 }
 0x775   : > { %v7712_v28 = vpop.f32.mrb[11].mxu0 }
 0x777   : > { %2998 = vmax.xlane.f32.xlu1 %v7707_v12 }
 0x778   : > { %3004 = vmax.xlane.f32.xlu0 %v7709_v16 }
 0x77a   : > { %v7716_v21 = vpop.f32.mrb[12].mxu0 }
 0x77b   : > { %3010 = vmax.xlane.f32.xlu1 %v7716_v21  ;;  %v7719_v54 = vpop.f32.mrb[13].mxu0 }
 0x77c   : > { %3000 = vmax.xlane.f32.xlu0 %v7712_v28  ;;  %v7722_v46 = vpop.f32.mrb[14].mxu0 }
 0x77d   : > { %v7724_v37 = vpop.f32.mrb[15].mxu0 }
 0x77f   : > { %3006 = vmax.xlane.f32.xlu1 %v7719_v54 }
 0x780   : > { %3012 = vmax.xlane.f32.xlu0 %v7722_v46 }
 0x784   : > { %3008 = vmax.xlane.f32.xlu0 %v7724_v37 }
 0x7f1   : > { %v2983_v31 = vpop.xlane.xlu0 %2982 }
 0x7f2   : > { %v7734_v27 = vmax.f32 %v7729_v50, %v2983_v31 }
 0x7f3   : > { %v2985_v62 = vpop.xlane.xlu1 %2984 }
 0x7f4   : > { %3552 = vst.msk [vmem:[#allocation3] sm:$0xff] %vm3286_vm11, %v7734_v27  ;;  %v7743_v39 = vmax.f32 %v7731_v32, %v2985_v62  ;;  %3080 = vperm.xlu1 %5478, %v7734_v27   ;;  %v7769_v62 = vld [vmem:[#allocation3 + $0x20] sm:$0xff] }
 0x7f5   : > { %v2987_v57 = vpop.xlane.xlu0 %2986  ;;  %8831 = vst [vmem:[#allocation27_spill] sm:$0xff] %v7769_v62 }
 0x7f6   : > { %8825 = vst [vmem:[#allocation21_spill] sm:$0xff] %v7743_v39  ;;  %3553 = vst.msk [vmem:[#allocation3 + $0x8] sm:$0xff] %vm3286_vm11, %v7743_v39  ;;  %v7751_v49 = vmax.f32 %v7736_v3, %v2987_v57  ;;  %3085 = vperm.xlu0 %5479, %v7743_v39   ;;  %v7804_v3 = vld [vmem:[#allocation3 + $0x40] sm:$0xff] }
 0x7f7   : > { %8838 = vst [vmem:[#allocation34_spill] sm:$0xff] %v7804_v3  ;;  %v7843_v39 = vld [vmem:[#allocation3 + $0x60] sm:$0xff] }
 0x7f8   : > { %8826 = vst [vmem:[#allocation22_spill] sm:$0xff] %v7751_v49  ;;  %3554 = vst.msk [vmem:[#allocation3 + $0x10] sm:$0xff] %vm3286_vm11, %v7751_v49  ;;  %v2995_v42 = vpop.xlane.xlu1 %2994  ;;  %3090 = vperm.xlu1 %5478, %v7751_v49   ;;  %v7785_v49 = vld [vmem:[#allocation3 + $0x50] sm:$0xff] }
 0x7f9   : > { %v7764_v19 = vmax.f32 %v7754_v9, %v2995_v42  ;;  %v2989_v59 = vpop.xlane.xlu0 %2988  ;;  %8834 = vst [vmem:[#allocation30_spill] sm:$0xff] %v7785_v49  ;;  %8846 = vst [vmem:[#allocation42_spill] sm:$0xff] %v7843_v39 }
 0x7fa   : > { %v7767_v31 = vmax.f32 %v7756_v29, %v2989_v59 }
 0x7fb   : > { %8829 = vst [vmem:[#allocation25_spill] sm:$0xff] %v7764_v19  ;;  %3558 = vst.msk [vmem:[#allocation3 + $0x30] sm:$0xff] %vm3286_vm11, %v7764_v19 }
 0x7fc   : > { %8830 = vst [vmem:[#allocation26_spill] sm:$0xff] %v7767_v31  ;;  %3555 = vst.msk [vmem:[#allocation3 + $0x18] sm:$0xff] %vm3286_vm11, %v7767_v31  ;;  %v2991_v42 = vpop.xlane.xlu1 %2990  ;;  %3095 = vperm.xlu1 %5478, %v7767_v31  }
 0x7fd   : > { %v7783_v59 = vmax.f32 %v7769_v62, %v2991_v42  ;;  %v2997_v0 = vpop.xlane.xlu0 %2996  ;;  %v7814_v42 = vld [vmem:[#allocation3 + $0x58] sm:$0xff] }
 0x7fe   : > { %v7788_v57 = vmax.f32 %v7775_v63, %v2997_v0  ;;  %8840 = vst [vmem:[#allocation36_spill] sm:$0xff] %v7814_v42 }
 0x7ff   : > { %8833 = vst [vmem:[#allocation29_spill] sm:$0xff] %v7783_v59  ;;  %3556 = vst.msk [vmem:[#allocation3 + $0x20] sm:$0xff] %vm3286_vm11, %v7783_v59 }
 0x800   : > { %8835 = vst [vmem:[#allocation31_spill] sm:$0xff] %v7788_v57  ;;  %v3003_v29 = vpop.xlane.xlu1 %3002  ;;  %3110 = vperm.xlu1 %5478, %v7764_v19   ;;  %3559 = vst.msk [vmem:[#allocation3 + $0x38] sm:$0xff] %vm3286_vm11, %v7788_v57 }
 0x801   : > { %v7802_v0 = vmax.f32 %v7785_v49, %v3003_v29  ;;  %v2993_v31 = vpop.xlane.xlu0 %2992  ;;  %v7824_v49 = vld [vmem:[#allocation3 + $0x70] sm:$0xff] }
 0x802   : > { %v7807_v9 = vmax.f32 %v7794_v2, %v2993_v31  ;;  %8842 = vst [vmem:[#allocation38_spill] sm:$0xff] %v7824_v49 }
 0x803   : > { %8837 = vst [vmem:[#allocation33_spill] sm:$0xff] %v7802_v0  ;;  %3562 = vst.msk [vmem:[#allocation3 + $0x50] sm:$0xff] %vm3286_vm11, %v7802_v0  ;;  %3130 = vperm.xlu0 %5479, %v7802_v0  }
 0x804   : > { %8839 = vst [vmem:[#allocation35_spill] sm:$0xff] %v7807_v9  ;;  %v2999_v63 = vpop.xlane.xlu1 %2998  ;;  %3100 = vperm.xlu1 %5478, %v7783_v59   ;;  %3557 = vst.msk [vmem:[#allocation3 + $0x28] sm:$0xff] %vm3286_vm11, %v7807_v9  ;;  %v7833_v59 = vld [vmem:[#allocation3 + $0x48] sm:$0xff] }
 0x805   : > { %v7822_v31 = vmax.f32 %v7804_v3, %v2999_v63  ;;  %v3005_v62 = vpop.xlane.xlu0 %3004  ;;  %8844 = vst [vmem:[#allocation40_spill] sm:$0xff] %v7833_v59 }
 0x806   : > { %v7827_v19 = vmax.f32 %v7814_v42, %v3005_v62 }
 0x807   : > { %8841 = vst [vmem:[#allocation37_spill] sm:$0xff] %v7822_v31  ;;  %3560 = vst.msk [vmem:[#allocation3 + $0x40] sm:$0xff] %vm3286_vm11, %v7822_v31 }
 0x808   : > { %8843 = vst [vmem:[#allocation39_spill] sm:$0xff] %v7827_v19  ;;  %v3011_v29 = vpop.xlane.xlu1 %3010  ;;  %3115 = vperm.xlu1 %5478, %v7788_v57   ;;  %3563 = vst.msk [vmem:[#allocation3 + $0x58] sm:$0xff] %vm3286_vm11, %v7827_v19  ;;  %v7852_v57 = vld [vmem:[#allocation3 + $0x78] sm:$0xff] }
 0x809   : > { %v7841_v62 = vmax.f32 %v7824_v49, %v3011_v29  ;;  %v3001_v2 = vpop.xlane.xlu0 %3000  ;;  %8848 = vst [vmem:[#allocation44_spill] sm:$0xff] %v7852_v57 }
 0x80a   : > { %v7846_v0 = vmax.f32 %v7833_v59, %v3001_v2 }
 0x80b   : > { %8845 = vst [vmem:[#allocation41_spill] sm:$0xff] %v7841_v62  ;;  %3566 = vst.msk [vmem:[#allocation3 + $0x70] sm:$0xff] %vm3286_vm11, %v7841_v62 }
 0x80c   : > { %8847 = vst [vmem:[#allocation43_spill] sm:$0xff] %v7846_v0  ;;  %3105 = vperm.xlu1 %5478, %v7807_v9   ;;  %v3007_v63 = vpop.xlane.xlu1 %3006  ;;  %3561 = vst.msk [vmem:[#allocation3 + $0x48] sm:$0xff] %vm3286_vm11, %v7846_v0  ;;  %v7870_v9 = vld [vmem:[#allocation3 + $0x68] sm:$0xff] }
 0x80d   : > { %v7860_v2 = vmax.f32 %v7843_v39, %v3007_v63  ;;  %v3013_v42 = vpop.xlane.xlu0 %3012  ;;  %8851 = vst [vmem:[#allocation47_spill] sm:$0xff] %v7870_v9 }
 0x80e   : > { %v7863_v3 = vmax.f32 %v7852_v57, %v3013_v42 }
 0x80f   : > { %8849 = vst [vmem:[#allocation45_spill] sm:$0xff] %v7860_v2  ;;  %3564 = vst.msk [vmem:[#allocation3 + $0x60] sm:$0xff] %vm3286_vm11, %v7860_v2  ;;  %3140 = vperm.xlu0 %5479, %v7860_v2  }
 0x810   : > { %8850 = vst [vmem:[#allocation46_spill] sm:$0xff] %v7863_v3  ;;  %3120 = vperm.xlu1 %5478, %v7822_v31   ;;  %3567 = vst.msk [vmem:[#allocation3 + $0x78] sm:$0xff] %vm3286_vm11, %v7863_v3 }
 0x811   : > { %v3009_v42 = vpop.xlane.xlu0 %3008 }
 0x812   : > { %v7878_v29 = vmax.f32 %v7870_v9, %v3009_v42 }
 0x813   : > { %3150 = vperm.xlu0 %5479, %v7841_v62  }
 0x814   : > { %8852 = vst [vmem:[#allocation48_spill] sm:$0xff] %v7878_v29  ;;  %3125 = vperm.xlu1 %5478, %v7846_v0   ;;  %3565 = vst.msk [vmem:[#allocation3 + $0x68] sm:$0xff] %vm3286_vm11, %v7878_v29 }
 0x818   : > { %3135 = vperm.xlu1 %5478, %v7827_v19  }
 0x81c   : > { %3145 = vperm.xlu1 %5478, %v7878_v29  }
 0x820   : > { %3155 = vperm.xlu1 %5478, %v7863_v3  }
 0x873   : > { %v3081_v63 = vpop.permute.xlu1 %3080 }
 0x874   : > { %v3158_v42 = vsub.f32 %v7683_v56, %v3081_v63 }
 0x875   : > { %v3086_v57 = vpop.permute.xlu0 %3085 }
 0x876   : > { %v3174_v2 = vmul.f32 1.442695, %v3158_v42  ;;  %v3159_v62 = vsub.f32 %v7688_v8, %v3086_v57 }
 0x877   : > { %v3091_v39 = vpop.permute.xlu1 %3090 }
 0x878   : > { %v3176_v0 = vmul.f32 1.442695, %v3159_v62  ;;  %v3160_v49 = vsub.f32 %v7681_v20, %v3091_v39  ;;  %5480 = vpow2.f32 %v3174_v2 }
 0x87a   : > { %5482 = vpow2.f32 %v3176_v0  ;;  %v3178_v9 = vmul.f32 1.442695, %v3160_v49 }
 0x87b   : > { %v3096_v59 = vpop.permute.xlu1 %3095 }
 0x87c   : > { %v3161_v19 = vsub.f32 %v7686_v1, %v3096_v59  ;;  %5484 = vpow2.f32 %v3178_v9 }
 0x87e   : > { %v3180_v29 = vmul.f32 1.442695, %v3161_v19 }
 0x87f   : > { %v3111_v3 = vpop.permute.xlu1 %3110 }
 0x880   : > { %5486 = vpow2.f32 %v3180_v29  ;;  %v3164_v9 = vsub.f32 %v7692_v15, %v3111_v3 }
 0x882   : > { %v7893_v31 = vpop.eup %5480  ;;  %v3131_v2 = vpop.permute.xlu0 %3130 }
 0x883   : > { %v3101_v56 = vpop.permute.xlu1 %3100 }
 0x884   : > { %v7895_v63 = vpop.eup %5482  ;;  %v3162_v20 = vsub.f32 %v7695_v43, %v3101_v56  ;;  %v3186_v43 = vmul.f32 1.442695, %v3164_v9  ;;  %v3168_v56 = vsub.f32 %v7704_v60, %v3131_v2  ;;  %v2531_v2 = vsel %vm2504_vm7, %v7561_v24, %v7555_v17 }
 0x885   : > { %v3415_v8 = vpack.c.bf16 %v7895_v63, %v7893_v31  ;;  %v2682_v24 = vsub.f32 0.0, %v2531_v2 }
 0x886   : > { %v7901_v57 = vpop.eup %5484  ;;  %v3182_v19 = vmul.f32 1.442695, %v3162_v20 }
 0x887   : > { %v3116_v39 = vpop.permute.xlu1 %3115  ;;  %5233 = vmatprep.mubr.bf16.mxu1 %v3415_v8 }
 0x888   : > { %v3165_v49 = vsub.f32 %v7698_v51, %v3116_v39  ;;  %5488 = vpow2.f32 %v3182_v19 }
 0x88a   : > { %v7903_v1 = vpop.eup %5486  ;;  %v3188_v59 = vmul.f32 1.442695, %v3165_v49  ;;  %v3194_v49 = vmul.f32 1.442695, %v3168_v56  ;;  %v2395_v56 = vld [vmem:[%s6190_s10 + $0xa8] sm:$0xff] }
 0x88b   : > { %v3106_v0 = vpop.permute.xlu1 %3105  ;;  %v3416_v62 = vpack.c.bf16 %v7903_v1, %v7901_v57 }
 0x88c   : > { %v3163_v29 = vsub.f32 %v7700_v6, %v3106_v0  ;;  %5490 = vpow2.f32 %v3188_v59 }
 0x88d   : > { %5234 = vmatmul.mubr.bf16.vlgmr.msra.gmra.mrb[0].mxu1 %v3416_v62 }
 0x88e   : > { %v3184_v42 = vmul.f32 1.442695, %v3163_v29  ;;  %5250 = vmatpush3.bf16.xpose.msra.mxu1 %v7400_v52  ;;  %v3141_v3 = vpop.permute.xlu0 %3140 }
 0x88f   : > { %5251 = vmatprep.subr.bf16.mxu1 %v7439_v47  ;;  %v3121_v51 = vpop.permute.xlu1 %3120  ;;  %v3170_v52 = vsub.f32 %v7719_v54, %v3141_v3 }
 0x890   : > { %5492 = vpow2.f32 %v3184_v42  ;;  %v3166_v15 = vsub.f32 %v7707_v12, %v3121_v51  ;;  %v2613_v51 = vsel %vm2601_vm8, %v7563_v25, %v7578_v53  ;;  %v2365_v25 = vld [vmem:[%s6185_s13 + $0xb8] sm:$0xff] }
 0x891   : > { %5494 = vpow2.f32 %v3186_v43 }
 0x892   : > { %v3190_v8 = vmul.f32 1.442695, %v3166_v15  ;;  %v7917_v19 = vpop.eup %5488  ;;  %v3151_v12 = vpop.permute.xlu0 %3150 }
 0x893   : > { %v3126_v6 = vpop.permute.xlu1 %3125  ;;  %v3172_v62 = vsub.f32 %v7716_v21, %v3151_v12 }
 0x894   : > { %v3167_v20 = vsub.f32 %v7712_v28, %v3126_v6  ;;  %5496 = vpow2.f32 %v3190_v8 }
 0x896   : > { %v3192_v39 = vmul.f32 1.442695, %v3167_v20  ;;  %5252 = vmatpush3.bf16.xpose.msra.mxu1 %v7439_v47  ;;  %v7920_v59 = vpop.eup %5490  ;;  %v3198_v47 = vmul.f32 1.442695, %v3170_v52  ;;  %v5609_v52 = vld [vmem:[%s6199_s14 + $0xa8] sm:$0xff] }
 0x897   : > { %5253 = vmatprep.subr.bf16.mxu1 %v7477_v35  ;;  %v3136_v9 = vpop.permute.xlu1 %3135 }
 0x898   : > { %5498 = vpow2.f32 %v3192_v39  ;;  %v3169_v60 = vsub.f32 %v7709_v16, %v3136_v9  ;;  %v2532_v16 = vsel %vm2504_vm7, %v7559_v44, %v7553_v18  ;;  %v2612_v18 = vsel %vm2601_vm8, %v7565_v26, %v7581_v45  ;;  %v2363_v26 = vld [vmem:[%s6185_s13 + $0xa8] sm:$0xff]  ;;  %v2397_v45 = vld [vmem:[%s6190_s10 + $0xb8] sm:$0xff] }
 0x899   : > { %5500 = vpow2.f32 %v3194_v49  ;;  %v2684_v44 = vsub.f32 0.0, %v2532_v16  ;;  %v2714_v8 = vsel %vm7377_vm10, %v2682_v24, %v2612_v18  ;;  %v5608_v39 = vld [vmem:[%s6199_s14 + $0xb8] sm:$0xff]  ;;  %v2427_v9 = vmul.f32 %v5609_v52, %v2363_v26  ;;  %v5611_v24 = vld [vmem:[%s6199_s14 + $0xc8] sm:$0xff] }
 0x89a   : > { %v7922_v0 = vpop.eup %5492  ;;  %v3196_v28 = vmul.f32 1.442695, %v3169_v60  ;;  %v2429_v49 = vmul.f32 %v5608_v39, %v2365_v25  ;;  %v2746_v60 = vmul.f32 %v2714_v8, %v2395_v56  ;;  %v2617_v8 = vsel %vm2601_vm8, %v7647_v36, %v7662_v13  ;;  %v2405_v36 = vld [vmem:[%s6190_s10 + $0xf8] sm:$0xff] }
 0x89b   : > { %v3146_v54 = vpop.permute.xlu1 %3145  ;;  %v3417_v29 = vpack.c.bf16 %v7922_v0, %v7917_v19  ;;  %v7927_v43 = vpop.eup %5494 }
 0x89c   : > { %5502 = vpow2.f32 %v3196_v28  ;;  %v3171_v21 = vsub.f32 %v7724_v37, %v3146_v54  ;;  %v3418_v42 = vpack.c.bf16 %v7920_v59, %v7927_v43  ;;  %v3202_v37 = vmul.f32 1.442695, %v3172_v62 }
 0x89d   : > { %5237 = vmatprep.mubr.bf16.mxu1 %v3417_v29  ;;  %5504 = vpow2.f32 %v3198_v47  ;;  %v2534_v47 = vsel %vm2504_vm7, %v7601_v41, %v7597_v38  ;;  %v2533_v62 = vsel %vm2504_vm7, %v7603_v4, %v7599_v40  ;;  %v2615_v29 = vsel %vm2601_vm8, %v7605_v23, %v7620_v22  ;;  %v2367_v23 = vld [vmem:[%s6185_s13 + $0xc8] sm:$0xff] }
 0x89e   : > { %v3200_v17 = vmul.f32 1.442695, %v3171_v21  ;;  %5254 = vmatpush3.bf16.xpose.msra.mxu1 %v7477_v35  ;;  %v7952_v3 = vpop.eup %5496  ;;  %v2716_v35 = vsel %vm7377_vm10, %v2684_v44, %v2613_v51  ;;  %v2614_v38 = vsel %vm2601_vm8, %v7607_v7, %v7623_v34  ;;  %v2688_v41 = vsub.f32 0.0, %v2534_v47  ;;  %v2369_v21 = vld [vmem:[%s6185_s13 + $0xd8] sm:$0xff]  ;;  %v2399_v34 = vld [vmem:[%s6190_s10 + $0xc8] sm:$0xff] }
 0x89f   : > { %5238 = vmatmul.mubr.bf16.gmra.mrb[4].mxu1 %v3418_v42  ;;  %5255 = vmatprep.subr.bf16.mxu1 %v7515_v48  ;;  %v3156_v15 = vpop.permute.xlu1 %3155  ;;  %v2748_v12 = vmul.f32 %v2716_v35, %v2397_v45  ;;  %v2778_v4 = vadd.f32 %v2746_v60, %v2427_v9  ;;  %v2401_v42 = vld [vmem:[%s6190_s10 + $0xd8] sm:$0xff]  ;;  %v2536_v45 = vsel %vm2504_vm7, %v7643_v10, %v7639_v11  ;;  %v2854_v10 = vld [vmem:[#allocation2 + $0x8] sm:$0xff] }
 0x8a0   : > { %5506 = vpow2.f32 %v3200_v17  ;;  %v3173_v53 = vsub.f32 %v7722_v46, %v3156_v15  ;;  %v2720_v7 = vsel %vm7377_vm10, %v2688_v41, %v2615_v29  ;;  %v5610_v17 = vld [vmem:[%s6199_s14 + $0xd8] sm:$0xff]  ;;  %v2535_v35 = vsel %vm2504_vm7, %v7645_v55, %v7641_v14  ;;  %v5613_v9 = vld [vmem:[%s6199_s14 + $0xe8] sm:$0xff] }
 0x8a1   : > { %5508 = vpow2.f32 %v3202_v37  ;;  %v2780_v16 = vadd.f32 %v2748_v12, %v2429_v49  ;;  %v2433_v44 = vmul.f32 %v5610_v17, %v2369_v21  ;;  %v2431_v37 = vmul.f32 %v5611_v24, %v2367_v23  ;;  %v2856_v41 = vld [vmem:[#allocation2 + $0x18] sm:$0xff]  ;;  %v2866_v21 = vld [vmem:[#allocation2 + $0x68] sm:$0xff] }
 0x8a2   : > { %v7961_v6 = vpop.eup %5498  ;;  %v3204_v20 = vmul.f32 1.442695, %v3173_v53  ;;  %v2752_v53 = vmul.f32 %v2720_v7, %v2401_v42  ;;  %v2616_v11 = vsel %vm2601_vm8, %v7649_v58, %v7665_v33  ;;  %v2692_v55 = vsub.f32 0.0, %v2536_v45  ;;  %v5612_v33 = vld [vmem:[%s6199_s14 + $0xf8] sm:$0xff] }
 0x8a3   : > { %v3419_v46 = vpack.c.bf16 %v7961_v6, %v7952_v3  ;;  %v7967_v28 = vpop.eup %5500  ;;  %v2800_v15 = vpack.c.bf16 %v2780_v16, %v2778_v4  ;;  %v2862_v4 = vld [vmem:[#allocation2 + $0x48] sm:$0xff]  ;;  %v2864_v16 = vld [vmem:[#allocation2 + $0x58] sm:$0xff] }
 0x8a4   : > { %5510 = vpow2.f32 %v3204_v20  ;;  %v2690_v20 = vsub.f32 0.0, %v2535_v35  ;;  %v2784_v49 = vadd.f32 %v2752_v53, %v2433_v44  ;;  %v2724_v13 = vsel %vm7377_vm10, %v2692_v55, %v2617_v8  ;;  %v2868_v23 = vld [vmem:[#allocation2 + $0x78] sm:$0xff] }
 0x8a5   : > { %5241 = vmatprep.mubr.bf16.mxu1 %v3419_v46  ;;  %v2371_v46 = vld [vmem:[%s6185_s13 + $0xe8] sm:$0xff]  ;;  %v2756_v60 = vmul.f32 %v2724_v13, %v2405_v36 }
 0x8a6   : > { %v7977_v54 = vpop.eup %5502  ;;  %5256 = vmatpush3.bf16.xpose.msra.mxu1 %v7515_v48  ;;  %v2686_v48 = vsub.f32 0.0, %v2533_v62  ;;  %v2722_v58 = vsel %vm7377_vm10, %v2690_v20, %v2616_v11  ;;  %v2435_v12 = vmul.f32 %v5613_v9, %v2371_v46 }
 0x8a7   : > { %5257 = vmatprep.subr.bf16.mxu1 %v7557_v5  ;;  %v3420_v40 = vpack.c.bf16 %v7977_v54, %v7967_v28  ;;  %v7991_v2 = vpop.eup %5504  ;;  %v2754_v47 = vmul.f32 %v2722_v58, %v2403_v61 }
 0x8a8   : > { %v2718_v51 = vsel %vm7377_vm10, %v2686_v48, %v2614_v38  ;;  %v2858_v48 = vld [vmem:[#allocation2 + $0x28] sm:$0xff] }
 0x8a9   : > { %5242 = vmatmul.mubr.bf16.gmra.mrb[8].mxu1 %v3420_v40  ;;  %v2750_v26 = vmul.f32 %v2718_v51, %v2399_v34  ;;  %v2786_v29 = vadd.f32 %v2754_v47, %v2435_v12  ;;  %v2808_v47 = vld [vmem:[%s6201_s12 + $0x18] sm:$0xff] }
 0x8aa   : > { %v7995_v22 = vpop.eup %5506 }
 0x8ab   : > { %v3421_v18 = vpack.c.bf16 %v7995_v22, %v7991_v2  ;;  %v8007_v25 = vpop.eup %5508  ;;  %v2782_v39 = vadd.f32 %v2750_v26, %v2431_v37 }
 0x8ad   : > { %5245 = vmatprep.mubr.bf16.mxu1 %v3421_v18  ;;  %v2802_v62 = vpack.c.bf16 %v2784_v49, %v2782_v39 }
 0x8ae   : > { %v8017_v56 = vpop.eup %5510  ;;  %5258 = vmatpush3.bf16.xpose.msra.mxu1 %v7557_v5  ;;  %v2373_v5 = vld [vmem:[%s6185_s13 + $0xf8] sm:$0xff] }
 0x8af   : > { %5259 = vmatprep.subr.bf16.mxu1 %v2800_v15  ;;  %v3422_v14 = vpack.c.bf16 %v8017_v56, %v8007_v25  ;;  %v2437_v52 = vmul.f32 %v5612_v33, %v2373_v5 }
 0x8b1   : > { %5246 = vmatmul.mubr.bf16.gmra.mrb[12].mxu1 %v3422_v14  ;;  %v2788_v38 = vadd.f32 %v2756_v60, %v2437_v52  ;;  %v2806_v60 = vld [vmem:[%s6201_s12 + $0x8] sm:$0xff] }
 0x8b2   : > { %5265 = vmatprep.mubr.bf16.mxu1 %v2854_v10 }
 0x8b3   : > { %v2804_v40 = vpack.c.bf16 %v2788_v38, %v2786_v29  ;;  %v2812_v29 = vld [vmem:[%s6201_s12 + $0x38] sm:$0xff]  ;;  %v8131_v38 = vld [vmem:[#allocation3 + $0x90] sm:$0xff] }
 0x8b6   : > { %5260 = vmatpush3.bf16.xpose.msra.mxu1 %v2800_v15 }
 0x8b7   : > { %5261 = vmatprep.subr.bf16.mxu1 %v2802_v62 }
 0x8be   : > { %5262 = vmatpush3.bf16.xpose.msra.mxu1 %v2802_v62  ;;  %v2838_v62 = vpack.c.bf16 %v2808_v47, %v2806_v60  ;;  %v8159_v47 = vld [vmem:[#allocation3 + $0xb0] sm:$0xff] }
 0x8bf   : > { %5263 = vmatprep.subr.bf16.mxu1 %v2804_v40 }
 0x8c0   : > { %5281 = vmatprep.subr.bf16.mxu0 %v2838_v62 }
 0x8c1   : > { %5282 = vmatpush3.bf16.msra.mxu0 %v2838_v62  ;;  %v2818_v62 = vld [vmem:[%s6201_s12 + $0x68] sm:$0xff] }
 0x8c6   : > { %5264 = vmatpush3.bf16.xpose.msra.mxu1 %v2804_v40 }
 0x8cd   : > { %5266 = vmatmul.mubr.bf16.vlgmr.msra.gmra.mrb[16].mxu1 %v2856_v41  ;;  %v8140_v41 = vld [vmem:[#allocation3 + $0x80] sm:$0xff] }
 0x8ce   : > { %5269 = vmatprep.mubr.bf16.mxu1 %v2858_v48  ;;  %v2822_v48 = vld [vmem:[%s6201_s12 + $0x88] sm:$0xff] }
 0x8d5   : > { %5270 = vmatmul.mubr.bf16.gmra.mrb[20].mxu1 %v2860_v30 }
 0x8d6   : > { %5273 = vmatprep.mubr.bf16.mxu1 %v2862_v4 }
 0x8dd   : > { %5274 = vmatmul.mubr.bf16.gmra.mrb[24].mxu1 %v2864_v16 }
 0x8de   : > { %5277 = vmatprep.mubr.bf16.mxu1 %v2866_v21 }
 0x8e5   : > { %5278 = vmatmul.mubr.bf16.gmra.mrb[28].mxu1 %v2868_v23  ;;  %v8152_v23 = vld [vmem:[#allocation3 + $0x98] sm:$0xff] }
 0x960   : > { %v8040_v42 = vpop.f32.mrb[0].mxu1 }
 0x961   : > { %8853 = vst [vmem:[#allocation49_spill] sm:$0xff] %v8040_v42  ;;  %v8042_v7 = vpop.f32.mrb[1].mxu1  ;;  %v8257_v42 = vld [vmem:[#allocation3 + $0xf0] sm:$0xff] }
 0x962   : > { %8854 = vst [vmem:[#allocation50_spill] sm:$0xff] %v8042_v7  ;;  %v8044_v34 = vpop.f32.mrb[2].mxu1  ;;  %v8898_v7 = vld [vmem:[#allocation35_spill] sm:$0xff] }
 0x963   : > { %8855 = vst [vmem:[#allocation51_spill] sm:$0xff] %v8044_v34  ;;  %v8046_v51 = vpop.f32.mrb[3].mxu1  ;;  %v8889_v34 = vld [vmem:[#allocation27_spill] sm:$0xff] }
 0x964   : > { %8856 = vst [vmem:[#allocation52_spill] sm:$0xff] %v8046_v51  ;;  %v8897_v51 = vld [vmem:[#allocation32_spill] sm:$0xff] }
 0x972   : > { %v8048_v18 = vpop.f32.mrb[4].mxu1 }
 0x973   : > { %8857 = vst [vmem:[#allocation53_spill] sm:$0xff] %v8048_v18  ;;  %v8050_v17 = vpop.f32.mrb[5].mxu1  ;;  %v8252_v18 = vld [vmem:[#allocation3 + $0xd8] sm:$0xff] }
 0x974   : > { %8858 = vst [vmem:[#allocation54_spill] sm:$0xff] %v8050_v17  ;;  %v8052_v44 = vpop.f32.mrb[6].mxu1  ;;  %v8890_v17 = vld [vmem:[#allocation29_spill] sm:$0xff] }
 0x975   : > { %8859 = vst [vmem:[#allocation55_spill] sm:$0xff] %v8052_v44  ;;  %v8054_v24 = vpop.f32.mrb[7].mxu1  ;;  %v8883_v44 = vld [vmem:[#allocation22_spill] sm:$0xff] }
 0x976   : > { %8860 = vst [vmem:[#allocation56_spill] sm:$0xff] %v8054_v24  ;;  %v2830_v24 = vld [vmem:[%s6201_s12 + $0xc8] sm:$0xff] }
 0x97c   : > { %v8056_v37 = vpop.f32.mrb[8].mxu1 }
 0x97d   : > { %8861 = vst [vmem:[#allocation57_spill] sm:$0xff] %v8056_v37  ;;  %v8058_v15 = vpop.f32.mrb[9].mxu1  ;;  %v8882_v37 = vld [vmem:[#allocation20_spill] sm:$0xff] }
 0x97e   : > { %8862 = vst [vmem:[#allocation58_spill] sm:$0xff] %v8058_v15  ;;  %v8060_v53 = vpop.f32.mrb[10].mxu1  ;;  %v8884_v15 = vsub.f32 %v8882_v37, %v8883_v44  ;;  %8892 = vst [vmem:[#allocation20_spill] sm:$0xff] %v8257_v42 }
 0x97f   : > { %8863 = vst [vmem:[#allocation59_spill] sm:$0xff] %v8060_v53  ;;  %v8062_v26 = vpop.f32.mrb[11].mxu1  ;;  %v2826_v53 = vld [vmem:[%s6201_s12 + $0xa8] sm:$0xff] }
 0x980   : > { %8864 = vst [vmem:[#allocation60_spill] sm:$0xff] %v8062_v26  ;;  %v8224_v26 = vld [vmem:[#allocation3 + $0xc0] sm:$0xff] }
 0x984   : > { %v8064_v45 = vpop.f32.mrb[12].mxu1 }
 0x985   : > { %8865 = vst [vmem:[#allocation61_spill] sm:$0xff] %v8064_v45  ;;  %v8066_v35 = vpop.f32.mrb[13].mxu1  ;;  %v8201_v45 = vld [vmem:[#allocation3 + $0xd0] sm:$0xff] }
 0x986   : > { %8866 = vst [vmem:[#allocation62_spill] sm:$0xff] %v8066_v35  ;;  %v8068_v8 = vpop.f32.mrb[14].mxu1 }
 0x987   : > { %8867 = vst [vmem:[#allocation63_spill] sm:$0xff] %v8068_v8  ;;  %v8070_v11 = vpop.f32.mrb[15].mxu1  ;;  %v8196_v8 = vld [vmem:[#allocation3 + $0xb8] sm:$0xff] }
 0x988   : > { %8868 = vst [vmem:[#allocation64_spill] sm:$0xff] %v8070_v11 }
 0x9a0   : > { %v8072_v14 = vpop.f32.mrb[16].mxu1 }
 0x9a1   : > { %3686 = vmax.xlane.f32.xlu0 %v8072_v14  ;;  %v8075_v10 = vpop.f32.mrb[17].mxu1 }
 0x9a2   : > { %v8077_v55 = vpop.f32.mrb[18].mxu1 }
 0x9a3   : > { %v8079_v20 = vpop.f32.mrb[19].mxu1 }
 0x9a4   : > { %3684 = vmax.xlane.f32.xlu1 %v8079_v20 }
 0x9a5   : > { %3682 = vmax.xlane.f32.xlu0 %v8075_v10 }
 0x9a8   : > { %v8083_v5 = vpop.f32.mrb[20].mxu1 }
 0x9a9   : > { %8869 = vst [vmem:[#allocation65_spill] sm:$0xff] %v8083_v5  ;;  %3688 = vmax.xlane.f32.xlu0 %v8077_v55  ;;  %3694 = vmax.xlane.f32.xlu1 %v8083_v5  ;;  %v8087_v39 = vpop.f32.mrb[21].mxu1 }
 0x9aa   : > { %v8089_v49 = vpop.f32.mrb[22].mxu1 }
 0x9ab   : > { %8870 = vst [vmem:[#allocation66_spill] sm:$0xff] %v8089_v49  ;;  %v8091_v46 = vpop.f32.mrb[23].mxu1 }
 0x9ad   : > { %3690 = vmax.xlane.f32.xlu1 %v8087_v39  ;;  %3692 = vmax.xlane.f32.xlu0 %v8091_v46 }
 0x9b0   : > { %v8095_v36 = vpop.f32.mrb[24].mxu1 }
 0x9b1   : > { %8871 = vst [vmem:[#allocation67_spill] sm:$0xff] %v8095_v36  ;;  %3696 = vmax.xlane.f32.xlu0 %v8089_v49  ;;  %3702 = vmax.xlane.f32.xlu1 %v8095_v36  ;;  %v8099_v13 = vpop.f32.mrb[25].mxu1  ;;  %v3210_v36 = vld [vmem:[#allocation4 + $0x20] sm:$0xff]  ;;  %v3211_v49 = vld [vmem:[#allocation4 + $0x28] sm:$0xff] }
 0x9b2   : > { %8872 = vst [vmem:[#allocation68_spill] sm:$0xff] %v8099_v13  ;;  %v8101_v61 = vpop.f32.mrb[26].mxu1 }
 0x9b3   : > { %8873 = vst [vmem:[#allocation69_spill] sm:$0xff] %v8101_v61  ;;  %v8103_v58 = vpop.f32.mrb[27].mxu1 }
 0x9b4   : > { %8874 = vst [vmem:[#allocation70_spill] sm:$0xff] %v8103_v58 }
 0x9b5   : > { %3698 = vmax.xlane.f32.xlu1 %v8099_v13  ;;  %3700 = vmax.xlane.f32.xlu0 %v8103_v58  ;;  %v3209_v58 = vld [vmem:[#allocation4 + $0x18] sm:$0xff] }
 0x9b8   : > { %v8107_v33 = vpop.f32.mrb[28].mxu1 }
 0x9b9   : > { %8875 = vst [vmem:[#allocation71_spill] sm:$0xff] %v8107_v33  ;;  %3704 = vmax.xlane.f32.xlu0 %v8101_v61  ;;  %3710 = vmax.xlane.f32.xlu1 %v8107_v33  ;;  %v8111_v52 = vpop.f32.mrb[29].mxu1 }
 0x9ba   : > { %8876 = vst [vmem:[#allocation72_spill] sm:$0xff] %v8111_v52  ;;  %v8113_v9 = vpop.f32.mrb[30].mxu1 }
 0x9bb   : > { %8877 = vst [vmem:[#allocation73_spill] sm:$0xff] %v8113_v9  ;;  %v8115_v12 = vpop.f32.mrb[31].mxu1 }
 0x9bc   : > { %8878 = vst [vmem:[#allocation74_spill] sm:$0xff] %v8115_v12 }
 0x9bd   : > { %3706 = vmax.xlane.f32.xlu1 %v8111_v52  ;;  %3708 = vmax.xlane.f32.xlu0 %v8115_v12 }
 0x9c1   : > { %3238 = vadd.xlane.f32.xlu1 %v7893_v31  ;;  %3712 = vmax.xlane.f32.xlu0 %v8113_v9  ;;  %v2810_v31 = vld [vmem:[%s6201_s12 + $0x28] sm:$0xff]  ;;  %v8899_v9 = vsub.f32 %v8897_v51, %v8898_v7 }
 0x9c3   : > { %v3056_v33 = vmul.f32 1.442695, %v8899_v9 }
 0x9c5   : > { %3242 = vadd.xlane.f32.xlu1 %v7901_v57  ;;  %3240 = vadd.xlane.f32.xlu0 %v7895_v63  ;;  %v2840_v57 = vpack.c.bf16 %v2812_v29, %v2810_v31  ;;  %v2820_v31 = vld [vmem:[%s6201_s12 + $0x78] sm:$0xff] }
 0x9c6   : > { %v2824_v29 = vld [vmem:[%s6201_s12 + $0x98] sm:$0xff] }
 0x9c7   : > { %5283 = vmatprep.subr.bf16.mxu0 %v2840_v57 }
 0x9c8   : > { %5284 = vmatpush3.bf16.msra.mxu0 %v2840_v57  ;;  %v2844_v57 = vpack.c.bf16 %v2820_v31, %v2818_v62  ;;  %v8879_v31 = vsub.f32 %v7729_v50, %v7734_v27 }
 0x9c9   : > { %3246 = vadd.xlane.f32.xlu1 %v7917_v19  ;;  %3244 = vadd.xlane.f32.xlu0 %v7903_v1  ;;  %v2814_v19 = vld [vmem:[%s6201_s12 + $0x48] sm:$0xff]  ;;  %v2816_v1 = vld [vmem:[%s6201_s12 + $0x58] sm:$0xff] }
 0x9ca   : > { %v3046_v11 = vmul.f32 1.442695, %v8879_v31 }
 0x9cc   : > { %5512 = vpow2.f32 %v3046_v11  ;;  %v8885_v11 = vld [vmem:[#allocation24_spill] sm:$0xff] }
 0x9cd   : > { %3250 = vadd.xlane.f32.xlu1 %v7927_v43  ;;  %3248 = vadd.xlane.f32.xlu0 %v7922_v0  ;;  %v8138_v43 = vld [vmem:[#allocation3 + $0x88] sm:$0xff]  ;;  %v2842_v0 = vpack.c.bf16 %v2816_v1, %v2814_v19 }
 0x9cf   : > { %5285 = vmatprep.subr.bf16.mxu0 %v2842_v0 }
 0x9d0   : > { %5286 = vmatpush3.bf16.msra.mxu0 %v2842_v0 }
 0x9d1   : > { %5287 = vmatprep.subr.bf16.mxu0 %v2844_v57 }
 0x9d4   : > { %5288 = vmatpush3.bf16.msra.mxu0 %v2844_v57 }
 0x9d6   : > { %v8297_v7 = vpop.eup %5512 }
 0xa2e   : > { %v3687_v63 = vpop.xlane.xlu0 %3686 }
 0xa2f   : > { %v8136_v40 = vmax.f32 %v8131_v38, %v3687_v63 }
 0xa31   : > { %4254 = vst.msk [vmem:[#allocation3 + $0x90] sm:$0xff] %vm3286_vm11, %v8136_v40  ;;  %v3685_v30 = vpop.xlane.xlu1 %3684 }
 0xa32   : > { %v8147_v4 = vmax.f32 %v8138_v43, %v3685_v30  ;;  %v3683_v16 = vpop.xlane.xlu0 %3682  ;;  %v8174_v30 = vld [vmem:[#allocation3 + $0xa0] sm:$0xff] }
 0xa33   : > { %v8150_v21 = vmax.f32 %v8140_v41, %v3683_v16  ;;  %v8177_v16 = vld [vmem:[#allocation3 + $0xa8] sm:$0xff] }
 0xa34   : > { %4253 = vst.msk [vmem:[#allocation3 + $0x88] sm:$0xff] %vm3286_vm11, %v8147_v4  ;;  %3785 = vperm.xlu1 %5478, %v8147_v4  }
 0xa35   : > { %4252 = vst.msk [vmem:[#allocation3 + $0x80] sm:$0xff] %vm3286_vm11, %v8150_v21  ;;  %3780 = vperm.xlu0 %5479, %v8150_v21  }
 0xa36   : > { %v3689_v63 = vpop.xlane.xlu0 %3688  ;;  %v3695_v19 = vpop.xlane.xlu1 %3694 }
 0xa37   : > { %v8169_v1 = vmax.f32 %v8152_v23, %v3689_v63  ;;  %v8172_v0 = vmax.f32 %v8159_v47, %v3695_v19  ;;  %v2846_v63 = vpack.c.bf16 %v2824_v29, %v2822_v48  ;;  %v2828_v48 = vld [vmem:[%s6201_s12 + $0xb8] sm:$0xff] }
 0xa38   : > { %3790 = vperm.xlu1 %5478, %v8136_v40   ;;  %v2848_v50 = vpack.c.bf16 %v2828_v48, %v2826_v53  ;;  %v3050_v53 = vmul.f32 1.442695, %v8884_v15  ;;  %v8229_v48 = vld [vmem:[#allocation3 + $0xc8] sm:$0xff] }
 0xa39   : > { %4255 = vst.msk [vmem:[#allocation3 + $0x98] sm:$0xff] %vm3286_vm11, %v8169_v1  ;;  %4258 = vst.msk [vmem:[#allocation3 + $0xb0] sm:$0xff] %vm3286_vm11, %v8172_v0  ;;  %3795 = vperm.xlu0 %5479, %v8169_v1   ;;  %5289 = vmatprep.subr.bf16.mxu0 %v2846_v63 }
 0xa3a   : > { %v3691_v57 = vpop.xlane.xlu1 %3690  ;;  %v3693_v19 = vpop.xlane.xlu0 %3692  ;;  %5290 = vmatpush3.bf16.msra.mxu0 %v2846_v63  ;;  %v8880_v63 = vld [vmem:[#allocation21_spill] sm:$0xff] }
 0xa3b   : > { %v8191_v60 = vmax.f32 %v8174_v30, %v3691_v57  ;;  %v8194_v62 = vmax.f32 %v8177_v16, %v3693_v19  ;;  %v8881_v19 = vsub.f32 %v7731_v32, %v8880_v63  ;;  %5291 = vmatprep.subr.bf16.mxu0 %v2848_v50  ;;  %v2832_v32 = vld [vmem:[%s6201_s12 + $0xd8] sm:$0xff] }
 0xa3c   : > { %v2850_v44 = vpack.c.bf16 %v2832_v32, %v2830_v24  ;;  %v8891_v24 = vsub.f32 %v8889_v34, %v8890_v17 }
 0xa3d   : > { %4256 = vst.msk [vmem:[#allocation3 + $0xa0] sm:$0xff] %vm3286_vm11, %v8191_v60  ;;  %4257 = vst.msk [vmem:[#allocation3 + $0xa8] sm:$0xff] %vm3286_vm11, %v8194_v62  ;;  %3800 = vperm.xlu1 %5478, %v8191_v60   ;;  %3805 = vperm.xlu0 %5479, %v8194_v62   ;;  %v3048_v29 = vmul.f32 1.442695, %v8881_v19 }
 0xa3e   : > { %v3697_v27 = vpop.xlane.xlu0 %3696  ;;  %v3703_v31 = vpop.xlane.xlu1 %3702  ;;  %5292 = vmatpush3.bf16.msra.mxu0 %v2848_v50  ;;  %v8886_v50 = vld [vmem:[#allocation26_spill] sm:$0xff]  ;;  %v3054_v32 = vmul.f32 1.442695, %v8891_v24 }
 0xa3f   : > { %v8219_v35 = vmax.f32 %v8196_v8, %v3697_v27  ;;  %v8222_v57 = vmax.f32 %v8201_v45, %v3703_v31  ;;  %5514 = vpow2.f32 %v3048_v29  ;;  %v8887_v63 = vsub.f32 %v8885_v11, %v8886_v50  ;;  %5293 = vmatprep.subr.bf16.mxu0 %v2850_v44  ;;  %v2834_v29 = vld [vmem:[%s6201_s12 + $0xe8] sm:$0xff]  ;;  %v2836_v11 = vld [vmem:[%s6201_s12 + $0xf8] sm:$0xff] }
 0xa40   : > { %5516 = vpow2.f32 %v3050_v53  ;;  %v2852_v34 = vpack.c.bf16 %v2836_v11, %v2834_v29  ;;  %v8894_v50 = vld [vmem:[#allocation25_spill] sm:$0xff]  ;;  %v8283_v29 = vld [vmem:[#allocation3 + $0xe0] sm:$0xff] }
 0xa41   : > { %4259 = vst.msk [vmem:[#allocation3 + $0xb8] sm:$0xff] %vm3286_vm11, %v8219_v35  ;;  %4262 = vst.msk [vmem:[#allocation3 + $0xd0] sm:$0xff] %vm3286_vm11, %v8222_v57  ;;  %3810 = vperm.xlu1 %5478, %v8172_v0   ;;  %3815 = vperm.xlu0 %5479, %v8219_v35   ;;  %v3052_v19 = vmul.f32 1.442695, %v8887_v63  ;;  %v8285_v11 = vld [vmem:[#allocation3 + $0xe8] sm:$0xff] }
 0xa42   : > { %v3699_v37 = vpop.xlane.xlu1 %3698  ;;  %v3701_v15 = vpop.xlane.xlu0 %3700  ;;  %5294 = vmatpush3.bf16.msra.mxu0 %v2850_v44  ;;  %v8893_v44 = vld [vmem:[#allocation23_spill] sm:$0xff]  ;;  %8900 = vst [vmem:[#allocation24_spill] sm:$0xff] %v8285_v11 }
 0xa43   : > { %v8247_v27 = vmax.f32 %v8224_v26, %v3699_v37  ;;  %v8250_v31 = vmax.f32 %v8229_v48, %v3701_v15  ;;  %v8895_v63 = vsub.f32 %v8893_v44, %v8894_v50  ;;  %5518 = vpow2.f32 %v3052_v19  ;;  %5295 = vmatprep.subr.bf16.mxu0 %v2852_v34  ;;  %v8305_v44 = vld [vmem:[#allocation3 + $0xf8] sm:$0xff]  ;;  %v3208_v19 = vld [vmem:[#allocation4 + $0x10] sm:$0xff] }
 0xa44   : > { %5520 = vpow2.f32 %v3054_v32  ;;  %v3206_v32 = vld [vmem:[#allocation4] sm:$0xff]  ;;  %8902 = vst [vmem:[#allocation27_spill] sm:$0xff] %v8305_v44 }
 0xa45   : > { %8888 = vst [vmem:[#allocation21_spill] sm:$0xff] %v8250_v31  ;;  %4260 = vst.msk [vmem:[#allocation3 + $0xc0] sm:$0xff] %vm3286_vm11, %v8247_v27  ;;  %3820 = vperm.xlu1 %5478, %v8247_v27   ;;  %3825 = vperm.xlu0 %5479, %v8250_v31   ;;  %v3058_v24 = vmul.f32 1.442695, %v8895_v63  ;;  %v3207_v63 = vld [vmem:[#allocation4 + $0x8] sm:$0xff] }
 0xa46   : > { %4261 = vst.msk [vmem:[#allocation3 + $0xc8] sm:$0xff] %vm3286_vm11, %v8250_v31  ;;  %v3705_v17 = vpop.xlane.xlu0 %3704  ;;  %v3711_v53 = vpop.xlane.xlu1 %3710  ;;  %5296 = vmatpush3.bf16.msra.mxu0 %v2852_v34 }
 0xa47   : > { %v8275_v37 = vmax.f32 %v8252_v18, %v3705_v17  ;;  %v8278_v15 = vmax.f32 %v8257_v42, %v3711_v53  ;;  %5522 = vpow2.f32 %v3058_v24 }
 0xa48   : > { %5524 = vpow2.f32 %v3056_v33  ;;  %v3222_v33 = vmul.f32 %v8297_v7, %v3206_v32 }
 0xa49   : > { %8896 = vst [vmem:[#allocation22_spill] sm:$0xff] %v8278_v15  ;;  %4263 = vst.msk [vmem:[#allocation3 + $0xd8] sm:$0xff] %vm3286_vm11, %v8275_v37  ;;  %3830 = vperm.xlu1 %5478, %v8222_v57   ;;  %3835 = vperm.xlu0 %5479, %v8275_v37   ;;  %v8307_v50 = vpop.eup %5514 }
 0xa4a   : > { %4266 = vst.msk [vmem:[#allocation3 + $0xf0] sm:$0xff] %vm3286_vm11, %v8278_v15  ;;  %v3707_v51 = vpop.xlane.xlu1 %3706  ;;  %v3709_v9 = vpop.xlane.xlu0 %3708  ;;  %v3223_v61 = vmul.f32 %v8307_v50, %v3207_v63 }
 0xa4b   : > { %v8300_v34 = vmax.f32 %v8283_v29, %v3707_v51  ;;  %v8303_v53 = vmax.f32 %v8285_v11, %v3709_v9  ;;  %v5517_v51 = vpop.eup %5516 }
 0xa4c   : > { %v3224_v32 = vmul.f32 %v5517_v51, %v3208_v19  ;;  %v3212_v19 = vld [vmem:[#allocation4 + $0x30] sm:$0xff] }
 0xa4d   : > { %8901 = vst [vmem:[#allocation26_spill] sm:$0xff] %v8303_v53  ;;  %4264 = vst.msk [vmem:[#allocation3 + $0xe0] sm:$0xff] %vm3286_vm11, %v8300_v34  ;;  %3840 = vperm.xlu1 %5478, %v8300_v34   ;;  %3845 = vperm.xlu0 %5479, %v8303_v53   ;;  %v5519_v52 = vpop.eup %5518 }
 0xa4e   : > { %4265 = vst.msk [vmem:[#allocation3 + $0xe8] sm:$0xff] %vm3286_vm11, %v8303_v53  ;;  %v3239_v9 = vpop.xlane.xlu1 %3238  ;;  %v3713_v17 = vpop.xlane.xlu0 %3712 }
 0xa4f   : > { %v3270_v42 = vadd.f32 %v3239_v9, %v3222_v33  ;;  %v8321_v12 = vmax.f32 %v8305_v44, %v3713_v17  ;;  %v5521_v33 = vpop.eup %5520  ;;  %v3225_v44 = vmul.f32 %v5519_v52, %v3209_v58 }
 0xa50   : > { %v3226_v24 = vmul.f32 %v5521_v33, %v3210_v36 }
 0xa51   : > { %8903 = vst [vmem:[#allocation29_spill] sm:$0xff] %v8321_v12  ;;  %3287 = vst.msk [vmem:[#allocation4] sm:$0xff] %vm3286_vm11, %v3270_v42  ;;  %3850 = vperm.xlu1 %5478, %v8278_v15   ;;  %3855 = vperm.xlu0 %5479, %v8321_v12   ;;  %v5523_v53 = vpop.eup %5522 }
 0xa52   : > { %4267 = vst.msk [vmem:[#allocation3 + $0xf8] sm:$0xff] %vm3286_vm11, %v8321_v12  ;;  %v3243_v9 = vpop.xlane.xlu1 %3242  ;;  %v3241_v17 = vpop.xlane.xlu0 %3240 }
 0xa53   : > { %v3272_v13 = vadd.f32 %v3243_v9, %v3224_v32  ;;  %v3271_v42 = vadd.f32 %v3241_v17, %v3223_v61  ;;  %v5525_v15 = vpop.eup %5524  ;;  %v3228_v32 = vmul.f32 %v5523_v53, %v3212_v19  ;;  %v8919_v19 = vld [vmem:[#allocation42_spill] sm:$0xff] }
 0xa54   : > { %v3227_v61 = vmul.f32 %v5525_v15, %v3211_v49  ;;  %v8905_v49 = vld [vmem:[#allocation31_spill] sm:$0xff] }
 0xa55   : > { %3289 = vst.msk [vmem:[#allocation4 + $0x10] sm:$0xff] %vm3286_vm11, %v3272_v13  ;;  %3288 = vst.msk [vmem:[#allocation4 + $0x8] sm:$0xff] %vm3286_vm11, %v3271_v42 }
 0xa56   : > { %v3247_v11 = vpop.xlane.xlu1 %3246  ;;  %v3245_v12 = vpop.xlane.xlu0 %3244 }
 0xa57   : > { %v3274_v63 = vadd.f32 %v3247_v11, %v3226_v24  ;;  %v3273_v5 = vadd.f32 %v3245_v12, %v3225_v44  ;;  %v8910_v12 = vld [vmem:[#allocation30_spill] sm:$0xff]  ;;  %v8916_v44 = vld [vmem:[#allocation36_spill] sm:$0xff] }
 0xa59   : > { %3291 = vst.msk [vmem:[#allocation4 + $0x20] sm:$0xff] %vm3286_vm11, %v3274_v63  ;;  %3290 = vst.msk [vmem:[#allocation4 + $0x18] sm:$0xff] %vm3286_vm11, %v3273_v5  ;;  %v8904_v5 = vld [vmem:[#allocation28_spill] sm:$0xff]  ;;  %v8920_v63 = vld [vmem:[#allocation45_spill] sm:$0xff] }
 0xa5a   : > { %v3251_v9 = vpop.xlane.xlu1 %3250  ;;  %v3249_v17 = vpop.xlane.xlu0 %3248  ;;  %v8906_v36 = vsub.f32 %v8904_v5, %v8905_v49  ;;  %v8926_v5 = vld [vmem:[#allocation48_spill] sm:$0xff] }
 0xa5b   : > { %v3276_v13 = vadd.f32 %v3251_v9, %v3228_v32  ;;  %v3275_v31 = vadd.f32 %v3249_v17, %v3227_v61  ;;  %v8921_v32 = vsub.f32 %v8919_v19, %v8920_v63  ;;  %v8923_v9 = vld [vmem:[#allocation41_spill] sm:$0xff] }
 0xa5d   : > { %3293 = vst.msk [vmem:[#allocation4 + $0x30] sm:$0xff] %vm3286_vm11, %v3276_v13  ;;  %3292 = vst.msk [vmem:[#allocation4 + $0x28] sm:$0xff] %vm3286_vm11, %v3275_v31  ;;  %v3070_v61 = vmul.f32 1.442695, %v8921_v32  ;;  %v8925_v13 = vld [vmem:[#allocation47_spill] sm:$0xff] }
 0xa5e   : > { %v8927_v49 = vsub.f32 %v8925_v13, %v8926_v5 }
 0xa70   : > { %3254 = vadd.xlane.f32.xlu0 %v7952_v3  ;;  %v3060_v3 = vmul.f32 1.442695, %v8906_v36  ;;  %v3072_v36 = vmul.f32 1.442695, %v8927_v49 }
 0xa72   : > { %5526 = vpow2.f32 %v3060_v3 }
 0xa74   : > { %3256 = vadd.xlane.f32.xlu0 %v7961_v6  ;;  %v8907_v6 = vld [vmem:[#allocation34_spill] sm:$0xff] }
 0xa75   : > { %3252 = vadd.xlane.f32.xlu1 %v7920_v59  ;;  %v8908_v59 = vld [vmem:[#allocation37_spill] sm:$0xff] }
 0xa76   : > { %v8909_v58 = vsub.f32 %v8907_v6, %v8908_v59  ;;  %v8929_v6 = vld [vmem:[#allocation46_spill] sm:$0xff] }
 0xa78   : > { %3260 = vadd.xlane.f32.xlu0 %v7977_v54  ;;  %v3062_v54 = vmul.f32 1.442695, %v8909_v58 }
 0xa79   : > { %3258 = vadd.xlane.f32.xlu1 %v7967_v28  ;;  %v8911_v28 = vld [vmem:[#allocation33_spill] sm:$0xff] }
 0xa7a   : > { %v8912_v31 = vsub.f32 %v8910_v12, %v8911_v28  ;;  %5528 = vpow2.f32 %v3062_v54  ;;  %v8932_v28 = vsub.f32 %v8140_v41, %v8150_v21  ;;  %v8935_v41 = vsub.f32 %v8159_v47, %v8172_v0 }
 0xa7c   : > { %3264 = vadd.xlane.f32.xlu0 %v7995_v22  ;;  %v3066_v22 = vmul.f32 1.442695, %v8912_v31  ;;  %v8372_v3 = vpop.eup %5526  ;;  %v3746_v31 = vmul.f32 1.442695, %v8932_v28  ;;  %v3758_v21 = vmul.f32 1.442695, %v8935_v41 }
 0xa7d   : > { %3262 = vadd.xlane.f32.xlu1 %v7991_v2  ;;  %v8913_v2 = vld [vmem:[#allocation40_spill] sm:$0xff]  ;;  %v8948_v41 = vld [vmem:[#allocation26_spill] sm:$0xff] }
 0xa7e   : > { %5530 = vpow2.f32 %v3066_v22  ;;  %v8933_v22 = vsub.f32 %v8174_v30, %v8191_v60 }
 0xa80   : > { %3268 = vadd.xlane.f32.xlu0 %v8017_v56 }
 0xa81   : > { %3266 = vadd.xlane.f32.xlu1 %v8007_v25  ;;  %v8914_v25 = vld [vmem:[#allocation43_spill] sm:$0xff] }
 0xa82   : > { %v8915_v56 = vsub.f32 %v8913_v2, %v8914_v25  ;;  %v3754_v2 = vmul.f32 1.442695, %v8933_v22  ;;  %v8934_v25 = vsub.f32 %v8131_v38, %v8136_v40  ;;  %v8937_v40 = vsub.f32 %v8201_v45, %v8222_v57  ;;  %v8946_v22 = vld [vmem:[#allocation66_spill] sm:$0xff] }
 0xa84   : > { %v3064_v11 = vmul.f32 1.442695, %v8915_v56  ;;  %v3750_v56 = vmul.f32 1.442695, %v8934_v25  ;;  %v3766_v47 = vmul.f32 1.442695, %v8937_v40 }
 0xa86   : > { %5532 = vpow2.f32 %v3064_v11  ;;  %v8936_v11 = vsub.f32 %v8152_v23, %v8169_v1  ;;  %v8939_v23 = vsub.f32 %v8224_v26, %v8247_v27  ;;  %v8941_v26 = vsub.f32 %v8283_v29, %v8300_v34 }
 0xa87   : > { %v8942_v29 = vsub.f32 %v8252_v18, %v8275_v37  ;;  %v8943_v18 = vld [vmem:[#allocation21_spill] sm:$0xff] }
 0xa88   : > { %v3752_v38 = vmul.f32 1.442695, %v8936_v11  ;;  %v3762_v1 = vmul.f32 1.442695, %v8939_v23  ;;  %v8944_v37 = vsub.f32 %v8229_v48, %v8943_v18 }
 0xa89   : > { %v3768_v34 = vmul.f32 1.442695, %v8942_v29 }
 0xa92   : > { %3321 = vperm.xlu1 %5478, %v8297_v7   ;;  %v8917_v7 = vld [vmem:[#allocation39_spill] sm:$0xff] }
 0xa93   : > { %v8918_v24 = vsub.f32 %v8916_v44, %v8917_v7  ;;  %v8938_v7 = vsub.f32 %v8177_v16, %v8194_v62  ;;  %v8940_v62 = vsub.f32 %v8196_v8, %v8219_v35 }
 0xa95   : > { %v3068_v42 = vmul.f32 1.442695, %v8918_v24  ;;  %v3756_v24 = vmul.f32 1.442695, %v8938_v7  ;;  %v3760_v32 = vmul.f32 1.442695, %v8940_v62 }
 0xa96   : > { %3331 = vperm.xlu1 %5478, %v5517_v51   ;;  %3326 = vperm.xlu0 %5479, %v8307_v50   ;;  %v8922_v51 = vld [vmem:[#allocation38_spill] sm:$0xff] }
 0xa97   : > { %v8924_v50 = vsub.f32 %v8922_v51, %v8923_v9  ;;  %5534 = vpow2.f32 %v3068_v42 }
 0xa98   : > { %5536 = vpow2.f32 %v3070_v61 }
 0xa99   : > { %v3074_v17 = vmul.f32 1.442695, %v8924_v50 }
 0xa9a   : > { %3336 = vperm.xlu1 %5478, %v5519_v52   ;;  %3341 = vperm.xlu0 %5479, %v5521_v33   ;;  %v8374_v52 = vpop.eup %5528  ;;  %v8928_v33 = vld [vmem:[#allocation44_spill] sm:$0xff] }
 0xa9b   : > { %5538 = vpow2.f32 %v3074_v17  ;;  %v8930_v59 = vsub.f32 %v8928_v33, %v8929_v6  ;;  %v8384_v54 = vpop.eup %5530  ;;  %v3764_v6 = vmul.f32 1.442695, %v8944_v37  ;;  %v8954_v37 = vld [vmem:[#allocation72_spill] sm:$0xff] }
 0xa9c   : > { %5540 = vpow2.f32 %v3072_v36  ;;  %v8386_v12 = vpop.eup %5532 }
 0xa9d   : > { %v3076_v58 = vmul.f32 1.442695, %v8930_v59 }
 0xa9e   : > { %3346 = vperm.xlu1 %5478, %v5525_v15   ;;  %3351 = vperm.xlu0 %5479, %v5523_v53   ;;  %v8931_v15 = vsub.f32 %v8138_v43, %v8147_v4 }
 0xa9f   : > { %5542 = vpow2.f32 %v3076_v58 }
 0xaa0   : > { %v3748_v53 = vmul.f32 1.442695, %v8931_v15 }
 0xaa1   : > { %v8396_v43 = vpop.eup %5534 }
 0xaa2   : > { %3356 = vperm.xlu1 %5478, %v8372_v3   ;;  %3361 = vperm.xlu0 %5479, %v8374_v52   ;;  %5544 = vpow2.f32 %v3748_v53  ;;  %v8398_v4 = vpop.eup %5536 }
 0xaa3   : > { %5546 = vpow2.f32 %v3746_v31 }
 0xaa4   : > { %5548 = vpow2.f32 %v3754_v2 }
 0xaa5   : > { %v8408_v60 = vpop.eup %5538  ;;  %5550 = vpow2.f32 %v3750_v56  ;;  %v8947_v56 = vld [vmem:[#allocation24_spill] sm:$0xff] }
 0xaa6   : > { %3366 = vperm.xlu1 %5478, %v8386_v12   ;;  %3371 = vperm.xlu0 %5479, %v8384_v54   ;;  %v8410_v30 = vpop.eup %5540  ;;  %5552 = vpow2.f32 %v3758_v21  ;;  %v8949_v21 = vsub.f32 %v8947_v56, %v8948_v41 }
 0xaa7   : > { %5554 = vpow2.f32 %v3752_v38 }
 0xaa8   : > { %5556 = vpow2.f32 %v3766_v47  ;;  %v3772_v11 = vmul.f32 1.442695, %v8949_v21  ;;  %v8956_v21 = vld [vmem:[#allocation71_spill] sm:$0xff] }
 0xaa9   : > { %v8420_v0 = vpop.eup %5542  ;;  %5558 = vpow2.f32 %v3756_v24 }
 0xaaa   : > { %3376 = vperm.xlu1 %5478, %v8396_v43   ;;  %3381 = vperm.xlu0 %5479, %v8398_v4   ;;  %5560 = vpow2.f32 %v3762_v1 }
 0xaac   : > { %v8422_v44 = vpop.eup %5544 }
 0xaad   : > { %v8432_v57 = vpop.eup %5546 }
 0xaae   : > { %3386 = vperm.xlu1 %5478, %v8410_v30   ;;  %3391 = vperm.xlu0 %5479, %v8408_v60   ;;  %v8435_v63 = vpop.eup %5548 }
 0xaaf   : > { %v8446_v9 = vpop.eup %5550 }
 0xab0   : > { %v8449_v35 = vpop.eup %5552 }
 0xab1   : > { %v8457_v5 = vpop.eup %5554 }
 0xab2   : > { %3396 = vperm.xlu1 %5478, %v8420_v0   ;;  %4026 = vperm.xlu0 %5479, %v8422_v44   ;;  %v8459_v36 = vpop.eup %5556 }
 0xab3   : > { %v3786_v45 = vpop.permute.xlu1 %3785  ;;  %v8468_v15 = vpop.eup %5558 }
 0xab4   : > { %v3859_v42 = vsub.f32 %v8079_v20, %v3786_v45  ;;  %v3781_v19 = vpop.permute.xlu0 %3780  ;;  %v3770_v20 = vmul.f32 1.442695, %v8941_v26  ;;  %v8470_v31 = vpop.eup %5560  ;;  %v8950_v45 = vld [vmem:[#allocation68_spill] sm:$0xff] }
 0xab5   : > { %v3858_v16 = vsub.f32 %v8075_v10, %v3781_v19  ;;  %v8951_v19 = vld [vmem:[#allocation70_spill] sm:$0xff] }
 0xab6   : > { %v3876_v61 = vmul.f32 1.442695, %v3859_v42  ;;  %4021 = vperm.xlu1 %5478, %v8432_v57   ;;  %4041 = vperm.xlu0 %5479, %v8435_v63  }
 0xab7   : > { %v3874_v27 = vmul.f32 1.442695, %v3858_v16  ;;  %v3791_v51 = vpop.permute.xlu1 %3790 }
 0xab8   : > { %5562 = vpow2.f32 %v3876_v61  ;;  %v3860_v10 = vsub.f32 %v8072_v14, %v3791_v51  ;;  %v3796_v50 = vpop.permute.xlu0 %3795 }
 0xab9   : > { %5564 = vpow2.f32 %v3874_v27  ;;  %v3861_v8 = vsub.f32 %v8077_v55, %v3796_v50  ;;  %v8952_v50 = vld [vmem:[#allocation67_spill] sm:$0xff] }
 0xaba   : > { %5566 = vpow2.f32 %v3760_v32  ;;  %v3878_v17 = vmul.f32 1.442695, %v3860_v10  ;;  %4031 = vperm.xlu1 %5478, %v8446_v9   ;;  %4051 = vperm.xlu0 %5479, %v8449_v35  }
 0xabb   : > { %5568 = vpow2.f32 %v3770_v20  ;;  %v3880_v13 = vmul.f32 1.442695, %v3861_v8 }
 0xabc   : > { %5570 = vpow2.f32 %v3878_v17  ;;  %v3801_v14 = vpop.permute.xlu1 %3800  ;;  %v3806_v49 = vpop.permute.xlu0 %3805  ;;  %v8953_v17 = vld [vmem:[#allocation69_spill] sm:$0xff] }
 0xabd   : > { %5572 = vpow2.f32 %v3880_v13  ;;  %v3862_v55 = vsub.f32 %v8087_v39, %v3801_v14  ;;  %v3863_v33 = vsub.f32 %v8091_v46, %v3806_v49  ;;  %v8945_v39 = vld [vmem:[#allocation65_spill] sm:$0xff] }
 0xabe   : > { %4036 = vperm.xlu1 %5478, %v8457_v5   ;;  %4071 = vperm.xlu0 %5479, %v8459_v36   ;;  %5574 = vpow2.f32 %v3768_v34 }
 0xabf   : > { %v3882_v59 = vmul.f32 1.442695, %v3862_v55  ;;  %v3884_v58 = vmul.f32 1.442695, %v3863_v33 }
 0xac0   : > { %v3811_v53 = vpop.permute.xlu1 %3810  ;;  %v3816_v28 = vpop.permute.xlu0 %3815 }
 0xac1   : > { %5576 = vpow2.f32 %v3882_v59  ;;  %v3864_v46 = vsub.f32 %v8945_v39, %v3811_v53  ;;  %v3865_v2 = vsub.f32 %v8946_v22, %v3816_v28  ;;  %v8955_v59 = vld [vmem:[#allocation74_spill] sm:$0xff] }
 0xac2   : > { %v8474_v25 = vpop.eup %5562  ;;  %5578 = vpow2.f32 %v3884_v58  ;;  %4046 = vperm.xlu1 %5478, %v8468_v15   ;;  %4061 = vperm.xlu0 %5479, %v8470_v31  }
 0xac3   : > { %v8478_v48 = vpop.eup %5564  ;;  %5580 = vpow2.f32 %v3764_v6  ;;  %v3886_v38 = vmul.f32 1.442695, %v3864_v46  ;;  %v3888_v40 = vmul.f32 1.442695, %v3865_v2 }
 0xac4   : > { %v8483_v47 = vpop.eup %5566  ;;  %v3821_v7 = vpop.permute.xlu1 %3820  ;;  %v4115_v23 = vpack.c.bf16 %v8474_v25, %v8478_v48 }
 0xac5   : > { %v3826_v24 = vpop.permute.xlu0 %3825  ;;  %v8487_v1 = vpop.eup %5568  ;;  %5582 = vpow2.f32 %v3886_v38  ;;  %v3866_v42 = vsub.f32 %v8950_v45, %v3821_v7  ;;  %v8957_v38 = vld [vmem:[#allocation73_spill] sm:$0xff] }
 0xac6   : > { %v3867_v16 = vsub.f32 %v8951_v19, %v3826_v24  ;;  %v8491_v62 = vpop.eup %5570  ;;  %5584 = vpow2.f32 %v3888_v40  ;;  %4056 = vperm.xlu1 %5478, %v8483_v47   ;;  %4081 = vperm.xlu0 %5479, %v8487_v1  }
 0xac7   : > { %v8495_v32 = vpop.eup %5572  ;;  %5586 = vpow2.f32 %v3772_v11  ;;  %v3890_v61 = vmul.f32 1.442695, %v3866_v42  ;;  %5297 = vmatprep.mubr.bf16.mxu0 %v4115_v23 }
 0xac8   : > { %v3892_v26 = vmul.f32 1.442695, %v3867_v16  ;;  %v3831_v20 = vpop.permute.xlu1 %3830  ;;  %v4116_v51 = vpack.c.bf16 %v8495_v32, %v8491_v62  ;;  %v8499_v10 = vpop.eup %5574 }
 0xac9   : > { %v3836_v27 = vpop.permute.xlu0 %3835  ;;  %5588 = vpow2.f32 %v3890_v61  ;;  %v3868_v8 = vsub.f32 %v8952_v50, %v3831_v20 }
 0xaca   : > { %v3869_v29 = vsub.f32 %v8953_v17, %v3836_v27  ;;  %5590 = vpow2.f32 %v3892_v26  ;;  %4076 = vperm.xlu1 %5478, %v8499_v10   ;;  %5298 = vmatmul.mubr.bf16.vlgmr.msra.gmra.mrb[16].mxu0 %v4116_v51 }
 0xacb   : > { %v5577_v34 = vpop.eup %5576  ;;  %v3894_v13 = vmul.f32 1.442695, %v3868_v8 }
 0xacc   : > { %v3896_v14 = vmul.f32 1.442695, %v3869_v29  ;;  %v5579_v49 = vpop.eup %5578  ;;  %v3841_v55 = vpop.permute.xlu1 %3840  ;;  %v3214_v29 = vld [vmem:[#allocation4 + $0x40] sm:$0xff] }
 0xacd   : > { %v3846_v33 = vpop.permute.xlu0 %3845  ;;  %v8504_v18 = vpop.eup %5580  ;;  %5592 = vpow2.f32 %v3894_v13  ;;  %v3870_v6 = vsub.f32 %v8954_v37, %v3841_v55  ;;  %v4117_v53 = vpack.c.bf16 %v5579_v49, %v5577_v34  ;;  %v3230_v13 = vmul.f32 %v8374_v52, %v3214_v29  ;;  %v3215_v55 = vld [vmem:[#allocation4 + $0x48] sm:$0xff]  ;;  %v3213_v37 = vld [vmem:[#allocation4 + $0x38] sm:$0xff]  ;;  %v8964_v29 = vld [vmem:[#allocation50_spill] sm:$0xff] }
 0xace   : > { %v3871_v58 = vsub.f32 %v8955_v59, %v3846_v33  ;;  %5594 = vpow2.f32 %v3896_v14  ;;  %4066 = vperm.xlu1 %5478, %v8504_v18   ;;  %v3216_v59 = vld [vmem:[#allocation4 + $0x50] sm:$0xff] }
 0xacf   : > { %v5583_v28 = vpop.eup %5582  ;;  %v3898_v39 = vmul.f32 1.442695, %v3870_v6  ;;  %5301 = vmatprep.mubr.bf16.mxu0 %v4117_v53  ;;  %v3219_v53 = vld [vmem:[#allocation4 + $0x68] sm:$0xff] }
 0xad0   : > { %v3900_v46 = vmul.f32 1.442695, %v3871_v58  ;;  %v5585_v22 = vpop.eup %5584  ;;  %v3851_v2 = vpop.permute.xlu1 %3850 }
 0xad1   : > { %v3856_v56 = vpop.permute.xlu0 %3855  ;;  %v8509_v41 = vpop.eup %5586  ;;  %5596 = vpow2.f32 %v3898_v39  ;;  %v3872_v11 = vsub.f32 %v8956_v21, %v3851_v2  ;;  %v4118_v7 = vpack.c.bf16 %v5585_v22, %v5583_v28 }
 0xad2   : > { %v3873_v40 = vsub.f32 %v8957_v38, %v3856_v56  ;;  %5598 = vpow2.f32 %v3900_v46  ;;  %4086 = vperm.xlu1 %5478, %v8509_v41   ;;  %v3221_v56 = vld [vmem:[#allocation4 + $0x78] sm:$0xff] }
 0xad3   : > { %v5589_v24 = vpop.eup %5588  ;;  %v3902_v23 = vmul.f32 1.442695, %v3872_v11  ;;  %5302 = vmatmul.mubr.bf16.gmra.mrb[20].mxu0 %v4118_v7  ;;  %v8959_v7 = vld [vmem:[#allocation22_spill] sm:$0xff] }
 0xad4   : > { %v3904_v45 = vmul.f32 1.442695, %v3873_v40  ;;  %v5591_v42 = vpop.eup %5590  ;;  %v8958_v40 = vld [vmem:[#allocation20_spill] sm:$0xff] }
 0xad5   : > { %5600 = vpow2.f32 %v3902_v23  ;;  %v4119_v19 = vpack.c.bf16 %v5591_v42, %v5589_v24 }
 0xad6   : > { %5602 = vpow2.f32 %v3904_v45  ;;  %v3237_v45 = vmul.f32 %v8420_v0, %v3221_v56 }
 0xad7   : > { %v5593_v16 = vpop.eup %5592  ;;  %5305 = vmatprep.mubr.bf16.mxu0 %v4119_v19 }
 0xad8   : > { %v5595_v61 = vpop.eup %5594 }
 0xad9   : > { %v4120_v26 = vpack.c.bf16 %v5595_v61, %v5593_v16 }
 0xadb   : > { %v8514_v20 = vpop.eup %5596  ;;  %5306 = vmatmul.mubr.bf16.gmra.mrb[24].mxu0 %v4120_v26  ;;  %v8962_v26 = vld [vmem:[#allocation29_spill] sm:$0xff] }
 0xadc   : > { %v5599_v27 = vpop.eup %5598 }
 0xadd   : > { %v4121_v51 = vpack.c.bf16 %v5599_v27, %v8514_v20 }
 0xadf   : > { %v5601_v50 = vpop.eup %5600  ;;  %5309 = vmatprep.mubr.bf16.mxu0 %v4121_v51 }
 0xae0   : > { %v5603_v8 = vpop.eup %5602 }
 0xae1   : > { %v4122_v17 = vpack.c.bf16 %v5603_v8, %v5601_v50 }
 0xae3   : > { %5310 = vmatmul.mubr.bf16.gmra.mrb[28].mxu0 %v4122_v17  ;;  %v3304_v17 = vld [vmem:[#allocation5 + $0x10] sm:$0xff] }
 0xae5   : > { %3943 = vadd.xlane.f32.xlu0 %v8491_v62 }
 0xae9   : > { %3939 = vadd.xlane.f32.xlu0 %v8478_v48  ;;  %v3231_v48 = vmul.f32 %v8386_v12, %v3215_v55  ;;  %v3232_v12 = vmul.f32 %v8384_v54, %v3216_v59  ;;  %v3220_v54 = vld [vmem:[#allocation4 + $0x70] sm:$0xff] }
 0xaed   : > { %3945 = vadd.xlane.f32.xlu0 %v8495_v32  ;;  %v3229_v32 = vmul.f32 %v8372_v3, %v3213_v37  ;;  %v3218_v3 = vld [vmem:[#allocation4 + $0x60] sm:$0xff] }
 0xaee   : > { %v3307_v37 = vld [vmem:[#allocation5 + $0x40] sm:$0xff] }
 0xaf1   : > { %3953 = vadd.xlane.f32.xlu0 %v5585_v22  ;;  %v3235_v22 = vmul.f32 %v8410_v30, %v3219_v53  ;;  %v8967_v53 = vld [vmem:[#allocation54_spill] sm:$0xff] }
 0xaf5   : > { %3949 = vadd.xlane.f32.xlu0 %v5579_v49 }
 0xaf6   : > { %3941 = vadd.xlane.f32.xlu1 %v8474_v25  ;;  %v3217_v25 = vld [vmem:[#allocation4 + $0x58] sm:$0xff] }
 0xaf7   : > { %v3233_v58 = vmul.f32 %v8396_v43, %v3217_v25  ;;  %v3234_v43 = vmul.f32 %v8398_v4, %v3218_v3  ;;  %v8966_v25 = vld [vmem:[#allocation49_spill] sm:$0xff]  ;;  %v8968_v3 = vld [vmem:[#allocation51_spill] sm:$0xff] }
 0xaf9   : > { %3961 = vadd.xlane.f32.xlu0 %v5595_v61  ;;  %v8961_v61 = vld [vmem:[#allocation27_spill] sm:$0xff] }
 0xafa   : > { %3951 = vadd.xlane.f32.xlu1 %v5583_v28 }
 0xafd   : > { %3957 = vadd.xlane.f32.xlu0 %v5591_v42  ;;  %v3255_v14 = vpop.xlane.xlu0 %3254  ;;  %v3236_v42 = vmul.f32 %v8408_v60, %v3220_v54  ;;  %v3305_v60 = vld [vmem:[#allocation5 + $0x20] sm:$0xff]  ;;  %v8969_v54 = vld [vmem:[#allocation53_spill] sm:$0xff] }
 0xafe   : > { %v3278_v33 = vadd.f32 %v3255_v14, %v3230_v13  ;;  %3947 = vadd.xlane.f32.xlu1 %v5577_v34 }
 0xb00   : > { %3295 = vst.msk [vmem:[#allocation4 + $0x40] sm:$0xff] %vm3286_vm11, %v3278_v33 }
 0xb01   : > { %3969 = vadd.xlane.f32.xlu0 %v5603_v8  ;;  %v3257_v62 = vpop.xlane.xlu0 %3256 }
 0xb02   : > { %v3279_v49 = vadd.f32 %v3257_v62, %v3231_v48  ;;  %v3253_v6 = vpop.xlane.xlu1 %3252  ;;  %3959 = vadd.xlane.f32.xlu1 %v5593_v16  ;;  %v8965_v48 = vld [vmem:[#allocation52_spill] sm:$0xff] }
 0xb03   : > { %v3277_v52 = vadd.f32 %v3253_v6, %v3229_v32  ;;  %v3306_v32 = vld [vmem:[#allocation5 + $0x30] sm:$0xff] }
 0xb04   : > { %3296 = vst.msk [vmem:[#allocation4 + $0x48] sm:$0xff] %vm3286_vm11, %v3279_v49 }
 0xb05   : > { %3294 = vst.msk [vmem:[#allocation4 + $0x38] sm:$0xff] %vm3286_vm11, %v3277_v52  ;;  %3965 = vadd.xlane.f32.xlu0 %v5599_v27  ;;  %v3261_v34 = vpop.xlane.xlu0 %3260  ;;  %v8963_v27 = vsub.f32 %v8961_v61, %v8962_v26  ;;  %v3312_v61 = vld [vmem:[#allocation5 + $0x90] sm:$0xff]  ;;  %v8972_v26 = vld [vmem:[#allocation55_spill] sm:$0xff] }
 0xb06   : > { %v3281_v28 = vadd.f32 %v3261_v34, %v3233_v58  ;;  %v3259_v39 = vpop.xlane.xlu1 %3258  ;;  %3955 = vadd.xlane.f32.xlu1 %v5589_v24  ;;  %v8960_v24 = vsub.f32 %v8958_v40, %v8959_v7  ;;  %v3310_v40 = vld [vmem:[#allocation5 + $0x70] sm:$0xff]  ;;  %v8970_v7 = vld [vmem:[#allocation56_spill] sm:$0xff] }
 0xb07   : > { %v3280_v46 = vadd.f32 %v3259_v39, %v3232_v12  ;;  %v3776_v51 = vmul.f32 1.442695, %v8963_v27  ;;  %v3309_v12 = vld [vmem:[#allocation5 + $0x60] sm:$0xff]  ;;  %v3308_v39 = vld [vmem:[#allocation5 + $0x50] sm:$0xff] }
 0xb08   : > { %3298 = vst.msk [vmem:[#allocation4 + $0x58] sm:$0xff] %vm3286_vm11, %v3281_v28  ;;  %v3774_v23 = vmul.f32 1.442695, %v8960_v24 }
 0xb09   : > { %3297 = vst.msk [vmem:[#allocation4 + $0x50] sm:$0xff] %vm3286_vm11, %v3280_v46  ;;  %v3265_v2 = vpop.xlane.xlu0 %3264 }
 0xb0a   : > { %v3283_v21 = vadd.f32 %v3265_v2, %v3235_v22  ;;  %v3263_v11 = vpop.xlane.xlu1 %3262  ;;  %3967 = vadd.xlane.f32.xlu1 %v5601_v50  ;;  %5604 = vpow2.f32 %v3774_v23  ;;  %v3303_v50 = vld [vmem:[#allocation5] sm:$0xff] }
 0xb0b   : > { %v3282_v38 = vadd.f32 %v3263_v11, %v3234_v43  ;;  %5606 = vpow2.f32 %v3776_v51  ;;  %v3311_v11 = vld [vmem:[#allocation5 + $0x80] sm:$0xff] }
 0xb0c   : > { %3300 = vst.msk [vmem:[#allocation4 + $0x68] sm:$0xff] %vm3286_vm11, %v3283_v21 }
 0xb0d   : > { %3299 = vst.msk [vmem:[#allocation4 + $0x60] sm:$0xff] %vm3286_vm11, %v3282_v38  ;;  %v3269_v30 = vpop.xlane.xlu0 %3268 }
 0xb0e   : > { %v3285_v4 = vadd.f32 %v3269_v30, %v3237_v45  ;;  %v3267_v19 = vpop.xlane.xlu1 %3266  ;;  %3963 = vadd.xlane.f32.xlu1 %v8514_v20 }
 0xb0f   : > { %v3284_v16 = vadd.f32 %v3267_v19, %v3236_v42  ;;  %v8971_v19 = vld [vmem:[#allocation58_spill] sm:$0xff] }
 0xb10   : > { %3302 = vst.msk [vmem:[#allocation4 + $0x78] sm:$0xff] %vm3286_vm11, %v3285_v4  ;;  %v3313_v4 = vld [vmem:[#allocation5 + $0xa0] sm:$0xff] }
 0xb11   : > { %3301 = vst.msk [vmem:[#allocation4 + $0x70] sm:$0xff] %vm3286_vm11, %v3284_v16 }
 0xb12   : > { %v3322_v0 = vpop.permute.xlu1 %3321 }
 0xb13   : > { %v3399_v8 = vmul.f32 %v3322_v0, %v3303_v50 }
 0xb14   : > { %v8549_v59 = vpop.eup %5604 }
 0xb15   : > { %v3520_v13 = vadd.f32 %v8964_v29, %v3399_v8  ;;  %v3327_v14 = vpop.permute.xlu0 %3326  ;;  %v8554_v2 = vpop.eup %5606 }
 0xb16   : > { %v3400_v20 = vmul.f32 %v3327_v14, %v3304_v17  ;;  %v3332_v55 = vpop.permute.xlu1 %3331  ;;  %v3315_v17 = vld [vmem:[#allocation5 + $0xc0] sm:$0xff] }
 0xb17   : > { %3536 = vst [vmem:[#allocation5] sm:$0xff] %v3520_v13  ;;  %v3401_v33 = vmul.f32 %v3332_v55, %v3305_v60  ;;  %v8973_v60 = vld [vmem:[#allocation57_spill] sm:$0xff]  ;;  %v3314_v13 = vld [vmem:[#allocation5 + $0xb0] sm:$0xff]  ;;  %v8974_v14 = vld [vmem:[#allocation60_spill] sm:$0xff] }
 0xb18   : > { %v3521_v62 = vadd.f32 %v8965_v48, %v3400_v20 }
 0xb19   : > { %v3522_v49 = vadd.f32 %v8966_v25, %v3401_v33  ;;  %v3342_v6 = vpop.permute.xlu0 %3341 }
 0xb1a   : > { %3537 = vst [vmem:[#allocation5 + $0x10] sm:$0xff] %v3521_v62  ;;  %v3403_v52 = vmul.f32 %v3342_v6, %v3307_v37  ;;  %v3337_v58 = vpop.permute.xlu1 %3336  ;;  %v3317_v62 = vld [vmem:[#allocation5 + $0xe0] sm:$0xff]  ;;  %v8976_v6 = vld [vmem:[#allocation59_spill] sm:$0xff] }
 0xb1b   : > { %3538 = vst [vmem:[#allocation5 + $0x20] sm:$0xff] %v3522_v49  ;;  %v3402_v34 = vmul.f32 %v3337_v58, %v3306_v32  ;;  %4091 = vperm.xlu0 %5479, %v8549_v59   ;;  %v8975_v32 = vld [vmem:[#allocation62_spill] sm:$0xff] }
 0xb1c   : > { %v3524_v28 = vadd.f32 %v8967_v53, %v3403_v52  ;;  %v3316_v49 = vld [vmem:[#allocation5 + $0xd0] sm:$0xff] }
 0xb1d   : > { %v3523_v46 = vadd.f32 %v8968_v3, %v3402_v34  ;;  %v3352_v22 = vpop.permute.xlu0 %3351  ;;  %v3318_v3 = vld [vmem:[#allocation5 + $0xf0] sm:$0xff] }
 0xb1e   : > { %3540 = vst [vmem:[#allocation5 + $0x40] sm:$0xff] %v3524_v28  ;;  %v3405_v43 = vmul.f32 %v3352_v22, %v3309_v12  ;;  %v3347_v56 = vpop.permute.xlu1 %3346  ;;  %v8977_v28 = vld [vmem:[#allocation61_spill] sm:$0xff] }
 0xb1f   : > { %3539 = vst [vmem:[#allocation5 + $0x30] sm:$0xff] %v3523_v46  ;;  %v3404_v21 = vmul.f32 %v3347_v56, %v3308_v39  ;;  %4096 = vperm.xlu1 %5478, %v8554_v2   ;;  %v8978_v46 = vld [vmem:[#allocation64_spill] sm:$0xff] }
 0xb20   : > { %v3526_v38 = vadd.f32 %v8969_v54, %v3405_v43 }
 0xb21   : > { %v3525_v24 = vadd.f32 %v8970_v7, %v3404_v21  ;;  %v3362_v23 = vpop.permute.xlu0 %3361  ;;  %v8979_v21 = vld [vmem:[#allocation63_spill] sm:$0xff] }
 0xb22   : > { %3542 = vst [vmem:[#allocation5 + $0x60] sm:$0xff] %v3526_v38  ;;  %v3407_v45 = vmul.f32 %v3362_v23, %v3311_v11  ;;  %v3357_v30 = vpop.permute.xlu1 %3356 }
 0xb23   : > { %3541 = vst [vmem:[#allocation5 + $0x50] sm:$0xff] %v3525_v24  ;;  %v3406_v42 = vmul.f32 %v3357_v30, %v3310_v40 }
 0xb24   : > { %v3528_v16 = vadd.f32 %v8971_v19, %v3407_v45 }
 0xb25   : > { %v3527_v27 = vadd.f32 %v8972_v26, %v3406_v42  ;;  %v3372_v51 = vpop.permute.xlu0 %3371 }
 0xb26   : > { %3544 = vst [vmem:[#allocation5 + $0x80] sm:$0xff] %v3528_v16  ;;  %v3409_v50 = vmul.f32 %v3372_v51, %v3313_v4  ;;  %v3367_v0 = vpop.permute.xlu1 %3366  ;;  %v3909_v16 = vld [vmem:[#allocation4 + $0x90] sm:$0xff] }
 0xb27   : > { %3543 = vst [vmem:[#allocation5 + $0x70] sm:$0xff] %v3527_v27  ;;  %v3408_v8 = vmul.f32 %v3367_v0, %v3312_v61  ;;  %v3925_v61 = vmul.f32 %v8446_v9, %v3909_v16  ;;  %v3907_v27 = vld [vmem:[#allocation4 + $0x80] sm:$0xff]  ;;  %v3914_v9 = vld [vmem:[#allocation4 + $0xb8] sm:$0xff] }
 0xb28   : > { %v3530_v29 = vadd.f32 %v8973_v60, %v3409_v50  ;;  %v3923_v0 = vmul.f32 %v8432_v57, %v3907_v27 }
 0xb29   : > { %v3529_v20 = vadd.f32 %v8974_v14, %v3408_v8  ;;  %v3382_v55 = vpop.permute.xlu0 %3381 }
 0xb2a   : > { %3546 = vst [vmem:[#allocation5 + $0xa0] sm:$0xff] %v3530_v29  ;;  %v3411_v33 = vmul.f32 %v3382_v55, %v3315_v17  ;;  %v3377_v37 = vpop.permute.xlu1 %3376  ;;  %v3910_v17 = vld [vmem:[#allocation4 + $0x98] sm:$0xff]  ;;  %v3930_v55 = vmul.f32 %v8483_v47, %v3914_v9 }
 0xb2b   : > { %3545 = vst [vmem:[#allocation5 + $0x90] sm:$0xff] %v3529_v20  ;;  %v3410_v48 = vmul.f32 %v3377_v37, %v3314_v13  ;;  %v3926_v13 = vmul.f32 %v8457_v5, %v3910_v17  ;;  %v3912_v37 = vld [vmem:[#allocation4 + $0xa8] sm:$0xff] }
 0xb2c   : > { %v3532_v25 = vadd.f32 %v8975_v32, %v3411_v33  ;;  %v3928_v32 = vmul.f32 %v8468_v15, %v3912_v37  ;;  %v4005_v37 = vld [vmem:[#allocation5 + $0x28] sm:$0xff] }
 0xb2d   : > { %v3531_v52 = vadd.f32 %v8976_v6, %v3410_v48  ;;  %v3392_v58 = vpop.permute.xlu0 %3391 }
 0xb2e   : > { %3548 = vst [vmem:[#allocation5 + $0xc0] sm:$0xff] %v3532_v25  ;;  %v3413_v34 = vmul.f32 %v3392_v58, %v3317_v62  ;;  %v3387_v12 = vpop.permute.xlu1 %3386  ;;  %v3908_v62 = vld [vmem:[#allocation4 + $0x88] sm:$0xff]  ;;  %v3913_v58 = vld [vmem:[#allocation4 + $0xb0] sm:$0xff] }
 0xb2f   : > { %3547 = vst [vmem:[#allocation5 + $0xb0] sm:$0xff] %v3531_v52  ;;  %v3412_v53 = vmul.f32 %v3387_v12, %v3316_v49  ;;  %v3924_v5 = vmul.f32 %v8422_v44, %v3908_v62  ;;  %v3918_v49 = vld [vmem:[#allocation4 + $0xd8] sm:$0xff] }
 0xb30   : > { %v3534_v39 = vadd.f32 %v8977_v28, %v3413_v34  ;;  %v3934_v47 = vmul.f32 %v8499_v10, %v3918_v49  ;;  %v3916_v28 = vld [vmem:[#allocation4 + $0xc8] sm:$0xff]  ;;  %v3922_v10 = vld [vmem:[#allocation4 + $0xf8] sm:$0xff] }
 0xb31   : > { %v3533_v22 = vadd.f32 %v8978_v46, %v3412_v53  ;;  %v8568_v54 = vpop.permute.xlu0 %4026  ;;  %v3929_v53 = vmul.f32 %v8449_v35, %v3913_v58  ;;  %v3932_v44 = vmul.f32 %v8504_v18, %v3916_v28  ;;  %v3938_v35 = vmul.f32 %v8554_v2, %v3922_v10  ;;  %v3920_v18 = vld [vmem:[#allocation4 + $0xe8] sm:$0xff] }
 0xb32   : > { %3550 = vst [vmem:[#allocation5 + $0xe0] sm:$0xff] %v3534_v39  ;;  %v3397_v43 = vpop.permute.xlu1 %3396 }
 0xb33   : > { %3549 = vst [vmem:[#allocation5 + $0xd0] sm:$0xff] %v3533_v22  ;;  %v3414_v56 = vmul.f32 %v3397_v43, %v3318_v3  ;;  %v3911_v3 = vld [vmem:[#allocation4 + $0xa0] sm:$0xff] }
 0xb34   : > { %v3927_v43 = vmul.f32 %v8435_v63, %v3911_v3  ;;  %v3936_v63 = vmul.f32 %v8509_v41, %v3920_v18  ;;  %v4003_v41 = vld [vmem:[#allocation5 + $0x8] sm:$0xff] }
 0xb35   : > { %v3535_v11 = vadd.f32 %v8979_v21, %v3414_v56  ;;  %v8572_v40 = vpop.permute.xlu0 %4041 }
 0xb36   : > { %v8570_v38 = vpop.permute.xlu1 %4021 }
 0xb37   : > { %3551 = vst [vmem:[#allocation5 + $0xf0] sm:$0xff] %v3535_v11  ;;  %v3917_v11 = vld [vmem:[#allocation4 + $0xd0] sm:$0xff]  ;;  %v4099_v49 = vmul.f32 %v8570_v38, %v4003_v41  ;;  %v4010_v38 = vld [vmem:[#allocation5 + $0x78] sm:$0xff] }
 0xb39   : > { %v8576_v24 = vpop.permute.xlu0 %4051 }
 0xb3a   : > { %v8574_v7 = vpop.permute.xlu1 %4031 }
 0xb3d   : > { %v8580_v45 = vpop.permute.xlu0 %4071 }
 0xb3e   : > { %v8578_v23 = vpop.permute.xlu1 %4036 }
 0xb41   : > { %v8584_v42 = vpop.permute.xlu0 %4061 }
 0xb42   : > { %v8582_v30 = vpop.permute.xlu1 %4046 }
 0xb45   : > { %v8588_v19 = vpop.permute.xlu0 %4081 }
 0xb46   : > { %v8586_v4 = vpop.permute.xlu1 %4056 }
 0xb4a   : > { %v8591_v51 = vpop.permute.xlu1 %4076 }
 0xb4e   : > { %v8595_v29 = vpop.permute.xlu1 %4066 }
 0xb52   : > { %v8601_v48 = vpop.permute.xlu1 %4086 }
 0xb72   : > { %v3944_v26 = vpop.xlane.xlu0 %3943 }
 0xb73   : > { %v3973_v50 = vadd.f32 %v3944_v26, %v3925_v61  ;;  %v3933_v26 = vmul.f32 %v8459_v36, %v3917_v11 }
 0xb75   : > { %3989 = vst.msk [vmem:[#allocation4 + $0x90] sm:$0xff] %vm3286_vm11, %v3973_v50 }
 0xb76   : > { %v3940_v8 = vpop.xlane.xlu0 %3939 }
 0xb77   : > { %v3971_v60 = vadd.f32 %v3940_v8, %v3923_v0  ;;  %v3915_v0 = vld [vmem:[#allocation4 + $0xc0] sm:$0xff] }
 0xb79   : > { %3987 = vst.msk [vmem:[#allocation4 + $0x80] sm:$0xff] %vm3286_vm11, %v3971_v60  ;;  %v3931_v60 = vmul.f32 %v8470_v31, %v3915_v0  ;;  %v4006_v31 = vld [vmem:[#allocation5 + $0x38] sm:$0xff] }
 0xb7a   : > { %v3946_v14 = vpop.xlane.xlu0 %3945 }
 0xb7b   : > { %v3974_v20 = vadd.f32 %v3946_v14, %v3926_v13  ;;  %v3921_v14 = vld [vmem:[#allocation4 + $0xf0] sm:$0xff] }
 0xb7c   : > { %v3937_v36 = vmul.f32 %v8549_v59, %v3921_v14  ;;  %v4102_v59 = vmul.f32 %v8578_v23, %v4006_v31 }
 0xb7d   : > { %3990 = vst.msk [vmem:[#allocation4 + $0x98] sm:$0xff] %vm3286_vm11, %v3974_v20 }
 0xb7e   : > { %v3954_v33 = vpop.xlane.xlu0 %3953 }
 0xb7f   : > { %v3978_v57 = vadd.f32 %v3954_v33, %v3930_v55  ;;  %v3919_v55 = vld [vmem:[#allocation4 + $0xe0] sm:$0xff] }
 0xb81   : > { %3994 = vst.msk [vmem:[#allocation4 + $0xb8] sm:$0xff] %vm3286_vm11, %v3978_v57  ;;  %v3935_v57 = vmul.f32 %v8487_v1, %v3919_v55 }
 0xb82   : > { %v3950_v25 = vpop.xlane.xlu0 %3949 }
 0xb83   : > { %v3976_v6 = vadd.f32 %v3950_v25, %v3928_v32  ;;  %v3942_v52 = vpop.xlane.xlu1 %3941  ;;  %v4004_v32 = vld [vmem:[#allocation5 + $0x18] sm:$0xff]  ;;  %v4101_v25 = vmul.f32 %v8574_v7, %v4005_v37  ;;  %v4009_v7 = vld [vmem:[#allocation5 + $0x68] sm:$0xff] }
 0xb84   : > { %v3972_v34 = vadd.f32 %v3942_v52, %v3924_v5  ;;  %v4105_v23 = vmul.f32 %v8576_v24, %v4009_v7  ;;  %v4014_v24 = vld [vmem:[#allocation5 + $0xb8] sm:$0xff] }
 0xb85   : > { %3992 = vst.msk [vmem:[#allocation4 + $0xa8] sm:$0xff] %vm3286_vm11, %v3976_v6 }
 0xb86   : > { %3988 = vst.msk [vmem:[#allocation4 + $0x88] sm:$0xff] %vm3286_vm11, %v3972_v34  ;;  %v3962_v12 = vpop.xlane.xlu0 %3961  ;;  %v4100_v34 = vmul.f32 %v8568_v54, %v4004_v32  ;;  %v4106_v54 = vmul.f32 %v8586_v4, %v4010_v38 }
 0xb87   : > { %v3982_v39 = vadd.f32 %v3962_v12, %v3934_v47  ;;  %v3952_v15 = vpop.xlane.xlu1 %3951 }
 0xb88   : > { %v3977_v46 = vadd.f32 %v3952_v15, %v3929_v53  ;;  %v4008_v15 = vld [vmem:[#allocation5 + $0x58] sm:$0xff] }
 0xb89   : > { %3998 = vst.msk [vmem:[#allocation4 + $0xd8] sm:$0xff] %vm3286_vm11, %v3982_v39  ;;  %v4007_v39 = vld [vmem:[#allocation5 + $0x48] sm:$0xff] }
 0xb8a   : > { %3993 = vst.msk [vmem:[#allocation4 + $0xb0] sm:$0xff] %vm3286_vm11, %v3977_v46  ;;  %v3958_v22 = vpop.xlane.xlu0 %3957  ;;  %v4103_v3 = vmul.f32 %v8572_v40, %v4007_v39  ;;  %v4299_v39 = vld [vmem:[#allocation4 + $0x58] sm:$0xff] (!%p5006_p4) }
 0xb8b   : > { %v3980_v56 = vadd.f32 %v3958_v22, %v3932_v44  ;;  %v3948_v21 = vpop.xlane.xlu1 %3947 }
 0xb8c   : > { %v3975_v16 = vadd.f32 %v3948_v21, %v3927_v43  ;;  %v4104_v43 = vmul.f32 %v8582_v30, %v4008_v15  ;;  %v4110_v30 = vmul.f32 %v8591_v51, %v4014_v24 }
 0xb8d   : > { %3996 = vst.msk [vmem:[#allocation4 + $0xc8] sm:$0xff] %vm3286_vm11, %v3980_v56 }
 0xb8e   : > { %3991 = vst.msk [vmem:[#allocation4 + $0xa0] sm:$0xff] %vm3286_vm11, %v3975_v16  ;;  %v3970_v61 = vpop.xlane.xlu0 %3969  ;;  %v4013_v16 = vld [vmem:[#allocation5 + $0xa8] sm:$0xff] }
 0xb8f   : > { %v3986_v27 = vadd.f32 %v3970_v61, %v3938_v35  ;;  %v3960_v50 = vpop.xlane.xlu1 %3959  ;;  %v4011_v61 = vld [vmem:[#allocation5 + $0x88] sm:$0xff]  ;;  %v4109_v40 = vmul.f32 %v8580_v45, %v4013_v16  ;;  %v4448_v16 = vld [vmem:[#allocation4 + $0x80] sm:$0xff] (!%p5006_p4) }
 0xb90   : > { %v3981_v8 = vadd.f32 %v3960_v50, %v3933_v26  ;;  %v4012_v26 = vld [vmem:[#allocation5 + $0x98] sm:$0xff]  ;;  %v4107_v4 = vmul.f32 %v8584_v42, %v4011_v61  ;;  %v4015_v45 = vld [vmem:[#allocation5 + $0xc8] sm:$0xff] }
 0xb91   : > { %4002 = vst.msk [vmem:[#allocation4 + $0xf8] sm:$0xff] %vm3286_vm11, %v3986_v27  ;;  %v4108_v0 = vmul.f32 %v8595_v29, %v4012_v26  ;;  %v4451_v61 = vld [vmem:[#allocation4 + $0x98] sm:$0xff] (!%p5006_p4) }
 0xb92   : > { %3997 = vst.msk [vmem:[#allocation4 + $0xd0] sm:$0xff] %vm3286_vm11, %v3981_v8  ;;  %v3966_v17 = vpop.xlane.xlu0 %3965 }
 0xb93   : > { %v3984_v2 = vadd.f32 %v3966_v17, %v3936_v63  ;;  %v3956_v13 = vpop.xlane.xlu1 %3955 }
 0xb94   : > { %v3979_v9 = vadd.f32 %v3956_v13, %v3931_v60 }
 0xb95   : > { %4000 = vst.msk [vmem:[#allocation4 + $0xe8] sm:$0xff] %vm3286_vm11, %v3984_v2  ;;  %v4017_v2 = vld [vmem:[#allocation5 + $0xe8] sm:$0xff] }
 0xb96   : > { %3995 = vst.msk [vmem:[#allocation4 + $0xc0] sm:$0xff] %vm3286_vm11, %v3979_v9  ;;  %v4018_v9 = vld [vmem:[#allocation5 + $0xf8] sm:$0xff] }
 0xb97   : > { %v3968_v20 = vpop.xlane.xlu1 %3967 }
 0xb98   : > { %v3985_v33 = vadd.f32 %v3968_v20, %v3937_v36  ;;  %v4016_v36 = vld [vmem:[#allocation5 + $0xd8] sm:$0xff]  ;;  %v4111_v20 = vmul.f32 %v8588_v19, %v4015_v45  ;;  %v4288_v19 = vld [vmem:[#allocation4] sm:$0xff] (!%p5006_p4) }
 0xb99   : > { %v4112_v41 = vmul.f32 %v8601_v48, %v4016_v36  ;;  %v4289_v48 = vld [vmem:[#allocation4 + $0x8] sm:$0xff] (!%p5006_p4) }
 0xb9a   : > { %4001 = vst.msk [vmem:[#allocation4 + $0xf0] sm:$0xff] %vm3286_vm11, %v3985_v33  ;;  %v4092_v13 = vpop.permute.xlu0 %4091 }
 0xb9b   : > { %v3964_v62 = vpop.xlane.xlu1 %3963  ;;  %v4113_v51 = vmul.f32 %v4092_v13, %v4017_v2 }
 0xb9c   : > { %v3983_v5 = vadd.f32 %v3964_v62, %v3935_v57  ;;  %v4461_v36 = vld [vmem:[#allocation4 + $0xe8] sm:$0xff] (!%p5006_p4) }
 0xb9d   : > { %v5299_v6 = vpop.f32.mrb[16].mxu0  ;;  %v4456_v2 = vld [vmem:[#allocation4 + $0xc0] sm:$0xff] (!%p5006_p4) }
 0xb9e   : > { %3999 = vst.msk [vmem:[#allocation4 + $0xe0] sm:$0xff] %vm3286_vm11, %v3983_v5  ;;  %v4222_v52 = vadd.f32 %v5299_v6, %v4101_v25  ;;  %v4157_v58 = vpop.f32.mrb[17].mxu0  ;;  %v4290_v5 = vld [vmem:[#allocation4 + $0x10] sm:$0xff] (!%p5006_p4)  ;;  %v5773_v6 = vmov (!%p5006_p4), 0  }
 0xb9f   : > { %v4220_v47 = vadd.f32 %v4157_v58, %v4099_v49  ;;  %v5300_v12 = vpop.f32.mrb[18].mxu0  ;;  %v4097_v42 = vpop.permute.xlu1 %4096  ;;  %v4291_v49 = vld [vmem:[#allocation4 + $0x18] sm:$0xff] (!%p5006_p4)  ;;  %5615 = vset.pattern.permute.xlu1 (!%p5006_p4), %v5773_v6  ;;  %5614 = vset.pattern.permute.xlu0 (!%p5006_p4), %v5773_v6  ;;  %5616 = vrcp.f32 (!%p5006_p4), %v4290_v5 }
 0xba0   : > { %4238 = vst [vmem:[#allocation5 + $0x28] sm:$0xff] %v4222_v52  ;;  %v4223_v1 = vadd.f32 %v5300_v12, %v4102_v59  ;;  %v4160_v53 = vpop.f32.mrb[19].mxu0  ;;  %v4114_v29 = vmul.f32 %v4097_v42, %v4018_v9  ;;  %5618 = vrcp.f32 (!%p5006_p4), %v4288_v19  ;;  %v4293_v59 = vld [vmem:[#allocation4 + $0x28] sm:$0xff] (!%p5006_p4)  ;;  %v4292_v52 = vld [vmem:[#allocation4 + $0x20] sm:$0xff] (!%p5006_p4)  ;;  %v4295_v58 = vld [vmem:[#allocation4 + $0x38] sm:$0xff] (!%p5006_p4) }
 0xba1   : > { %4236 = vst [vmem:[#allocation5 + $0x8] sm:$0xff] %v4220_v47  ;;  %v4221_v28 = vadd.f32 %v4160_v53, %v4100_v34  ;;  %5620 = vrcp.f32 (!%p5006_p4), %v4291_v49  ;;  %v4294_v34 = vld [vmem:[#allocation4 + $0x30] sm:$0xff] (!%p5006_p4)  ;;  %v4274_v19 = vld [vmem:[#allocation5 + $0x20] sm:$0xff] (!%p5006_p4) }
 0xba2   : > { %4239 = vst [vmem:[#allocation5 + $0x38] sm:$0xff] %v4223_v1  ;;  %5622 = vrcp.f32 (!%p5006_p4), %v4289_v48  ;;  %v4297_v1 = vld [vmem:[#allocation4 + $0x48] sm:$0xff] (!%p5006_p4)  ;;  %v4458_v9 = vld [vmem:[#allocation4 + $0xd0] sm:$0xff] (!%p5006_p4)  ;;  %v4272_v49 = vld [vmem:[#allocation5] sm:$0xff] (!%p5006_p4) }
 0xba3   : > { %4237 = vst [vmem:[#allocation5 + $0x18] sm:$0xff] %v4221_v28  ;;  %5624 = vrcp.f32 (!%p5006_p4), %v4293_v59  ;;  %v4296_v28 = vld [vmem:[#allocation4 + $0x40] sm:$0xff] (!%p5006_p4) }
 0xba4   : > { %5626 = vrcp.f32 (!%p5006_p4), %v4292_v52 }
 0xba5   : > { %5628 = vrcp.f32 (!%p5006_p4), %v4295_v58  ;;  %v4275_v58 = vld [vmem:[#allocation5 + $0x30] sm:$0xff] (!%p5006_p4) }
 0xba6   : > { %v5303_v46 = vpop.f32.mrb[20].mxu0  ;;  %5630 = vrcp.f32 (!%p5006_p4), %v4294_v34  ;;  %v4273_v34 = vld [vmem:[#allocation5 + $0x10] sm:$0xff] (!%p5006_p4) }
 0xba7   : > { %v4226_v44 = vadd.f32 %v5303_v46, %v4105_v23  ;;  %v4173_v22 = vpop.f32.mrb[21].mxu0  ;;  %5632 = vrcp.f32 (!%p5006_p4), %v4297_v1  ;;  %v4298_v23 = vld [vmem:[#allocation4 + $0x50] sm:$0xff] (!%p5006_p4) }
 0xba8   : > { %v4224_v10 = vadd.f32 %v4173_v22, %v4103_v3  ;;  %v5304_v56 = vpop.f32.mrb[22].mxu0  ;;  %5634 = vrcp.f32 (!%p5006_p4), %v4296_v28  ;;  %v4301_v3 = vld [vmem:[#allocation4 + $0x68] sm:$0xff] (!%p5006_p4)  ;;  %v4303_v22 = vld [vmem:[#allocation4 + $0x78] sm:$0xff] (!%p5006_p4)  ;;  %v4277_v28 = vld [vmem:[#allocation5 + $0x50] sm:$0xff] (!%p5006_p4) }
 0xba9   : > { %4242 = vst [vmem:[#allocation5 + $0x68] sm:$0xff] %v4226_v44  ;;  %v4227_v21 = vadd.f32 %v5304_v56, %v4106_v54  ;;  %v4176_v11 = vpop.f32.mrb[23].mxu0  ;;  %v5617_v47 = vpop.eup (!%p5006_p4), %5616  ;;  %5636 = vrcp.f32 (!%p5006_p4), %v4299_v39  ;;  %v4300_v54 = vld [vmem:[#allocation4 + $0x60] sm:$0xff] (!%p5006_p4) }
 0xbaa   : > { %4240 = vst [vmem:[#allocation5 + $0x48] sm:$0xff] %v4224_v10  ;;  %v4225_v35 = vadd.f32 %v4176_v11, %v4104_v43  ;;  %v5619_v12 = vpop.eup (!%p5006_p4), %5618  ;;  %4332 = vperm.xlu1 (!%p5006_p4), %5615, %v5617_v47   ;;  %5638 = vrcp.f32 (!%p5006_p4), %v4298_v23  ;;  %v4302_v10 = vld [vmem:[#allocation4 + $0x70] sm:$0xff] (!%p5006_p4) }
 0xbab   : > { %4243 = vst [vmem:[#allocation5 + $0x78] sm:$0xff] %v4227_v21  ;;  %v5621_v53 = vpop.eup (!%p5006_p4), %5620  ;;  %4322 = vperm.xlu0 (!%p5006_p4), %5614, %v5619_v12   ;;  %5640 = vrcp.f32 (!%p5006_p4), %v4301_v3  ;;  %v4449_v21 = vld [vmem:[#allocation4 + $0x88] sm:$0xff] (!%p5006_p4)  ;;  %v4279_v3 = vld [vmem:[#allocation5 + $0x70] sm:$0xff] (!%p5006_p4) }
 0xbac   : > { %4241 = vst [vmem:[#allocation5 + $0x58] sm:$0xff] %v4225_v35  ;;  %v5623_v7 = vpop.eup (!%p5006_p4), %5622  ;;  %5642 = vrcp.f32 (!%p5006_p4), %v4300_v54 }
 0xbad   : > { %v5625_v38 = vpop.eup (!%p5006_p4), %5624  ;;  %5644 = vrcp.f32 (!%p5006_p4), %v4303_v22 }
 0xbae   : > { %v5307_v18 = vpop.f32.mrb[24].mxu0  ;;  %4337 = vperm.xlu1 (!%p5006_p4), %5615, %v5621_v53   ;;  %v5627_v15 = vpop.eup (!%p5006_p4), %5626  ;;  %5646 = vrcp.f32 (!%p5006_p4), %v4302_v10  ;;  %v4281_v10 = vld [vmem:[#allocation5 + $0x90] sm:$0xff] (!%p5006_p4) }
 0xbaf   : > { %v4230_v27 = vadd.f32 %v5307_v18, %v4109_v40  ;;  %v4189_v50 = vpop.f32.mrb[25].mxu0  ;;  %4327 = vperm.xlu0 (!%p5006_p4), %5614, %v5623_v7   ;;  %v5629_v46 = vpop.eup (!%p5006_p4), %5628  ;;  %5648 = vrcp.f32 (!%p5006_p4), %v4449_v21  ;;  %v4450_v40 = vld [vmem:[#allocation4 + $0x90] sm:$0xff] (!%p5006_p4)  ;;  %v4276_v7 = vld [vmem:[#allocation5 + $0x40] sm:$0xff] (!%p5006_p4) }
 0xbb0   : > { %v4228_v8 = vadd.f32 %v4189_v50, %v4107_v4  ;;  %v5308_v63 = vpop.f32.mrb[26].mxu0  ;;  %v5631_v44 = vpop.eup (!%p5006_p4), %5630  ;;  %5650 = vrcp.f32 (!%p5006_p4), %v4448_v16  ;;  %v4453_v4 = vld [vmem:[#allocation4 + $0xa8] sm:$0xff] (!%p5006_p4)  ;;  %v4455_v50 = vld [vmem:[#allocation4 + $0xb8] sm:$0xff] (!%p5006_p4) }
 0xbb1   : > { %4246 = vst [vmem:[#allocation5 + $0xa8] sm:$0xff] %v4230_v27  ;;  %v4231_v17 = vadd.f32 %v5308_v63, %v4110_v30  ;;  %v4192_v60 = vpop.f32.mrb[27].mxu0  ;;  %v5633_v43 = vpop.eup (!%p5006_p4), %5632  ;;  %5652 = vrcp.f32 (!%p5006_p4), %v4451_v61  ;;  %v4452_v30 = vld [vmem:[#allocation4 + $0xa0] sm:$0xff] (!%p5006_p4)  ;;  %v4283_v61 = vld [vmem:[#allocation5 + $0xb0] sm:$0xff] (!%p5006_p4) }
 0xbb2   : > { %4244 = vst [vmem:[#allocation5 + $0x88] sm:$0xff] %v4228_v8  ;;  %v4229_v14 = vadd.f32 %v4192_v60, %v4108_v0  ;;  %4347 = vperm.xlu1 (!%p5006_p4), %5615, %v5625_v38   ;;  %v5635_v56 = vpop.eup (!%p5006_p4), %5634  ;;  %5654 = vrcp.f32 (!%p5006_p4), %v4450_v40  ;;  %v4454_v8 = vld [vmem:[#allocation4 + $0xb0] sm:$0xff] (!%p5006_p4) }
 0xbb3   : > { %4247 = vst [vmem:[#allocation5 + $0xb8] sm:$0xff] %v4231_v17  ;;  %4342 = vperm.xlu0 (!%p5006_p4), %5614, %v5627_v15   ;;  %v5637_v11 = vpop.eup (!%p5006_p4), %5636  ;;  %5656 = vrcp.f32 (!%p5006_p4), %v4453_v4  ;;  %v4457_v17 = vld [vmem:[#allocation4 + $0xc8] sm:$0xff] (!%p5006_p4) }
 0xbb4   : > { %4245 = vst [vmem:[#allocation5 + $0x98] sm:$0xff] %v4229_v14  ;;  %v5639_v35 = vpop.eup (!%p5006_p4), %5638  ;;  %5658 = vrcp.f32 (!%p5006_p4), %v4452_v30  ;;  %v4459_v14 = vld [vmem:[#allocation4 + $0xd8] sm:$0xff] (!%p5006_p4)  ;;  %v4285_v30 = vld [vmem:[#allocation5 + $0xd0] sm:$0xff] (!%p5006_p4) }
 0xbb5   : > { %v5641_v24 = vpop.eup (!%p5006_p4), %5640  ;;  %5660 = vrcp.f32 (!%p5006_p4), %v4455_v50 }
 0xbb6   : > { %v5311_v55 = vpop.f32.mrb[28].mxu0  ;;  %4271 = sbr.rel (%p5006_p4) target bundleno = 3178 (0xc6a), region = 141  ;;  %4357 = vperm.xlu1 (!%p5006_p4), %5615, %v5629_v46   ;;  %v5643_v26 = vpop.eup (!%p5006_p4), %5642  ;;  %5662 = vrcp.f32 (!%p5006_p4), %v4454_v8  ;;  %v4278_v46 = vld [vmem:[#allocation5 + $0x60] sm:$0xff] (!%p5006_p4) }
 0xbb7   : > { %v4234_v33 = vadd.f32 %v5311_v55, %v4113_v51  ;;  %v4205_v37 = vpop.f32.mrb[29].mxu0  ;;  %4352 = vperm.xlu0 (!%p5006_p4), %5614, %v5631_v44   ;;  %v5645_v18 = vpop.eup (!%p5006_p4), %5644  ;;  %5664 = vrcp.f32 (!%p5006_p4), %v4457_v17  ;;  %v4287_v17 = vld [vmem:[#allocation5 + $0xf0] sm:$0xff] (!%p5006_p4) }
 0xbb8   : > { %v4232_v57 = vadd.f32 %v4205_v37, %v4111_v20  ;;  %v5312_v31 = vpop.f32.mrb[30].mxu0  ;;  %v5647_v27 = vpop.eup (!%p5006_p4), %5646  ;;  %5666 = vrcp.f32 (!%p5006_p4), %v4456_v2  ;;  %v4460_v20 = vld [vmem:[#allocation4 + $0xe0] sm:$0xff] (!%p5006_p4)  ;;  %v4462_v37 = vld [vmem:[#allocation4 + $0xf0] sm:$0xff] (!%p5006_p4) }
 0xbb9   : > { %4250 = vst [vmem:[#allocation5 + $0xe8] sm:$0xff] %v4234_v33  ;;  %v4235_v62 = vadd.f32 %v5312_v31, %v4114_v29  ;;  %v4208_v32 = vpop.f32.mrb[31].mxu0  ;;  %v5649_v0 = vpop.eup (!%p5006_p4), %5648  ;;  %5668 = vrcp.f32 (!%p5006_p4), %v4459_v14  ;;  %v4463_v29 = vld [vmem:[#allocation4 + $0xf8] sm:$0xff] (!%p5006_p4) }
 0xbba   : > { %4248 = vst [vmem:[#allocation5 + $0xc8] sm:$0xff] %v4232_v57  ;;  %v4233_v25 = vadd.f32 %v4208_v32, %v4112_v41  ;;  %4367 = vperm.xlu1 (!%p5006_p4), %5615, %v5633_v43   ;;  %v5651_v63 = vpop.eup (!%p5006_p4), %5650  ;;  %5670 = vrcp.f32 (!%p5006_p4), %v4458_v9  ;;  %v4433_v9 = vld [vmem:[#allocation5 + $0x18] sm:$0xff] (!%p5006_p4) }
 0xbbb   : > { %4251 = vst [vmem:[#allocation5 + $0xf8] sm:$0xff] %v4235_v62  ;;  %4362 = vperm.xlu0 (!%p5006_p4), %5614, %v5635_v56   ;;  %v5653_v60 = vpop.eup (!%p5006_p4), %5652  ;;  %5672 = vrcp.f32 (!%p5006_p4), %v4461_v36  ;;  %v4280_v56 = vld [vmem:[#allocation5 + $0x80] sm:$0xff] (!%p5006_p4) }
 0xbbc   : > { %4249 = vst [vmem:[#allocation5 + $0xd8] sm:$0xff] %v4233_v25  ;;  %v5655_v13 = vpop.eup (!%p5006_p4), %5654  ;;  %5674 = vrcp.f32 (!%p5006_p4), %v4460_v20 }
 0xbbd   : > { %v5657_v45 = vpop.eup %5656  ;;  %5676 = vrcp.f32 %v4463_v29  ;;  %v4435_v29 = vld [vmem:[#allocation5 + $0x38] sm:$0xff] }
 0xbbe   : > { %4377 = vperm.xlu1 %5615, %v5637_v11   ;;  %v5659_v42 = vpop.eup %5658  ;;  %5678 = vrcp.f32 %v4462_v37 }
 0xbbf   : > { %4372 = vperm.xlu0 %5614, %v5639_v35   ;;  %v5661_v51 = vpop.eup %5660 }
 0xbc0   : > { %v5663_v55 = vpop.eup %5662 }
 0xbc1   : > { %v5665_v33 = vpop.eup %5664 }
 0xbc2   : > { %4387 = vperm.xlu1 %5615, %v5641_v24   ;;  %v5667_v41 = vpop.eup %5666  ;;  %v4282_v24 = vld [vmem:[#allocation5 + $0xa0] sm:$0xff] }
 0xbc3   : > { %4382 = vperm.xlu0 %5614, %v5643_v26   ;;  %v5669_v57 = vpop.eup %5668 }
 0xbc4   : > { %v5671_v31 = vpop.eup %5670 }
 0xbc5   : > { %v5673_v62 = vpop.eup %5672 }
 0xbc6   : > { %4397 = vperm.xlu1 %5615, %v5645_v18   ;;  %v5675_v32 = vpop.eup %5674 }
 0xbc7   : > { %4392 = vperm.xlu0 %5614, %v5647_v27   ;;  %v5677_v25 = vpop.eup %5676  ;;  %v4284_v27 = vld [vmem:[#allocation5 + $0xc0] sm:$0xff] }
 0xbc8   : > { %v5679_v5 = vpop.eup %5678 }
 0xbca   : > { %4487 = vperm.xlu1 %5615, %v5649_v0  }
 0xbcb   : > { %4482 = vperm.xlu0 %5614, %v5651_v63  }
 0xbce   : > { %4497 = vperm.xlu1 %5615, %v5653_v60   ;;  %v4286_v60 = vld [vmem:[#allocation5 + $0xe0] sm:$0xff] }
 0xbcf   : > { %4492 = vperm.xlu0 %5614, %v5655_v13  }
 0xbd2   : > { %4507 = vperm.xlu1 %5615, %v5657_v45  }
 0xbd3   : > { %4502 = vperm.xlu0 %5614, %v5659_v42   ;;  %v4432_v42 = vld [vmem:[#allocation5 + $0x8] sm:$0xff] }
 0xbd6   : > { %4517 = vperm.xlu1 %5615, %v5661_v51  }
 0xbd7   : > { %4512 = vperm.xlu0 %5614, %v5663_v55  }
 0xbda   : > { %4527 = vperm.xlu1 %5615, %v5665_v33   ;;  %v4434_v33 = vld [vmem:[#allocation5 + $0x28] sm:$0xff] }
 0xbdb   : > { %4522 = vperm.xlu0 %5614, %v5667_v41  }
 0xbde   : > { %4537 = vperm.xlu1 %5615, %v5669_v57  }
 0xbdf   : > { %4532 = vperm.xlu0 %5614, %v5671_v31  }
 0xbe2   : > { %4547 = vperm.xlu1 %5615, %v5673_v62   ;;  %v4437_v62 = vld [vmem:[#allocation5 + $0x58] sm:$0xff] }
 0xbe3   : > { %4542 = vperm.xlu0 %5614, %v5675_v32   ;;  %v4436_v32 = vld [vmem:[#allocation5 + $0x48] sm:$0xff] }
 0xbe6   : > { %4557 = vperm.xlu1 %5615, %v5677_v25  }
 0xbe7   : > { %4552 = vperm.xlu0 %5614, %v5679_v5  }
 0xc29   : > { %v4333_v6 = vpop.permute.xlu1 %4332 }
 0xc2a   : > { %v4402_v48 = vmul.f32 %v4333_v6, %v4274_v19  ;;  %v4323_v59 = vpop.permute.xlu0 %4322  ;;  %v4439_v6 = vld [vmem:[#allocation5 + $0x78] sm:$0xff] }
 0xc2b   : > { %v4400_v52 = vmul.f32 %v4323_v59, %v4272_v49 }
 0xc2c   : > { %4418 = vst [vmem:[#allocation5 + $0x20] sm:$0xff] %v4402_v48  ;;  %4628 = vst [vmem:[%s6195_s2 + $0x20] sm:$0xff] %v4402_v48  ;;  %v4438_v48 = vld [vmem:[#allocation5 + $0x68] sm:$0xff] }
 0xc2d   : > { %4416 = vst [vmem:[#allocation5] sm:$0xff] %v4400_v52  ;;  %4624 = vst [vmem:[%s6195_s2] sm:$0xff] %v4400_v52  ;;  %v4338_v47 = vpop.permute.xlu1 %4337 }
 0xc2e   : > { %v4403_v12 = vmul.f32 %v4338_v47, %v4275_v58  ;;  %v4328_v1 = vpop.permute.xlu0 %4327  ;;  %v4441_v47 = vld [vmem:[#allocation5 + $0x98] sm:$0xff] }
 0xc2f   : > { %v4401_v53 = vmul.f32 %v4328_v1, %v4273_v34 }
 0xc30   : > { %4419 = vst [vmem:[#allocation5 + $0x30] sm:$0xff] %v4403_v12  ;;  %4630 = vst [vmem:[%s6195_s2 + $0x30] sm:$0xff] %v4403_v12  ;;  %v4440_v12 = vld [vmem:[#allocation5 + $0x88] sm:$0xff] }
 0xc31   : > { %4417 = vst [vmem:[#allocation5 + $0x10] sm:$0xff] %v4401_v53  ;;  %4626 = vst [vmem:[%s6195_s2 + $0x10] sm:$0xff] %v4401_v53  ;;  %v4348_v39 = vpop.permute.xlu1 %4347 }
 0xc32   : > { %v4405_v38 = vmul.f32 %v4348_v39, %v4277_v28  ;;  %v4343_v23 = vpop.permute.xlu0 %4342  ;;  %v4443_v39 = vld [vmem:[#allocation5 + $0xb8] sm:$0xff] }
 0xc33   : > { %v4404_v15 = vmul.f32 %v4343_v23, %v4276_v7 }
 0xc34   : > { %4421 = vst [vmem:[#allocation5 + $0x50] sm:$0xff] %v4405_v38  ;;  %4634 = vst [vmem:[%s6195_s2 + $0x50] sm:$0xff] %v4405_v38  ;;  %v4442_v38 = vld [vmem:[#allocation5 + $0xa8] sm:$0xff] }
 0xc35   : > { %4420 = vst [vmem:[#allocation5 + $0x40] sm:$0xff] %v4404_v15  ;;  %4632 = vst [vmem:[%s6195_s2 + $0x40] sm:$0xff] %v4404_v15  ;;  %v4358_v54 = vpop.permute.xlu1 %4357 }
 0xc36   : > { %v4407_v44 = vmul.f32 %v4358_v54, %v4279_v3  ;;  %v4353_v22 = vpop.permute.xlu0 %4352  ;;  %v4445_v54 = vld [vmem:[#allocation5 + $0xd8] sm:$0xff] }
 0xc37   : > { %v4406_v43 = vmul.f32 %v4353_v22, %v4278_v46 }
 0xc38   : > { %4423 = vst [vmem:[#allocation5 + $0x70] sm:$0xff] %v4407_v44  ;;  %4638 = vst [vmem:[%s6195_s2 + $0x70] sm:$0xff] %v4407_v44  ;;  %v4444_v44 = vld [vmem:[#allocation5 + $0xc8] sm:$0xff] }
 0xc39   : > { %4422 = vst [vmem:[#allocation5 + $0x60] sm:$0xff] %v4406_v43  ;;  %4636 = vst [vmem:[%s6195_s2 + $0x60] sm:$0xff] %v4406_v43  ;;  %v4368_v21 = vpop.permute.xlu1 %4367 }
 0xc3a   : > { %v4409_v11 = vmul.f32 %v4368_v21, %v4281_v10  ;;  %v4363_v16 = vpop.permute.xlu0 %4362  ;;  %v4447_v21 = vld [vmem:[#allocation5 + $0xf8] sm:$0xff] }
 0xc3b   : > { %v4408_v35 = vmul.f32 %v4363_v16, %v4280_v56 }
 0xc3c   : > { %4425 = vst [vmem:[#allocation5 + $0x90] sm:$0xff] %v4409_v11  ;;  %4642 = vst [vmem:[%s6195_s2 + $0x90] sm:$0xff] %v4409_v11  ;;  %v4446_v11 = vld [vmem:[#allocation5 + $0xe8] sm:$0xff] }
 0xc3d   : > { %4424 = vst [vmem:[#allocation5 + $0x80] sm:$0xff] %v4408_v35  ;;  %4640 = vst [vmem:[%s6195_s2 + $0x80] sm:$0xff] %v4408_v35  ;;  %v4378_v40 = vpop.permute.xlu1 %4377 }
 0xc3e   : > { %v4411_v26 = vmul.f32 %v4378_v40, %v4283_v61  ;;  %v4373_v4 = vpop.permute.xlu0 %4372 }
 0xc3f   : > { %v4410_v18 = vmul.f32 %v4373_v4, %v4282_v24 }
 0xc40   : > { %4427 = vst [vmem:[#allocation5 + $0xb0] sm:$0xff] %v4411_v26  ;;  %4646 = vst [vmem:[%s6195_s2 + $0xb0] sm:$0xff] %v4411_v26 }
 0xc41   : > { %4426 = vst [vmem:[#allocation5 + $0xa0] sm:$0xff] %v4410_v18  ;;  %4644 = vst [vmem:[%s6195_s2 + $0xa0] sm:$0xff] %v4410_v18  ;;  %v4388_v50 = vpop.permute.xlu1 %4387 }
 0xc42   : > { %v4413_v0 = vmul.f32 %v4388_v50, %v4285_v30  ;;  %v4383_v8 = vpop.permute.xlu0 %4382 }
 0xc43   : > { %v4412_v63 = vmul.f32 %v4383_v8, %v4284_v27 }
 0xc44   : > { %4429 = vst [vmem:[#allocation5 + $0xd0] sm:$0xff] %v4413_v0  ;;  %4650 = vst [vmem:[%s6195_s2 + $0xd0] sm:$0xff] %v4413_v0 }
 0xc45   : > { %4428 = vst [vmem:[#allocation5 + $0xc0] sm:$0xff] %v4412_v63  ;;  %4648 = vst [vmem:[%s6195_s2 + $0xc0] sm:$0xff] %v4412_v63  ;;  %v4398_v2 = vpop.permute.xlu1 %4397 }
 0xc46   : > { %v4415_v13 = vmul.f32 %v4398_v2, %v4287_v17  ;;  %v4393_v14 = vpop.permute.xlu0 %4392 }
 0xc47   : > { %v4414_v45 = vmul.f32 %v4393_v14, %v4286_v60 }
 0xc48   : > { %4431 = vst [vmem:[#allocation5 + $0xf0] sm:$0xff] %v4415_v13  ;;  %4654 = vst [vmem:[%s6195_s2 + $0xf0] sm:$0xff] %v4415_v13 }
 0xc49   : > { %4430 = vst [vmem:[#allocation5 + $0xe0] sm:$0xff] %v4414_v45  ;;  %4652 = vst [vmem:[%s6195_s2 + $0xe0] sm:$0xff] %v4414_v45  ;;  %v4488_v36 = vpop.permute.xlu1 %4487 }
 0xc4a   : > { %v4561_v51 = vmul.f32 %v4488_v36, %v4433_v9  ;;  %v4483_v20 = vpop.permute.xlu0 %4482 }
 0xc4b   : > { %v4560_v55 = vmul.f32 %v4483_v20, %v4432_v42 }
 0xc4c   : > { %4577 = vst [vmem:[#allocation5 + $0x18] sm:$0xff] %v4561_v51  ;;  %4627 = vst [vmem:[%s6195_s2 + $0x18] sm:$0xff] %v4561_v51 }
 0xc4d   : > { %4576 = vst [vmem:[#allocation5 + $0x8] sm:$0xff] %v4560_v55  ;;  %4625 = vst [vmem:[%s6195_s2 + $0x8] sm:$0xff] %v4560_v55  ;;  %v4498_v37 = vpop.permute.xlu1 %4497 }
 0xc4e   : > { %v4563_v41 = vmul.f32 %v4498_v37, %v4435_v29  ;;  %v4493_v57 = vpop.permute.xlu0 %4492 }
 0xc4f   : > { %v4562_v31 = vmul.f32 %v4493_v57, %v4434_v33 }
 0xc50   : > { %4579 = vst [vmem:[#allocation5 + $0x38] sm:$0xff] %v4563_v41  ;;  %4631 = vst [vmem:[%s6195_s2 + $0x38] sm:$0xff] %v4563_v41 }
 0xc51   : > { %4578 = vst [vmem:[#allocation5 + $0x28] sm:$0xff] %v4562_v31  ;;  %4629 = vst [vmem:[%s6195_s2 + $0x28] sm:$0xff] %v4562_v31  ;;  %v4508_v25 = vpop.permute.xlu1 %4507 }
 0xc52   : > { %v4565_v5 = vmul.f32 %v4508_v25, %v4437_v62  ;;  %v4503_v19 = vpop.permute.xlu0 %4502 }
 0xc53   : > { %v4564_v49 = vmul.f32 %v4503_v19, %v4436_v32 }
 0xc54   : > { %4581 = vst [vmem:[#allocation5 + $0x58] sm:$0xff] %v4565_v5  ;;  %4635 = vst [vmem:[%s6195_s2 + $0x58] sm:$0xff] %v4565_v5 }
 0xc55   : > { %4580 = vst [vmem:[#allocation5 + $0x48] sm:$0xff] %v4564_v49  ;;  %4633 = vst [vmem:[%s6195_s2 + $0x48] sm:$0xff] %v4564_v49  ;;  %v4518_v59 = vpop.permute.xlu1 %4517 }
 0xc56   : > { %v4567_v52 = vmul.f32 %v4518_v59, %v4439_v6  ;;  %v4513_v58 = vpop.permute.xlu0 %4512 }
 0xc57   : > { %v4566_v34 = vmul.f32 %v4513_v58, %v4438_v48 }
 0xc58   : > { %4583 = vst [vmem:[#allocation5 + $0x78] sm:$0xff] %v4567_v52  ;;  %4639 = vst [vmem:[%s6195_s2 + $0x78] sm:$0xff] %v4567_v52 }
 0xc59   : > { %4582 = vst [vmem:[#allocation5 + $0x68] sm:$0xff] %v4566_v34  ;;  %4637 = vst [vmem:[%s6195_s2 + $0x68] sm:$0xff] %v4566_v34  ;;  %v4528_v1 = vpop.permute.xlu1 %4527 }
 0xc5a   : > { %v4569_v53 = vmul.f32 %v4528_v1, %v4441_v47  ;;  %v4523_v28 = vpop.permute.xlu0 %4522 }
 0xc5b   : > { %v4568_v7 = vmul.f32 %v4523_v28, %v4440_v12 }
 0xc5c   : > { %4585 = vst [vmem:[#allocation5 + $0x98] sm:$0xff] %v4569_v53  ;;  %4643 = vst [vmem:[%s6195_s2 + $0x98] sm:$0xff] %v4569_v53 }
 0xc5d   : > { %4584 = vst [vmem:[#allocation5 + $0x88] sm:$0xff] %v4568_v7  ;;  %4641 = vst [vmem:[%s6195_s2 + $0x88] sm:$0xff] %v4568_v7  ;;  %v4538_v23 = vpop.permute.xlu1 %4537 }
 0xc5e   : > { %v4571_v15 = vmul.f32 %v4538_v23, %v4443_v39  ;;  %v4533_v3 = vpop.permute.xlu0 %4532 }
 0xc5f   : > { %v4570_v46 = vmul.f32 %v4533_v3, %v4442_v38 }
 0xc60   : > { %4587 = vst [vmem:[#allocation5 + $0xb8] sm:$0xff] %v4571_v15  ;;  %4647 = vst [vmem:[%s6195_s2 + $0xb8] sm:$0xff] %v4571_v15 }
 0xc61   : > { %4586 = vst [vmem:[#allocation5 + $0xa8] sm:$0xff] %v4570_v46  ;;  %4645 = vst [vmem:[%s6195_s2 + $0xa8] sm:$0xff] %v4570_v46  ;;  %v4548_v22 = vpop.permute.xlu1 %4547 }
 0xc62   : > { %v4573_v43 = vmul.f32 %v4548_v22, %v4445_v54  ;;  %v4543_v10 = vpop.permute.xlu0 %4542 }
 0xc63   : > { %v4572_v56 = vmul.f32 %v4543_v10, %v4444_v44 }
 0xc64   : > { %4589 = vst [vmem:[#allocation5 + $0xd8] sm:$0xff] %v4573_v43  ;;  %4651 = vst [vmem:[%s6195_s2 + $0xd8] sm:$0xff] %v4573_v43 }
 0xc65   : > { %4588 = vst [vmem:[#allocation5 + $0xc8] sm:$0xff] %v4572_v56  ;;  %4649 = vst [vmem:[%s6195_s2 + $0xc8] sm:$0xff] %v4572_v56  ;;  %v4558_v16 = vpop.permute.xlu1 %4557 }
 0xc66   : > { %v4575_v35 = vmul.f32 %v4558_v16, %v4447_v21  ;;  %v4553_v61 = vpop.permute.xlu0 %4552 }
 0xc67   : > { %v4574_v24 = vmul.f32 %v4553_v61, %v4446_v11 }
 0xc68   : > { %4591 = vst [vmem:[#allocation5 + $0xf8] sm:$0xff] %v4575_v35  ;;  %4655 = vst [vmem:[%s6195_s2 + $0xf8] sm:$0xff] %v4575_v35 }
 0xc69   : > { %4590 = vst [vmem:[#allocation5 + $0xe8] sm:$0xff] %v4574_v24  ;;  %4653 = vst [vmem:[%s6195_s2 + $0xe8] sm:$0xff] %v4574_v24 }
 0xc6a PF: > { %s21_s27 = sadd.s32 1, %s5766_s27   ;;  %s8980_s19 = sld [smem:[#allocation9_spill]] }
 0xc6b   : > { %p18_p5 = scmp.ge.s32.totalorder %s21_s27, 10   ;;  %s8981_s20 = sld [smem:[#allocation16_spill]] }
 0xc6c   : > { %s8982_s21 = sld [smem:[#allocation10_spill]]  ;;  %s8983_s22 = sld [smem:[#allocation11_spill]] }
 0xc6d   : > { %s8984_s23 = sld [smem:[#allocation12_spill]]  ;;  %s8985_s24 = sld [smem:[#allocation13_spill]] }
 0xc6e   : > { %s8986_s25 = sld [smem:[#allocation14_spill]]  ;;  %s8987_s26 = sld [smem:[#allocation15_spill]] }
 0xc6f   : > { %s8988_s17 = smov %s5730_s18  ;;  %s8989_s18 = smov %s5925_s6 }
 0xc70   :  { %20 = sbr.rel (!%p18_p5) target bundleno = 19 (0x13), region = 214 }

</bundles_post_ra>
